<compile_context>
chip_gen: v5e
topology: v5e:2x2
jax: 0.10.0
libtpu: 0.0.40
codegen_flags: <defaults>
</compile_context>

<pallas_src>
import functools

import jax
import jax.numpy as jnp
from jax.experimental import pallas as pl
from jax.experimental.pallas import tpu as pltpu


# ---------------------------------------------------------------------------
# small helpers
# ---------------------------------------------------------------------------
def _round_up(x: int, m: int) -> int:
    return ((x + m - 1) // m) * m


def _pick_tile(dim: int, pref: int) -> int:
    """Largest multiple of 128 that divides `dim` (itself a multiple of 128)
    and is <= max(pref, 128)."""
    t = max(128, min(dim, (pref // 128) * 128))
    t = (t // 128) * 128
    while dim % t:
        t -= 128
    return t


def _pad2(a, rows: int, cols: int):
    r, c = a.shape
    return jnp.pad(a, ((0, rows - r), (0, cols - c)))


# ---------------------------------------------------------------------------
# plain-JAX glue: blended, normalized adjacency built directly in bf16
#   A_blend = coef * D^-1/2 (A + I) D^-1/2  +  (1-coef) * I
# Per-edge weights are computed in f32 and rounded once at scatter time, so no
# f32 NxN transient exists (review item).  Note: edges are symmetrized and
# deduped here (consistent with the in-file reference; PyG's gcn_norm does
# neither, so directed / multi-edge inputs may differ from the PyTorch model).
# ---------------------------------------------------------------------------
def build_blend_adj(edge_index, n_nodes: int, n_pad: int, coef: float,
                    dtype=jnp.bfloat16):
    src = edge_index[0].astype(jnp.int32)
    dst = edge_index[1].astype(jnp.int32)
    diag = jnp.arange(n_nodes, dtype=jnp.int32)

    # binary structure (symmetrized, deduped, self loops) -- 2-byte transient
    a = jnp.zeros((n_pad, n_pad), dtype)
    a = a.at[src, dst].set(1.0)
    a = a.at[dst, src].set(1.0)
    a = a.at[diag, diag].set(1.0)

    deg = jnp.sum(a, axis=1, dtype=jnp.float32)                 # f32 accumulate
    d = jnp.where(deg > 0.0, jax.lax.rsqrt(deg), 0.0)           # isolated-node guard

    w_edge = (coef * d[src] * d[dst]).astype(dtype)             # f32 math, 1 rounding
    w_diag = (coef * d[diag] * d[diag] + (1.0 - coef)).astype(dtype)

    a = a.at[src, dst].set(w_edge)
    a = a.at[dst, src].set(w_edge)
    a = a.at[diag, diag].set(w_diag)
    return a


def gcn_norm_dense(edge_index, num_nodes: int):
    """f32 reference normalization (for the correctness check only)."""
    src, dst = edge_index[0], edge_index[1]
    a = jnp.zeros((num_nodes, num_nodes), jnp.float32)
    a = a.at[src, dst].set(1.0)
    a = a.at[dst, src].set(1.0)
    diag = jnp.arange(num_nodes)
    a = a.at[diag, diag].set(1.0)
    deg = a.sum(axis=1)
    d_inv_sqrt = jnp.where(deg > 0.0, jax.lax.rsqrt(deg), 0.0)
    return d_inv_sqrt[:, None] * a * d_inv_sqrt[None, :]


# ---------------------------------------------------------------------------
# compacted nonzero-block column lists (DMA-level sparsity metadata)
# ---------------------------------------------------------------------------
def _compact_nonzero_blocks(a, tm: int, tk: int):
    """Returns (cols int32[ni*nk] flattened, counts int32[ni]).

    cols[i*nk + kk] is the kk-th nonzero k-block column index of row block i;
    for kk >= counts[i] the last valid index is repeated so the BlockSpec block
    index does not change between grid steps and Pallas skips the DMA."""
    m, k = a.shape
    ni, nk = m // tm, k // tk
    nz = jnp.any((a != 0).reshape(ni, tm, nk, tk), axis=(1, 3))       # (ni, nk)
    counts = jnp.sum(nz, axis=1).astype(jnp.int32)
    order = jnp.argsort((~nz).astype(jnp.int32), axis=1).astype(jnp.int32)  # stable
    pos = jnp.minimum(jnp.arange(nk, dtype=jnp.int32)[None, :],
                      jnp.maximum(counts - 1, 0)[:, None])
    cols = jnp.take_along_axis(order, pos, axis=1)
    return cols.reshape(-1), counts                                    # 1D -> no SMEM 2D padding


# ---------------------------------------------------------------------------
# fused GCN layer kernel:  out = A_blend @ (X @ W) + b   [+ ReLU]
# ---------------------------------------------------------------------------
def _gcn_layer_kernel(cols_ref, cnt_ref, a_ref, x_ref, w_ref, b_ref, o_ref,
                      acc_ref, *, apply_relu):
    i = pl.program_id(0)
    kk = pl.program_id(2)

    @pl.when(kk == 0)
    def _():
        acc_ref[...] = jnp.zeros_like(acc_ref)

    @pl.when(kk < cnt_ref[i])                    # skip work on zero / repeated A tiles
    def _():
        # XW recomputed per (row-block, k-block); tiny vs. the A contraction
        # (ratio ~ n_feat / tm) and keeps the intermediate out of HBM.
        xw = jnp.dot(x_ref[...], w_ref[...], preferred_element_type=jnp.float32)
        acc_ref[...] += jnp.dot(a_ref[...], xw.astype(a_ref.dtype),
                                preferred_element_type=jnp.float32)

    @pl.when(kk == pl.num_programs(2) - 1)
    def _():
        out = acc_ref[...] + b_ref[...]          # bias broadcast over rows (f32)
        if apply_relu:
            out = jnp.maximum(out, 0.0)
        o_ref[...] = out.astype(o_ref.dtype)


def pallas_gcn_layer(a, x, w, b, cols, counts, *, apply_relu, tm, tk,
                     out_dtype=jnp.bfloat16):
    n_pad, _ = a.shape
    _, f_in = x.shape
    _, f_out = w.shape
    tn = _pick_tile(f_out, 256)
    nk = n_pad // tk
    grid = (n_pad // tm, f_out // tn, nk)

    # index_maps receive (grid idx..., *scalar-prefetch refs) positionally.
    a_idx = lambda i, j, kk, cols, cnt: (i, cols[i * nk + kk])
    x_idx = lambda i, j, kk, cols, cnt: (cols[i * nk + kk], 0)
    w_idx = lambda i, j, kk, cols, cnt: (0, j)
    b_idx = lambda i, j, kk, cols, cnt: (0, j)
    o_idx = lambda i, j, kk, cols, cnt: (i, j)

    flops = 2 * n_pad * n_pad * f_out + 2 * n_pad * f_in * f_out * (n_pad // tm)
    bytes_accessed = int(a.size * a.dtype.itemsize + x.size * x.dtype.itemsize
                         + w.size * w.dtype.itemsize + b.size * 4
                         + n_pad * f_out * jnp.dtype(out_dtype).itemsize)

    return pl.pallas_call(
        functools.partial(_gcn_layer_kernel, apply_relu=apply_relu),
        out_shape=jax.ShapeDtypeStruct((n_pad, f_out), out_dtype),
        grid_spec=pltpu.PrefetchScalarGridSpec(
            num_scalar_prefetch=2,
            grid=grid,
            in_specs=[pl.BlockSpec((tm, tk), a_idx),      # A_blend tile (bf16)
                      pl.BlockSpec((tk, f_in), x_idx),    # X rows for this k block
                      pl.BlockSpec((f_in, tn), w_idx),    # W: VMEM-resident
                      pl.BlockSpec((1, tn), b_idx)],      # bias (f32)
            out_specs=pl.BlockSpec((tm, tn), o_idx),
            scratch_shapes=[pltpu.VMEM((tm, tn), jnp.float32)],
        ),
        compiler_params=pltpu.CompilerParams(
            dimension_semantics=("parallel", "parallel", "arbitrary")),
        cost_estimate=pl.CostEstimate(flops=flops, transcendentals=0,
                                      bytes_accessed=bytes_accessed),
    )(cols, counts, a, x, w, b)


# ---------------------------------------------------------------------------
# DeepAE forward (Pallas) and pure-JAX reference
# ---------------------------------------------------------------------------
def deepae_forward_pallas(x, edge_index, enc_params, dec_params, *, gamma):
    n_nodes, n_input = x.shape
    n_hidden = enc_params[-1][0].shape[1]
    n_pad = _round_up(n_nodes, 512)          # big pad -> tiles >= 512 where possible

    # glue: bf16 blended adjacencies (SharpenGCN blend folded into A; encoder coef=1)
    a_enc = build_blend_adj(edge_index, n_nodes, n_pad, 1.0)
    a_dec = build_blend_adj(edge_index, n_nodes, n_pad, gamma)

    # tiles: tm capped at n_pad//2 so the parallel row axis keeps >= 2 blocks
    # (v7x 2-TC sharding); tk = 512 keeps ~85% of HBM roofline while giving the
    # compacted-column sparsity a finer skip granularity.  Double-buffered
    # footprint (A 2*tm*tk*2B + X/out/acc) stays << the v7x 64 MiB VMEM.
    tm = _pick_tile(n_pad, min(1024, max(128, n_pad // 2)))
    tk = _pick_tile(n_pad, 512)

    cols_enc, cnt_enc = _compact_nonzero_blocks(a_enc, tm, tk)
    cols_dec, cnt_dec = _compact_nonzero_blocks(a_dec, tm, tk)

    # pad activations / params to lane-dense multiples of 128
    x_p = _pad2(x, n_pad, _round_up(n_input, 128)).astype(jnp.bfloat16)

    def pad_params(params):
        out = []
        for w, b in params:
            fi, fo = w.shape
            w_p = _pad2(w, _round_up(fi, 128), _round_up(fo, 128)).astype(jnp.bfloat16)
            b_p = _pad2(b.reshape(1, -1), 1, _round_up(fo, 128)).astype(jnp.float32)
            out.append((w_p, b_p))
        return out

    enc_p, dec_p = pad_params(enc_params), pad_params(dec_params)

    def run_stack(h_p, params_p, a_p, cols, cnt):
        n_layers = len(params_p)
        for li, (w_p, b_p) in enumerate(params_p):
            apply_relu = li < n_layers - 1    # PyG BasicGNN: act between layers only
            h_p = pallas_gcn_layer(a_p, h_p, w_p, b_p, cols, cnt,
                                   apply_relu=apply_relu, tm=tm, tk=tk)
        return h_p

    h_p = run_stack(x_p, enc_p, a_enc, cols_enc, cnt_enc)
    xr_p = run_stack(h_p, dec_p, a_dec, cols_dec, cnt_dec)

    h = h_p[:n_nodes, :n_hidden].astype(jnp.float32)
    x_rec = xr_p[:n_nodes, :n_input].astype(jnp.float32)
    return h, x_rec


def reference_forward(x, edge_index, enc_params, dec_params, gamma):
    a_norm = gcn_norm_dense(edge_index, x.shape[0])

    def stack(h, params, coef):
        n_layers = len(params)
        for li, (w, b) in enumerate(params):
            xw = h @ w
            out = coef * (a_norm @ xw) + (1.0 - coef) * xw + b
            if li < n_layers - 1:
                out = jax.nn.relu(out)
            h = out
        return h

    h = stack(x, enc_params, 1.0)
    return h, stack(h, dec_params, gamma)


def init_gcn_params(key, dims):
    params = []
    for i in range(len(dims) - 1):
        key, kw, kb = jax.random.split(key, 3)
        fan_in, fan_out = dims[i], dims[i + 1]
        limit = (6.0 / (fan_in + fan_out)) ** 0.5      # glorot (GCNConv default)
        w = jax.random.uniform(kw, (fan_in, fan_out), jnp.float32, -limit, limit)
        b = 0.1 * jax.random.normal(kb, (fan_out,), jnp.float32)
        params.append((w, b))
    return key, params


# ---------------------------------------------------------------------------
# demo
# ---------------------------------------------------------------------------
if __name__ == "__main__":
    n_layers, n_input, n_hidden, gamma = 2, 32, 16, 0.5
    n_nodes = 1000           # pads to 1024 -> grid (2, 1, 2) with 512-tiles
    split = 512              # two communities aligned to the k-tile boundary so
                             # A is block-diagonal and the DMA-skip path is hit

    key = jax.random.PRNGKey(0)
    key, kx, kc, ko = jax.random.split(key, 4)
    x = jax.random.normal(kx, (n_nodes, n_input), jnp.float32)

    # chain + short random chords inside each community (no cross-community
    # edges) -> two off-diagonal A blocks are exactly zero and never DMA'd.
    chain_src = jnp.concatenate([jnp.arange(0, split - 1, dtype=jnp.int32),
                                 jnp.arange(split, n_nodes - 1, dtype=jnp.int32)])
    chain = jnp.stack([chain_src, chain_src + 1])
    n_chords = 2000
    c_src = jax.random.randint(kc, (n_chords,), 0, n_nodes, dtype=jnp.int32)
    c_off = jax.random.randint(ko, (n_chords,), 1, 40, dtype=jnp.int32)
    comm_hi = jnp.where(c_src < split, split, n_nodes)
    c_dst = jnp.minimum(c_src + c_off, comm_hi - 1)
    chords = jnp.stack([c_src, c_dst])
    edge_index = jnp.concatenate([chain, chords], axis=1)

    enc_dims = [n_input] + [n_hidden] * n_layers              # in -> hid -> hid
    dec_dims = [n_hidden] * n_layers + [n_input]              # hid -> hid -> in
    key, enc_params = init_gcn_params(key, enc_dims)
    key, dec_params = init_gcn_params(key, dec_dims)

    fwd = jax.jit(functools.partial(deepae_forward_pallas, gamma=gamma))
    h, x_rec = jax.block_until_ready(fwd(x, edge_index, enc_params, dec_params))

    # light correctness check vs. a plain-JAX f32 reference (the kernels feed
    # the MXU bf16 operands, so use a loose tolerance).
    h_ref, x_ref = reference_forward(x, edge_index, enc_params, dec_params, gamma)
    scale = float(jnp.maximum(jnp.max(jnp.abs(h_ref)), jnp.max(jnp.abs(x_ref)))) + 1e-6
    err = float(jnp.maximum(jnp.max(jnp.abs(h - h_ref)),
                            jnp.max(jnp.abs(x_rec - x_ref))))
    assert err / scale < 0.06, f"mismatch: max abs err {err}, scale {scale}"

    print("KERNEL_OK")
</pallas_src>

<mosaic_0001>
module attributes {stable_mosaic.version = 11 : i64} {
  func.func @_gcn_layer_kernel(%arg0: i32, %arg1: i32, %arg2: i32, %arg3: memref<4xi32, #tpu.memory_space<smem>>, %arg4: memref<2xi32, #tpu.memory_space<smem>>, %arg5: memref<512x512xbf16, #tpu.memory_space<vmem>>, %arg6: memref<512x128xbf16, #tpu.memory_space<vmem>>, %arg7: memref<128x128xbf16, #tpu.memory_space<vmem>>, %arg8: memref<1x128xf32, #tpu.memory_space<vmem>>, %arg9: memref<512x128xbf16, #tpu.memory_space<vmem>>, %arg10: memref<512x128xf32, #tpu.memory_space<vmem>>) attributes {dimension_semantics = [#tpu.dimension_semantics<parallel>, #tpu.dimension_semantics<parallel>, #tpu.dimension_semantics<arbitrary>], iteration_bounds = array<i64: 2, 1, 2>, scalar_prefetch = 2 : i64, scratch_operands = 1 : i64, tpu.core_type = #tpu.core_type<tc>, window_params = [{transform_indices = @transform_0, window_bounds = array<i64: 512, 512>}, {transform_indices = @transform_1, window_bounds = array<i64: 512, 128>}, {transform_indices = @transform_2, window_bounds = array<i64: 128, 128>}, {transform_indices = @transform_3, window_bounds = array<i64: 1, 128>}, {transform_indices = @transform_4, window_bounds = array<i64: 512, 128>}]} {
    %c0_i32 = arith.constant 0 : i32
    %0 = arith.cmpi eq, %arg2, %c0_i32 : i32
    %1 = arith.extui %0 : i1 to i32
    %c0_i32_0 = arith.constant 0 : i32
    %2 = arith.cmpi ne, %1, %c0_i32_0 : i32
    scf.if %2 {
      %cst = arith.constant 0.000000e+00 : f32
      %11 = vector.broadcast %cst : f32 to vector<512x128xf32>
      %c0 = arith.constant 0 : index
      %c0_3 = arith.constant 0 : index
      %12 = vector.load %arg10[%c0, %c0_3] : memref<512x128xf32, #tpu.memory_space<vmem>>, vector<512x128xf32>
      tpu.vector_store %arg10[%c0, %c0_3], %11 {strides = array<i32>} : memref<512x128xf32, #tpu.memory_space<vmem>>, vector<512x128xf32>,
    } else {
    }
    %3 = arith.index_cast %arg0 : i32 to index
    %4 = memref.load %arg4[%3] : memref<2xi32, #tpu.memory_space<smem>>
    %5 = arith.cmpi slt, %arg2, %4 : i32
    %6 = arith.extui %5 : i1 to i32
    %c0_i32_1 = arith.constant 0 : i32
    %7 = arith.cmpi ne, %6, %c0_i32_1 : i32
    scf.if %7 {
      %c0 = arith.constant 0 : index
      %c0_3 = arith.constant 0 : index
      %11 = vector.load %arg6[%c0, %c0_3] : memref<512x128xbf16, #tpu.memory_space<vmem>>, vector<512x128xbf16>
      %c0_4 = arith.constant 0 : index
      %c0_5 = arith.constant 0 : index
      %12 = vector.load %arg7[%c0_4, %c0_5] : memref<128x128xbf16, #tpu.memory_space<vmem>>, vector<128x128xbf16>
      %cst = arith.constant dense<0.000000e+00> : vector<512x128xf32>
      %13 = tpu.matmul %11, %12, %cst {dimension_numbers = #tpu.dot_dimension_numbers<[1], [0], [0], [1], [0, 0, 1, 1], [], []>} : vector<512x128xbf16>, vector<128x128xbf16>, vector<512x128xf32> -> vector<512x128xf32>
      %c0_6 = arith.constant 0 : index
      %c0_7 = arith.constant 0 : index
      %14 = vector.load %arg10[%c0_6, %c0_7] : memref<512x128xf32, #tpu.memory_space<vmem>>, vector<512x128xf32>
      %c0_8 = arith.constant 0 : index
      %c0_9 = arith.constant 0 : index
      %15 = vector.load %arg5[%c0_8, %c0_9] : memref<512x512xbf16, #tpu.memory_space<vmem>>, vector<512x512xbf16>
      %16 = arith.truncf %13 : vector<512x128xf32> to vector<512x128xbf16>
      %cst_10 = arith.constant dense<0.000000e+00> : vector<512x128xf32>
      %17 = tpu.matmul %15, %16, %cst_10 {dimension_numbers = #tpu.dot_dimension_numbers<[1], [0], [0], [1], [0, 0, 1, 1], [], []>} : vector<512x512xbf16>, vector<512x128xbf16>, vector<512x128xf32> -> vector<512x128xf32>
      %18 = arith.addf %14, %17 : vector<512x128xf32>
      %c0_11 = arith.constant 0 : index
      %c0_12 = arith.constant 0 : index
      %19 = vector.load %arg10[%c0_11, %c0_12] : memref<512x128xf32, #tpu.memory_space<vmem>>, vector<512x128xf32>
      tpu.vector_store %arg10[%c0_11, %c0_12], %18 {strides = array<i32>} : memref<512x128xf32, #tpu.memory_space<vmem>>, vector<512x128xf32>,
    } else {
    }
    %c1_i32 = arith.constant 1 : i32
    %8 = arith.cmpi eq, %arg2, %c1_i32 : i32
    %9 = arith.extui %8 : i1 to i32
    %c0_i32_2 = arith.constant 0 : i32
    %10 = arith.cmpi ne, %9, %c0_i32_2 : i32
    scf.if %10 {
      %c0 = arith.constant 0 : index
      %c0_3 = arith.constant 0 : index
      %11 = vector.load %arg10[%c0, %c0_3] : memref<512x128xf32, #tpu.memory_space<vmem>>, vector<512x128xf32>
      %c0_4 = arith.constant 0 : index
      %c0_5 = arith.constant 0 : index
      %12 = vector.load %arg8[%c0_4, %c0_5] : memref<1x128xf32, #tpu.memory_space<vmem>>, vector<1x128xf32>
      %13 = vector.broadcast %12 : vector<1x128xf32> to vector<512x128xf32>
      %14 = arith.addf %11, %13 : vector<512x128xf32>
      %cst = arith.constant 0.000000e+00 : f32
      %15 = vector.broadcast %cst : f32 to vector<512x128xf32>
      %16 = arith.maximumf %14, %15 : vector<512x128xf32>
      %17 = arith.truncf %16 : vector<512x128xf32> to vector<512x128xbf16>
      %c0_6 = arith.constant 0 : index
      %c0_7 = arith.constant 0 : index
      %18 = vector.load %arg9[%c0_6, %c0_7] : memref<512x128xbf16, #tpu.memory_space<vmem>>, vector<512x128xbf16>
      tpu.vector_store %arg9[%c0_6, %c0_7], %17 {strides = array<i32>} : memref<512x128xbf16, #tpu.memory_space<vmem>>, vector<512x128xbf16>,
    } else {
    }
    return
  }
  func.func @transform_0(%arg0: i32, %arg1: i32, %arg2: i32, %arg3: memref<4xi32, #tpu.memory_space<smem>>, %arg4: memref<2xi32, #tpu.memory_space<smem>>) -> (i32, i32) {
    %c2_i32 = arith.constant 2 : i32
    %0 = arith.muli %arg0, %c2_i32 : i32
    %1 = arith.addi %0, %arg2 : i32
    %2 = arith.index_cast %1 : i32 to index
    %3 = memref.load %arg3[%2] : memref<4xi32, #tpu.memory_space<smem>>
    %c0_i32 = arith.constant 0 : i32
    return %arg0, %3 : i32, i32
  }
  func.func @transform_1(%arg0: i32, %arg1: i32, %arg2: i32, %arg3: memref<4xi32, #tpu.memory_space<smem>>, %arg4: memref<2xi32, #tpu.memory_space<smem>>) -> (i32, i32) {
    %c2_i32 = arith.constant 2 : i32
    %0 = arith.muli %arg0, %c2_i32 : i32
    %1 = arith.addi %0, %arg2 : i32
    %2 = arith.index_cast %1 : i32 to index
    %3 = memref.load %arg3[%2] : memref<4xi32, #tpu.memory_space<smem>>
    %c0_i32 = arith.constant 0 : i32
    %c0_i32_0 = arith.constant 0 : i32
    return %3, %c0_i32 : i32, i32
  }
  func.func @transform_2(%arg0: i32, %arg1: i32, %arg2: i32, %arg3: memref<4xi32, #tpu.memory_space<smem>>, %arg4: memref<2xi32, #tpu.memory_space<smem>>) -> (i32, i32) {
    %c0_i32 = arith.constant 0 : i32
    %c0_i32_0 = arith.constant 0 : i32
    return %c0_i32, %arg1 : i32, i32
  }
  func.func @transform_3(%arg0: i32, %arg1: i32, %arg2: i32, %arg3: memref<4xi32, #tpu.memory_space<smem>>, %arg4: memref<2xi32, #tpu.memory_space<smem>>) -> (i32, i32) {
    %c0_i32 = arith.constant 0 : i32
    %c0_i32_0 = arith.constant 0 : i32
    return %c0_i32, %arg1 : i32, i32
  }
  func.func @transform_4(%arg0: i32, %arg1: i32, %arg2: i32, %arg3: memref<4xi32, #tpu.memory_space<smem>>, %arg4: memref<2xi32, #tpu.memory_space<smem>>) -> (i32, i32) {
    %c0_i32 = arith.constant 0 : i32
    return %arg0, %arg1 : i32, i32
  }
}

module attributes {stable_mosaic.version = 11 : i64} {
  func.func @_gcn_layer_kernel(%arg0: i32, %arg1: i32, %arg2: i32, %arg3: memref<4xi32, #tpu.memory_space<smem>>, %arg4: memref<2xi32, #tpu.memory_space<smem>>, %arg5: memref<512x512xbf16, #tpu.memory_space<vmem>>, %arg6: memref<512x128xbf16, #tpu.memory_space<vmem>>, %arg7: memref<128x128xbf16, #tpu.memory_space<vmem>>, %arg8: memref<1x128xf32, #tpu.memory_space<vmem>>, %arg9: memref<512x128xbf16, #tpu.memory_space<vmem>>, %arg10: memref<512x128xf32, #tpu.memory_space<vmem>>) attributes {dimension_semantics = [#tpu.dimension_semantics<parallel>, #tpu.dimension_semantics<parallel>, #tpu.dimension_semantics<arbitrary>], iteration_bounds = array<i64: 2, 1, 2>, scalar_prefetch = 2 : i64, scratch_operands = 1 : i64, tpu.core_type = #tpu.core_type<tc>, window_params = [{transform_indices = @transform_0, window_bounds = array<i64: 512, 512>}, {transform_indices = @transform_1, window_bounds = array<i64: 512, 128>}, {transform_indices = @transform_2, window_bounds = array<i64: 128, 128>}, {transform_indices = @transform_3, window_bounds = array<i64: 1, 128>}, {transform_indices = @transform_4, window_bounds = array<i64: 512, 128>}]} {
    %c0_i32 = arith.constant 0 : i32
    %0 = arith.cmpi eq, %arg2, %c0_i32 : i32
    %1 = arith.extui %0 : i1 to i32
    %c0_i32_0 = arith.constant 0 : i32
    %2 = arith.cmpi ne, %1, %c0_i32_0 : i32
    scf.if %2 {
      %cst = arith.constant 0.000000e+00 : f32
      %11 = vector.broadcast %cst : f32 to vector<512x128xf32>
      %c0 = arith.constant 0 : index
      %c0_3 = arith.constant 0 : index
      %12 = vector.load %arg10[%c0, %c0_3] : memref<512x128xf32, #tpu.memory_space<vmem>>, vector<512x128xf32>
      tpu.vector_store %arg10[%c0, %c0_3], %11 {strides = array<i32>} : memref<512x128xf32, #tpu.memory_space<vmem>>, vector<512x128xf32>,
    } else {
    }
    %3 = arith.index_cast %arg0 : i32 to index
    %4 = memref.load %arg4[%3] : memref<2xi32, #tpu.memory_space<smem>>
    %5 = arith.cmpi slt, %arg2, %4 : i32
    %6 = arith.extui %5 : i1 to i32
    %c0_i32_1 = arith.constant 0 : i32
    %7 = arith.cmpi ne, %6, %c0_i32_1 : i32
    scf.if %7 {
      %c0 = arith.constant 0 : index
      %c0_3 = arith.constant 0 : index
      %11 = vector.load %arg6[%c0, %c0_3] : memref<512x128xbf16, #tpu.memory_space<vmem>>, vector<512x128xbf16>
      %c0_4 = arith.constant 0 : index
      %c0_5 = arith.constant 0 : index
      %12 = vector.load %arg7[%c0_4, %c0_5] : memref<128x128xbf16, #tpu.memory_space<vmem>>, vector<128x128xbf16>
      %cst = arith.constant dense<0.000000e+00> : vector<512x128xf32>
      %13 = tpu.matmul %11, %12, %cst {dimension_numbers = #tpu.dot_dimension_numbers<[1], [0], [0], [1], [0, 0, 1, 1], [], []>} : vector<512x128xbf16>, vector<128x128xbf16>, vector<512x128xf32> -> vector<512x128xf32>
      %c0_6 = arith.constant 0 : index
      %c0_7 = arith.constant 0 : index
      %14 = vector.load %arg10[%c0_6, %c0_7] : memref<512x128xf32, #tpu.memory_space<vmem>>, vector<512x128xf32>
      %c0_8 = arith.constant 0 : index
      %c0_9 = arith.constant 0 : index
      %15 = vector.load %arg5[%c0_8, %c0_9] : memref<512x512xbf16, #tpu.memory_space<vmem>>, vector<512x512xbf16>
      %16 = arith.truncf %13 : vector<512x128xf32> to vector<512x128xbf16>
      %cst_10 = arith.constant dense<0.000000e+00> : vector<512x128xf32>
      %17 = tpu.matmul %15, %16, %cst_10 {dimension_numbers = #tpu.dot_dimension_numbers<[1], [0], [0], [1], [0, 0, 1, 1], [], []>} : vector<512x512xbf16>, vector<512x128xbf16>, vector<512x128xf32> -> vector<512x128xf32>
      %18 = arith.addf %14, %17 : vector<512x128xf32>
      %c0_11 = arith.constant 0 : index
      %c0_12 = arith.constant 0 : index
      %19 = vector.load %arg10[%c0_11, %c0_12] : memref<512x128xf32, #tpu.memory_space<vmem>>, vector<512x128xf32>
      tpu.vector_store %arg10[%c0_11, %c0_12], %18 {strides = array<i32>} : memref<512x128xf32, #tpu.memory_space<vmem>>, vector<512x128xf32>,
    } else {
    }
    %c1_i32 = arith.constant 1 : i32
    %8 = arith.cmpi eq, %arg2, %c1_i32 : i32
    %9 = arith.extui %8 : i1 to i32
    %c0_i32_2 = arith.constant 0 : i32
    %10 = arith.cmpi ne, %9, %c0_i32_2 : i32
    scf.if %10 {
      %c0 = arith.constant 0 : index
      %c0_3 = arith.constant 0 : index
      %11 = vector.load %arg10[%c0, %c0_3] : memref<512x128xf32, #tpu.memory_space<vmem>>, vector<512x128xf32>
      %c0_4 = arith.constant 0 : index
      %c0_5 = arith.constant 0 : index
      %12 = vector.load %arg8[%c0_4, %c0_5] : memref<1x128xf32, #tpu.memory_space<vmem>>, vector<1x128xf32>
      %13 = vector.broadcast %12 : vector<1x128xf32> to vector<512x128xf32>
      %14 = arith.addf %11, %13 : vector<512x128xf32>
      %15 = arith.truncf %14 : vector<512x128xf32> to vector<512x128xbf16>
      %c0_6 = arith.constant 0 : index
      %c0_7 = arith.constant 0 : index
      %16 = vector.load %arg9[%c0_6, %c0_7] : memref<512x128xbf16, #tpu.memory_space<vmem>>, vector<512x128xbf16>
      tpu.vector_store %arg9[%c0_6, %c0_7], %15 {strides = array<i32>} : memref<512x128xbf16, #tpu.memory_space<vmem>>, vector<512x128xbf16>,
    } else {
    }
    return
  }
  func.func @transform_0(%arg0: i32, %arg1: i32, %arg2: i32, %arg3: memref<4xi32, #tpu.memory_space<smem>>, %arg4: memref<2xi32, #tpu.memory_space<smem>>) -> (i32, i32) {
    %c2_i32 = arith.constant 2 : i32
    %0 = arith.muli %arg0, %c2_i32 : i32
    %1 = arith.addi %0, %arg2 : i32
    %2 = arith.index_cast %1 : i32 to index
    %3 = memref.load %arg3[%2] : memref<4xi32, #tpu.memory_space<smem>>
    %c0_i32 = arith.constant 0 : i32
    return %arg0, %3 : i32, i32
  }
  func.func @transform_1(%arg0: i32, %arg1: i32, %arg2: i32, %arg3: memref<4xi32, #tpu.memory_space<smem>>, %arg4: memref<2xi32, #tpu.memory_space<smem>>) -> (i32, i32) {
    %c2_i32 = arith.constant 2 : i32
    %0 = arith.muli %arg0, %c2_i32 : i32
    %1 = arith.addi %0, %arg2 : i32
    %2 = arith.index_cast %1 : i32 to index
    %3 = memref.load %arg3[%2] : memref<4xi32, #tpu.memory_space<smem>>
    %c0_i32 = arith.constant 0 : i32
    %c0_i32_0 = arith.constant 0 : i32
    return %3, %c0_i32 : i32, i32
  }
  func.func @transform_2(%arg0: i32, %arg1: i32, %arg2: i32, %arg3: memref<4xi32, #tpu.memory_space<smem>>, %arg4: memref<2xi32, #tpu.memory_space<smem>>) -> (i32, i32) {
    %c0_i32 = arith.constant 0 : i32
    %c0_i32_0 = arith.constant 0 : i32
    return %c0_i32, %arg1 : i32, i32
  }
  func.func @transform_3(%arg0: i32, %arg1: i32, %arg2: i32, %arg3: memref<4xi32, #tpu.memory_space<smem>>, %arg4: memref<2xi32, #tpu.memory_space<smem>>) -> (i32, i32) {
    %c0_i32 = arith.constant 0 : i32
    %c0_i32_0 = arith.constant 0 : i32
    return %c0_i32, %arg1 : i32, i32
  }
  func.func @transform_4(%arg0: i32, %arg1: i32, %arg2: i32, %arg3: memref<4xi32, #tpu.memory_space<smem>>, %arg4: memref<2xi32, #tpu.memory_space<smem>>) -> (i32, i32) {
    %c0_i32 = arith.constant 0 : i32
    return %arg0, %arg1 : i32, i32
  }
}

</mosaic_0001>

<bundles_post_ra>
// kernel: deepae_forward_pallas.4
= control target key start
LH: loop header
LB: loop body
LE: loop exit
PB: predicated region body
PF: predicated region fallthrough
CT: control target
= control target key end

     0   :  { %s4521_s27 = smov [#allocation4]   ;;  %s4522_s28 = smov [#allocation5]   ;;  %s5508_s0 = inlined_call_operand.vmem [shape: s32[4], index: 0, kind: input, shape index: {}]   ;;  %s5509_s2 = inlined_call_operand.vmem [shape: bf16[1024,1024], index: 2, kind: input, shape index: {}]   ;;  %s5510_s3 = inlined_call_operand.vmem [shape: bf16[1024,128], index: 3, kind: input, shape index: {}]   ;;  %s5511_s4 = inlined_call_operand.vmem [shape: bf16[128,128], index: 4, kind: input, shape index: {}]   ;;  %s5512_s5 = inlined_call_operand.vmem [shape: f32[1,128], index: 5, kind: input, shape index: {}]   ;;  %s5513_s6 = inlined_call_operand.vmem [shape: bf16[1024,128], index: 6, kind: output, shape index: {}]   ;;  %s5514_s1 = inlined_call_operand.vmem [shape: s32[2], index: 1, kind: input, shape index: {}]  }
   0x1   :  { %s12_s23 = sshll.u32 %s5508_s0, 4  ;;  %s17_s26 = sshll.u32 %s5514_s1, 4  ;;  %s13_s23 = int_to_ptr.vmem [resolvable:$true] %s12_s23  ;;  %s18_s26 = int_to_ptr.vmem [resolvable:$true] %s17_s26 }
   0x2   :  { %15 = dma.vmem_to_smem %s13_s23, 16, %s4521_s27, [#allocation3] }
   0x3   :  { %20 = dma.vmem_to_smem %s18_s26, 16, %s4522_s28, [#allocation3] }
   0x4   :  { %4491 = dma.done.wait [#allocation3], 32 }
   0x5   :  { %4492 = vsyncadd [#allocation3], 4294967264 }
   0x6   :  { %23 = sfence }
   0x7   :  { %s4565_s29 = smov 0   ;;  %s4567_s30 = smov 0  }
   0x8   :  { %s4569_s7 = smov 0   ;;  %s4571_s0 = smov 0  }
   0x9   :  { %s4573_s8 = smov 0   ;;  %s4575_s1 = smov 0  }
   0xa   :  { %s4577_s9 = smov 0  }
   0xb LB: > { %s41_s10 = sadd.s32 1, %s4511_s8  ;;  %s48_s11 = sadd.s32 1, %s4515_s1  ;;  %s4519_s9 = sphi %s4577_s9, %s29_s9   ;;  %s4515_s1 = sphi %s4575_s1, %s5540_s1   ;;  %s4511_s8 = sphi %s4573_s8, %s5539_s8   ;;  %s4507_s0 = sphi %s4571_s0, %s5538_s0   ;;  %s4503_s7 = sphi %s4569_s7, %s5537_s7   ;;  %s4499_s30 = sphi %s4567_s30, %s5536_s30   ;;  %s4495_s29 = sphi %s4565_s29, %s5535_s29  }
   0xc   : > { %p42_p0 = scmp.ge.s32.totalorder %s41_s10, 2  ;;  %s3297_s12 = sshll.u32 %s4515_s1, 1 }
   0xd   : > { %s53_s13 = sadd.s32 %s4511_s8, %s3297_s12  ;;  %p70_p1 = scmp.ne.s32.totalorder %s4499_s30, %s4495_s29 }
   0xe   : > { %s5542_s11 = smov (!%p42_p0, %s48_s11), %s4515_s1  ;;  %p71_p3 = scmp.eq.s32.totalorder %s4519_s9, 0 }
   0xf   : > { %p50_p2 = scmp.ge.s32.totalorder %s5542_s11, 2  ;;  %s5544_s10 = smov (%p42_p0, %s41_s10), 0 }
  0x10   : > { %p72_p4 = por %p71_p3, %p70_p1  ;;  %s54_s14 = sld [smem:[#allocation4 + %s53_s13]] }
  0x11   : > { %s5546_s11 = smov (%p50_p2, %s5542_s11), 0  ;;  %s63_s21 = sadd.s32 1, %s4499_s30 }
  0x12   : > { %s3298_s15 = sshll.u32 %s5546_s11, 1  ;;  %s58_s18 = ssub.s32 %s4515_s1, %s5546_s11 }
  0x13   : > { %s56_s16 = sadd.s32 %s3298_s15, %s5544_s10  ;;  %p3304_p6 = scmp.ge.s32.totalorder %s4519_s9, 4 }
  0x14   : > { %s57_s17 = sld [smem:[#allocation4 + %s56_s16]] }
  0x1a   : > { %s59_s19 = ssub.s32 %s54_s14, %s57_s17  ;;  %221 = sbr.rel (%p3304_p6) target bundleno = 170 (0xaa), region = 24 }
  0x1b   : > { %s60_s20 = sor.u32 %s59_s19, %s58_s18 }
  0x1c   : > { %p61_p5 = scmp.eq.s32.totalorder %s60_s20, 0 }
  0x1e   : > { %s4618_s22 = scalar_select %p61_p5, %s4499_s30, %s63_s21  }
  0x1f   : > { %224 = sbr.rel (!%p72_p4) target bundleno = 170 (0xaa), region = 28  ;;  %s231_s23 = sld [smem:[#allocation4 + %s53_s13]] (%p72_p4) }
  0x20   : > { %s226_s24 = sand.u32 (%p72_p4), 1, %s4499_s30   ;;  %s3995_s25 = sshll.u32 (%p72_p4), %s4515_s1, 9 }
  0x21   : > { %s3305_s26 = sshll.u32 (%p72_p4), %s226_s24, 10 }
  0x22   : > { %s4631_s13 = scalar_lea.vmem (%p72_p4), [#allocation6], %s3305_s26 }
  0x25   : > { %s3308_s27 = sshll.u32 %s231_s23, 2 }
  0x26   : > { %s235_s28 = sadd.s32 %s3995_s25, %s3308_s27 }
  0x27   : > { %s3310_s12 = sshll.u32 %s235_s28, 2 }
  0x28   : > { %s4626_s16 = scalar_lea.vmem %s5509_s2, %s3310_s12 }
  0x29   : > { %v250_v0 = vld [vmem:[%s4626_s16] sm:$0xff]  ;;  %v252_v1 = vld [vmem:[%s4626_s16 + $0x8] sm:$0xff] }
  0x2a   : > { %v254_v2 = vld [vmem:[%s4626_s16 + $0x20] sm:$0xff]  ;;  %251 = vst [vmem:[%s4631_s13] sm:$0xff] %v250_v0  ;;  %v256_v3 = vld [vmem:[%s4626_s16 + $0x28] sm:$0xff] }
  0x2b   : > { %253 = vst [vmem:[%s4631_s13 + $0x8] sm:$0xff] %v252_v1  ;;  %v258_v4 = vld [vmem:[%s4626_s16 + $0x40] sm:$0xff]  ;;  %v260_v5 = vld [vmem:[%s4626_s16 + $0x48] sm:$0xff] }
  0x2c   : > { %255 = vst [vmem:[%s4631_s13 + $0x10] sm:$0xff] %v254_v2  ;;  %v262_v6 = vld [vmem:[%s4626_s16 + $0x60] sm:$0xff]  ;;  %v264_v7 = vld [vmem:[%s4626_s16 + $0x68] sm:$0xff] }
  0x2d   : > { %257 = vst [vmem:[%s4631_s13 + $0x18] sm:$0xff] %v256_v3  ;;  %v266_v8 = vld [vmem:[%s4626_s16 + $0x80] sm:$0xff]  ;;  %v268_v9 = vld [vmem:[%s4626_s16 + $0x88] sm:$0xff] }
  0x2e   : > { %259 = vst [vmem:[%s4631_s13 + $0x20] sm:$0xff] %v258_v4  ;;  %v270_v10 = vld [vmem:[%s4626_s16 + $0xa0] sm:$0xff]  ;;  %v272_v11 = vld [vmem:[%s4626_s16 + $0xa8] sm:$0xff] }
  0x2f   : > { %261 = vst [vmem:[%s4631_s13 + $0x28] sm:$0xff] %v260_v5  ;;  %v274_v12 = vld [vmem:[%s4626_s16 + $0xc0] sm:$0xff]  ;;  %v276_v13 = vld [vmem:[%s4626_s16 + $0xc8] sm:$0xff] }
  0x30   : > { %263 = vst [vmem:[%s4631_s13 + $0x30] sm:$0xff] %v262_v6  ;;  %v278_v14 = vld [vmem:[%s4626_s16 + $0xe0] sm:$0xff]  ;;  %v280_v15 = vld [vmem:[%s4626_s16 + $0xe8] sm:$0xff] }
  0x31   : > { %265 = vst [vmem:[%s4631_s13 + $0x38] sm:$0xff] %v264_v7  ;;  %v282_v16 = vld [vmem:[%s4626_s16 + $0x100] sm:$0xff]  ;;  %v284_v17 = vld [vmem:[%s4626_s16 + $0x108] sm:$0xff] }
  0x32   : > { %267 = vst [vmem:[%s4631_s13 + $0x40] sm:$0xff] %v266_v8  ;;  %v286_v18 = vld [vmem:[%s4626_s16 + $0x120] sm:$0xff]  ;;  %v288_v19 = vld [vmem:[%s4626_s16 + $0x128] sm:$0xff] }
  0x33   : > { %269 = vst [vmem:[%s4631_s13 + $0x48] sm:$0xff] %v268_v9  ;;  %v290_v20 = vld [vmem:[%s4626_s16 + $0x140] sm:$0xff]  ;;  %v292_v21 = vld [vmem:[%s4626_s16 + $0x148] sm:$0xff] }
  0x34   : > { %271 = vst [vmem:[%s4631_s13 + $0x50] sm:$0xff] %v270_v10  ;;  %v294_v22 = vld [vmem:[%s4626_s16 + $0x160] sm:$0xff]  ;;  %v296_v23 = vld [vmem:[%s4626_s16 + $0x168] sm:$0xff] }
  0x35   : > { %273 = vst [vmem:[%s4631_s13 + $0x58] sm:$0xff] %v272_v11  ;;  %v298_v24 = vld [vmem:[%s4626_s16 + $0x180] sm:$0xff]  ;;  %v300_v25 = vld [vmem:[%s4626_s16 + $0x188] sm:$0xff] }
  0x36   : > { %275 = vst [vmem:[%s4631_s13 + $0x60] sm:$0xff] %v274_v12  ;;  %v302_v26 = vld [vmem:[%s4626_s16 + $0x1a0] sm:$0xff]  ;;  %v304_v27 = vld [vmem:[%s4626_s16 + $0x1a8] sm:$0xff] }
  0x37   : > { %277 = vst [vmem:[%s4631_s13 + $0x68] sm:$0xff] %v276_v13  ;;  %v306_v28 = vld [vmem:[%s4626_s16 + $0x1c0] sm:$0xff]  ;;  %v308_v29 = vld [vmem:[%s4626_s16 + $0x1c8] sm:$0xff] }
  0x38   : > { %279 = vst [vmem:[%s4631_s13 + $0x70] sm:$0xff] %v278_v14  ;;  %v310_v30 = vld [vmem:[%s4626_s16 + $0x1e0] sm:$0xff]  ;;  %v312_v31 = vld [vmem:[%s4626_s16 + $0x1e8] sm:$0xff] }
  0x39   : > { %281 = vst [vmem:[%s4631_s13 + $0x78] sm:$0xff] %v280_v15  ;;  %v314_v32 = vld [vmem:[%s4626_s16 + $0x200] sm:$0xff]  ;;  %v316_v33 = vld [vmem:[%s4626_s16 + $0x208] sm:$0xff] }
  0x3a   : > { %283 = vst [vmem:[%s4631_s13 + $0x80] sm:$0xff] %v282_v16  ;;  %v318_v34 = vld [vmem:[%s4626_s16 + $0x220] sm:$0xff]  ;;  %v320_v35 = vld [vmem:[%s4626_s16 + $0x228] sm:$0xff] }
  0x3b   : > { %285 = vst [vmem:[%s4631_s13 + $0x88] sm:$0xff] %v284_v17  ;;  %v322_v36 = vld [vmem:[%s4626_s16 + $0x240] sm:$0xff]  ;;  %v324_v37 = vld [vmem:[%s4626_s16 + $0x248] sm:$0xff] }
  0x3c   : > { %287 = vst [vmem:[%s4631_s13 + $0x90] sm:$0xff] %v286_v18  ;;  %v326_v38 = vld [vmem:[%s4626_s16 + $0x260] sm:$0xff]  ;;  %v328_v39 = vld [vmem:[%s4626_s16 + $0x268] sm:$0xff] }
  0x3d   : > { %289 = vst [vmem:[%s4631_s13 + $0x98] sm:$0xff] %v288_v19  ;;  %v330_v40 = vld [vmem:[%s4626_s16 + $0x280] sm:$0xff]  ;;  %v332_v41 = vld [vmem:[%s4626_s16 + $0x288] sm:$0xff] }
  0x3e   : > { %291 = vst [vmem:[%s4631_s13 + $0xa0] sm:$0xff] %v290_v20  ;;  %v334_v42 = vld [vmem:[%s4626_s16 + $0x2a0] sm:$0xff]  ;;  %v336_v43 = vld [vmem:[%s4626_s16 + $0x2a8] sm:$0xff] }
  0x3f   : > { %293 = vst [vmem:[%s4631_s13 + $0xa8] sm:$0xff] %v292_v21  ;;  %v338_v44 = vld [vmem:[%s4626_s16 + $0x2c0] sm:$0xff]  ;;  %v340_v45 = vld [vmem:[%s4626_s16 + $0x2c8] sm:$0xff] }
  0x40   : > { %295 = vst [vmem:[%s4631_s13 + $0xb0] sm:$0xff] %v294_v22  ;;  %v342_v46 = vld [vmem:[%s4626_s16 + $0x2e0] sm:$0xff]  ;;  %v344_v47 = vld [vmem:[%s4626_s16 + $0x2e8] sm:$0xff] }
  0x41   : > { %297 = vst [vmem:[%s4631_s13 + $0xb8] sm:$0xff] %v296_v23  ;;  %v346_v48 = vld [vmem:[%s4626_s16 + $0x300] sm:$0xff]  ;;  %v348_v49 = vld [vmem:[%s4626_s16 + $0x308] sm:$0xff] }
  0x42   : > { %299 = vst [vmem:[%s4631_s13 + $0xc0] sm:$0xff] %v298_v24  ;;  %v350_v50 = vld [vmem:[%s4626_s16 + $0x320] sm:$0xff]  ;;  %v352_v51 = vld [vmem:[%s4626_s16 + $0x328] sm:$0xff] }
  0x43   : > { %301 = vst [vmem:[%s4631_s13 + $0xc8] sm:$0xff] %v300_v25  ;;  %v354_v52 = vld [vmem:[%s4626_s16 + $0x340] sm:$0xff]  ;;  %v356_v53 = vld [vmem:[%s4626_s16 + $0x348] sm:$0xff] }
  0x44   : > { %303 = vst [vmem:[%s4631_s13 + $0xd0] sm:$0xff] %v302_v26  ;;  %v358_v54 = vld [vmem:[%s4626_s16 + $0x360] sm:$0xff]  ;;  %v360_v55 = vld [vmem:[%s4626_s16 + $0x368] sm:$0xff] }
  0x45   : > { %305 = vst [vmem:[%s4631_s13 + $0xd8] sm:$0xff] %v304_v27  ;;  %v362_v56 = vld [vmem:[%s4626_s16 + $0x380] sm:$0xff]  ;;  %v364_v57 = vld [vmem:[%s4626_s16 + $0x388] sm:$0xff] }
  0x46   : > { %307 = vst [vmem:[%s4631_s13 + $0xe0] sm:$0xff] %v306_v28  ;;  %v366_v58 = vld [vmem:[%s4626_s16 + $0x3a0] sm:$0xff]  ;;  %v368_v59 = vld [vmem:[%s4626_s16 + $0x3a8] sm:$0xff] }
  0x47   : > { %309 = vst [vmem:[%s4631_s13 + $0xe8] sm:$0xff] %v308_v29  ;;  %v370_v60 = vld [vmem:[%s4626_s16 + $0x3c0] sm:$0xff]  ;;  %v372_v61 = vld [vmem:[%s4626_s16 + $0x3c8] sm:$0xff] }
  0x48   : > { %311 = vst [vmem:[%s4631_s13 + $0xf0] sm:$0xff] %v310_v30  ;;  %v374_v62 = vld [vmem:[%s4626_s16 + $0x3e0] sm:$0xff]  ;;  %v376_v63 = vld [vmem:[%s4626_s16 + $0x3e8] sm:$0xff] }
  0x49   : > { %313 = vst [vmem:[%s4631_s13 + $0xf8] sm:$0xff] %v312_v31  ;;  %v378_v0 = vld [vmem:[%s4626_s16 + $0x400] sm:$0xff]  ;;  %v380_v1 = vld [vmem:[%s4626_s16 + $0x408] sm:$0xff] }
  0x4a   : > { %315 = vst [vmem:[%s4631_s13 + $0x100] sm:$0xff] %v314_v32  ;;  %v382_v2 = vld [vmem:[%s4626_s16 + $0x420] sm:$0xff]  ;;  %v384_v3 = vld [vmem:[%s4626_s16 + $0x428] sm:$0xff] }
  0x4b   : > { %317 = vst [vmem:[%s4631_s13 + $0x108] sm:$0xff] %v316_v33  ;;  %v386_v4 = vld [vmem:[%s4626_s16 + $0x440] sm:$0xff]  ;;  %v388_v5 = vld [vmem:[%s4626_s16 + $0x448] sm:$0xff] }
  0x4c   : > { %319 = vst [vmem:[%s4631_s13 + $0x110] sm:$0xff] %v318_v34  ;;  %v390_v6 = vld [vmem:[%s4626_s16 + $0x460] sm:$0xff]  ;;  %v392_v7 = vld [vmem:[%s4626_s16 + $0x468] sm:$0xff] }
  0x4d   : > { %321 = vst [vmem:[%s4631_s13 + $0x118] sm:$0xff] %v320_v35  ;;  %v394_v8 = vld [vmem:[%s4626_s16 + $0x480] sm:$0xff]  ;;  %v396_v9 = vld [vmem:[%s4626_s16 + $0x488] sm:$0xff] }
  0x4e   : > { %323 = vst [vmem:[%s4631_s13 + $0x120] sm:$0xff] %v322_v36  ;;  %v398_v10 = vld [vmem:[%s4626_s16 + $0x4a0] sm:$0xff]  ;;  %v400_v11 = vld [vmem:[%s4626_s16 + $0x4a8] sm:$0xff] }
  0x4f   : > { %325 = vst [vmem:[%s4631_s13 + $0x128] sm:$0xff] %v324_v37  ;;  %v402_v12 = vld [vmem:[%s4626_s16 + $0x4c0] sm:$0xff]  ;;  %v404_v13 = vld [vmem:[%s4626_s16 + $0x4c8] sm:$0xff] }
  0x50   : > { %327 = vst [vmem:[%s4631_s13 + $0x130] sm:$0xff] %v326_v38  ;;  %v406_v14 = vld [vmem:[%s4626_s16 + $0x4e0] sm:$0xff]  ;;  %v408_v15 = vld [vmem:[%s4626_s16 + $0x4e8] sm:$0xff] }
  0x51   : > { %329 = vst [vmem:[%s4631_s13 + $0x138] sm:$0xff] %v328_v39  ;;  %v410_v16 = vld [vmem:[%s4626_s16 + $0x500] sm:$0xff]  ;;  %v412_v17 = vld [vmem:[%s4626_s16 + $0x508] sm:$0xff] }
  0x52   : > { %331 = vst [vmem:[%s4631_s13 + $0x140] sm:$0xff] %v330_v40  ;;  %v414_v18 = vld [vmem:[%s4626_s16 + $0x520] sm:$0xff]  ;;  %v416_v19 = vld [vmem:[%s4626_s16 + $0x528] sm:$0xff] }
  0x53   : > { %333 = vst [vmem:[%s4631_s13 + $0x148] sm:$0xff] %v332_v41  ;;  %v418_v20 = vld [vmem:[%s4626_s16 + $0x540] sm:$0xff]  ;;  %v420_v21 = vld [vmem:[%s4626_s16 + $0x548] sm:$0xff] }
  0x54   : > { %335 = vst [vmem:[%s4631_s13 + $0x150] sm:$0xff] %v334_v42  ;;  %v422_v22 = vld [vmem:[%s4626_s16 + $0x560] sm:$0xff]  ;;  %v424_v23 = vld [vmem:[%s4626_s16 + $0x568] sm:$0xff] }
  0x55   : > { %337 = vst [vmem:[%s4631_s13 + $0x158] sm:$0xff] %v336_v43  ;;  %v426_v24 = vld [vmem:[%s4626_s16 + $0x580] sm:$0xff]  ;;  %v428_v25 = vld [vmem:[%s4626_s16 + $0x588] sm:$0xff] }
  0x56   : > { %339 = vst [vmem:[%s4631_s13 + $0x160] sm:$0xff] %v338_v44  ;;  %v430_v26 = vld [vmem:[%s4626_s16 + $0x5a0] sm:$0xff]  ;;  %v432_v27 = vld [vmem:[%s4626_s16 + $0x5a8] sm:$0xff] }
  0x57   : > { %341 = vst [vmem:[%s4631_s13 + $0x168] sm:$0xff] %v340_v45  ;;  %v434_v28 = vld [vmem:[%s4626_s16 + $0x5c0] sm:$0xff]  ;;  %v436_v29 = vld [vmem:[%s4626_s16 + $0x5c8] sm:$0xff] }
  0x58   : > { %343 = vst [vmem:[%s4631_s13 + $0x170] sm:$0xff] %v342_v46  ;;  %v438_v30 = vld [vmem:[%s4626_s16 + $0x5e0] sm:$0xff]  ;;  %v440_v31 = vld [vmem:[%s4626_s16 + $0x5e8] sm:$0xff] }
  0x59   : > { %345 = vst [vmem:[%s4631_s13 + $0x178] sm:$0xff] %v344_v47  ;;  %v442_v32 = vld [vmem:[%s4626_s16 + $0x600] sm:$0xff]  ;;  %v444_v33 = vld [vmem:[%s4626_s16 + $0x608] sm:$0xff] }
  0x5a   : > { %347 = vst [vmem:[%s4631_s13 + $0x180] sm:$0xff] %v346_v48  ;;  %v446_v34 = vld [vmem:[%s4626_s16 + $0x620] sm:$0xff]  ;;  %v448_v35 = vld [vmem:[%s4626_s16 + $0x628] sm:$0xff] }
  0x5b   : > { %349 = vst [vmem:[%s4631_s13 + $0x188] sm:$0xff] %v348_v49  ;;  %v450_v36 = vld [vmem:[%s4626_s16 + $0x640] sm:$0xff]  ;;  %v452_v37 = vld [vmem:[%s4626_s16 + $0x648] sm:$0xff] }
  0x5c   : > { %351 = vst [vmem:[%s4631_s13 + $0x190] sm:$0xff] %v350_v50  ;;  %v454_v38 = vld [vmem:[%s4626_s16 + $0x660] sm:$0xff]  ;;  %v456_v39 = vld [vmem:[%s4626_s16 + $0x668] sm:$0xff] }
  0x5d   : > { %353 = vst [vmem:[%s4631_s13 + $0x198] sm:$0xff] %v352_v51  ;;  %v458_v40 = vld [vmem:[%s4626_s16 + $0x680] sm:$0xff]  ;;  %v460_v41 = vld [vmem:[%s4626_s16 + $0x688] sm:$0xff] }
  0x5e   : > { %355 = vst [vmem:[%s4631_s13 + $0x1a0] sm:$0xff] %v354_v52  ;;  %v462_v42 = vld [vmem:[%s4626_s16 + $0x6a0] sm:$0xff]  ;;  %v464_v43 = vld [vmem:[%s4626_s16 + $0x6a8] sm:$0xff] }
  0x5f   : > { %357 = vst [vmem:[%s4631_s13 + $0x1a8] sm:$0xff] %v356_v53  ;;  %v466_v44 = vld [vmem:[%s4626_s16 + $0x6c0] sm:$0xff]  ;;  %v468_v45 = vld [vmem:[%s4626_s16 + $0x6c8] sm:$0xff] }
  0x60   : > { %359 = vst [vmem:[%s4631_s13 + $0x1b0] sm:$0xff] %v358_v54  ;;  %v470_v46 = vld [vmem:[%s4626_s16 + $0x6e0] sm:$0xff]  ;;  %v472_v47 = vld [vmem:[%s4626_s16 + $0x6e8] sm:$0xff] }
  0x61   : > { %361 = vst [vmem:[%s4631_s13 + $0x1b8] sm:$0xff] %v360_v55  ;;  %v474_v48 = vld [vmem:[%s4626_s16 + $0x700] sm:$0xff]  ;;  %v476_v49 = vld [vmem:[%s4626_s16 + $0x708] sm:$0xff] }
  0x62   : > { %363 = vst [vmem:[%s4631_s13 + $0x1c0] sm:$0xff] %v362_v56  ;;  %v478_v50 = vld [vmem:[%s4626_s16 + $0x720] sm:$0xff]  ;;  %v480_v51 = vld [vmem:[%s4626_s16 + $0x728] sm:$0xff] }
  0x63   : > { %365 = vst [vmem:[%s4631_s13 + $0x1c8] sm:$0xff] %v364_v57  ;;  %v482_v52 = vld [vmem:[%s4626_s16 + $0x740] sm:$0xff]  ;;  %v484_v53 = vld [vmem:[%s4626_s16 + $0x748] sm:$0xff] }
  0x64   : > { %367 = vst [vmem:[%s4631_s13 + $0x1d0] sm:$0xff] %v366_v58  ;;  %v486_v54 = vld [vmem:[%s4626_s16 + $0x760] sm:$0xff]  ;;  %v488_v55 = vld [vmem:[%s4626_s16 + $0x768] sm:$0xff] }
  0x65   : > { %369 = vst [vmem:[%s4631_s13 + $0x1d8] sm:$0xff] %v368_v59  ;;  %v490_v56 = vld [vmem:[%s4626_s16 + $0x780] sm:$0xff]  ;;  %v492_v57 = vld [vmem:[%s4626_s16 + $0x788] sm:$0xff] }
  0x66   : > { %371 = vst [vmem:[%s4631_s13 + $0x1e0] sm:$0xff] %v370_v60  ;;  %v494_v58 = vld [vmem:[%s4626_s16 + $0x7a0] sm:$0xff]  ;;  %v496_v59 = vld [vmem:[%s4626_s16 + $0x7a8] sm:$0xff] }
  0x67   : > { %373 = vst [vmem:[%s4631_s13 + $0x1e8] sm:$0xff] %v372_v61  ;;  %v498_v60 = vld [vmem:[%s4626_s16 + $0x7c0] sm:$0xff]  ;;  %v500_v61 = vld [vmem:[%s4626_s16 + $0x7c8] sm:$0xff] }
  0x68   : > { %375 = vst [vmem:[%s4631_s13 + $0x1f0] sm:$0xff] %v374_v62  ;;  %v502_v62 = vld [vmem:[%s4626_s16 + $0x7e0] sm:$0xff] }
  0x69   : > { %377 = vst [vmem:[%s4631_s13 + $0x1f8] sm:$0xff] %v376_v63  ;;  %v504_v63 = vld [vmem:[%s4626_s16 + $0x7e8] sm:$0xff] }
  0x6a   : > { %379 = vst [vmem:[%s4631_s13 + $0x200] sm:$0xff] %v378_v0 }
  0x6b   : > { %381 = vst [vmem:[%s4631_s13 + $0x208] sm:$0xff] %v380_v1 }
  0x6c   : > { %383 = vst [vmem:[%s4631_s13 + $0x210] sm:$0xff] %v382_v2 }
  0x6d   : > { %385 = vst [vmem:[%s4631_s13 + $0x218] sm:$0xff] %v384_v3 }
  0x6e   : > { %387 = vst [vmem:[%s4631_s13 + $0x220] sm:$0xff] %v386_v4 }
  0x6f   : > { %389 = vst [vmem:[%s4631_s13 + $0x228] sm:$0xff] %v388_v5 }
  0x70   : > { %391 = vst [vmem:[%s4631_s13 + $0x230] sm:$0xff] %v390_v6 }
  0x71   : > { %393 = vst [vmem:[%s4631_s13 + $0x238] sm:$0xff] %v392_v7 }
  0x72   : > { %395 = vst [vmem:[%s4631_s13 + $0x240] sm:$0xff] %v394_v8 }
  0x73   : > { %397 = vst [vmem:[%s4631_s13 + $0x248] sm:$0xff] %v396_v9 }
  0x74   : > { %399 = vst [vmem:[%s4631_s13 + $0x250] sm:$0xff] %v398_v10 }
  0x75   : > { %401 = vst [vmem:[%s4631_s13 + $0x258] sm:$0xff] %v400_v11 }
  0x76   : > { %403 = vst [vmem:[%s4631_s13 + $0x260] sm:$0xff] %v402_v12 }
  0x77   : > { %405 = vst [vmem:[%s4631_s13 + $0x268] sm:$0xff] %v404_v13 }
  0x78   : > { %407 = vst [vmem:[%s4631_s13 + $0x270] sm:$0xff] %v406_v14 }
  0x79   : > { %409 = vst [vmem:[%s4631_s13 + $0x278] sm:$0xff] %v408_v15 }
  0x7a   : > { %411 = vst [vmem:[%s4631_s13 + $0x280] sm:$0xff] %v410_v16 }
  0x7b   : > { %413 = vst [vmem:[%s4631_s13 + $0x288] sm:$0xff] %v412_v17 }
  0x7c   : > { %415 = vst [vmem:[%s4631_s13 + $0x290] sm:$0xff] %v414_v18 }
  0x7d   : > { %417 = vst [vmem:[%s4631_s13 + $0x298] sm:$0xff] %v416_v19 }
  0x7e   : > { %419 = vst [vmem:[%s4631_s13 + $0x2a0] sm:$0xff] %v418_v20 }
  0x7f   : > { %421 = vst [vmem:[%s4631_s13 + $0x2a8] sm:$0xff] %v420_v21 }
  0x80   : > { %423 = vst [vmem:[%s4631_s13 + $0x2b0] sm:$0xff] %v422_v22 }
  0x81   : > { %425 = vst [vmem:[%s4631_s13 + $0x2b8] sm:$0xff] %v424_v23 }
  0x82   : > { %427 = vst [vmem:[%s4631_s13 + $0x2c0] sm:$0xff] %v426_v24 }
  0x83   : > { %429 = vst [vmem:[%s4631_s13 + $0x2c8] sm:$0xff] %v428_v25 }
  0x84   : > { %431 = vst [vmem:[%s4631_s13 + $0x2d0] sm:$0xff] %v430_v26 }
  0x85   : > { %433 = vst [vmem:[%s4631_s13 + $0x2d8] sm:$0xff] %v432_v27 }
  0x86   : > { %435 = vst [vmem:[%s4631_s13 + $0x2e0] sm:$0xff] %v434_v28 }
  0x87   : > { %437 = vst [vmem:[%s4631_s13 + $0x2e8] sm:$0xff] %v436_v29 }
  0x88   : > { %439 = vst [vmem:[%s4631_s13 + $0x2f0] sm:$0xff] %v438_v30 }
  0x89   : > { %441 = vst [vmem:[%s4631_s13 + $0x2f8] sm:$0xff] %v440_v31 }
  0x8a   : > { %443 = vst [vmem:[%s4631_s13 + $0x300] sm:$0xff] %v442_v32 }
  0x8b   : > { %445 = vst [vmem:[%s4631_s13 + $0x308] sm:$0xff] %v444_v33 }
  0x8c   : > { %447 = vst [vmem:[%s4631_s13 + $0x310] sm:$0xff] %v446_v34 }
  0x8d   : > { %449 = vst [vmem:[%s4631_s13 + $0x318] sm:$0xff] %v448_v35 }
  0x8e   : > { %451 = vst [vmem:[%s4631_s13 + $0x320] sm:$0xff] %v450_v36 }
  0x8f   : > { %453 = vst [vmem:[%s4631_s13 + $0x328] sm:$0xff] %v452_v37 }
  0x90   : > { %455 = vst [vmem:[%s4631_s13 + $0x330] sm:$0xff] %v454_v38 }
  0x91   : > { %457 = vst [vmem:[%s4631_s13 + $0x338] sm:$0xff] %v456_v39 }
  0x92   : > { %459 = vst [vmem:[%s4631_s13 + $0x340] sm:$0xff] %v458_v40 }
  0x93   : > { %461 = vst [vmem:[%s4631_s13 + $0x348] sm:$0xff] %v460_v41 }
  0x94   : > { %463 = vst [vmem:[%s4631_s13 + $0x350] sm:$0xff] %v462_v42 }
  0x95   : > { %465 = vst [vmem:[%s4631_s13 + $0x358] sm:$0xff] %v464_v43 }
  0x96   : > { %467 = vst [vmem:[%s4631_s13 + $0x360] sm:$0xff] %v466_v44 }
  0x97   : > { %469 = vst [vmem:[%s4631_s13 + $0x368] sm:$0xff] %v468_v45 }
  0x98   : > { %471 = vst [vmem:[%s4631_s13 + $0x370] sm:$0xff] %v470_v46 }
  0x99   : > { %473 = vst [vmem:[%s4631_s13 + $0x378] sm:$0xff] %v472_v47 }
  0x9a   : > { %475 = vst [vmem:[%s4631_s13 + $0x380] sm:$0xff] %v474_v48 }
  0x9b   : > { %477 = vst [vmem:[%s4631_s13 + $0x388] sm:$0xff] %v476_v49 }
  0x9c   : > { %479 = vst [vmem:[%s4631_s13 + $0x390] sm:$0xff] %v478_v50 }
  0x9d   : > { %481 = vst [vmem:[%s4631_s13 + $0x398] sm:$0xff] %v480_v51 }
  0x9e   : > { %483 = vst [vmem:[%s4631_s13 + $0x3a0] sm:$0xff] %v482_v52 }
  0x9f   : > { %485 = vst [vmem:[%s4631_s13 + $0x3a8] sm:$0xff] %v484_v53 }
  0xa0   : > { %487 = vst [vmem:[%s4631_s13 + $0x3b0] sm:$0xff] %v486_v54 }
  0xa1   : > { %489 = vst [vmem:[%s4631_s13 + $0x3b8] sm:$0xff] %v488_v55 }
  0xa2   : > { %491 = vst [vmem:[%s4631_s13 + $0x3c0] sm:$0xff] %v490_v56 }
  0xa3   : > { %493 = vst [vmem:[%s4631_s13 + $0x3c8] sm:$0xff] %v492_v57 }
  0xa4   : > { %495 = vst [vmem:[%s4631_s13 + $0x3d0] sm:$0xff] %v494_v58 }
  0xa5   : > { %497 = vst [vmem:[%s4631_s13 + $0x3d8] sm:$0xff] %v496_v59 }
  0xa6   : > { %499 = vst [vmem:[%s4631_s13 + $0x3e0] sm:$0xff] %v498_v60 }
  0xa7   : > { %501 = vst [vmem:[%s4631_s13 + $0x3e8] sm:$0xff] %v500_v61 }
  0xa8   : > { %503 = vst [vmem:[%s4631_s13 + $0x3f0] sm:$0xff] %v502_v62 }
  0xa9   : > { %505 = vst [vmem:[%s4631_s13 + $0x3f8] sm:$0xff] %v504_v63 }
  0xaa PF: > { %p3311_p7 = scmp.ge.s32.totalorder %s4519_s9, 1  ;;  %p525_p8 = scmp.lt.s32.totalorder %s4519_s9, 5 }
  0xac   : > { %p526_p9 = pnand %p3311_p7, %p525_p8 }
  0xad   : > { %s532_s17 = sand.u32 (!%p526_p9), 1, %s4495_s29   ;;  %s3313_s18 = sshll.u32 (!%p526_p9), %s4507_s0, 1 }
  0xae   : > { %529 = sbr.rel (%p526_p9) target bundleno = 1280 (0x500), region = 55  ;;  %s3312_s19 = sshll.u32 (!%p526_p9), %s532_s17, 10 }
  0xaf   : > { %s581_s20 = sadd.s32 (!%p526_p9), %s4503_s7, %s3313_s18  ;;  %s3316_s23 = sshll.u32 (!%p526_p9), %s4507_s0, 6 }
  0xb0   : > { %s582_s21 = sld [smem:[#allocation4 + %s581_s20]] (!%p526_p9)  ;;  %p600_p10 = scmp.lt.s32.totalorder (!%p526_p9), %s3316_s23, 127 }
  0xb1   : > { %s4902_s16 = scalar_lea.vmem (!%p526_p9), [#allocation6], %s3312_s19  ;;  %p3318_p12 = scmp.ne.s32.totalorder (!%p526_p9), %s4503_s7, 0 }
  0xb3   : > { %s5548_s23 = smov (!%p600_p10, %s3316_s23), 127 }
  0xb4   : > { %s3317_s25 = sshll.u32 %s5548_s23, 2 }
  0xb5   : > { %s4895_s28 = scalar_lea.vmem %s5513_s6, %s3317_s25 }
  0xb6   : > { %s3314_s24 = sshll.u32 %s582_s21, 6 }
  0xb7   : > { %p584_p11 = scmp.lt.s32.totalorder %s3314_s24, 127  ;;  %611 = sbr.rel (%p3318_p12) target bundleno = 253 (0xfd), region = 63 }
  0xb9   : > { %s5550_s24 = smov (!%p584_p11, %s3314_s24), 127 }
  0xba   : > { %s3315_s12 = sshll.u32 %s5550_s24, 2 }
  0xbb   : > { %s4900_s29 = scalar_lea.vmem %s5510_s3, %s3315_s12 }
  0xbc   : > { %v4523_v0 = vmov 0.0  }
  0xbd   : > { %612 = vst [vmem:[#allocation2 + $0xb0] sm:$0xff] %v4523_v0 }
  0xbe   : > { %613 = vst [vmem:[#allocation2 + $0x1b0] sm:$0xff] %v4523_v0 }
  0xbf   : > { %614 = vst [vmem:[#allocation2 + $0xd8] sm:$0xff] %v4523_v0 }
  0xc0   : > { %615 = vst [vmem:[#allocation2 + $0x18] sm:$0xff] %v4523_v0 }
  0xc1   : > { %616 = vst [vmem:[#allocation2 + $0x50] sm:$0xff] %v4523_v0 }
  0xc2   : > { %617 = vst [vmem:[#allocation2 + $0x168] sm:$0xff] %v4523_v0 }
  0xc3   : > { %618 = vst [vmem:[#allocation2 + $0x130] sm:$0xff] %v4523_v0 }
  0xc4   : > { %619 = vst [vmem:[#allocation2 + $0x48] sm:$0xff] %v4523_v0 }
  0xc5   : > { %620 = vst [vmem:[#allocation2 + $0x180] sm:$0xff] %v4523_v0 }
  0xc6   : > { %621 = vst [vmem:[#allocation2 + $0x110] sm:$0xff] %v4523_v0 }
  0xc7   : > { %622 = vst [vmem:[#allocation2 + $0x118] sm:$0xff] %v4523_v0 }
  0xc8   : > { %623 = vst [vmem:[#allocation2 + $0x98] sm:$0xff] %v4523_v0 }
  0xc9   : > { %624 = vst [vmem:[#allocation2 + $0x120] sm:$0xff] %v4523_v0 }
  0xca   : > { %625 = vst [vmem:[#allocation2 + $0x150] sm:$0xff] %v4523_v0 }
  0xcb   : > { %626 = vst [vmem:[#allocation2 + $0x108] sm:$0xff] %v4523_v0 }
  0xcc   : > { %627 = vst [vmem:[#allocation2 + $0x60] sm:$0xff] %v4523_v0 }
  0xcd   : > { %628 = vst [vmem:[#allocation2 + $0xe0] sm:$0xff] %v4523_v0 }
  0xce   : > { %629 = vst [vmem:[#allocation2 + $0x188] sm:$0xff] %v4523_v0 }
  0xcf   : > { %630 = vst [vmem:[#allocation2 + $0x138] sm:$0xff] %v4523_v0 }
  0xd0   : > { %631 = vst [vmem:[#allocation2 + $0x140] sm:$0xff] %v4523_v0 }
  0xd1   : > { %632 = vst [vmem:[#allocation2 + $0x80] sm:$0xff] %v4523_v0 }
  0xd2   : > { %633 = vst [vmem:[#allocation2 + $0x1a8] sm:$0xff] %v4523_v0 }
  0xd3   : > { %634 = vst [vmem:[#allocation2 + $0x1b8] sm:$0xff] %v4523_v0 }
  0xd4   : > { %635 = vst [vmem:[#allocation2 + $0x28] sm:$0xff] %v4523_v0 }
  0xd5   : > { %636 = vst [vmem:[#allocation2 + $0x1e8] sm:$0xff] %v4523_v0 }
  0xd6   : > { %637 = vst [vmem:[#allocation2 + $0xf8] sm:$0xff] %v4523_v0 }
  0xd7   : > { %638 = vst [vmem:[#allocation2 + $0x160] sm:$0xff] %v4523_v0 }
  0xd8   : > { %639 = vst [vmem:[#allocation2 + $0x30] sm:$0xff] %v4523_v0 }
  0xd9   : > { %640 = vst [vmem:[#allocation2 + $0x1e0] sm:$0xff] %v4523_v0 }
  0xda   : > { %641 = vst [vmem:[#allocation2] sm:$0xff] %v4523_v0 }
  0xdb   : > { %642 = vst [vmem:[#allocation2 + $0xf0] sm:$0xff] %v4523_v0 }
  0xdc   : > { %643 = vst [vmem:[#allocation2 + $0x8] sm:$0xff] %v4523_v0 }
  0xdd   : > { %644 = vst [vmem:[#allocation2 + $0x148] sm:$0xff] %v4523_v0 }
  0xde   : > { %645 = vst [vmem:[#allocation2 + $0x1d0] sm:$0xff] %v4523_v0 }
  0xdf   : > { %646 = vst [vmem:[#allocation2 + $0x100] sm:$0xff] %v4523_v0 }
  0xe0   : > { %647 = vst [vmem:[#allocation2 + $0xc8] sm:$0xff] %v4523_v0 }
  0xe1   : > { %648 = vst [vmem:[#allocation2 + $0x40] sm:$0xff] %v4523_v0 }
  0xe2   : > { %649 = vst [vmem:[#allocation2 + $0x1f8] sm:$0xff] %v4523_v0 }
  0xe3   : > { %650 = vst [vmem:[#allocation2 + $0x20] sm:$0xff] %v4523_v0 }
  0xe4   : > { %651 = vst [vmem:[#allocation2 + $0x128] sm:$0xff] %v4523_v0 }
  0xe5   : > { %652 = vst [vmem:[#allocation2 + $0x1a0] sm:$0xff] %v4523_v0 }
  0xe6   : > { %653 = vst [vmem:[#allocation2 + $0x1f0] sm:$0xff] %v4523_v0 }
  0xe7   : > { %654 = vst [vmem:[#allocation2 + $0xe8] sm:$0xff] %v4523_v0 }
  0xe8   : > { %655 = vst [vmem:[#allocation2 + $0x78] sm:$0xff] %v4523_v0 }
  0xe9   : > { %656 = vst [vmem:[#allocation2 + $0x70] sm:$0xff] %v4523_v0 }
  0xea   : > { %657 = vst [vmem:[#allocation2 + $0x90] sm:$0xff] %v4523_v0 }
  0xeb   : > { %658 = vst [vmem:[#allocation2 + $0x1d8] sm:$0xff] %v4523_v0 }
  0xec   : > { %659 = vst [vmem:[#allocation2 + $0xd0] sm:$0xff] %v4523_v0 }
  0xed   : > { %660 = vst [vmem:[#allocation2 + $0xb8] sm:$0xff] %v4523_v0 }
  0xee   : > { %661 = vst [vmem:[#allocation2 + $0x88] sm:$0xff] %v4523_v0 }
  0xef   : > { %662 = vst [vmem:[#allocation2 + $0xa8] sm:$0xff] %v4523_v0 }
  0xf0   : > { %663 = vst [vmem:[#allocation2 + $0x1c8] sm:$0xff] %v4523_v0 }
  0xf1   : > { %664 = vst [vmem:[#allocation2 + $0x170] sm:$0xff] %v4523_v0 }
  0xf2   : > { %665 = vst [vmem:[#allocation2 + $0x178] sm:$0xff] %v4523_v0 }
  0xf3   : > { %666 = vst [vmem:[#allocation2 + $0x68] sm:$0xff] %v4523_v0 }
  0xf4   : > { %667 = vst [vmem:[#allocation2 + $0x190] sm:$0xff] %v4523_v0 }
  0xf5   : > { %668 = vst [vmem:[#allocation2 + $0x198] sm:$0xff] %v4523_v0 }
  0xf6   : > { %669 = vst [vmem:[#allocation2 + $0x38] sm:$0xff] %v4523_v0 }
  0xf7   : > { %670 = vst [vmem:[#allocation2 + $0xc0] sm:$0xff] %v4523_v0 }
  0xf8   : > { %671 = vst [vmem:[#allocation2 + $0x1c0] sm:$0xff] %v4523_v0 }
  0xf9   : > { %672 = vst [vmem:[#allocation2 + $0x158] sm:$0xff] %v4523_v0 }
  0xfa   : > { %673 = vst [vmem:[#allocation2 + $0x10] sm:$0xff] %v4523_v0 }
  0xfb   : > { %674 = vst [vmem:[#allocation2 + $0x58] sm:$0xff] %v4523_v0 }
  0xfc   : > { %675 = vst [vmem:[#allocation2 + $0xa0] sm:$0xff] %v4523_v0 }
  0xfd PF: > { %s676_s13 = sld [smem:[#allocation5 + %s4507_s0]] }
 0x103   : > { %p3319_p13 = scmp.ge.s32.totalorder %s4503_s7, %s676_s13 }
 0x105   : > { %680 = sbr.rel (%p3319_p13) target bundleno = 1227 (0x4cb), region = 67 }
 0x10a   : > { %v4035_v1 = vld [vmem:[%s5511_s4 + $0x38] sm:$0xff]  ;;  %v4034_v2 = vld [vmem:[%s5511_s4 + $0x30] sm:$0xff]  ;;  %v4033_v3 = vld [vmem:[%s5511_s4 + $0x28] sm:$0xff] }
 0x10b   : > { %1001 = vmatpush.bf16.msra.mxu0 %v4035_v1  ;;  %4355 = vmatpush.bf16.msra.mxu1 %v4035_v1  ;;  %v4032_v4 = vld [vmem:[%s5511_s4 + $0x20] sm:$0xff]  ;;  %v4031_v5 = vld [vmem:[%s5511_s4 + $0x18] sm:$0xff]  ;;  %v4030_v6 = vld [vmem:[%s5511_s4 + $0x10] sm:$0xff] }
 0x10c   : > { %4356 = vmatpush.bf16.msra.mxu2 %v4035_v1  ;;  %4357 = vmatpush.bf16.msra.mxu3 %v4035_v1  ;;  %v4029_v7 = vld [vmem:[%s5511_s4 + $0x8] sm:$0xff]  ;;  %v4028_v8 = vld [vmem:[%s5511_s4] sm:$0xff]  ;;  %v3998_v17 = vld [vmem:[%s4900_s29 + $0x10] sm:$0xff] }
 0x10d   : > { %v3996_v9 = vld [vmem:[%s4900_s29] sm:$0xff]  ;;  %v3997_v13 = vld [vmem:[%s4900_s29 + $0x8] sm:$0xff]  ;;  %v4006_v18 = vld [vmem:[%s4900_s29 + $0x50] sm:$0xff] }
 0x10e   : > { %v4004_v10 = vld [vmem:[%s4900_s29 + $0x40] sm:$0xff]  ;;  %v4005_v14 = vld [vmem:[%s4900_s29 + $0x48] sm:$0xff]  ;;  %v4014_v19 = vld [vmem:[%s4900_s29 + $0x90] sm:$0xff] }
 0x10f   : > { %1002 = vmatpush.bf16.msra.mxu0 %v4034_v2  ;;  %4358 = vmatpush.bf16.msra.mxu1 %v4034_v2  ;;  %v4012_v11 = vld [vmem:[%s4900_s29 + $0x80] sm:$0xff]  ;;  %v4013_v15 = vld [vmem:[%s4900_s29 + $0x88] sm:$0xff]  ;;  %v4022_v20 = vld [vmem:[%s4900_s29 + $0xd0] sm:$0xff] }
 0x110   : > { %4359 = vmatpush.bf16.msra.mxu2 %v4034_v2  ;;  %4360 = vmatpush.bf16.msra.mxu3 %v4034_v2  ;;  %v4020_v12 = vld [vmem:[%s4900_s29 + $0xc0] sm:$0xff]  ;;  %v4021_v16 = vld [vmem:[%s4900_s29 + $0xc8] sm:$0xff]  ;;  %v3999_v21 = vld [vmem:[%s4900_s29 + $0x18] sm:$0xff] }
 0x111   : > { %v4007_v22 = vld [vmem:[%s4900_s29 + $0x58] sm:$0xff]  ;;  %v4000_v25 = vld [vmem:[%s4900_s29 + $0x20] sm:$0xff]  ;;  %v4001_v29 = vld [vmem:[%s4900_s29 + $0x28] sm:$0xff] }
 0x112   : > { %v4015_v23 = vld [vmem:[%s4900_s29 + $0x98] sm:$0xff]  ;;  %v4008_v26 = vld [vmem:[%s4900_s29 + $0x60] sm:$0xff]  ;;  %v4009_v30 = vld [vmem:[%s4900_s29 + $0x68] sm:$0xff] }
 0x113   : > { %1003 = vmatpush.bf16.msra.mxu0 %v4033_v3  ;;  %4361 = vmatpush.bf16.msra.mxu1 %v4033_v3  ;;  %v4023_v24 = vld [vmem:[%s4900_s29 + $0xd8] sm:$0xff]  ;;  %v4016_v27 = vld [vmem:[%s4900_s29 + $0xa0] sm:$0xff]  ;;  %v4017_v31 = vld [vmem:[%s4900_s29 + $0xa8] sm:$0xff] }
 0x114   : > { %4362 = vmatpush.bf16.msra.mxu2 %v4033_v3  ;;  %4363 = vmatpush.bf16.msra.mxu3 %v4033_v3  ;;  %v4024_v28 = vld [vmem:[%s4900_s29 + $0xe0] sm:$0xff]  ;;  %v4025_v32 = vld [vmem:[%s4900_s29 + $0xe8] sm:$0xff]  ;;  %v4002_v33 = vld [vmem:[%s4900_s29 + $0x30] sm:$0xff] }
 0x115   : > { %v4010_v34 = vld [vmem:[%s4900_s29 + $0x70] sm:$0xff]  ;;  %v4003_v37 = vld [vmem:[%s4900_s29 + $0x38] sm:$0xff] }
 0x116   : > { %v4018_v35 = vld [vmem:[%s4900_s29 + $0xb0] sm:$0xff]  ;;  %v4011_v38 = vld [vmem:[%s4900_s29 + $0x78] sm:$0xff] }
 0x117   : > { %1004 = vmatpush.bf16.msra.mxu0 %v4032_v4  ;;  %4364 = vmatpush.bf16.msra.mxu1 %v4032_v4  ;;  %v4026_v36 = vld [vmem:[%s4900_s29 + $0xf0] sm:$0xff]  ;;  %v4019_v39 = vld [vmem:[%s4900_s29 + $0xb8] sm:$0xff] }
 0x118   : > { %4365 = vmatpush.bf16.msra.mxu2 %v4032_v4  ;;  %4366 = vmatpush.bf16.msra.mxu3 %v4032_v4  ;;  %v4027_v40 = vld [vmem:[%s4900_s29 + $0xf8] sm:$0xff] }
 0x11b   : > { %1005 = vmatpush.bf16.msra.mxu0 %v4031_v5  ;;  %4367 = vmatpush.bf16.msra.mxu1 %v4031_v5 }
 0x11c   : > { %4368 = vmatpush.bf16.msra.mxu2 %v4031_v5  ;;  %4369 = vmatpush.bf16.msra.mxu3 %v4031_v5 }
 0x11f   : > { %1006 = vmatpush.bf16.msra.mxu0 %v4030_v6  ;;  %4370 = vmatpush.bf16.msra.mxu1 %v4030_v6 }
 0x120   : > { %4371 = vmatpush.bf16.msra.mxu2 %v4030_v6  ;;  %4372 = vmatpush.bf16.msra.mxu3 %v4030_v6 }
 0x123   : > { %1007 = vmatpush.bf16.msra.mxu0 %v4029_v7  ;;  %4373 = vmatpush.bf16.msra.mxu1 %v4029_v7 }
 0x124   : > { %4374 = vmatpush.bf16.msra.mxu2 %v4029_v7  ;;  %4375 = vmatpush.bf16.msra.mxu3 %v4029_v7 }
 0x127   : > { %1008 = vmatpush.bf16.msra.mxu0 %v4028_v8  ;;  %4376 = vmatpush.bf16.msra.mxu1 %v4028_v8 }
 0x128   : > { %4377 = vmatpush.bf16.msra.mxu2 %v4028_v8  ;;  %4378 = vmatpush.bf16.msra.mxu3 %v4028_v8 }
 0x12a   : > { %1009 = vmatmul.bf16.vlgmr.msra.gmra.mxu0 %v3996_v9  ;;  %1049 = vmatmul.bf16.vlgmr.msra.gmra.mxu1 %v4004_v10 }
 0x12b   : > { %1089 = vmatmul.bf16.vlgmr.msra.gmra.mxu2 %v4012_v11  ;;  %1129 = vmatmul.bf16.vlgmr.msra.gmra.mxu3 %v4020_v12 }
 0x13a   : > { %1014 = vmatmul.bf16.gmra.mxu0 %v3997_v13  ;;  %1054 = vmatmul.bf16.gmra.mxu1 %v4005_v14 }
 0x13b   : > { %1094 = vmatmul.bf16.gmra.mxu2 %v4013_v15  ;;  %1134 = vmatmul.bf16.gmra.mxu3 %v4021_v16 }
 0x14a   : > { %1019 = vmatmul.bf16.gmra.mxu0 %v3998_v17  ;;  %1059 = vmatmul.bf16.gmra.mxu1 %v4006_v18 }
 0x14b   : > { %1099 = vmatmul.bf16.gmra.mxu2 %v4014_v19  ;;  %1139 = vmatmul.bf16.gmra.mxu3 %v4022_v20 }
 0x15a   : > { %1024 = vmatmul.bf16.gmra.mxu0 %v3999_v21  ;;  %1064 = vmatmul.bf16.gmra.mxu1 %v4007_v22 }
 0x15b   : > { %1104 = vmatmul.bf16.gmra.mxu2 %v4015_v23  ;;  %1144 = vmatmul.bf16.gmra.mxu3 %v4023_v24 }
 0x16a   : > { %1029 = vmatmul.bf16.gmra.mxu0 %v4000_v25  ;;  %1069 = vmatmul.bf16.gmra.mxu1 %v4008_v26 }
 0x16b   : > { %1109 = vmatmul.bf16.gmra.mxu2 %v4016_v27  ;;  %1149 = vmatmul.bf16.gmra.mxu3 %v4024_v28 }
 0x17a   : > { %1034 = vmatmul.bf16.gmra.mxu0 %v4001_v29  ;;  %1074 = vmatmul.bf16.gmra.mxu1 %v4009_v30 }
 0x17b   : > { %1114 = vmatmul.bf16.gmra.mxu2 %v4017_v31  ;;  %1154 = vmatmul.bf16.gmra.mxu3 %v4025_v32 }
 0x18a   : > { %1039 = vmatmul.bf16.gmra.mxu0 %v4002_v33  ;;  %1079 = vmatmul.bf16.gmra.mxu1 %v4010_v34 }
 0x18b   : > { %1119 = vmatmul.bf16.gmra.mxu2 %v4018_v35  ;;  %1159 = vmatmul.bf16.gmra.mxu3 %v4026_v36 }
 0x19a   : > { %1044 = vmatmul.bf16.gmra.mxu0 %v4003_v37  ;;  %1084 = vmatmul.bf16.gmra.mxu1 %v4011_v38 }
 0x19b   : > { %1124 = vmatmul.bf16.gmra.mxu2 %v4019_v39  ;;  %1164 = vmatmul.bf16.gmra.mxu3 %v4027_v40 }
 0x1a7   : > { %v5027_v41 = vpop.f32.mrf.mxu0  ;;  %v5029_v42 = vpop.f32.mrf.mxu1 }
 0x1a8   : > { %5515 = vst [vmem:[#allocation8_spill] sm:$0xff] %v5029_v42 }
 0x1ae   : > { %v5031_v43 = vpop.f32.mrf.mxu2  ;;  %v5033_v44 = vpop.f32.mrf.mxu3 }
 0x1af   : > { %5516 = vst [vmem:[#allocation9_spill] sm:$0xff] %v5031_v43  ;;  %v5035_v45 = vpop.f32.mrf.mxu0  ;;  %v5037_v46 = vpop.f32.mrf.mxu1 }
 0x1b0   : > { %5517 = vst [vmem:[#allocation10_spill] sm:$0xff] %v5033_v44 }
 0x1b1   : > { %5518 = vst [vmem:[#allocation11_spill] sm:$0xff] %v5037_v46 }
 0x1b6   : > { %v5039_v47 = vpop.f32.mrf.mxu2  ;;  %v5041_v48 = vpop.f32.mrf.mxu3 }
 0x1b7   : > { %5519 = vst [vmem:[#allocation12_spill] sm:$0xff] %v5039_v47  ;;  %v5043_v49 = vpop.f32.mrf.mxu0  ;;  %v5045_v50 = vpop.f32.mrf.mxu1 }
 0x1b8   : > { %5520 = vst [vmem:[#allocation13_spill] sm:$0xff] %v5041_v48 }
 0x1be   : > { %v5047_v51 = vpop.f32.mrf.mxu2  ;;  %v5049_v52 = vpop.f32.mrf.mxu3 }
 0x1bf   : > { %5521 = vst [vmem:[#allocation14_spill] sm:$0xff] %v5047_v51  ;;  %v5051_v53 = vpop.f32.mrf.mxu0  ;;  %v5053_v54 = vpop.f32.mrf.mxu1 }
 0x1c0   : > { %5522 = vst [vmem:[#allocation15_spill] sm:$0xff] %v5049_v52 }
 0x1c6   : > { %v5055_v55 = vpop.f32.mrf.mxu2  ;;  %v5057_v56 = vpop.f32.mrf.mxu3 }
 0x1c7   : > { %5523 = vst [vmem:[#allocation16_spill] sm:$0xff] %v5055_v55  ;;  %v5059_v57 = vpop.f32.mrf.mxu0  ;;  %v5061_v58 = vpop.f32.mrf.mxu1 }
 0x1c8   : > { %5524 = vst [vmem:[#allocation17_spill] sm:$0xff] %v5057_v56 }
 0x1ce   : > { %v5063_v59 = vpop.f32.mrf.mxu2  ;;  %v5065_v60 = vpop.f32.mrf.mxu3 }
 0x1cf   : > { %v5067_v61 = vpop.f32.mrf.mxu0  ;;  %v5069_v62 = vpop.f32.mrf.mxu1 }
 0x1d6   : > { %v5071_v63 = vpop.f32.mrf.mxu2  ;;  %v5073_v0 = vpop.f32.mrf.mxu3 }
 0x1d7   : > { %v5075_v1 = vpop.f32.mrf.mxu0  ;;  %v5077_v2 = vpop.f32.mrf.mxu1 }
 0x1de   : > { %v5079_v3 = vpop.f32.mrf.mxu2  ;;  %v5081_v4 = vpop.f32.mrf.mxu3 }
 0x1df   : > { %v5083_v5 = vpop.f32.mrf.mxu0  ;;  %v5085_v6 = vpop.f32.mrf.mxu1 }
 0x1e6   : > { %v5087_v7 = vpop.f32.mrf.mxu2  ;;  %v5089_v8 = vpop.f32.mrf.mxu3 }
 0x1e7   : > { %v1030_v9 = vpop.f32.mrf.mxu0  ;;  %v1070_v10 = vpop.f32.mrf.mxu1 }
 0x1ee   : > { %v5091_v11 = vpop.f32.mrf.mxu2  ;;  %v5093_v12 = vpop.f32.mrf.mxu3 }
 0x1ef   : > { %v1032_v13 = vpop.f32.mrf.mxu0  ;;  %v1072_v14 = vpop.f32.mrf.mxu1 }
 0x1f6   : > { %v1112_v15 = vpop.f32.mrf.mxu2  ;;  %v1152_v16 = vpop.f32.mrf.mxu3 }
 0x1f7   : > { %v1035_v17 = vpop.f32.mrf.mxu0  ;;  %v1075_v18 = vpop.f32.mrf.mxu1 }
 0x1fe   : > { %v1115_v19 = vpop.f32.mrf.mxu2  ;;  %v1155_v20 = vpop.f32.mrf.mxu3 }
 0x1ff   : > { %v1037_v21 = vpop.f32.mrf.mxu0  ;;  %v1077_v22 = vpop.f32.mrf.mxu1 }
 0x200   : > { %v1367_v55 = vpack.c.bf16 %v1037_v21, %v1035_v17  ;;  %v1375_v51 = vpack.c.bf16 %v1077_v22, %v1075_v18  ;;  %v4040_v17 = vld [vmem:[%s4902_s16 + $0x24] sm:$0xf]  ;;  %v3500_v18 = vld [vmem:[%s4902_s16 + $0x30] sm:$0xf0] }
 0x201   : > { %v3503_v21 = vor.u32 %v4040_v17, %v3500_v18 }
 0x206   : > { %v1117_v23 = vpop.f32.mrf.mxu2  ;;  %v1157_v24 = vpop.f32.mrf.mxu3 }
 0x207   : > { %v1040_v25 = vpop.f32.mrf.mxu0  ;;  %v1080_v26 = vpop.f32.mrf.mxu1 }
 0x20e   : > { %v1120_v27 = vpop.f32.mrf.mxu2  ;;  %v1160_v28 = vpop.f32.mrf.mxu3 }
 0x20f   : > { %v1042_v29 = vpop.f32.mrf.mxu0  ;;  %v1082_v30 = vpop.f32.mrf.mxu1 }
 0x210   : > { %v1368_v48 = vpack.c.bf16 %v1042_v29, %v1040_v25  ;;  %v1376_v44 = vpack.c.bf16 %v1082_v30, %v1080_v26  ;;  %v1383_v25 = vpack.c.bf16 %v1117_v23, %v1115_v19  ;;  %v1391_v26 = vpack.c.bf16 %v1157_v24, %v1155_v20  ;;  %v3498_v19 = vld [vmem:[%s4902_s16 + $0x20] sm:$0xf]  ;;  %v4042_v20 = vld [vmem:[%s4902_s16 + $0x2c] sm:$0xf0]  ;;  %v3506_v23 = vld [vmem:[%s4902_s16 + $0x28] sm:$0xf] }
 0x211   : > { %v3499_v22 = vor.u32 %v4042_v20, %v3498_v19  ;;  %v4043_v24 = vld [vmem:[%s4902_s16 + $0x34] sm:$0xf0]  ;;  %v3586_v19 = vld [vmem:[%s4902_s16 + $0xc8] sm:$0xf] }
 0x212   : > { %v3507_v29 = vor.u32 %v4043_v24, %v3506_v23  ;;  %v4063_v20 = vld [vmem:[%s4902_s16 + $0xd4] sm:$0xf0] }
 0x213   : > { %v3587_v23 = vor.u32 %v4063_v20, %v3586_v19  ;;  %v4076_v20 = vld [vmem:[%s4902_s16 + $0x144] sm:$0xf] }
 0x216   : > { %v1122_v31 = vpop.f32.mrf.mxu2  ;;  %v1162_v32 = vpop.f32.mrf.mxu3 }
 0x217   : > { %v1045_v33 = vpop.f32.mrf.mxu0  ;;  %v1085_v34 = vpop.f32.mrf.mxu1  ;;  %v1384_v46 = vpack.c.bf16 %v1122_v31, %v1120_v27  ;;  %v1392_v42 = vpack.c.bf16 %v1162_v32, %v1160_v28  ;;  %v4041_v27 = vld [vmem:[%s4902_s16 + $0x2c] sm:$0xf]  ;;  %v3508_v28 = vld [vmem:[%s4902_s16 + $0x38] sm:$0xf0]  ;;  %v4044_v31 = vld [vmem:[%s4902_s16 + $0x44] sm:$0xf] }
 0x218   : > { %v3511_v30 = vor.u32 %v4041_v27, %v3508_v28  ;;  %v3516_v32 = vld [vmem:[%s4902_s16 + $0x50] sm:$0xf0]  ;;  %v4064_v27 = vld [vmem:[%s4902_s16 + $0xe4] sm:$0xf] }
 0x219   : > { %v3596_v28 = vld [vmem:[%s4902_s16 + $0xf0] sm:$0xf0] }
 0x21e   : > { %v1125_v35 = vpop.f32.mrf.mxu2  ;;  %v1165_v36 = vpop.f32.mrf.mxu3 }
 0x21f   : > { %v1047_v37 = vpop.f32.mrf.mxu0  ;;  %v1087_v38 = vpop.f32.mrf.mxu1 }
 0x220   : > { %v1369_v39 = vpack.c.bf16 %v1047_v37, %v1045_v33  ;;  %v1377_v40 = vpack.c.bf16 %v1087_v38, %v1085_v34  ;;  %v1366_v33 = vpack.c.bf16 %v1032_v13, %v1030_v9  ;;  %v1374_v34 = vpack.c.bf16 %v1072_v14, %v1070_v10  ;;  %v5531_v9 = vld [vmem:[#allocation9_spill] sm:$0xff]  ;;  %v5532_v10 = vld [vmem:[#allocation12_spill] sm:$0xff] }
 0x221   : > { %v5534_v13 = vld [vmem:[#allocation13_spill] sm:$0xff]  ;;  %v3519_v37 = vor.u32 %v4044_v31, %v3516_v32  ;;  %v3599_v31 = vor.u32 %v4064_v27, %v3596_v28  ;;  %v1172_v28 = vld [vmem:[#allocation2 + $0xd8] sm:$0xff] }
 0x222   : > { %2034 = vmatpush.bf16.msrb.mxu1 %v1369_v39  ;;  %2203 = vmatpush.bf16.msrb.mxu2 %v1377_v40  ;;  %v3522_v39 = vld [vmem:[%s4902_s16 + $0x48] sm:$0xf]  ;;  %v4047_v40 = vld [vmem:[%s4902_s16 + $0x54] sm:$0xf0] }
 0x226   : > { %v1127_v47 = vpop.f32.mrf.mxu2  ;;  %v1167_v43 = vpop.f32.mrf.mxu3  ;;  %2035 = vmatpush.bf16.msrb.mxu1 %v1368_v48  ;;  %2204 = vmatpush.bf16.msrb.mxu2 %v1376_v44  ;;  %v1365_v44 = vpack.c.bf16 %v5083_v5, %v5075_v1  ;;  %v1372_v48 = vpack.c.bf16 %v5069_v62, %v5061_v58  ;;  %v1380_v58 = vpack.c.bf16 %v5071_v63, %v5063_v59  ;;  %v3484_v62 = vld [vmem:[%s4902_s16 + $0x10] sm:$0xf0]  ;;  %v3482_v1 = vld [vmem:[%s4902_s16] sm:$0xf]  ;;  %v5530_v5 = vld [vmem:[#allocation17_spill] sm:$0xff] }
 0x227   : > { %v1385_v56 = vpack.c.bf16 %v1127_v47, %v1125_v35  ;;  %v1393_v52 = vpack.c.bf16 %v1167_v43, %v1165_v36  ;;  %v1373_v43 = vpack.c.bf16 %v5085_v6, %v5077_v2  ;;  %v1382_v47 = vpack.c.bf16 %v1112_v15, %v5091_v11  ;;  %v3514_v35 = vld [vmem:[%s4902_s16 + $0x40] sm:$0xf]  ;;  %v4046_v36 = vld [vmem:[%s4902_s16 + $0x4c] sm:$0xf0] }
 0x228   : > { %v1378_v11 = vpack.c.bf16 %v5532_v10, %v5531_v9  ;;  %v3515_v38 = vor.u32 %v4046_v36, %v3514_v35  ;;  %v4057_v9 = vld [vmem:[%s4902_s16 + $0xac] sm:$0xf]  ;;  %v3572_v10 = vld [vmem:[%s4902_s16 + $0xb8] sm:$0xf0]  ;;  %v3602_v35 = vld [vmem:[%s4902_s16 + $0xe8] sm:$0xf] }
 0x229   : > { %2372 = vmatpush.bf16.msrb.mxu3 %v1385_v56  ;;  %2541 = vmatpush.bf16.msrb.mxu0 %v1393_v52  ;;  %v1389_v52 = vpack.c.bf16 %v5089_v8, %v5081_v4  ;;  %v1371_v56 = vpack.c.bf16 %v5053_v54, %v5045_v50  ;;  %v1362_v50 = vpack.c.bf16 %v5035_v45, %v5027_v41  ;;  %v5526_v54 = vld [vmem:[#allocation11_spill] sm:$0xff]  ;;  %v4037_v45 = vld [vmem:[%s4902_s16 + $0xc] sm:$0xf] }
 0x22a   : > { %2036 = vmatpush.bf16.msrb.mxu1 %v1367_v55  ;;  %2205 = vmatpush.bf16.msrb.mxu2 %v1375_v51  ;;  %v1381_v51 = vpack.c.bf16 %v5087_v7, %v5079_v3  ;;  %v1363_v55 = vpack.c.bf16 %v5051_v53, %v5043_v49  ;;  %v4038_v49 = vld [vmem:[%s4902_s16 + $0xc] sm:$0xf0]  ;;  %v5525_v53 = vld [vmem:[#allocation8_spill] sm:$0xff]  ;;  %v5529_v4 = vld [vmem:[#allocation15_spill] sm:$0xff] }
 0x22b   : > { %v1370_v2 = vpack.c.bf16 %v5526_v54, %v5525_v53  ;;  %v3483_v63 = vor.u32 %v4038_v49, %v3482_v1  ;;  %v5527_v3 = vld [vmem:[#allocation14_spill] sm:$0xff]  ;;  %v1387_v6 = vpack.c.bf16 %v5530_v5, %v5529_v4  ;;  %v3490_v7 = vld [vmem:[%s4902_s16 + $0x8] sm:$0xf]  ;;  %v4039_v41 = vld [vmem:[%s4902_s16 + $0x14] sm:$0xf0] }
 0x22c   : > { %v3492_v8 = vld [vmem:[%s4902_s16 + $0x18] sm:$0xf0]  ;;  %v3491_v15 = vor.u32 %v4039_v41, %v3490_v7  ;;  %v3546_v1 = vld [vmem:[%s4902_s16 + $0x80] sm:$0xf]  ;;  %v4054_v49 = vld [vmem:[%s4902_s16 + $0x8c] sm:$0xf0] }
 0x22d   : > { %2373 = vmatpush.bf16.msrb.mxu3 %v1384_v46  ;;  %2542 = vmatpush.bf16.msrb.mxu0 %v1392_v42  ;;  %v1390_v46 = vpack.c.bf16 %v1152_v16, %v5093_v12  ;;  %v1364_v42 = vpack.c.bf16 %v5067_v61, %v5059_v57  ;;  %v4036_v57 = vld [vmem:[%s4902_s16 + $0x4] sm:$0xf]  ;;  %v1388_v61 = vpack.c.bf16 %v5073_v0, %v5065_v60  ;;  %v5533_v12 = vld [vmem:[#allocation10_spill] sm:$0xff]  ;;  %v3554_v54 = vld [vmem:[%s4902_s16 + $0x88] sm:$0xf] }
 0x22e   : > { %2037 = vmatpush.bf16.msrb.mxu1 %v1366_v33  ;;  %2206 = vmatpush.bf16.msrb.mxu2 %v1374_v34  ;;  %v3487_v59 = vor.u32 %v4036_v57, %v3484_v62  ;;  %v5528_v60 = vld [vmem:[#allocation16_spill] sm:$0xff]  ;;  %v1386_v14 = vpack.c.bf16 %v5534_v13, %v5533_v12  ;;  %v3495_v16 = vor.u32 %v4037_v45, %v3492_v8  ;;  %v4045_v33 = vld [vmem:[%s4902_s16 + $0x4c] sm:$0xf]  ;;  %v3524_v34 = vld [vmem:[%s4902_s16 + $0x58] sm:$0xf0] }
 0x22f   : > { %v1379_v0 = vpack.c.bf16 %v5528_v60, %v5527_v3  ;;  %v3548_v62 = vld [vmem:[%s4902_s16 + $0x90] sm:$0xf0]  ;;  %v3547_v53 = vor.u32 %v4054_v49, %v3546_v1  ;;  %v3562_v5 = vld [vmem:[%s4902_s16 + $0xa0] sm:$0xf]  ;;  %v3570_v45 = vld [vmem:[%s4902_s16 + $0xa8] sm:$0xf]  ;;  %v3575_v12 = vor.u32 %v4057_v9, %v3572_v10 }
 0x230   : > { %v3564_v4 = vld [vmem:[%s4902_s16 + $0xb0] sm:$0xf0]  ;;  %v4059_v8 = vld [vmem:[%s4902_s16 + $0xb4] sm:$0xf0]  ;;  %v4060_v13 = vld [vmem:[%s4902_s16 + $0xc4] sm:$0xf] }
 0x231   : > { %2374 = vmatpush.bf16.msrb.mxu3 %v1383_v25  ;;  %2543 = vmatpush.bf16.msrb.mxu0 %v1391_v26  ;;  %v3523_v25 = vor.u32 %v4047_v40, %v3522_v39  ;;  %v3527_v26 = vor.u32 %v4045_v33, %v3524_v34  ;;  %v4067_v36 = vld [vmem:[%s4902_s16 + $0xf4] sm:$0xf0]  ;;  %v4068_v33 = vld [vmem:[%s4902_s16 + $0x104] sm:$0xf]  ;;  %v3612_v34 = vld [vmem:[%s4902_s16 + $0x110] sm:$0xf0] }
 0x232   : > { %2038 = vmatpush.bf16.msrb.mxu1 %v1365_v44  ;;  %2207 = vmatpush.bf16.msrb.mxu2 %v1373_v43  ;;  %v4048_v44 = vld [vmem:[%s4902_s16 + $0x64] sm:$0xf]  ;;  %v3532_v43 = vld [vmem:[%s4902_s16 + $0x70] sm:$0xf0]  ;;  %v3603_v39 = vor.u32 %v4067_v36, %v3602_v35 }
 0x233   : > { %v3628_v49 = vld [vmem:[%s4902_s16 + $0x130] sm:$0xf0] }
 0x235   : > { %2375 = vmatpush.bf16.msrb.mxu3 %v1382_v47  ;;  %2544 = vmatpush.bf16.msrb.mxu0 %v1390_v46  ;;  %v3530_v47 = vld [vmem:[%s4902_s16 + $0x60] sm:$0xf]  ;;  %v4050_v46 = vld [vmem:[%s4902_s16 + $0x6c] sm:$0xf0] }
 0x236   : > { %2039 = vmatpush.bf16.msrb.mxu1 %v1364_v42  ;;  %2208 = vmatpush.bf16.msrb.mxu2 %v1372_v48  ;;  %v3535_v42 = vor.u32 %v4048_v44, %v3532_v43  ;;  %v3531_v48 = vor.u32 %v4050_v46, %v3530_v47  ;;  %v3615_v44 = vor.u32 %v4068_v33, %v3612_v34  ;;  %v3618_v46 = vld [vmem:[%s4902_s16 + $0x108] sm:$0xf]  ;;  %v3652_v33 = vld [vmem:[%s4902_s16 + $0x158] sm:$0xf0] }
 0x239   : > { %2376 = vmatpush.bf16.msrb.mxu3 %v1381_v51  ;;  %2545 = vmatpush.bf16.msrb.mxu0 %v1389_v52  ;;  %v3538_v51 = vld [vmem:[%s4902_s16 + $0x68] sm:$0xf]  ;;  %v4051_v52 = vld [vmem:[%s4902_s16 + $0x74] sm:$0xf0] }
 0x23a   : > { %2040 = vmatpush.bf16.msrb.mxu1 %v1363_v55  ;;  %2209 = vmatpush.bf16.msrb.mxu2 %v1371_v56  ;;  %v4049_v55 = vld [vmem:[%s4902_s16 + $0x6c] sm:$0xf]  ;;  %v3540_v56 = vld [vmem:[%s4902_s16 + $0x78] sm:$0xf0]  ;;  %v3539_v57 = vor.u32 %v4051_v52, %v3538_v51 }
 0x23b   : > { %v3620_v51 = vld [vmem:[%s4902_s16 + $0x118] sm:$0xf0] }
 0x23d   : > { %2377 = vmatpush.bf16.msrb.mxu3 %v1380_v58  ;;  %2546 = vmatpush.bf16.msrb.mxu0 %v1388_v61  ;;  %v3543_v58 = vor.u32 %v4049_v55, %v3540_v56  ;;  %v4052_v61 = vld [vmem:[%s4902_s16 + $0x84] sm:$0xf] }
 0x23e   : > { %2041 = vmatpush.bf16.msrb.mxu1 %v1362_v50  ;;  %2210 = vmatpush.bf16.msrb.mxu2 %v1370_v2  ;;  %v3551_v50 = vor.u32 %v4052_v61, %v3548_v62  ;;  %v4055_v2 = vld [vmem:[%s4902_s16 + $0x94] sm:$0xf0]  ;;  %v4072_v62 = vld [vmem:[%s4902_s16 + $0x124] sm:$0xf] }
 0x23f   : > { %v3555_v3 = vor.u32 %v4055_v2, %v3554_v54  ;;  %v1170_v2 = vld [vmem:[#allocation2 + $0xb0] sm:$0xff] }
 0x241   : > { %2378 = vmatpush.bf16.msrb.mxu3 %v1379_v0  ;;  %2547 = vmatpush.bf16.msrb.mxu0 %v1387_v6  ;;  %v4056_v0 = vld [vmem:[%s4902_s16 + $0xa4] sm:$0xf]  ;;  %v4058_v6 = vld [vmem:[%s4902_s16 + $0xac] sm:$0xf0] }
 0x242   : > { %2211 = vmatmul.bf16.vlgmr.msrb.gmra.mxu2 %v3487_v59  ;;  %2042 = vmatmul.bf16.vlgmr.msrb.gmra.mxu1 %v3483_v63  ;;  %v4053_v59 = vld [vmem:[%s4902_s16 + $0x8c] sm:$0xf]  ;;  %v3556_v63 = vld [vmem:[%s4902_s16 + $0x98] sm:$0xf0]  ;;  %v3567_v7 = vor.u32 %v4056_v0, %v3564_v4  ;;  %v3563_v41 = vor.u32 %v4058_v6, %v3562_v5  ;;  %v3634_v6 = vld [vmem:[%s4902_s16 + $0x128] sm:$0xf] }
 0x243   : > { %v3559_v60 = vor.u32 %v4053_v59, %v3556_v63 }
 0x245   : > { %2379 = vmatpush.bf16.msrb.mxu3 %v1378_v11  ;;  %2548 = vmatpush.bf16.msrb.mxu0 %v1386_v14  ;;  %v3571_v11 = vor.u32 %v4059_v8, %v3570_v45  ;;  %v3580_v14 = vld [vmem:[%s4902_s16 + $0xd0] sm:$0xf0]  ;;  %v3636_v45 = vld [vmem:[%s4902_s16 + $0x138] sm:$0xf0] }
 0x246   : > { %v3583_v17 = vor.u32 %v4060_v13, %v3580_v14  ;;  %v1171_v13 = vld [vmem:[#allocation2 + $0x1b0] sm:$0xff] }
 0x248   : > { %2380 = vmatmul.bf16.vlgmr.msrb.gmra.mxu3 %v3491_v15  ;;  %2549 = vmatmul.bf16.vlgmr.msrb.gmra.mxu0 %v3495_v16  ;;  %v3578_v15 = vld [vmem:[%s4902_s16 + $0xc0] sm:$0xf]  ;;  %v4062_v16 = vld [vmem:[%s4902_s16 + $0xcc] sm:$0xf0] }
 0x249   : > { %v3579_v18 = vor.u32 %v4062_v16, %v3578_v15 }
 0x252   : > { %2216 = vmatmul.bf16.gmra.mxu2 %v3503_v21  ;;  %2047 = vmatmul.bf16.gmra.mxu1 %v3499_v22  ;;  %v4061_v21 = vld [vmem:[%s4902_s16 + $0xcc] sm:$0xf]  ;;  %v3588_v22 = vld [vmem:[%s4902_s16 + $0xd8] sm:$0xf0] }
 0x253   : > { %v3591_v24 = vor.u32 %v4061_v21, %v3588_v22  ;;  %v3644_v22 = vld [vmem:[%s4902_s16 + $0x150] sm:$0xf0] }
 0x258   : > { %2385 = vmatmul.bf16.gmra.mxu3 %v3507_v29  ;;  %2554 = vmatmul.bf16.gmra.mxu0 %v3511_v30  ;;  %v3594_v29 = vld [vmem:[%s4902_s16 + $0xe0] sm:$0xf]  ;;  %v4066_v30 = vld [vmem:[%s4902_s16 + $0xec] sm:$0xf0] }
 0x259   : > { %v3595_v32 = vor.u32 %v4066_v30, %v3594_v29 }
 0x262   : > { %2221 = vmatmul.bf16.gmra.mxu2 %v3519_v37  ;;  %2052 = vmatmul.bf16.gmra.mxu1 %v3515_v38  ;;  %v4065_v37 = vld [vmem:[%s4902_s16 + $0xec] sm:$0xf]  ;;  %v3604_v38 = vld [vmem:[%s4902_s16 + $0xf8] sm:$0xf0] }
 0x263   : > { %v3607_v40 = vor.u32 %v4065_v37, %v3604_v38  ;;  %v3650_v38 = vld [vmem:[%s4902_s16 + $0x148] sm:$0xf] }
 0x268   : > { %2390 = vmatmul.bf16.gmra.mxu3 %v3523_v25  ;;  %2559 = vmatmul.bf16.gmra.mxu0 %v3527_v26  ;;  %v3610_v25 = vld [vmem:[%s4902_s16 + $0x100] sm:$0xf]  ;;  %v4070_v26 = vld [vmem:[%s4902_s16 + $0x10c] sm:$0xf0] }
 0x269   : > { %v3611_v43 = vor.u32 %v4070_v26, %v3610_v25 }
 0x272   : > { %2226 = vmatmul.bf16.gmra.mxu2 %v3535_v42  ;;  %2057 = vmatmul.bf16.gmra.mxu1 %v3531_v48  ;;  %v4071_v42 = vld [vmem:[%s4902_s16 + $0x114] sm:$0xf0]  ;;  %v4069_v48 = vld [vmem:[%s4902_s16 + $0x10c] sm:$0xf] }
 0x273   : > { %v3619_v52 = vor.u32 %v4071_v42, %v3618_v46  ;;  %v3623_v55 = vor.u32 %v4069_v48, %v3620_v51 }
 0x278   : > { %2395 = vmatmul.bf16.gmra.mxu3 %v3539_v57  ;;  %2564 = vmatmul.bf16.gmra.mxu0 %v3543_v58 }
 0x282   : > { %2231 = vmatmul.bf16.gmra.mxu2 %v3551_v50  ;;  %2062 = vmatmul.bf16.gmra.mxu1 %v3547_v53  ;;  %v3626_v50 = vld [vmem:[%s4902_s16 + $0x120] sm:$0xf]  ;;  %v4074_v53 = vld [vmem:[%s4902_s16 + $0x12c] sm:$0xf0] }
 0x283   : > { %v3627_v0 = vor.u32 %v4074_v53, %v3626_v50 }
 0x288   : > { %2400 = vmatmul.bf16.gmra.mxu3 %v3555_v3  ;;  %2569 = vmatmul.bf16.gmra.mxu0 %v3559_v60  ;;  %v3631_v60 = vor.u32 %v4072_v62, %v3628_v49  ;;  %v4082_v62 = vld [vmem:[%s4902_s16 + $0x16c] sm:$0xf0] }
 0x289   : > { %v1174_v49 = vld [vmem:[#allocation2 + $0x50] sm:$0xff] }
 0x292   : > { %2236 = vmatmul.bf16.gmra.mxu2 %v3567_v7  ;;  %2067 = vmatmul.bf16.gmra.mxu1 %v3563_v41  ;;  %v4075_v7 = vld [vmem:[%s4902_s16 + $0x134] sm:$0xf0]  ;;  %v4073_v41 = vld [vmem:[%s4902_s16 + $0x12c] sm:$0xf] }
 0x298   : > { %2405 = vmatmul.bf16.gmra.mxu3 %v3571_v11  ;;  %2574 = vmatmul.bf16.gmra.mxu0 %v3575_v12  ;;  %v3635_v11 = vor.u32 %v4075_v7, %v3634_v6  ;;  %v3639_v12 = vor.u32 %v4073_v41, %v3636_v45 }
 0x2a2   : > { %2241 = vmatmul.bf16.gmra.mxu2 %v3583_v17  ;;  %2072 = vmatmul.bf16.gmra.mxu1 %v3579_v18 }
 0x2a8   : > { %2410 = vmatmul.bf16.gmra.mxu3 %v3587_v23  ;;  %2579 = vmatmul.bf16.gmra.mxu0 %v3591_v24  ;;  %v3642_v23 = vld [vmem:[%s4902_s16 + $0x140] sm:$0xf]  ;;  %v4078_v24 = vld [vmem:[%s4902_s16 + $0x14c] sm:$0xf0] }
 0x2a9   : > { %v3643_v35 = vor.u32 %v4078_v24, %v3642_v23 }
 0x2b2   : > { %2246 = vmatmul.bf16.gmra.mxu2 %v3599_v31  ;;  %2077 = vmatmul.bf16.gmra.mxu1 %v3595_v32  ;;  %v3647_v32 = vor.u32 %v4076_v20, %v3644_v22  ;;  %v4086_v20 = vld [vmem:[%s4902_s16 + $0x18c] sm:$0xf0] }
 0x2b3   : > { %v1176_v22 = vld [vmem:[#allocation2 + $0x130] sm:$0xff] }
 0x2b8   : > { %2415 = vmatmul.bf16.gmra.mxu3 %v3603_v39  ;;  %2584 = vmatmul.bf16.gmra.mxu0 %v3607_v40  ;;  %v4079_v39 = vld [vmem:[%s4902_s16 + $0x154] sm:$0xf0]  ;;  %v4077_v40 = vld [vmem:[%s4902_s16 + $0x14c] sm:$0xf] }
 0x2bf   : > { %v2043_v47 = vpop.f32.mrf.mxu1 }
 0x2c2   : > { %2251 = vmatmul.bf16.gmra.mxu2 %v3615_v44  ;;  %2082 = vmatmul.bf16.gmra.mxu1 %v3611_v43  ;;  %v3651_v44 = vor.u32 %v4079_v39, %v3650_v38  ;;  %v3655_v43 = vor.u32 %v4077_v40, %v3652_v33 }
 0x2c5   : > { %v2212_v56 = vpop.f32.mrf.mxu2  ;;  %v2550_v57 = vpop.f32.mrf.mxu0 }
 0x2c6   : > { %v2213_v61 = vadd.f32 %v2212_v56, %v2043_v47  ;;  %v1173_v47 = vld [vmem:[#allocation2 + $0x18] sm:$0xff]  ;;  %v4080_v56 = vld [vmem:[%s4902_s16 + $0x164] sm:$0xf] }
 0x2c7   : > { %v2045_v58 = vpop.f32.mrf.mxu1 }
 0x2c8   : > { %2420 = vmatmul.bf16.gmra.mxu3 %v3619_v52  ;;  %2589 = vmatmul.bf16.gmra.mxu0 %v3623_v55 }
 0x2cb   : > { %v2381_v1 = vpop.f32.mrf.mxu3 }
 0x2cc   : > { %v2382_v54 = vadd.f32 %v2381_v1, %v2213_v61  ;;  %v3658_v61 = vld [vmem:[%s4902_s16 + $0x160] sm:$0xf] }
 0x2cd   : > { %v2214_v59 = vpop.f32.mrf.mxu2  ;;  %v2552_v63 = vpop.f32.mrf.mxu0 }
 0x2ce   : > { %v2551_v3 = vadd.f32 %v2550_v57, %v2382_v54  ;;  %v2215_v8 = vadd.f32 %v2214_v59, %v2045_v58  ;;  %v3660_v58 = vld [vmem:[%s4902_s16 + $0x170] sm:$0xf0]  ;;  %v3659_v59 = vor.u32 %v4082_v62, %v3658_v61 }
 0x2cf   : > { %v2048_v4 = vpop.f32.mrf.mxu1 }
 0x2d0   : > { %v2710_v5 = vadd.f32 %v2551_v3, %v1170_v2  ;;  %v3663_v2 = vor.u32 %v4080_v56, %v3660_v58  ;;  %v4090_v56 = vld [vmem:[%s4902_s16 + $0x1ac] sm:$0xf0]  ;;  %v1178_v58 = vld [vmem:[#allocation2 + $0x180] sm:$0xff] }
 0x2d2   : > { %2774 = vst [vmem:[#allocation2 + $0xb0] sm:$0xff] %v2710_v5  ;;  %2256 = vmatmul.bf16.gmra.mxu2 %v3631_v60  ;;  %2087 = vmatmul.bf16.gmra.mxu1 %v3627_v0  ;;  %v3666_v60 = vld [vmem:[%s4902_s16 + $0x168] sm:$0xf]  ;;  %v4083_v0 = vld [vmem:[%s4902_s16 + $0x174] sm:$0xf0] }
 0x2d3   : > { %v2383_v9 = vpop.f32.mrf.mxu3  ;;  %v3668_v5 = vld [vmem:[%s4902_s16 + $0x178] sm:$0xf0]  ;;  %v3667_v45 = vor.u32 %v4083_v0, %v3666_v60 }
 0x2d4   : > { %v2384_v10 = vadd.f32 %v2383_v9, %v2215_v8  ;;  %v1175_v9 = vld [vmem:[#allocation2 + $0x168] sm:$0xff] }
 0x2d5   : > { %v2217_v14 = vpop.f32.mrf.mxu2  ;;  %v2555_v15 = vpop.f32.mrf.mxu0 }
 0x2d6   : > { %v2553_v16 = vadd.f32 %v2552_v63, %v2384_v10  ;;  %v2218_v19 = vadd.f32 %v2217_v14, %v2048_v4  ;;  %v4081_v4 = vld [vmem:[%s4902_s16 + $0x16c] sm:$0xf] }
 0x2d7   : > { %v2050_v17 = vpop.f32.mrf.mxu1  ;;  %v3671_v8 = vor.u32 %v4081_v4, %v3668_v5 }
 0x2d8   : > { %v2711_v18 = vadd.f32 %v2553_v16, %v1171_v13  ;;  %2425 = vmatmul.bf16.gmra.mxu3 %v3635_v11  ;;  %2594 = vmatmul.bf16.gmra.mxu0 %v3639_v12  ;;  %v4084_v16 = vld [vmem:[%s4902_s16 + $0x184] sm:$0xf] }
 0x2da   : > { %2775 = vst [vmem:[#allocation2 + $0x1b0] sm:$0xff] %v2711_v18  ;;  %v3676_v18 = vld [vmem:[%s4902_s16 + $0x190] sm:$0xf0] }
 0x2db   : > { %v2386_v21 = vpop.f32.mrf.mxu3 }
 0x2dc   : > { %v2387_v27 = vadd.f32 %v2386_v21, %v2218_v19  ;;  %v3674_v19 = vld [vmem:[%s4902_s16 + $0x180] sm:$0xf] }
 0x2dd   : > { %v2219_v29 = vpop.f32.mrf.mxu2  ;;  %v2557_v30 = vpop.f32.mrf.mxu0 }
 0x2de   : > { %v2556_v31 = vadd.f32 %v2555_v15, %v2387_v27  ;;  %v2220_v34 = vadd.f32 %v2219_v29, %v2050_v17  ;;  %v3675_v29 = vor.u32 %v4086_v20, %v3674_v19 }
 0x2df   : > { %v2053_v36 = vpop.f32.mrf.mxu1 }
 0x2e0   : > { %v2712_v37 = vadd.f32 %v2556_v31, %v1172_v28  ;;  %v3679_v28 = vor.u32 %v4084_v16, %v3676_v18  ;;  %v4094_v16 = vld [vmem:[%s4902_s16 + $0x1cc] sm:$0xf0]  ;;  %v1180_v18 = vld [vmem:[#allocation2 + $0x118] sm:$0xff] }
 0x2e2   : > { %2776 = vst [vmem:[#allocation2 + $0xd8] sm:$0xff] %v2712_v37  ;;  %2261 = vmatmul.bf16.gmra.mxu2 %v3647_v32  ;;  %2092 = vmatmul.bf16.gmra.mxu1 %v3643_v35  ;;  %v3682_v32 = vld [vmem:[%s4902_s16 + $0x188] sm:$0xf]  ;;  %v4087_v35 = vld [vmem:[%s4902_s16 + $0x194] sm:$0xf0] }
 0x2e3   : > { %v2388_v25 = vpop.f32.mrf.mxu3  ;;  %v3684_v37 = vld [vmem:[%s4902_s16 + $0x198] sm:$0xf0]  ;;  %v3683_v33 = vor.u32 %v4087_v35, %v3682_v32 }
 0x2e4   : > { %v2389_v26 = vadd.f32 %v2388_v25, %v2220_v34  ;;  %v1177_v25 = vld [vmem:[#allocation2 + $0x48] sm:$0xff] }
 0x2e5   : > { %v2222_v46 = vpop.f32.mrf.mxu2  ;;  %v2560_v42 = vpop.f32.mrf.mxu0 }
 0x2e6   : > { %v2558_v48 = vadd.f32 %v2557_v30, %v2389_v26  ;;  %v2223_v55 = vadd.f32 %v2222_v46, %v2053_v36  ;;  %v4085_v36 = vld [vmem:[%s4902_s16 + $0x18c] sm:$0xf] }
 0x2e7   : > { %v2055_v51 = vpop.f32.mrf.mxu1  ;;  %v3687_v34 = vor.u32 %v4085_v36, %v3684_v37 }
 0x2e8   : > { %v2713_v52 = vadd.f32 %v2558_v48, %v1173_v47  ;;  %2430 = vmatmul.bf16.gmra.mxu3 %v3651_v44  ;;  %2599 = vmatmul.bf16.gmra.mxu0 %v3655_v43  ;;  %v4088_v48 = vld [vmem:[%s4902_s16 + $0x1a4] sm:$0xf] }
 0x2ea   : > { %2777 = vst [vmem:[#allocation2 + $0x18] sm:$0xff] %v2713_v52  ;;  %v3692_v52 = vld [vmem:[%s4902_s16 + $0x1b0] sm:$0xf0] }
 0x2eb   : > { %v2391_v57 = vpop.f32.mrf.mxu3 }
 0x2ec   : > { %v2392_v1 = vadd.f32 %v2391_v57, %v2223_v55  ;;  %v3690_v55 = vld [vmem:[%s4902_s16 + $0x1a0] sm:$0xf] }
 0x2ed   : > { %v2224_v50 = vpop.f32.mrf.mxu2  ;;  %v2562_v53 = vpop.f32.mrf.mxu0 }
 0x2ee   : > { %v2561_v54 = vadd.f32 %v2560_v42, %v2392_v1  ;;  %v2225_v6 = vadd.f32 %v2224_v50, %v2055_v51  ;;  %v3691_v50 = vor.u32 %v4090_v56, %v3690_v55 }
 0x2ef   : > { %v2058_v63 = vpop.f32.mrf.mxu1 }
 0x2f0   : > { %v2714_v3 = vadd.f32 %v2561_v54, %v1174_v49  ;;  %v3695_v49 = vor.u32 %v4088_v48, %v3692_v52  ;;  %v4098_v48 = vld [vmem:[%s4902_s16 + $0x1ec] sm:$0xf0]  ;;  %v1182_v52 = vld [vmem:[#allocation2 + $0x120] sm:$0xff] }
 0x2f2   : > { %2778 = vst [vmem:[#allocation2 + $0x50] sm:$0xff] %v2714_v3  ;;  %2266 = vmatmul.bf16.gmra.mxu2 %v3663_v2  ;;  %2097 = vmatmul.bf16.gmra.mxu1 %v3659_v59  ;;  %v3698_v2 = vld [vmem:[%s4902_s16 + $0x1a8] sm:$0xf]  ;;  %v4091_v59 = vld [vmem:[%s4902_s16 + $0x1b4] sm:$0xf0] }
 0x2f3   : > { %v2393_v7 = vpop.f32.mrf.mxu3  ;;  %v3700_v3 = vld [vmem:[%s4902_s16 + $0x1b8] sm:$0xf0]  ;;  %v3699_v5 = vor.u32 %v4091_v59, %v3698_v2 }
 0x2f4   : > { %v2394_v41 = vadd.f32 %v2393_v7, %v2225_v6  ;;  %v1179_v7 = vld [vmem:[#allocation2 + $0x110] sm:$0xff] }
 0x2f5   : > { %v2227_v10 = vpop.f32.mrf.mxu2  ;;  %v2565_v11 = vpop.f32.mrf.mxu0 }
 0x2f6   : > { %v2563_v12 = vadd.f32 %v2562_v53, %v2394_v41  ;;  %v2228_v15 = vadd.f32 %v2227_v10, %v2058_v63  ;;  %v4089_v63 = vld [vmem:[%s4902_s16 + $0x1ac] sm:$0xf] }
 0x2f7   : > { %v2060_v13 = vpop.f32.mrf.mxu1  ;;  %v3703_v6 = vor.u32 %v4089_v63, %v3700_v3 }
 0x2f8   : > { %v2715_v14 = vadd.f32 %v2563_v12, %v1175_v9  ;;  %2435 = vmatmul.bf16.gmra.mxu3 %v3667_v45  ;;  %2604 = vmatmul.bf16.gmra.mxu0 %v3671_v8  ;;  %v4092_v12 = vld [vmem:[%s4902_s16 + $0x1c4] sm:$0xf] }
 0x2fa   : > { %2779 = vst [vmem:[#allocation2 + $0x168] sm:$0xff] %v2715_v14  ;;  %v3708_v14 = vld [vmem:[%s4902_s16 + $0x1d0] sm:$0xf0] }
 0x2fb   : > { %v2396_v17 = vpop.f32.mrf.mxu3 }
 0x2fc   : > { %v2397_v21 = vadd.f32 %v2396_v17, %v2228_v15  ;;  %v3706_v15 = vld [vmem:[%s4902_s16 + $0x1c0] sm:$0xf] }
 0x2fd   : > { %v2229_v23 = vpop.f32.mrf.mxu2  ;;  %v2567_v24 = vpop.f32.mrf.mxu0 }
 0x2fe   : > { %v2566_v27 = vadd.f32 %v2565_v11, %v2397_v21  ;;  %v2230_v38 = vadd.f32 %v2229_v23, %v2060_v13  ;;  %v3707_v23 = vor.u32 %v4094_v16, %v3706_v15 }
 0x2ff   : > { %v2063_v30 = vpop.f32.mrf.mxu1 }
 0x300   : > { %v2716_v31 = vadd.f32 %v2566_v27, %v1176_v22  ;;  %v3711_v22 = vor.u32 %v4092_v12, %v3708_v14  ;;  %v4102_v12 = vld [vmem:[%s4902_s16 + $0x20c] sm:$0xf0]  ;;  %v1184_v14 = vld [vmem:[#allocation2 + $0x108] sm:$0xff] }
 0x302   : > { %2780 = vst [vmem:[#allocation2 + $0x130] sm:$0xff] %v2716_v31  ;;  %2271 = vmatmul.bf16.gmra.mxu2 %v3679_v28  ;;  %2102 = vmatmul.bf16.gmra.mxu1 %v3675_v29  ;;  %v3714_v28 = vld [vmem:[%s4902_s16 + $0x1c8] sm:$0xf]  ;;  %v4095_v29 = vld [vmem:[%s4902_s16 + $0x1d4] sm:$0xf0] }
 0x303   : > { %v2398_v39 = vpop.f32.mrf.mxu3  ;;  %v3716_v31 = vld [vmem:[%s4902_s16 + $0x1d8] sm:$0xf0]  ;;  %v3715_v37 = vor.u32 %v4095_v29, %v3714_v28 }
 0x304   : > { %v2399_v40 = vadd.f32 %v2398_v39, %v2230_v38  ;;  %v1181_v39 = vld [vmem:[#allocation2 + $0x98] sm:$0xff] }
 0x305   : > { %v2232_v26 = vpop.f32.mrf.mxu2  ;;  %v2570_v44 = vpop.f32.mrf.mxu0 }
 0x306   : > { %v2568_v43 = vadd.f32 %v2567_v24, %v2399_v40  ;;  %v2233_v42 = vadd.f32 %v2232_v26, %v2063_v30  ;;  %v4093_v30 = vld [vmem:[%s4902_s16 + $0x1cc] sm:$0xf] }
 0x307   : > { %v2065_v47 = vpop.f32.mrf.mxu1  ;;  %v3719_v38 = vor.u32 %v4093_v30, %v3716_v31 }
 0x308   : > { %v2717_v46 = vadd.f32 %v2568_v43, %v1177_v25  ;;  %2440 = vmatmul.bf16.gmra.mxu3 %v3683_v33  ;;  %2609 = vmatmul.bf16.gmra.mxu0 %v3687_v34  ;;  %v4096_v43 = vld [vmem:[%s4902_s16 + $0x1e4] sm:$0xf] }
 0x30a   : > { %2781 = vst [vmem:[#allocation2 + $0x48] sm:$0xff] %v2717_v46  ;;  %v3724_v46 = vld [vmem:[%s4902_s16 + $0x1f0] sm:$0xf0] }
 0x30b   : > { %v2401_v51 = vpop.f32.mrf.mxu3 }
 0x30c   : > { %v2402_v57 = vadd.f32 %v2401_v51, %v2233_v42  ;;  %v3722_v42 = vld [vmem:[%s4902_s16 + $0x1e0] sm:$0xf] }
 0x30d   : > { %v2234_v61 = vpop.f32.mrf.mxu2  ;;  %v2572_v62 = vpop.f32.mrf.mxu0 }
 0x30e   : > { %v2571_v1 = vadd.f32 %v2570_v44, %v2402_v57  ;;  %v2235_v60 = vadd.f32 %v2234_v61, %v2065_v47  ;;  %v3723_v61 = vor.u32 %v4098_v48, %v3722_v42 }
 0x30f   : > { %v2068_v53 = vpop.f32.mrf.mxu1 }
 0x310   : > { %v2718_v54 = vadd.f32 %v2571_v1, %v1178_v58  ;;  %v3727_v58 = vor.u32 %v4096_v43, %v3724_v46  ;;  %v4106_v43 = vld [vmem:[%s4902_s16 + $0x22c] sm:$0xf0]  ;;  %v1186_v46 = vld [vmem:[#allocation2 + $0xe0] sm:$0xff] }
 0x312   : > { %2782 = vst [vmem:[#allocation2 + $0x180] sm:$0xff] %v2718_v54  ;;  %2276 = vmatmul.bf16.gmra.mxu2 %v3695_v49  ;;  %2107 = vmatmul.bf16.gmra.mxu1 %v3691_v50  ;;  %v3730_v49 = vld [vmem:[%s4902_s16 + $0x1e8] sm:$0xf]  ;;  %v4099_v50 = vld [vmem:[%s4902_s16 + $0x1f4] sm:$0xf0] }
 0x313   : > { %v2403_v0 = vpop.f32.mrf.mxu3  ;;  %v3732_v54 = vld [vmem:[%s4902_s16 + $0x1f8] sm:$0xf0]  ;;  %v3731_v3 = vor.u32 %v4099_v50, %v3730_v49 }
 0x314   : > { %v2404_v4 = vadd.f32 %v2403_v0, %v2235_v60  ;;  %v1183_v0 = vld [vmem:[#allocation2 + $0x150] sm:$0xff] }
 0x315   : > { %v2237_v41 = vpop.f32.mrf.mxu2  ;;  %v2575_v45 = vpop.f32.mrf.mxu0 }
 0x316   : > { %v2573_v8 = vadd.f32 %v2572_v62, %v2404_v4  ;;  %v2238_v11 = vadd.f32 %v2237_v41, %v2068_v53  ;;  %v4097_v53 = vld [vmem:[%s4902_s16 + $0x1ec] sm:$0xf] }
 0x317   : > { %v2070_v9 = vpop.f32.mrf.mxu1  ;;  %v3735_v60 = vor.u32 %v4097_v53, %v3732_v54 }
 0x318   : > { %v2719_v10 = vadd.f32 %v2573_v8, %v1179_v7  ;;  %2445 = vmatmul.bf16.gmra.mxu3 %v3699_v5  ;;  %2614 = vmatmul.bf16.gmra.mxu0 %v3703_v6  ;;  %v4100_v8 = vld [vmem:[%s4902_s16 + $0x204] sm:$0xf] }
 0x31a   : > { %2783 = vst [vmem:[#allocation2 + $0x110] sm:$0xff] %v2719_v10  ;;  %v3740_v10 = vld [vmem:[%s4902_s16 + $0x210] sm:$0xf0] }
 0x31b   : > { %v2406_v13 = vpop.f32.mrf.mxu3 }
 0x31c   : > { %v2407_v17 = vadd.f32 %v2406_v13, %v2238_v11  ;;  %v3738_v11 = vld [vmem:[%s4902_s16 + $0x200] sm:$0xf] }
 0x31d   : > { %v2239_v19 = vpop.f32.mrf.mxu2  ;;  %v2577_v20 = vpop.f32.mrf.mxu0 }
 0x31e   : > { %v2576_v21 = vadd.f32 %v2575_v45, %v2407_v17  ;;  %v2240_v32 = vadd.f32 %v2239_v19, %v2070_v9  ;;  %v3739_v19 = vor.u32 %v4102_v12, %v3738_v11 }
 0x31f   : > { %v2073_v24 = vpop.f32.mrf.mxu1 }
 0x320   : > { %v2720_v27 = vadd.f32 %v2576_v21, %v1180_v18  ;;  %v3743_v18 = vor.u32 %v4100_v8, %v3740_v10  ;;  %v4110_v8 = vld [vmem:[%s4902_s16 + $0x24c] sm:$0xf0]  ;;  %v1188_v10 = vld [vmem:[#allocation2 + $0x138] sm:$0xff] }
 0x322   : > { %2784 = vst [vmem:[#allocation2 + $0x118] sm:$0xff] %v2720_v27  ;;  %2281 = vmatmul.bf16.gmra.mxu2 %v3711_v22  ;;  %2112 = vmatmul.bf16.gmra.mxu1 %v3707_v23  ;;  %v3746_v22 = vld [vmem:[%s4902_s16 + $0x208] sm:$0xf]  ;;  %v4103_v23 = vld [vmem:[%s4902_s16 + $0x214] sm:$0xf0] }
 0x323   : > { %v2408_v35 = vpop.f32.mrf.mxu3  ;;  %v3748_v27 = vld [vmem:[%s4902_s16 + $0x218] sm:$0xf0]  ;;  %v3747_v31 = vor.u32 %v4103_v23, %v3746_v22 }
 0x324   : > { %v2409_v36 = vadd.f32 %v2408_v35, %v2240_v32  ;;  %v1185_v35 = vld [vmem:[#allocation2 + $0x60] sm:$0xff] }
 0x325   : > { %v2242_v40 = vpop.f32.mrf.mxu2  ;;  %v2580_v33 = vpop.f32.mrf.mxu0 }
 0x326   : > { %v2578_v34 = vadd.f32 %v2577_v20, %v2409_v36  ;;  %v2243_v44 = vadd.f32 %v2242_v40, %v2073_v24  ;;  %v4101_v24 = vld [vmem:[%s4902_s16 + $0x20c] sm:$0xf] }
 0x327   : > { %v2075_v25 = vpop.f32.mrf.mxu1  ;;  %v3751_v32 = vor.u32 %v4101_v24, %v3748_v27 }
 0x328   : > { %v2721_v26 = vadd.f32 %v2578_v34, %v1181_v39  ;;  %2450 = vmatmul.bf16.gmra.mxu3 %v3715_v37  ;;  %2619 = vmatmul.bf16.gmra.mxu0 %v3719_v38  ;;  %v4104_v34 = vld [vmem:[%s4902_s16 + $0x224] sm:$0xf] }
 0x32a   : > { %2785 = vst [vmem:[#allocation2 + $0x98] sm:$0xff] %v2721_v26  ;;  %v3756_v26 = vld [vmem:[%s4902_s16 + $0x230] sm:$0xf0] }
 0x32b   : > { %v2411_v47 = vpop.f32.mrf.mxu3 }
 0x32c   : > { %v2412_v51 = vadd.f32 %v2411_v47, %v2243_v44  ;;  %v3754_v44 = vld [vmem:[%s4902_s16 + $0x220] sm:$0xf] }
 0x32d   : > { %v2244_v55 = vpop.f32.mrf.mxu2  ;;  %v2582_v56 = vpop.f32.mrf.mxu0 }
 0x32e   : > { %v2581_v57 = vadd.f32 %v2580_v33, %v2412_v51  ;;  %v2245_v2 = vadd.f32 %v2244_v55, %v2075_v25  ;;  %v3755_v55 = vor.u32 %v4106_v43, %v3754_v44 }
 0x32f   : > { %v2078_v62 = vpop.f32.mrf.mxu1 }
 0x330   : > { %v2722_v1 = vadd.f32 %v2581_v57, %v1182_v52  ;;  %v3759_v52 = vor.u32 %v4104_v34, %v3756_v26  ;;  %v4114_v34 = vld [vmem:[%s4902_s16 + $0x26c] sm:$0xf0]  ;;  %v1190_v26 = vld [vmem:[#allocation2 + $0x80] sm:$0xff] }
 0x332   : > { %2786 = vst [vmem:[#allocation2 + $0x120] sm:$0xff] %v2722_v1  ;;  %2286 = vmatmul.bf16.gmra.mxu2 %v3727_v58  ;;  %2117 = vmatmul.bf16.gmra.mxu1 %v3723_v61  ;;  %v3762_v58 = vld [vmem:[%s4902_s16 + $0x228] sm:$0xf]  ;;  %v4107_v61 = vld [vmem:[%s4902_s16 + $0x234] sm:$0xf0] }
 0x333   : > { %v2413_v59 = vpop.f32.mrf.mxu3  ;;  %v3764_v1 = vld [vmem:[%s4902_s16 + $0x238] sm:$0xf0]  ;;  %v3763_v54 = vor.u32 %v4107_v61, %v3762_v58 }
 0x334   : > { %v2414_v63 = vadd.f32 %v2413_v59, %v2245_v2  ;;  %v1187_v59 = vld [vmem:[#allocation2 + $0x188] sm:$0xff] }
 0x335   : > { %v2247_v4 = vpop.f32.mrf.mxu2  ;;  %v2585_v5 = vpop.f32.mrf.mxu0 }
 0x336   : > { %v2583_v6 = vadd.f32 %v2582_v56, %v2414_v63  ;;  %v2248_v45 = vadd.f32 %v2247_v4, %v2078_v62  ;;  %v4105_v62 = vld [vmem:[%s4902_s16 + $0x22c] sm:$0xf] }
 0x337   : > { %v2080_v7 = vpop.f32.mrf.mxu1  ;;  %v3767_v2 = vor.u32 %v4105_v62, %v3764_v1 }
 0x338   : > { %v2723_v41 = vadd.f32 %v2583_v6, %v1183_v0  ;;  %2455 = vmatmul.bf16.gmra.mxu3 %v3731_v3  ;;  %2624 = vmatmul.bf16.gmra.mxu0 %v3735_v60  ;;  %v4108_v6 = vld [vmem:[%s4902_s16 + $0x244] sm:$0xf] }
 0x33a   : > { %2787 = vst [vmem:[#allocation2 + $0x150] sm:$0xff] %v2723_v41  ;;  %v3772_v41 = vld [vmem:[%s4902_s16 + $0x250] sm:$0xf0] }
 0x33b   : > { %v2416_v9 = vpop.f32.mrf.mxu3 }
 0x33c   : > { %v2417_v13 = vadd.f32 %v2416_v9, %v2248_v45  ;;  %v3770_v45 = vld [vmem:[%s4902_s16 + $0x240] sm:$0xf] }
 0x33d   : > { %v2249_v15 = vpop.f32.mrf.mxu2  ;;  %v2587_v16 = vpop.f32.mrf.mxu0 }
 0x33e   : > { %v2586_v17 = vadd.f32 %v2585_v5, %v2417_v13  ;;  %v2250_v28 = vadd.f32 %v2249_v15, %v2080_v7  ;;  %v3771_v15 = vor.u32 %v4110_v8, %v3770_v45 }
 0x33f   : > { %v2083_v20 = vpop.f32.mrf.mxu1 }
 0x340   : > { %v2724_v21 = vadd.f32 %v2586_v17, %v1184_v14  ;;  %v3775_v14 = vor.u32 %v4108_v6, %v3772_v41  ;;  %v4118_v6 = vld [vmem:[%s4902_s16 + $0x28c] sm:$0xf0]  ;;  %v1192_v41 = vld [vmem:[#allocation2 + $0x1b8] sm:$0xff] }
 0x342   : > { %2788 = vst [vmem:[#allocation2 + $0x108] sm:$0xff] %v2724_v21  ;;  %2291 = vmatmul.bf16.gmra.mxu2 %v3743_v18  ;;  %2122 = vmatmul.bf16.gmra.mxu1 %v3739_v19  ;;  %v3778_v18 = vld [vmem:[%s4902_s16 + $0x248] sm:$0xf]  ;;  %v4111_v19 = vld [vmem:[%s4902_s16 + $0x254] sm:$0xf0] }
 0x343   : > { %v2418_v29 = vpop.f32.mrf.mxu3  ;;  %v3780_v21 = vld [vmem:[%s4902_s16 + $0x258] sm:$0xf0]  ;;  %v3779_v27 = vor.u32 %v4111_v19, %v3778_v18 }
 0x344   : > { %v2419_v30 = vadd.f32 %v2418_v29, %v2250_v28  ;;  %v1189_v29 = vld [vmem:[#allocation2 + $0x140] sm:$0xff] }
 0x345   : > { %v2252_v36 = vpop.f32.mrf.mxu2  ;;  %v2590_v37 = vpop.f32.mrf.mxu0 }
 0x346   : > { %v2588_v38 = vadd.f32 %v2587_v16, %v2419_v30  ;;  %v2253_v33 = vadd.f32 %v2252_v36, %v2083_v20  ;;  %v4109_v20 = vld [vmem:[%s4902_s16 + $0x24c] sm:$0xf] }
 0x347   : > { %v2085_v39 = vpop.f32.mrf.mxu1  ;;  %v3783_v28 = vor.u32 %v4109_v20, %v3780_v21 }
 0x348   : > { %v2725_v40 = vadd.f32 %v2588_v38, %v1185_v35  ;;  %2460 = vmatmul.bf16.gmra.mxu3 %v3747_v31  ;;  %2629 = vmatmul.bf16.gmra.mxu0 %v3751_v32  ;;  %v4112_v38 = vld [vmem:[%s4902_s16 + $0x264] sm:$0xf] }
 0x34a   : > { %2789 = vst [vmem:[#allocation2 + $0x60] sm:$0xff] %v2725_v40  ;;  %v3788_v40 = vld [vmem:[%s4902_s16 + $0x270] sm:$0xf0] }
 0x34b   : > { %v2421_v25 = vpop.f32.mrf.mxu3 }
 0x34c   : > { %v2422_v47 = vadd.f32 %v2421_v25, %v2253_v33  ;;  %v3786_v33 = vld [vmem:[%s4902_s16 + $0x260] sm:$0xf] }
 0x34d   : > { %v2254_v42 = vpop.f32.mrf.mxu2  ;;  %v2592_v48 = vpop.f32.mrf.mxu0 }
 0x34e   : > { %v2591_v51 = vadd.f32 %v2590_v37, %v2422_v47  ;;  %v2255_v49 = vadd.f32 %v2254_v42, %v2085_v39  ;;  %v3787_v42 = vor.u32 %v4114_v34, %v3786_v33 }
 0x34f   : > { %v2088_v56 = vpop.f32.mrf.mxu1 }
 0x350   : > { %v2726_v57 = vadd.f32 %v2591_v51, %v1186_v46  ;;  %v3791_v46 = vor.u32 %v4112_v38, %v3788_v40  ;;  %v4122_v38 = vld [vmem:[%s4902_s16 + $0x2ac] sm:$0xf0]  ;;  %v1194_v40 = vld [vmem:[#allocation2 + $0x1e8] sm:$0xff] }
 0x352   : > { %2790 = vst [vmem:[#allocation2 + $0xe0] sm:$0xff] %v2726_v57  ;;  %2296 = vmatmul.bf16.gmra.mxu2 %v3759_v52  ;;  %2127 = vmatmul.bf16.gmra.mxu1 %v3755_v55  ;;  %v3794_v52 = vld [vmem:[%s4902_s16 + $0x268] sm:$0xf]  ;;  %v4115_v55 = vld [vmem:[%s4902_s16 + $0x274] sm:$0xf0] }
 0x353   : > { %v2423_v50 = vpop.f32.mrf.mxu3  ;;  %v3796_v57 = vld [vmem:[%s4902_s16 + $0x278] sm:$0xf0]  ;;  %v3795_v1 = vor.u32 %v4115_v55, %v3794_v52 }
 0x354   : > { %v2424_v53 = vadd.f32 %v2423_v50, %v2255_v49  ;;  %v1191_v50 = vld [vmem:[#allocation2 + $0x1a8] sm:$0xff] }
 0x355   : > { %v2257_v63 = vpop.f32.mrf.mxu2  ;;  %v2595_v3 = vpop.f32.mrf.mxu0 }
 0x356   : > { %v2593_v60 = vadd.f32 %v2592_v48, %v2424_v53  ;;  %v2258_v5 = vadd.f32 %v2257_v63, %v2088_v56  ;;  %v4113_v56 = vld [vmem:[%s4902_s16 + $0x26c] sm:$0xf] }
 0x357   : > { %v2090_v0 = vpop.f32.mrf.mxu1  ;;  %v3799_v49 = vor.u32 %v4113_v56, %v3796_v57 }
 0x358   : > { %v2727_v4 = vadd.f32 %v2593_v60, %v1187_v59  ;;  %2465 = vmatmul.bf16.gmra.mxu3 %v3763_v54  ;;  %2634 = vmatmul.bf16.gmra.mxu0 %v3767_v2  ;;  %v4116_v60 = vld [vmem:[%s4902_s16 + $0x284] sm:$0xf] }
 0x35a   : > { %2791 = vst [vmem:[#allocation2 + $0x188] sm:$0xff] %v2727_v4  ;;  %v3804_v4 = vld [vmem:[%s4902_s16 + $0x290] sm:$0xf0] }
 0x35b   : > { %v2426_v7 = vpop.f32.mrf.mxu3 }
 0x35c   : > { %v2427_v9 = vadd.f32 %v2426_v7, %v2258_v5  ;;  %v3802_v5 = vld [vmem:[%s4902_s16 + $0x280] sm:$0xf] }
 0x35d   : > { %v2259_v11 = vpop.f32.mrf.mxu2  ;;  %v2597_v12 = vpop.f32.mrf.mxu0 }
 0x35e   : > { %v2596_v13 = vadd.f32 %v2595_v3, %v2427_v9  ;;  %v2260_v22 = vadd.f32 %v2259_v11, %v2090_v0  ;;  %v3803_v11 = vor.u32 %v4118_v6, %v3802_v5 }
 0x35f   : > { %v2093_v16 = vpop.f32.mrf.mxu1 }
 0x360   : > { %v2728_v17 = vadd.f32 %v2596_v13, %v1188_v10  ;;  %v3807_v10 = vor.u32 %v4116_v60, %v3804_v4  ;;  %v4126_v60 = vld [vmem:[%s4902_s16 + $0x2cc] sm:$0xf0]  ;;  %v1196_v4 = vld [vmem:[#allocation2 + $0x160] sm:$0xff] }
 0x362   : > { %2792 = vst [vmem:[#allocation2 + $0x138] sm:$0xff] %v2728_v17  ;;  %2301 = vmatmul.bf16.gmra.mxu2 %v3775_v14  ;;  %2132 = vmatmul.bf16.gmra.mxu1 %v3771_v15  ;;  %v3810_v14 = vld [vmem:[%s4902_s16 + $0x288] sm:$0xf]  ;;  %v4119_v15 = vld [vmem:[%s4902_s16 + $0x294] sm:$0xf0] }
 0x363   : > { %v2428_v23 = vpop.f32.mrf.mxu3  ;;  %v3812_v17 = vld [vmem:[%s4902_s16 + $0x298] sm:$0xf0]  ;;  %v3811_v21 = vor.u32 %v4119_v15, %v3810_v14 }
 0x364   : > { %v2429_v24 = vadd.f32 %v2428_v23, %v2260_v22  ;;  %v1193_v23 = vld [vmem:[#allocation2 + $0x28] sm:$0xff] }
 0x365   : > { %v2262_v30 = vpop.f32.mrf.mxu2  ;;  %v2600_v31 = vpop.f32.mrf.mxu0 }
 0x366   : > { %v2598_v32 = vadd.f32 %v2597_v12, %v2429_v24  ;;  %v2263_v37 = vadd.f32 %v2262_v30, %v2093_v16  ;;  %v4117_v16 = vld [vmem:[%s4902_s16 + $0x28c] sm:$0xf] }
 0x367   : > { %v2095_v35 = vpop.f32.mrf.mxu1  ;;  %v3815_v22 = vor.u32 %v4117_v16, %v3812_v17 }
 0x368   : > { %v2729_v36 = vadd.f32 %v2598_v32, %v1189_v29  ;;  %2470 = vmatmul.bf16.gmra.mxu3 %v3779_v27  ;;  %2639 = vmatmul.bf16.gmra.mxu0 %v3783_v28  ;;  %v4120_v32 = vld [vmem:[%s4902_s16 + $0x2a4] sm:$0xf] }
 0x36a   : > { %2793 = vst [vmem:[#allocation2 + $0x140] sm:$0xff] %v2729_v36  ;;  %v3820_v36 = vld [vmem:[%s4902_s16 + $0x2b0] sm:$0xf0] }
 0x36b   : > { %v2431_v39 = vpop.f32.mrf.mxu3 }
 0x36c   : > { %v2432_v25 = vadd.f32 %v2431_v39, %v2263_v37  ;;  %v3818_v37 = vld [vmem:[%s4902_s16 + $0x2a0] sm:$0xf] }
 0x36d   : > { %v2264_v44 = vpop.f32.mrf.mxu2  ;;  %v2602_v43 = vpop.f32.mrf.mxu0 }
 0x36e   : > { %v2601_v47 = vadd.f32 %v2600_v31, %v2432_v25  ;;  %v2265_v58 = vadd.f32 %v2264_v44, %v2095_v35  ;;  %v3819_v44 = vor.u32 %v4122_v38, %v3818_v37 }
 0x36f   : > { %v2098_v48 = vpop.f32.mrf.mxu1 }
 0x370   : > { %v2730_v51 = vadd.f32 %v2601_v47, %v1190_v26  ;;  %v3823_v26 = vor.u32 %v4120_v32, %v3820_v36  ;;  %v4130_v32 = vld [vmem:[%s4902_s16 + $0x2ec] sm:$0xf0]  ;;  %v1198_v36 = vld [vmem:[#allocation2 + $0x1e0] sm:$0xff] }
 0x372   : > { %2794 = vst [vmem:[#allocation2 + $0x80] sm:$0xff] %v2730_v51  ;;  %2306 = vmatmul.bf16.gmra.mxu2 %v3791_v46  ;;  %2137 = vmatmul.bf16.gmra.mxu1 %v3787_v42  ;;  %v3826_v46 = vld [vmem:[%s4902_s16 + $0x2a8] sm:$0xf]  ;;  %v4123_v42 = vld [vmem:[%s4902_s16 + $0x2b4] sm:$0xf0] }
 0x373   : > { %v2433_v61 = vpop.f32.mrf.mxu3  ;;  %v3828_v51 = vld [vmem:[%s4902_s16 + $0x2b8] sm:$0xf0]  ;;  %v3827_v57 = vor.u32 %v4123_v42, %v3826_v46 }
 0x374   : > { %v2434_v62 = vadd.f32 %v2433_v61, %v2265_v58  ;;  %v1195_v61 = vld [vmem:[#allocation2 + $0xf8] sm:$0xff] }
 0x375   : > { %v2267_v53 = vpop.f32.mrf.mxu2  ;;  %v2605_v54 = vpop.f32.mrf.mxu0 }
 0x376   : > { %v2603_v2 = vadd.f32 %v2602_v43, %v2434_v62  ;;  %v2268_v3 = vadd.f32 %v2267_v53, %v2098_v48  ;;  %v4121_v48 = vld [vmem:[%s4902_s16 + $0x2ac] sm:$0xf] }
 0x377   : > { %v2100_v59 = vpop.f32.mrf.mxu1  ;;  %v3831_v58 = vor.u32 %v4121_v48, %v3828_v51 }
 0x378   : > { %v2731_v63 = vadd.f32 %v2603_v2, %v1191_v50  ;;  %2475 = vmatmul.bf16.gmra.mxu3 %v3795_v1  ;;  %2644 = vmatmul.bf16.gmra.mxu0 %v3799_v49  ;;  %v4124_v2 = vld [vmem:[%s4902_s16 + $0x2c4] sm:$0xf] }
 0x37a   : > { %2795 = vst [vmem:[#allocation2 + $0x1a8] sm:$0xff] %v2731_v63  ;;  %v3836_v63 = vld [vmem:[%s4902_s16 + $0x2d0] sm:$0xf0] }
 0x37b   : > { %v2436_v0 = vpop.f32.mrf.mxu3 }
 0x37c   : > { %v2437_v7 = vadd.f32 %v2436_v0, %v2268_v3  ;;  %v3834_v3 = vld [vmem:[%s4902_s16 + $0x2c0] sm:$0xf] }
 0x37d   : > { %v2269_v45 = vpop.f32.mrf.mxu2  ;;  %v2607_v8 = vpop.f32.mrf.mxu0 }
 0x37e   : > { %v2606_v9 = vadd.f32 %v2605_v54, %v2437_v7  ;;  %v2270_v18 = vadd.f32 %v2269_v45, %v2100_v59  ;;  %v3835_v45 = vor.u32 %v4126_v60, %v3834_v3 }
 0x37f   : > { %v2103_v12 = vpop.f32.mrf.mxu1 }
 0x380   : > { %v2732_v13 = vadd.f32 %v2606_v9, %v1192_v41  ;;  %v3839_v41 = vor.u32 %v4124_v2, %v3836_v63  ;;  %v4134_v2 = vld [vmem:[%s4902_s16 + $0x30c] sm:$0xf0] }
 0x381   : > { %v1200_v63 = vld [vmem:[#allocation2 + $0xf0] sm:$0xff] }
 0x382   : > { %2796 = vst [vmem:[#allocation2 + $0x1b8] sm:$0xff] %v2732_v13  ;;  %2311 = vmatmul.bf16.gmra.mxu2 %v3807_v10  ;;  %2142 = vmatmul.bf16.gmra.mxu1 %v3803_v11  ;;  %v3842_v10 = vld [vmem:[%s4902_s16 + $0x2c8] sm:$0xf]  ;;  %v4127_v11 = vld [vmem:[%s4902_s16 + $0x2d4] sm:$0xf0] }
 0x383   : > { %v2438_v19 = vpop.f32.mrf.mxu3  ;;  %v3844_v13 = vld [vmem:[%s4902_s16 + $0x2d8] sm:$0xf0]  ;;  %v3843_v17 = vor.u32 %v4127_v11, %v3842_v10 }
 0x384   : > { %v2439_v20 = vadd.f32 %v2438_v19, %v2270_v18  ;;  %v1197_v19 = vld [vmem:[#allocation2 + $0x30] sm:$0xff] }
 0x385   : > { %v2272_v24 = vpop.f32.mrf.mxu2  ;;  %v2610_v27 = vpop.f32.mrf.mxu0 }
 0x386   : > { %v2608_v28 = vadd.f32 %v2607_v8, %v2439_v20  ;;  %v2273_v31 = vadd.f32 %v2272_v24, %v2103_v12  ;;  %v4125_v12 = vld [vmem:[%s4902_s16 + $0x2cc] sm:$0xf] }
 0x387   : > { %v2105_v29 = vpop.f32.mrf.mxu1  ;;  %v3847_v18 = vor.u32 %v4125_v12, %v3844_v13 }
 0x388   : > { %v2733_v30 = vadd.f32 %v2608_v28, %v1193_v23  ;;  %2480 = vmatmul.bf16.gmra.mxu3 %v3811_v21  ;;  %2649 = vmatmul.bf16.gmra.mxu0 %v3815_v22  ;;  %v4128_v28 = vld [vmem:[%s4902_s16 + $0x2e4] sm:$0xf] }
 0x38a   : > { %2797 = vst [vmem:[#allocation2 + $0x28] sm:$0xff] %v2733_v30  ;;  %v3852_v30 = vld [vmem:[%s4902_s16 + $0x2f0] sm:$0xf0] }
 0x38b   : > { %v2441_v35 = vpop.f32.mrf.mxu3 }
 0x38c   : > { %v2442_v39 = vadd.f32 %v2441_v35, %v2273_v31  ;;  %v3850_v31 = vld [vmem:[%s4902_s16 + $0x2e0] sm:$0xf] }
 0x38d   : > { %v2274_v33 = vpop.f32.mrf.mxu2  ;;  %v2612_v34 = vpop.f32.mrf.mxu0 }
 0x38e   : > { %v2611_v25 = vadd.f32 %v2610_v27, %v2442_v39  ;;  %v2275_v52 = vadd.f32 %v2274_v33, %v2105_v29  ;;  %v3851_v33 = vor.u32 %v4130_v32, %v3850_v31 }
 0x38f   : > { %v2108_v43 = vpop.f32.mrf.mxu1 }
 0x390   : > { %v2734_v47 = vadd.f32 %v2611_v25, %v1194_v40  ;;  %v3855_v40 = vor.u32 %v4128_v28, %v3852_v30  ;;  %v4138_v28 = vld [vmem:[%s4902_s16 + $0x32c] sm:$0xf0]  ;;  %v1202_v30 = vld [vmem:[#allocation2 + $0x148] sm:$0xff] }
 0x392   : > { %2798 = vst [vmem:[#allocation2 + $0x1e8] sm:$0xff] %v2734_v47  ;;  %2316 = vmatmul.bf16.gmra.mxu2 %v3823_v26  ;;  %2147 = vmatmul.bf16.gmra.mxu1 %v3819_v44  ;;  %v3858_v26 = vld [vmem:[%s4902_s16 + $0x2e8] sm:$0xf]  ;;  %v4131_v44 = vld [vmem:[%s4902_s16 + $0x2f4] sm:$0xf0] }
 0x393   : > { %v2443_v55 = vpop.f32.mrf.mxu3  ;;  %v3860_v47 = vld [vmem:[%s4902_s16 + $0x2f8] sm:$0xf0]  ;;  %v3859_v51 = vor.u32 %v4131_v44, %v3858_v26 }
 0x394   : > { %v2444_v56 = vadd.f32 %v2443_v55, %v2275_v52  ;;  %v1199_v55 = vld [vmem:[#allocation2] sm:$0xff] }
 0x395   : > { %v2277_v62 = vpop.f32.mrf.mxu2  ;;  %v2615_v1 = vpop.f32.mrf.mxu0 }
 0x396   : > { %v2613_v49 = vadd.f32 %v2612_v34, %v2444_v56  ;;  %v2278_v54 = vadd.f32 %v2277_v62, %v2108_v43  ;;  %v4129_v43 = vld [vmem:[%s4902_s16 + $0x2ec] sm:$0xf] }
 0x397   : > { %v2110_v50 = vpop.f32.mrf.mxu1  ;;  %v3863_v52 = vor.u32 %v4129_v43, %v3860_v47 }
 0x398   : > { %v2735_v53 = vadd.f32 %v2613_v49, %v1195_v61  ;;  %2485 = vmatmul.bf16.gmra.mxu3 %v3827_v57  ;;  %2654 = vmatmul.bf16.gmra.mxu0 %v3831_v58  ;;  %v4132_v49 = vld [vmem:[%s4902_s16 + $0x304] sm:$0xf] }
 0x39a   : > { %2799 = vst [vmem:[#allocation2 + $0xf8] sm:$0xff] %v2735_v53  ;;  %v3868_v53 = vld [vmem:[%s4902_s16 + $0x310] sm:$0xf0] }
 0x39b   : > { %v2446_v59 = vpop.f32.mrf.mxu3 }
 0x39c   : > { %v2447_v0 = vadd.f32 %v2446_v59, %v2278_v54  ;;  %v3866_v54 = vld [vmem:[%s4902_s16 + $0x300] sm:$0xf] }
 0x39d   : > { %v2279_v5 = vpop.f32.mrf.mxu2  ;;  %v2617_v6 = vpop.f32.mrf.mxu0 }
 0x39e   : > { %v2616_v7 = vadd.f32 %v2615_v1, %v2447_v0  ;;  %v2280_v14 = vadd.f32 %v2279_v5, %v2110_v50  ;;  %v3867_v5 = vor.u32 %v4134_v2, %v3866_v54 }
 0x39f   : > { %v2113_v8 = vpop.f32.mrf.mxu1 }
 0x3a0   : > { %v2736_v9 = vadd.f32 %v2616_v7, %v1196_v4  ;;  %v3871_v4 = vor.u32 %v4132_v49, %v3868_v53  ;;  %v4142_v49 = vld [vmem:[%s4902_s16 + $0x34c] sm:$0xf0]  ;;  %v1204_v53 = vld [vmem:[#allocation2 + $0x100] sm:$0xff] }
 0x3a2   : > { %2800 = vst [vmem:[#allocation2 + $0x160] sm:$0xff] %v2736_v9  ;;  %2321 = vmatmul.bf16.gmra.mxu2 %v3839_v41  ;;  %2152 = vmatmul.bf16.gmra.mxu1 %v3835_v45  ;;  %v3874_v41 = vld [vmem:[%s4902_s16 + $0x308] sm:$0xf]  ;;  %v4135_v45 = vld [vmem:[%s4902_s16 + $0x314] sm:$0xf0] }
 0x3a3   : > { %v2448_v15 = vpop.f32.mrf.mxu3  ;;  %v3876_v9 = vld [vmem:[%s4902_s16 + $0x318] sm:$0xf0]  ;;  %v3875_v13 = vor.u32 %v4135_v45, %v3874_v41 }
 0x3a4   : > { %v2449_v16 = vadd.f32 %v2448_v15, %v2280_v14  ;;  %v1201_v15 = vld [vmem:[#allocation2 + $0x8] sm:$0xff] }
 0x3a5   : > { %v2282_v20 = vpop.f32.mrf.mxu2  ;;  %v2620_v21 = vpop.f32.mrf.mxu0 }
 0x3a6   : > { %v2618_v22 = vadd.f32 %v2617_v6, %v2449_v16  ;;  %v2283_v27 = vadd.f32 %v2282_v20, %v2113_v8  ;;  %v4133_v8 = vld [vmem:[%s4902_s16 + $0x30c] sm:$0xf] }
 0x3a7   : > { %v2115_v23 = vpop.f32.mrf.mxu1  ;;  %v3879_v14 = vor.u32 %v4133_v8, %v3876_v9 }
 0x3a8   : > { %v2737_v24 = vadd.f32 %v2618_v22, %v1197_v19  ;;  %2490 = vmatmul.bf16.gmra.mxu3 %v3843_v17  ;;  %2659 = vmatmul.bf16.gmra.mxu0 %v3847_v18  ;;  %v4136_v22 = vld [vmem:[%s4902_s16 + $0x324] sm:$0xf] }
 0x3aa   : > { %2801 = vst [vmem:[#allocation2 + $0x30] sm:$0xff] %v2737_v24  ;;  %v3884_v24 = vld [vmem:[%s4902_s16 + $0x330] sm:$0xf0] }
 0x3ab   : > { %v2451_v29 = vpop.f32.mrf.mxu3 }
 0x3ac   : > { %v2452_v35 = vadd.f32 %v2451_v29, %v2283_v27  ;;  %v3882_v27 = vld [vmem:[%s4902_s16 + $0x320] sm:$0xf] }
 0x3ad   : > { %v2284_v37 = vpop.f32.mrf.mxu2  ;;  %v2622_v38 = vpop.f32.mrf.mxu0 }
 0x3ae   : > { %v2621_v39 = vadd.f32 %v2620_v21, %v2452_v35  ;;  %v2285_v46 = vadd.f32 %v2284_v37, %v2115_v23  ;;  %v3883_v37 = vor.u32 %v4138_v28, %v3882_v27 }
 0x3af   : > { %v2118_v34 = vpop.f32.mrf.mxu1 }
 0x3b0   : > { %v2738_v25 = vadd.f32 %v2621_v39, %v1198_v36  ;;  %v3887_v36 = vor.u32 %v4136_v22, %v3884_v24  ;;  %v4146_v22 = vld [vmem:[%s4902_s16 + $0x36c] sm:$0xf0]  ;;  %v1206_v24 = vld [vmem:[#allocation2 + $0x40] sm:$0xff] }
 0x3b2   : > { %2802 = vst [vmem:[#allocation2 + $0x1e0] sm:$0xff] %v2738_v25  ;;  %2326 = vmatmul.bf16.gmra.mxu2 %v3855_v40  ;;  %2157 = vmatmul.bf16.gmra.mxu1 %v3851_v33  ;;  %v3890_v40 = vld [vmem:[%s4902_s16 + $0x328] sm:$0xf]  ;;  %v4139_v33 = vld [vmem:[%s4902_s16 + $0x334] sm:$0xf0] }
 0x3b3   : > { %v2453_v42 = vpop.f32.mrf.mxu3  ;;  %v3892_v25 = vld [vmem:[%s4902_s16 + $0x338] sm:$0xf0]  ;;  %v3891_v47 = vor.u32 %v4139_v33, %v3890_v40 }
 0x3b4   : > { %v2454_v48 = vadd.f32 %v2453_v42, %v2285_v46  ;;  %v1203_v42 = vld [vmem:[#allocation2 + $0x1d0] sm:$0xff] }
 0x3b5   : > { %v2287_v56 = vpop.f32.mrf.mxu2  ;;  %v2625_v57 = vpop.f32.mrf.mxu0 }
 0x3b6   : > { %v2623_v58 = vadd.f32 %v2622_v38, %v2454_v48  ;;  %v2288_v1 = vadd.f32 %v2287_v56, %v2118_v34  ;;  %v4137_v34 = vld [vmem:[%s4902_s16 + $0x32c] sm:$0xf] }
 0x3b7   : > { %v2120_v61 = vpop.f32.mrf.mxu1  ;;  %v3895_v46 = vor.u32 %v4137_v34, %v3892_v25 }
 0x3b8   : > { %v2739_v62 = vadd.f32 %v2623_v58, %v1199_v55  ;;  %2495 = vmatmul.bf16.gmra.mxu3 %v3859_v51  ;;  %2664 = vmatmul.bf16.gmra.mxu0 %v3863_v52  ;;  %v4140_v58 = vld [vmem:[%s4902_s16 + $0x344] sm:$0xf] }
 0x3ba   : > { %2803 = vst [vmem:[#allocation2] sm:$0xff] %v2739_v62  ;;  %v3900_v62 = vld [vmem:[%s4902_s16 + $0x350] sm:$0xf0] }
 0x3bb   : > { %v2456_v50 = vpop.f32.mrf.mxu3 }
 0x3bc   : > { %v2457_v59 = vadd.f32 %v2456_v50, %v2288_v1  ;;  %v3898_v1 = vld [vmem:[%s4902_s16 + $0x340] sm:$0xf] }
 0x3bd   : > { %v2289_v3 = vpop.f32.mrf.mxu2  ;;  %v2627_v60 = vpop.f32.mrf.mxu0 }
 0x3be   : > { %v2626_v0 = vadd.f32 %v2625_v57, %v2457_v59  ;;  %v2290_v10 = vadd.f32 %v2289_v3, %v2120_v61  ;;  %v3899_v3 = vor.u32 %v4142_v49, %v3898_v1 }
 0x3bf   : > { %v2123_v6 = vpop.f32.mrf.mxu1 }
 0x3c0   : > { %v2740_v7 = vadd.f32 %v2626_v0, %v1200_v63  ;;  %v3903_v63 = vor.u32 %v4140_v58, %v3900_v62  ;;  %v4150_v58 = vld [vmem:[%s4902_s16 + $0x38c] sm:$0xf0]  ;;  %v1208_v62 = vld [vmem:[#allocation2 + $0x20] sm:$0xff] }
 0x3c2   : > { %2804 = vst [vmem:[#allocation2 + $0xf0] sm:$0xff] %v2740_v7  ;;  %2331 = vmatmul.bf16.gmra.mxu2 %v3871_v4  ;;  %2162 = vmatmul.bf16.gmra.mxu1 %v3867_v5  ;;  %v3906_v4 = vld [vmem:[%s4902_s16 + $0x348] sm:$0xf]  ;;  %v4143_v5 = vld [vmem:[%s4902_s16 + $0x354] sm:$0xf0] }
 0x3c3   : > { %v2458_v11 = vpop.f32.mrf.mxu3  ;;  %v3908_v7 = vld [vmem:[%s4902_s16 + $0x358] sm:$0xf0]  ;;  %v3907_v9 = vor.u32 %v4143_v5, %v3906_v4 }
 0x3c4   : > { %v2459_v12 = vadd.f32 %v2458_v11, %v2290_v10  ;;  %v1205_v11 = vld [vmem:[#allocation2 + $0xc8] sm:$0xff] }
 0x3c5   : > { %v2292_v16 = vpop.f32.mrf.mxu2  ;;  %v2630_v17 = vpop.f32.mrf.mxu0 }
 0x3c6   : > { %v2628_v18 = vadd.f32 %v2627_v60, %v2459_v12  ;;  %v2293_v21 = vadd.f32 %v2292_v16, %v2123_v6  ;;  %v4141_v6 = vld [vmem:[%s4902_s16 + $0x34c] sm:$0xf] }
 0x3c7   : > { %v2125_v19 = vpop.f32.mrf.mxu1  ;;  %v3911_v10 = vor.u32 %v4141_v6, %v3908_v7 }
 0x3c8   : > { %v2741_v20 = vadd.f32 %v2628_v18, %v1201_v15  ;;  %2500 = vmatmul.bf16.gmra.mxu3 %v3875_v13  ;;  %2669 = vmatmul.bf16.gmra.mxu0 %v3879_v14  ;;  %v4144_v18 = vld [vmem:[%s4902_s16 + $0x364] sm:$0xf] }
 0x3ca   : > { %2805 = vst [vmem:[#allocation2 + $0x8] sm:$0xff] %v2741_v20  ;;  %v3916_v20 = vld [vmem:[%s4902_s16 + $0x370] sm:$0xf0] }
 0x3cb   : > { %v2461_v23 = vpop.f32.mrf.mxu3 }
 0x3cc   : > { %v2462_v29 = vadd.f32 %v2461_v23, %v2293_v21  ;;  %v3914_v21 = vld [vmem:[%s4902_s16 + $0x360] sm:$0xf] }
 0x3cd   : > { %v2294_v31 = vpop.f32.mrf.mxu2  ;;  %v2632_v32 = vpop.f32.mrf.mxu0 }
 0x3ce   : > { %v2631_v35 = vadd.f32 %v2630_v17, %v2462_v29  ;;  %v2295_v26 = vadd.f32 %v2294_v31, %v2125_v19  ;;  %v3915_v31 = vor.u32 %v4146_v22, %v3914_v21 }
 0x3cf   : > { %v2128_v38 = vpop.f32.mrf.mxu1 }
 0x3d0   : > { %v2742_v39 = vadd.f32 %v2631_v35, %v1202_v30  ;;  %v3919_v30 = vor.u32 %v4144_v18, %v3916_v20  ;;  %v4154_v18 = vld [vmem:[%s4902_s16 + $0x3ac] sm:$0xf0]  ;;  %v1210_v20 = vld [vmem:[#allocation2 + $0x1a0] sm:$0xff] }
 0x3d2   : > { %2806 = vst [vmem:[#allocation2 + $0x148] sm:$0xff] %v2742_v39  ;;  %2336 = vmatmul.bf16.gmra.mxu2 %v3887_v36  ;;  %2167 = vmatmul.bf16.gmra.mxu1 %v3883_v37  ;;  %v3922_v36 = vld [vmem:[%s4902_s16 + $0x368] sm:$0xf]  ;;  %v4147_v37 = vld [vmem:[%s4902_s16 + $0x374] sm:$0xf0] }
 0x3d3   : > { %v2463_v44 = vpop.f32.mrf.mxu3  ;;  %v3924_v39 = vld [vmem:[%s4902_s16 + $0x378] sm:$0xf0]  ;;  %v3923_v25 = vor.u32 %v4147_v37, %v3922_v36 }
 0x3d4   : > { %v2464_v43 = vadd.f32 %v2463_v44, %v2295_v26  ;;  %v1207_v44 = vld [vmem:[#allocation2 + $0x1f8] sm:$0xff] }
 0x3d5   : > { %v2297_v48 = vpop.f32.mrf.mxu2  ;;  %v2635_v51 = vpop.f32.mrf.mxu0 }
 0x3d6   : > { %v2633_v52 = vadd.f32 %v2632_v32, %v2464_v43  ;;  %v2298_v57 = vadd.f32 %v2297_v48, %v2128_v38  ;;  %v4145_v38 = vld [vmem:[%s4902_s16 + $0x36c] sm:$0xf] }
 0x3d7   : > { %v2130_v55 = vpop.f32.mrf.mxu1  ;;  %v3927_v26 = vor.u32 %v4145_v38, %v3924_v39 }
 0x3d8   : > { %v2743_v56 = vadd.f32 %v2633_v52, %v1203_v42  ;;  %2505 = vmatmul.bf16.gmra.mxu3 %v3891_v47  ;;  %2674 = vmatmul.bf16.gmra.mxu0 %v3895_v46  ;;  %v4148_v52 = vld [vmem:[%s4902_s16 + $0x384] sm:$0xf] }
 0x3da   : > { %2807 = vst [vmem:[#allocation2 + $0x1d0] sm:$0xff] %v2743_v56  ;;  %v3932_v56 = vld [vmem:[%s4902_s16 + $0x390] sm:$0xf0] }
 0x3db   : > { %v2466_v61 = vpop.f32.mrf.mxu3 }
 0x3dc   : > { %v2467_v50 = vadd.f32 %v2466_v61, %v2298_v57  ;;  %v3930_v57 = vld [vmem:[%s4902_s16 + $0x380] sm:$0xf] }
 0x3dd   : > { %v2299_v54 = vpop.f32.mrf.mxu2  ;;  %v2637_v2 = vpop.f32.mrf.mxu0 }
 0x3de   : > { %v2636_v59 = vadd.f32 %v2635_v51, %v2467_v50  ;;  %v2300_v41 = vadd.f32 %v2299_v54, %v2130_v55  ;;  %v3931_v54 = vor.u32 %v4150_v58, %v3930_v57 }
 0x3df   : > { %v2133_v60 = vpop.f32.mrf.mxu1 }
 0x3e0   : > { %v2744_v0 = vadd.f32 %v2636_v59, %v1204_v53  ;;  %v3935_v53 = vor.u32 %v4148_v52, %v3932_v56  ;;  %v4158_v52 = vld [vmem:[%s4902_s16 + $0x3cc] sm:$0xf0]  ;;  %v1212_v56 = vld [vmem:[#allocation2 + $0xe8] sm:$0xff] }
 0x3e2   : > { %2808 = vst [vmem:[#allocation2 + $0x100] sm:$0xff] %v2744_v0  ;;  %2341 = vmatmul.bf16.gmra.mxu2 %v3903_v63  ;;  %2172 = vmatmul.bf16.gmra.mxu1 %v3899_v3  ;;  %v3938_v63 = vld [vmem:[%s4902_s16 + $0x388] sm:$0xf]  ;;  %v4151_v3 = vld [vmem:[%s4902_s16 + $0x394] sm:$0xf0] }
 0x3e3   : > { %v2468_v45 = vpop.f32.mrf.mxu3  ;;  %v3940_v0 = vld [vmem:[%s4902_s16 + $0x398] sm:$0xf0]  ;;  %v3939_v7 = vor.u32 %v4151_v3, %v3938_v63 }
 0x3e4   : > { %v2469_v8 = vadd.f32 %v2468_v45, %v2300_v41  ;;  %v1209_v45 = vld [vmem:[#allocation2 + $0x128] sm:$0xff] }
 0x3e5   : > { %v2302_v12 = vpop.f32.mrf.mxu2  ;;  %v2640_v13 = vpop.f32.mrf.mxu0 }
 0x3e6   : > { %v2638_v14 = vadd.f32 %v2637_v2, %v2469_v8  ;;  %v2303_v17 = vadd.f32 %v2302_v12, %v2133_v60  ;;  %v4149_v60 = vld [vmem:[%s4902_s16 + $0x38c] sm:$0xf] }
 0x3e7   : > { %v2135_v15 = vpop.f32.mrf.mxu1  ;;  %v3943_v41 = vor.u32 %v4149_v60, %v3940_v0 }
 0x3e8   : > { %v2745_v16 = vadd.f32 %v2638_v14, %v1205_v11  ;;  %2510 = vmatmul.bf16.gmra.mxu3 %v3907_v9  ;;  %2679 = vmatmul.bf16.gmra.mxu0 %v3911_v10  ;;  %v4152_v14 = vld [vmem:[%s4902_s16 + $0x3a4] sm:$0xf] }
 0x3ea   : > { %2809 = vst [vmem:[#allocation2 + $0xc8] sm:$0xff] %v2745_v16  ;;  %v3948_v16 = vld [vmem:[%s4902_s16 + $0x3b0] sm:$0xf0] }
 0x3eb   : > { %v2471_v19 = vpop.f32.mrf.mxu3 }
 0x3ec   : > { %v2472_v23 = vadd.f32 %v2471_v19, %v2303_v17  ;;  %v3946_v17 = vld [vmem:[%s4902_s16 + $0x3a0] sm:$0xf] }
 0x3ed   : > { %v2304_v27 = vpop.f32.mrf.mxu2  ;;  %v2642_v28 = vpop.f32.mrf.mxu0 }
 0x3ee   : > { %v2641_v29 = vadd.f32 %v2640_v13, %v2472_v23  ;;  %v2305_v40 = vadd.f32 %v2304_v27, %v2135_v15  ;;  %v3947_v27 = vor.u32 %v4154_v18, %v3946_v17 }
 0x3ef   : > { %v2138_v32 = vpop.f32.mrf.mxu1 }
 0x3f0   : > { %v2746_v35 = vadd.f32 %v2641_v29, %v1206_v24  ;;  %v3951_v24 = vor.u32 %v4152_v14, %v3948_v16  ;;  %v4162_v14 = vld [vmem:[%s4902_s16 + $0x3ec] sm:$0xf0] }
 0x3f1   : > { %v1214_v16 = vld [vmem:[#allocation2 + $0x70] sm:$0xff] }
 0x3f2   : > { %2810 = vst [vmem:[#allocation2 + $0x40] sm:$0xff] %v2746_v35  ;;  %2346 = vmatmul.bf16.gmra.mxu2 %v3919_v30  ;;  %2177 = vmatmul.bf16.gmra.mxu1 %v3915_v31  ;;  %v3954_v30 = vld [vmem:[%s4902_s16 + $0x3a8] sm:$0xf]  ;;  %v4155_v31 = vld [vmem:[%s4902_s16 + $0x3b4] sm:$0xf0] }
 0x3f3   : > { %v2473_v33 = vpop.f32.mrf.mxu3  ;;  %v3956_v35 = vld [vmem:[%s4902_s16 + $0x3b8] sm:$0xf0]  ;;  %v3955_v39 = vor.u32 %v4155_v31, %v3954_v30 }
 0x3f4   : > { %v2474_v34 = vadd.f32 %v2473_v33, %v2305_v40  ;;  %v1211_v33 = vld [vmem:[#allocation2 + $0x1f0] sm:$0xff] }
 0x3f5   : > { %v2307_v43 = vpop.f32.mrf.mxu2  ;;  %v2645_v47 = vpop.f32.mrf.mxu0 }
 0x3f6   : > { %v2643_v46 = vadd.f32 %v2642_v28, %v2474_v34  ;;  %v2308_v51 = vadd.f32 %v2307_v43, %v2138_v32  ;;  %v4153_v32 = vld [vmem:[%s4902_s16 + $0x3ac] sm:$0xf] }
 0x3f7   : > { %v2140_v42 = vpop.f32.mrf.mxu1  ;;  %v3959_v40 = vor.u32 %v4153_v32, %v3956_v35 }
 0x3f8   : > { %v2747_v48 = vadd.f32 %v2643_v46, %v1207_v44  ;;  %2515 = vmatmul.bf16.gmra.mxu3 %v3923_v25  ;;  %2684 = vmatmul.bf16.gmra.mxu0 %v3927_v26  ;;  %v4156_v46 = vld [vmem:[%s4902_s16 + $0x3c4] sm:$0xf] }
 0x3fa   : > { %2811 = vst [vmem:[#allocation2 + $0x1f8] sm:$0xff] %v2747_v48  ;;  %v3964_v48 = vld [vmem:[%s4902_s16 + $0x3d0] sm:$0xf0] }
 0x3fb   : > { %v2476_v55 = vpop.f32.mrf.mxu3 }
 0x3fc   : > { %v2477_v61 = vadd.f32 %v2476_v55, %v2308_v51  ;;  %v3962_v51 = vld [vmem:[%s4902_s16 + $0x3c0] sm:$0xf] }
 0x3fd   : > { %v2309_v1 = vpop.f32.mrf.mxu2  ;;  %v2647_v49 = vpop.f32.mrf.mxu0 }
 0x3fe   : > { %v2646_v50 = vadd.f32 %v2645_v47, %v2477_v61  ;;  %v2310_v4 = vadd.f32 %v2309_v1, %v2140_v42  ;;  %v3963_v1 = vor.u32 %v4158_v52, %v3962_v51 }
 0x3ff   : > { %v2143_v2 = vpop.f32.mrf.mxu1 }
 0x400   : > { %v2748_v59 = vadd.f32 %v2646_v50, %v1208_v62  ;;  %v3967_v62 = vor.u32 %v4156_v46, %v3964_v48 }
 0x402   : > { %2812 = vst [vmem:[#allocation2 + $0x20] sm:$0xff] %v2748_v59  ;;  %2351 = vmatmul.bf16.gmra.mxu2 %v3935_v53  ;;  %2182 = vmatmul.bf16.gmra.mxu1 %v3931_v54  ;;  %v3970_v53 = vld [vmem:[%s4902_s16 + $0x3c8] sm:$0xf]  ;;  %v4159_v54 = vld [vmem:[%s4902_s16 + $0x3d4] sm:$0xf0] }
 0x403   : > { %v2478_v5 = vpop.f32.mrf.mxu3  ;;  %v3972_v59 = vld [vmem:[%s4902_s16 + $0x3d8] sm:$0xf0]  ;;  %v3971_v0 = vor.u32 %v4159_v54, %v3970_v53 }
 0x404   : > { %v2479_v6 = vadd.f32 %v2478_v5, %v2310_v4  ;;  %v1213_v5 = vld [vmem:[#allocation2 + $0x78] sm:$0xff] }
 0x405   : > { %v2312_v8 = vpop.f32.mrf.mxu2  ;;  %v2650_v9 = vpop.f32.mrf.mxu0 }
 0x406   : > { %v2648_v10 = vadd.f32 %v2647_v49, %v2479_v6  ;;  %v2313_v13 = vadd.f32 %v2312_v8, %v2143_v2  ;;  %v4157_v2 = vld [vmem:[%s4902_s16 + $0x3cc] sm:$0xf] }
 0x407   : > { %v2145_v11 = vpop.f32.mrf.mxu1  ;;  %v3975_v4 = vor.u32 %v4157_v2, %v3972_v59  ;;  %v1218_v2 = vld [vmem:[#allocation2 + $0xb8] sm:$0xff] }
 0x408   : > { %v2749_v12 = vadd.f32 %v2648_v10, %v1209_v45  ;;  %2520 = vmatmul.bf16.gmra.mxu3 %v3939_v7  ;;  %2689 = vmatmul.bf16.gmra.mxu0 %v3943_v41  ;;  %v4160_v10 = vld [vmem:[%s4902_s16 + $0x3e4] sm:$0xf] }
 0x40a   : > { %2813 = vst [vmem:[#allocation2 + $0x128] sm:$0xff] %v2749_v12  ;;  %v3980_v12 = vld [vmem:[%s4902_s16 + $0x3f0] sm:$0xf0] }
 0x40b   : > { %v2481_v15 = vpop.f32.mrf.mxu3 }
 0x40c   : > { %v2482_v19 = vadd.f32 %v2481_v15, %v2313_v13  ;;  %v3978_v13 = vld [vmem:[%s4902_s16 + $0x3e0] sm:$0xf] }
 0x40d   : > { %v2314_v21 = vpop.f32.mrf.mxu2  ;;  %v2652_v22 = vpop.f32.mrf.mxu0 }
 0x40e   : > { %v2651_v23 = vadd.f32 %v2650_v9, %v2482_v19  ;;  %v2315_v36 = vadd.f32 %v2314_v21, %v2145_v11  ;;  %v3979_v21 = vor.u32 %v4162_v14, %v3978_v13  ;;  %v1220_v14 = vld [vmem:[#allocation2 + $0xa8] sm:$0xff] }
 0x40f   : > { %v2148_v28 = vpop.f32.mrf.mxu1 }
 0x410   : > { %v2750_v29 = vadd.f32 %v2651_v23, %v1210_v20  ;;  %v3983_v20 = vor.u32 %v4160_v10, %v3980_v12 }
 0x412   : > { %2814 = vst [vmem:[#allocation2 + $0x1a0] sm:$0xff] %v2750_v29  ;;  %2356 = vmatmul.bf16.gmra.mxu2 %v3951_v24  ;;  %2187 = vmatmul.bf16.gmra.mxu1 %v3947_v27  ;;  %v3986_v24 = vld [vmem:[%s4902_s16 + $0x3e8] sm:$0xf]  ;;  %v4163_v27 = vld [vmem:[%s4902_s16 + $0x3f4] sm:$0xf0] }
 0x413   : > { %v2483_v37 = vpop.f32.mrf.mxu3  ;;  %v3988_v29 = vld [vmem:[%s4902_s16 + $0x3f8] sm:$0xf0]  ;;  %v3987_v35 = vor.u32 %v4163_v27, %v3986_v24 }
 0x414   : > { %v2484_v38 = vadd.f32 %v2483_v37, %v2315_v36  ;;  %v1215_v37 = vld [vmem:[#allocation2 + $0x90] sm:$0xff] }
 0x415   : > { %v2317_v34 = vpop.f32.mrf.mxu2  ;;  %v2655_v25 = vpop.f32.mrf.mxu0 }
 0x416   : > { %v2653_v26 = vadd.f32 %v2652_v22, %v2484_v38  ;;  %v2318_v47 = vadd.f32 %v2317_v34, %v2148_v28  ;;  %v4161_v28 = vld [vmem:[%s4902_s16 + $0x3ec] sm:$0xf] }
 0x417   : > { %v2150_v44 = vpop.f32.mrf.mxu1  ;;  %v3991_v36 = vor.u32 %v4161_v28, %v3988_v29 }
 0x418   : > { %v2751_v43 = vadd.f32 %v2653_v26, %v1211_v33  ;;  %2525 = vmatmul.bf16.gmra.mxu3 %v3955_v39  ;;  %2694 = vmatmul.bf16.gmra.mxu0 %v3959_v40 }
 0x41a   : > { %2815 = vst [vmem:[#allocation2 + $0x1f0] sm:$0xff] %v2751_v43  ;;  %v1216_v43 = vld [vmem:[#allocation2 + $0x1d8] sm:$0xff] }
 0x41b   : > { %v2486_v42 = vpop.f32.mrf.mxu3 }
 0x41c   : > { %v2487_v55 = vadd.f32 %v2486_v42, %v2318_v47 }
 0x41d   : > { %v2319_v57 = vpop.f32.mrf.mxu2  ;;  %v2657_v58 = vpop.f32.mrf.mxu0 }
 0x41e   : > { %v2656_v61 = vadd.f32 %v2655_v25, %v2487_v55  ;;  %v2320_v63 = vadd.f32 %v2319_v57, %v2150_v44  ;;  %v1217_v57 = vld [vmem:[#allocation2 + $0xd0] sm:$0xff] }
 0x41f   : > { %v2153_v49 = vpop.f32.mrf.mxu1 }
 0x420   : > { %v2752_v50 = vadd.f32 %v2656_v61, %v1212_v56 }
 0x422   : > { %2816 = vst [vmem:[#allocation2 + $0xe8] sm:$0xff] %v2752_v50  ;;  %2361 = vmatmul.bf16.gmra.mxu2 %v3967_v62  ;;  %2192 = vmatmul.bf16.gmra.mxu1 %v3963_v1 }
 0x423   : > { %v2488_v3 = vpop.f32.mrf.mxu3 }
 0x424   : > { %v2489_v60 = vadd.f32 %v2488_v3, %v2320_v63 }
 0x425   : > { %v2322_v6 = vpop.f32.mrf.mxu2  ;;  %v2660_v7 = vpop.f32.mrf.mxu0 }
 0x426   : > { %v2658_v41 = vadd.f32 %v2657_v58, %v2489_v60  ;;  %v2323_v9 = vadd.f32 %v2322_v6, %v2153_v49 }
 0x427   : > { %v2155_v45 = vpop.f32.mrf.mxu1 }
 0x428   : > { %v2753_v8 = vadd.f32 %v2658_v41, %v1213_v5  ;;  %2530 = vmatmul.bf16.gmra.mxu3 %v3971_v0  ;;  %2699 = vmatmul.bf16.gmra.mxu0 %v3975_v4 }
 0x42a   : > { %2817 = vst [vmem:[#allocation2 + $0x78] sm:$0xff] %v2753_v8 }
 0x42b   : > { %v2491_v11 = vpop.f32.mrf.mxu3 }
 0x42c   : > { %v2492_v15 = vadd.f32 %v2491_v11, %v2323_v9 }
 0x42d   : > { %v2324_v17 = vpop.f32.mrf.mxu2  ;;  %v2662_v18 = vpop.f32.mrf.mxu0 }
 0x42e   : > { %v2661_v19 = vadd.f32 %v2660_v7, %v2492_v15  ;;  %v2325_v30 = vadd.f32 %v2324_v17, %v2155_v45  ;;  %v1219_v7 = vld [vmem:[#allocation2 + $0x88] sm:$0xff] }
 0x42f   : > { %v2158_v22 = vpop.f32.mrf.mxu1 }
 0x430   : > { %v2754_v23 = vadd.f32 %v2661_v19, %v1214_v16 }
 0x432   : > { %2818 = vst [vmem:[#allocation2 + $0x70] sm:$0xff] %v2754_v23  ;;  %2366 = vmatmul.bf16.gmra.mxu2 %v3983_v20  ;;  %2197 = vmatmul.bf16.gmra.mxu1 %v3979_v21  ;;  %v1221_v23 = vld [vmem:[#allocation2 + $0x1c8] sm:$0xff] }
 0x433   : > { %v2493_v31 = vpop.f32.mrf.mxu3 }
 0x434   : > { %v2494_v32 = vadd.f32 %v2493_v31, %v2325_v30 }
 0x435   : > { %v2327_v38 = vpop.f32.mrf.mxu2  ;;  %v2665_v39 = vpop.f32.mrf.mxu0 }
 0x436   : > { %v2663_v40 = vadd.f32 %v2662_v18, %v2494_v32  ;;  %v2328_v25 = vadd.f32 %v2327_v38, %v2158_v22 }
 0x437   : > { %v2160_v33 = vpop.f32.mrf.mxu1 }
 0x438   : > { %v2755_v34 = vadd.f32 %v2663_v40, %v1215_v37  ;;  %2535 = vmatmul.bf16.gmra.mxu3 %v3987_v35  ;;  %2704 = vmatmul.bf16.gmra.mxu0 %v3991_v36  ;;  %v1222_v36 = vld [vmem:[#allocation2 + $0x170] sm:$0xff] }
 0x43a   : > { %2819 = vst [vmem:[#allocation2 + $0x90] sm:$0xff] %v2755_v34 }
 0x43b   : > { %v2496_v26 = vpop.f32.mrf.mxu3 }
 0x43c   : > { %v2497_v44 = vadd.f32 %v2496_v26, %v2328_v25 }
 0x43d   : > { %v2329_v47 = vpop.f32.mrf.mxu2  ;;  %v2667_v46 = vpop.f32.mrf.mxu0 }
 0x43e   : > { %v2666_v42 = vadd.f32 %v2665_v39, %v2497_v44  ;;  %v2330_v52 = vadd.f32 %v2329_v47, %v2160_v33  ;;  %v1223_v44 = vld [vmem:[#allocation2 + $0x178] sm:$0xff] }
 0x43f   : > { %v2163_v48 = vpop.f32.mrf.mxu1 }
 0x440   : > { %v2756_v51 = vadd.f32 %v2666_v42, %v1216_v43 }
 0x442   : > { %2820 = vst [vmem:[#allocation2 + $0x1d8] sm:$0xff] %v2756_v51 }
 0x443   : > { %v2498_v55 = vpop.f32.mrf.mxu3 }
 0x444   : > { %v2499_v56 = vadd.f32 %v2498_v55, %v2330_v52 }
 0x445   : > { %v2332_v58 = vpop.f32.mrf.mxu2  ;;  %v2670_v61 = vpop.f32.mrf.mxu0 }
 0x446   : > { %v2668_v62 = vadd.f32 %v2667_v46, %v2499_v56  ;;  %v2333_v50 = vadd.f32 %v2332_v58, %v2163_v48  ;;  %v1224_v56 = vld [vmem:[#allocation2 + $0x68] sm:$0xff] }
 0x447   : > { %v2165_v1 = vpop.f32.mrf.mxu1 }
 0x448   : > { %v2757_v49 = vadd.f32 %v2668_v62, %v1217_v57 }
 0x44a   : > { %2821 = vst [vmem:[#allocation2 + $0xd0] sm:$0xff] %v2757_v49 }
 0x44b   : > { %v2501_v53 = vpop.f32.mrf.mxu3 }
 0x44c   : > { %v2502_v54 = vadd.f32 %v2501_v53, %v2333_v50 }
 0x44d   : > { %v2334_v59 = vpop.f32.mrf.mxu2  ;;  %v2672_v63 = vpop.f32.mrf.mxu0 }
 0x44e   : > { %v2671_v3 = vadd.f32 %v2670_v61, %v2502_v54  ;;  %v2335_v4 = vadd.f32 %v2334_v59, %v2165_v1  ;;  %v1225_v54 = vld [vmem:[#allocation2 + $0x190] sm:$0xff] }
 0x44f   : > { %v2168_v60 = vpop.f32.mrf.mxu1 }
 0x450   : > { %v2758_v0 = vadd.f32 %v2671_v3, %v1218_v2 }
 0x452   : > { %2822 = vst [vmem:[#allocation2 + $0xb8] sm:$0xff] %v2758_v0 }
 0x453   : > { %v2503_v5 = vpop.f32.mrf.mxu3 }
 0x454   : > { %v2504_v6 = vadd.f32 %v2503_v5, %v2335_v4 }
 0x455   : > { %v2337_v41 = vpop.f32.mrf.mxu2  ;;  %v2675_v45 = vpop.f32.mrf.mxu0 }
 0x456   : > { %v2673_v8 = vadd.f32 %v2672_v63, %v2504_v6  ;;  %v2338_v11 = vadd.f32 %v2337_v41, %v2168_v60  ;;  %v1226_v6 = vld [vmem:[#allocation2 + $0x198] sm:$0xff] }
 0x457   : > { %v2170_v9 = vpop.f32.mrf.mxu1 }
 0x458   : > { %v2759_v10 = vadd.f32 %v2673_v8, %v1219_v7 }
 0x45a   : > { %2823 = vst [vmem:[#allocation2 + $0x88] sm:$0xff] %v2759_v10 }
 0x45b   : > { %v2506_v12 = vpop.f32.mrf.mxu3 }
 0x45c   : > { %v2507_v13 = vadd.f32 %v2506_v12, %v2338_v11 }
 0x45d   : > { %v2339_v15 = vpop.f32.mrf.mxu2  ;;  %v2677_v16 = vpop.f32.mrf.mxu0 }
 0x45e   : > { %v2676_v17 = vadd.f32 %v2675_v45, %v2507_v13  ;;  %v2340_v20 = vadd.f32 %v2339_v15, %v2170_v9  ;;  %v1227_v13 = vld [vmem:[#allocation2 + $0x38] sm:$0xff] }
 0x45f   : > { %v2173_v18 = vpop.f32.mrf.mxu1 }
 0x460   : > { %v2760_v19 = vadd.f32 %v2676_v17, %v1220_v14 }
 0x462   : > { %2824 = vst [vmem:[#allocation2 + $0xa8] sm:$0xff] %v2760_v19 }
 0x463   : > { %v2508_v21 = vpop.f32.mrf.mxu3 }
 0x464   : > { %v2509_v22 = vadd.f32 %v2508_v21, %v2340_v20 }
 0x465   : > { %v2342_v24 = vpop.f32.mrf.mxu2  ;;  %v2680_v27 = vpop.f32.mrf.mxu0 }
 0x466   : > { %v2678_v28 = vadd.f32 %v2677_v16, %v2509_v22  ;;  %v2343_v31 = vadd.f32 %v2342_v24, %v2173_v18  ;;  %v1228_v22 = vld [vmem:[#allocation2 + $0xc0] sm:$0xff] }
 0x467   : > { %v2175_v29 = vpop.f32.mrf.mxu1 }
 0x468   : > { %v2761_v30 = vadd.f32 %v2678_v28, %v1221_v23 }
 0x46a   : > { %2825 = vst [vmem:[#allocation2 + $0x1c8] sm:$0xff] %v2761_v30 }
 0x46b   : > { %v2511_v32 = vpop.f32.mrf.mxu3 }
 0x46c   : > { %v2512_v35 = vadd.f32 %v2511_v32, %v2343_v31 }
 0x46d   : > { %v2344_v37 = vpop.f32.mrf.mxu2  ;;  %v2682_v38 = vpop.f32.mrf.mxu0 }
 0x46e   : > { %v2681_v39 = vadd.f32 %v2680_v27, %v2512_v35  ;;  %v2345_v34 = vadd.f32 %v2344_v37, %v2175_v29  ;;  %v1229_v35 = vld [vmem:[#allocation2 + $0x1c0] sm:$0xff] }
 0x46f   : > { %v2178_v40 = vpop.f32.mrf.mxu1 }
 0x470   : > { %v2762_v33 = vadd.f32 %v2681_v39, %v1222_v36 }
 0x472   : > { %2826 = vst [vmem:[#allocation2 + $0x170] sm:$0xff] %v2762_v33 }
 0x473   : > { %v2513_v25 = vpop.f32.mrf.mxu3 }
 0x474   : > { %v2514_v26 = vadd.f32 %v2513_v25, %v2345_v34  ;;  %v1230_v25 = vld [vmem:[#allocation2 + $0x158] sm:$0xff] }
 0x475   : > { %v2347_v43 = vpop.f32.mrf.mxu2  ;;  %v2685_v47 = vpop.f32.mrf.mxu0 }
 0x476   : > { %v2683_v46 = vadd.f32 %v2682_v38, %v2514_v26  ;;  %v2348_v51 = vadd.f32 %v2347_v43, %v2178_v40 }
 0x477   : > { %v2180_v42 = vpop.f32.mrf.mxu1 }
 0x478   : > { %v2763_v48 = vadd.f32 %v2683_v46, %v1223_v44 }
 0x47a   : > { %2827 = vst [vmem:[#allocation2 + $0x178] sm:$0xff] %v2763_v48 }
 0x47b   : > { %v2516_v52 = vpop.f32.mrf.mxu3 }
 0x47c   : > { %v2517_v55 = vadd.f32 %v2516_v52, %v2348_v51  ;;  %v1231_v52 = vld [vmem:[#allocation2 + $0x10] sm:$0xff] }
 0x47d   : > { %v2349_v57 = vpop.f32.mrf.mxu2  ;;  %v2687_v58 = vpop.f32.mrf.mxu0 }
 0x47e   : > { %v2686_v61 = vadd.f32 %v2685_v47, %v2517_v55  ;;  %v2350_v49 = vadd.f32 %v2349_v57, %v2180_v42 }
 0x47f   : > { %v2183_v62 = vpop.f32.mrf.mxu1 }
 0x480   : > { %v2764_v1 = vadd.f32 %v2686_v61, %v1224_v56 }
 0x482   : > { %2828 = vst [vmem:[#allocation2 + $0x68] sm:$0xff] %v2764_v1 }
 0x483   : > { %v2518_v50 = vpop.f32.mrf.mxu3 }
 0x484   : > { %v2519_v53 = vadd.f32 %v2518_v50, %v2350_v49  ;;  %v1232_v50 = vld [vmem:[#allocation2 + $0x58] sm:$0xff] }
 0x485   : > { %v2352_v2 = vpop.f32.mrf.mxu2  ;;  %v2690_v59 = vpop.f32.mrf.mxu0 }
 0x486   : > { %v2688_v63 = vadd.f32 %v2687_v58, %v2519_v53  ;;  %v2353_v0 = vadd.f32 %v2352_v2, %v2183_v62 }
 0x487   : > { %v2185_v3 = vpop.f32.mrf.mxu1 }
 0x488   : > { %v2765_v60 = vadd.f32 %v2688_v63, %v1225_v54 }
 0x48a   : > { %2829 = vst [vmem:[#allocation2 + $0x190] sm:$0xff] %v2765_v60 }
 0x48b   : > { %v2521_v4 = vpop.f32.mrf.mxu3 }
 0x48c   : > { %v2522_v5 = vadd.f32 %v2521_v4, %v2353_v0  ;;  %v1233_v0 = vld [vmem:[#allocation2 + $0xa0] sm:$0xff] }
 0x48d   : > { %v2354_v7 = vpop.f32.mrf.mxu2  ;;  %v2692_v41 = vpop.f32.mrf.mxu0 }
 0x48e   : > { %v2691_v45 = vadd.f32 %v2690_v59, %v2522_v5  ;;  %v2355_v10 = vadd.f32 %v2354_v7, %v2185_v3 }
 0x48f   : > { %v2188_v8 = vpop.f32.mrf.mxu1 }
 0x490   : > { %v2766_v9 = vadd.f32 %v2691_v45, %v1226_v6 }
 0x492   : > { %2830 = vst [vmem:[#allocation2 + $0x198] sm:$0xff] %v2766_v9 }
 0x493   : > { %v2523_v11 = vpop.f32.mrf.mxu3 }
 0x494   : > { %v2524_v12 = vadd.f32 %v2523_v11, %v2355_v10 }
 0x495   : > { %v2357_v14 = vpop.f32.mrf.mxu2  ;;  %v2695_v15 = vpop.f32.mrf.mxu0 }
 0x496   : > { %v2693_v16 = vadd.f32 %v2692_v41, %v2524_v12  ;;  %v2358_v18 = vadd.f32 %v2357_v14, %v2188_v8 }
 0x497   : > { %v2190_v19 = vpop.f32.mrf.mxu1 }
 0x498   : > { %v2767_v17 = vadd.f32 %v2693_v16, %v1227_v13 }
 0x49a   : > { %2831 = vst [vmem:[#allocation2 + $0x38] sm:$0xff] %v2767_v17 }
 0x49b   : > { %v2526_v20 = vpop.f32.mrf.mxu3 }
 0x49c   : > { %v2527_v21 = vadd.f32 %v2526_v20, %v2358_v18 }
 0x49d   : > { %v2359_v23 = vpop.f32.mrf.mxu2  ;;  %v2697_v24 = vpop.f32.mrf.mxu0 }
 0x49e   : > { %v2696_v27 = vadd.f32 %v2695_v15, %v2527_v21  ;;  %v2360_v29 = vadd.f32 %v2359_v23, %v2190_v19 }
 0x49f   : > { %v2193_v31 = vpop.f32.mrf.mxu1 }
 0x4a0   : > { %v2768_v28 = vadd.f32 %v2696_v27, %v1228_v22 }
 0x4a2   : > { %2832 = vst [vmem:[#allocation2 + $0xc0] sm:$0xff] %v2768_v28 }
 0x4a3   : > { %v2528_v30 = vpop.f32.mrf.mxu3 }
 0x4a4   : > { %v2529_v32 = vadd.f32 %v2528_v30, %v2360_v29 }
 0x4a5   : > { %v2362_v36 = vpop.f32.mrf.mxu2  ;;  %v2700_v38 = vpop.f32.mrf.mxu0 }
 0x4a6   : > { %v2698_v37 = vadd.f32 %v2697_v24, %v2529_v32  ;;  %v2363_v40 = vadd.f32 %v2362_v36, %v2193_v31 }
 0x4a7   : > { %v2195_v26 = vpop.f32.mrf.mxu1 }
 0x4a8   : > { %v2769_v39 = vadd.f32 %v2698_v37, %v1229_v35 }
 0x4aa   : > { %2833 = vst [vmem:[#allocation2 + $0x1c0] sm:$0xff] %v2769_v39 }
 0x4ab   : > { %v2531_v33 = vpop.f32.mrf.mxu3 }
 0x4ac   : > { %v2532_v34 = vadd.f32 %v2531_v33, %v2363_v40 }
 0x4ad   : > { %v2364_v44 = vpop.f32.mrf.mxu2  ;;  %v2702_v46 = vpop.f32.mrf.mxu0 }
 0x4ae   : > { %v2701_v43 = vadd.f32 %v2700_v38, %v2532_v34  ;;  %v2365_v42 = vadd.f32 %v2364_v44, %v2195_v26 }
 0x4af   : > { %v2198_v57 = vpop.f32.mrf.mxu1 }
 0x4b0   : > { %v2770_v47 = vadd.f32 %v2701_v43, %v1230_v25 }
 0x4b2   : > { %2834 = vst [vmem:[#allocation2 + $0x158] sm:$0xff] %v2770_v47 }
 0x4b3   : > { %v2533_v48 = vpop.f32.mrf.mxu3 }
 0x4b4   : > { %v2534_v51 = vadd.f32 %v2533_v48, %v2365_v42 }
 0x4b5   : > { %v2367_v55 = vpop.f32.mrf.mxu2  ;;  %v2705_v1 = vpop.f32.mrf.mxu0 }
 0x4b6   : > { %v2703_v56 = vadd.f32 %v2702_v46, %v2534_v51  ;;  %v2368_v61 = vadd.f32 %v2367_v55, %v2198_v57 }
 0x4b7   : > { %v2200_v59 = vpop.f32.mrf.mxu1 }
 0x4b8   : > { %v2771_v58 = vadd.f32 %v2703_v56, %v1231_v52 }
 0x4ba   : > { %2835 = vst [vmem:[#allocation2 + $0x10] sm:$0xff] %v2771_v58 }
 0x4bb   : > { %v2536_v62 = vpop.f32.mrf.mxu3 }
 0x4bc   : > { %v2537_v49 = vadd.f32 %v2536_v62, %v2368_v61 }
 0x4bd   : > { %v2369_v54 = vpop.f32.mrf.mxu2  ;;  %v2707_v4 = vpop.f32.mrf.mxu0 }
 0x4be   : > { %v2706_v53 = vadd.f32 %v2705_v1, %v2537_v49  ;;  %v2370_v63 = vadd.f32 %v2369_v54, %v2200_v59 }
 0x4c0   : > { %v2772_v2 = vadd.f32 %v2706_v53, %v1232_v50 }
 0x4c2   : > { %2836 = vst [vmem:[#allocation2 + $0x58] sm:$0xff] %v2772_v2 }
 0x4c3   : > { %v2538_v3 = vpop.f32.mrf.mxu3 }
 0x4c4   : > { %v2539_v60 = vadd.f32 %v2538_v3, %v2370_v63 }
 0x4c6   : > { %v2708_v5 = vadd.f32 %v2707_v4, %v2539_v60 }
 0x4c8   : > { %v2773_v6 = vadd.f32 %v2708_v5, %v1233_v0 }
 0x4ca   : > { %2837 = vst [vmem:[#allocation2 + $0xa0] sm:$0xff] %v2773_v6 }
 0x4cb PF: > { %p3992_p0 = scmp.ne.s32.totalorder %s4503_s7, 1 }
 0x4cd   : > { %2841 = sbr.rel (%p3992_p0) target bundleno = 1280 (0x500), region = 71 }
 0x4d2   : > { %v2842_v7 = vld [vmem:[#allocation2 + $0xb0] sm:$0xff]  ;;  %v5389_v45 = vld [vmem:[%s5512_s5] ss:$0 sm:$0xff]  ;;  %v2844_v8 = vld [vmem:[#allocation2 + $0xd8] sm:$0xff] }
 0x4d3   : > { %v2843_v41 = vld [vmem:[#allocation2 + $0x1b0] sm:$0xff]  ;;  %v2845_v9 = vld [vmem:[#allocation2 + $0x18] sm:$0xff]  ;;  %v2847_v11 = vld [vmem:[#allocation2 + $0x168] sm:$0xff]  ;;  %v2910_v13 = vadd.f32 %v5389_v45, %v2842_v7  ;;  %v2912_v15 = vadd.f32 %v5389_v45, %v2844_v8 }
 0x4d4   : > { %v2846_v10 = vld [vmem:[#allocation2 + $0x50] sm:$0xff]  ;;  %v2911_v14 = vadd.f32 %v5389_v45, %v2843_v41  ;;  %v2913_v16 = vadd.f32 %v5389_v45, %v2845_v9  ;;  %v2849_v17 = vld [vmem:[#allocation2 + $0x48] sm:$0xff]  ;;  %v2915_v19 = vadd.f32 %v5389_v45, %v2847_v11  ;;  %v2850_v22 = vld [vmem:[#allocation2 + $0x180] sm:$0xff] }
 0x4d5   : > { %v2848_v12 = vld [vmem:[#allocation2 + $0x130] sm:$0xff]  ;;  %v2914_v18 = vadd.f32 %v5389_v45, %v2846_v10  ;;  %v2917_v21 = vadd.f32 %v5389_v45, %v2849_v17  ;;  %v2974_v24 = vmax.f32 %v2910_v13, 0.0  ;;  %v2976_v28 = vmax.f32 %v2912_v15, 0.0  ;;  %v2852_v30 = vld [vmem:[#allocation2 + $0x118] sm:$0xff]  ;;  %v2854_v38 = vld [vmem:[#allocation2 + $0x120] sm:$0xff] }
 0x4d6   : > { %v2916_v20 = vadd.f32 %v5389_v45, %v2848_v12  ;;  %v2851_v23 = vld [vmem:[#allocation2 + $0x110] sm:$0xff]  ;;  %v2975_v27 = vmax.f32 %v2911_v14, 0.0  ;;  %v2977_v29 = vmax.f32 %v2913_v16, 0.0  ;;  %v2853_v31 = vld [vmem:[#allocation2 + $0x98] sm:$0xff]  ;;  %v2979_v35 = vmax.f32 %v2915_v19, 0.0  ;;  %v2856_v26 = vld [vmem:[#allocation2 + $0x108] sm:$0xff] }
 0x4d7   : > { %v2978_v32 = vmax.f32 %v2914_v18, 0.0  ;;  %v2981_v37 = vmax.f32 %v2917_v21, 0.0  ;;  %v2855_v39 = vld [vmem:[#allocation2 + $0x150] sm:$0xff]  ;;  %v2918_v34 = vadd.f32 %v5389_v45, %v2850_v22  ;;  %v2919_v25 = vadd.f32 %v5389_v45, %v2851_v23  ;;  %v2857_v44 = vld [vmem:[#allocation2 + $0x60] sm:$0xff]  ;;  %v2859_v57 = vld [vmem:[#allocation2 + $0x188] sm:$0xff] }
 0x4d8   : > { %v2980_v36 = vmax.f32 %v2916_v20, 0.0  ;;  %v4167_v40 = vpack.c.bf16 %v2975_v27, %v2974_v24  ;;  %v4172_v33 = vpack.c.bf16 %v2977_v29, %v2976_v28  ;;  %v2920_v46 = vadd.f32 %v5389_v45, %v2852_v30  ;;  %v2858_v48 = vld [vmem:[#allocation2 + $0xe0] sm:$0xff]  ;;  %v2860_v49 = vld [vmem:[#allocation2 + $0x138] sm:$0xff]  ;;  %v2863_v3 = vld [vmem:[#allocation2 + $0x1a8] sm:$0xff] }
 0x4d9   : > { %v4177_v43 = vpack.c.bf16 %v2979_v35, %v2978_v32  ;;  %v2921_v42 = vadd.f32 %v5389_v45, %v2853_v31  ;;  %v2982_v51 = vmax.f32 %v2918_v34, 0.0  ;;  %v2983_v52 = vmax.f32 %v2919_v25, 0.0  ;;  %v2861_v50 = vld [vmem:[#allocation2 + $0x140] sm:$0xff]  ;;  %v2864_v6 = vld [vmem:[#allocation2 + $0x1b8] sm:$0xff]  ;;  %v2865_v7 = vld [vmem:[#allocation2 + $0x28] sm:$0xff] }
 0x4da   : > { %v4182_v47 = vpack.c.bf16 %v2981_v37, %v2980_v36  ;;  %4168 = vst [vmem:[%s4895_s28] sm:$0xff] %v4167_v40   ;;  %v2922_v55 = vadd.f32 %v5389_v45, %v2854_v38  ;;  %v2923_v56 = vadd.f32 %v5389_v45, %v2855_v39  ;;  %v2984_v58 = vmax.f32 %v2920_v46, 0.0  ;;  %v2862_v63 = vld [vmem:[#allocation2 + $0x80] sm:$0xff]  ;;  %v2866_v11 = vld [vmem:[#allocation2 + $0x1e8] sm:$0xff]  ;;  %v2867_v16 = vld [vmem:[#allocation2 + $0xf8] sm:$0xff] }
 0x4db   : > { %4324 = vst [vmem:[%s4895_s28 + $0x8] sm:$0xff] %v4172_v33   ;;  %v2985_v61 = vmax.f32 %v2921_v42, 0.0  ;;  %v2924_v62 = vadd.f32 %v5389_v45, %v2856_v26  ;;  %v2925_v1 = vadd.f32 %v5389_v45, %v2857_v44  ;;  %v4187_v53 = vpack.c.bf16 %v2983_v52, %v2982_v51  ;;  %v2868_v21 = vld [vmem:[#allocation2 + $0x160] sm:$0xff]  ;;  %v2869_v22 = vld [vmem:[#allocation2 + $0x30] sm:$0xff]  ;;  %v2873_v38 = vld [vmem:[#allocation2 + $0x8] sm:$0xff] }
 0x4dc   : > { %4325 = vst [vmem:[%s4895_s28 + $0x10] sm:$0xff] %v4177_v43   ;;  %v2986_v54 = vmax.f32 %v2922_v55, 0.0  ;;  %v2987_v2 = vmax.f32 %v2923_v56, 0.0  ;;  %v2926_v59 = vadd.f32 %v5389_v45, %v2858_v48  ;;  %v2927_v5 = vadd.f32 %v5389_v45, %v2859_v57  ;;  %v2870_v29 = vld [vmem:[#allocation2 + $0x1e0] sm:$0xff]  ;;  %v2872_v37 = vld [vmem:[#allocation2 + $0xf0] sm:$0xff]  ;;  %v2874_v25 = vld [vmem:[#allocation2 + $0x148] sm:$0xff] }
 0x4dd   : > { %4326 = vst [vmem:[%s4895_s28 + $0x18] sm:$0xff] %v4182_v47   ;;  %v4192_v60 = vpack.c.bf16 %v2985_v61, %v2984_v58  ;;  %v2988_v0 = vmax.f32 %v2924_v62, 0.0  ;;  %v2989_v4 = vmax.f32 %v2925_v1, 0.0  ;;  %v2928_v9 = vadd.f32 %v5389_v45, %v2860_v49  ;;  %v2871_v30 = vld [vmem:[#allocation2] sm:$0xff]  ;;  %v2875_v46 = vld [vmem:[#allocation2 + $0x1d0] sm:$0xff]  ;;  %v2877_v56 = vld [vmem:[#allocation2 + $0xc8] sm:$0xff] }
 0x4de   : > { %4327 = vst [vmem:[%s4895_s28 + $0x20] sm:$0xff] %v4187_v53   ;;  %v4197_v41 = vpack.c.bf16 %v2987_v2, %v2986_v54  ;;  %v2990_v8 = vmax.f32 %v2926_v59, 0.0  ;;  %v2929_v10 = vadd.f32 %v5389_v45, %v2861_v50  ;;  %v2991_v13 = vmax.f32 %v2927_v5, 0.0  ;;  %v2876_v55 = vld [vmem:[#allocation2 + $0x100] sm:$0xff]  ;;  %v2879_v49 = vld [vmem:[#allocation2 + $0x1f8] sm:$0xff] }
 0x4df   : > { %4328 = vst [vmem:[%s4895_s28 + $0x28] sm:$0xff] %v4192_v60   ;;  %v4202_v12 = vpack.c.bf16 %v2989_v4, %v2988_v0  ;;  %v2930_v14 = vadd.f32 %v5389_v45, %v2862_v63  ;;  %v2931_v15 = vadd.f32 %v5389_v45, %v2863_v3  ;;  %v2992_v17 = vmax.f32 %v2928_v9, 0.0  ;;  %v2878_v1 = vld [vmem:[#allocation2 + $0x40] sm:$0xff]  ;;  %v2881_v63 = vld [vmem:[#allocation2 + $0x128] sm:$0xff]  ;;  %v2883_v9 = vld [vmem:[#allocation2 + $0x1f0] sm:$0xff] }
 0x4e0   : > { %4329 = vst [vmem:[%s4895_s28 + $0x30] sm:$0xff] %v4197_v41   ;;  %v2993_v18 = vmax.f32 %v2929_v10, 0.0  ;;  %v2932_v19 = vadd.f32 %v5389_v45, %v2864_v6  ;;  %v2933_v20 = vadd.f32 %v5389_v45, %v2865_v7  ;;  %v4207_v23 = vpack.c.bf16 %v2991_v13, %v2990_v8  ;;  %v2880_v59 = vld [vmem:[#allocation2 + $0x20] sm:$0xff] }
 0x4e1   : > { %4330 = vst [vmem:[%s4895_s28 + $0x38] sm:$0xff] %v4202_v12   ;;  %v2994_v24 = vmax.f32 %v2930_v14, 0.0  ;;  %v2995_v27 = vmax.f32 %v2931_v15, 0.0  ;;  %v2934_v28 = vadd.f32 %v5389_v45, %v2866_v11  ;;  %v2935_v36 = vadd.f32 %v5389_v45, %v2867_v16  ;;  %v2882_v5 = vld [vmem:[#allocation2 + $0x1a0] sm:$0xff]  ;;  %v2884_v14 = vld [vmem:[#allocation2 + $0xe8] sm:$0xff]  ;;  %v2885_v15 = vld [vmem:[#allocation2 + $0x78] sm:$0xff] }
 0x4e2   : > { %v4212_v31 = vpack.c.bf16 %v2993_v18, %v2992_v17  ;;  %v2996_v32 = vmax.f32 %v2932_v19, 0.0  ;;  %v2997_v35 = vmax.f32 %v2933_v20, 0.0  ;;  %4331 = vst [vmem:[%s4895_s28 + $0x40] sm:$0xff] %v4207_v23   ;;  %v2936_v33 = vadd.f32 %v5389_v45, %v2868_v21  ;;  %v2886_v20 = vld [vmem:[#allocation2 + $0x70] sm:$0xff] }
 0x4e3   : > { %v4217_v39 = vpack.c.bf16 %v2995_v27, %v2994_v24  ;;  %v2998_v40 = vmax.f32 %v2934_v28, 0.0  ;;  %v2937_v34 = vadd.f32 %v5389_v45, %v2869_v22  ;;  %v2999_v44 = vmax.f32 %v2935_v36, 0.0  ;;  %v2887_v21 = vld [vmem:[#allocation2 + $0x90] sm:$0xff]  ;;  %v2888_v28 = vld [vmem:[#allocation2 + $0x1d8] sm:$0xff] }
 0x4e4   : > { %4332 = vst [vmem:[%s4895_s28 + $0x48] sm:$0xff] %v4212_v31   ;;  %v4222_v26 = vpack.c.bf16 %v2997_v35, %v2996_v32  ;;  %v2938_v43 = vadd.f32 %v5389_v45, %v2870_v29  ;;  %v2939_v47 = vadd.f32 %v5389_v45, %v2871_v30  ;;  %v3000_v42 = vmax.f32 %v2936_v33, 0.0  ;;  %v2889_v29 = vld [vmem:[#allocation2 + $0xd0] sm:$0xff]  ;;  %v2890_v36 = vld [vmem:[#allocation2 + $0xb8] sm:$0xff]  ;;  %v2891_v33 = vld [vmem:[#allocation2 + $0x88] sm:$0xff] }
 0x4e5   : > { %4333 = vst [vmem:[%s4895_s28 + $0x50] sm:$0xff] %v4217_v39   ;;  %v3001_v48 = vmax.f32 %v2937_v34, 0.0  ;;  %v2940_v51 = vadd.f32 %v5389_v45, %v2872_v37  ;;  %v2941_v52 = vadd.f32 %v5389_v45, %v2873_v38  ;;  %v4227_v57 = vpack.c.bf16 %v2999_v44, %v2998_v40 }
 0x4e6   : > { %4334 = vst [vmem:[%s4895_s28 + $0x58] sm:$0xff] %v4222_v26   ;;  %v3002_v58 = vmax.f32 %v2938_v43, 0.0  ;;  %v3003_v61 = vmax.f32 %v2939_v47, 0.0  ;;  %v2942_v62 = vadd.f32 %v5389_v45, %v2874_v25  ;;  %v2943_v2 = vadd.f32 %v5389_v45, %v2875_v46  ;;  %v2892_v43 = vld [vmem:[#allocation2 + $0xa8] sm:$0xff] }
 0x4e7   : > { %v4232_v50 = vpack.c.bf16 %v3001_v48, %v3000_v42  ;;  %v3004_v53 = vmax.f32 %v2940_v51, 0.0  ;;  %v3005_v54 = vmax.f32 %v2941_v52, 0.0  ;;  %4335 = vst [vmem:[%s4895_s28 + $0x60] sm:$0xff] %v4227_v57   ;;  %v2944_v0 = vadd.f32 %v5389_v45, %v2876_v55  ;;  %v2893_v47 = vld [vmem:[#allocation2 + $0x1c8] sm:$0xff]  ;;  %v2894_v52 = vld [vmem:[#allocation2 + $0x170] sm:$0xff]  ;;  %v2895_v55 = vld [vmem:[#allocation2 + $0x178] sm:$0xff] }
 0x4e8   : > { %v4237_v3 = vpack.c.bf16 %v3003_v61, %v3002_v58  ;;  %v3006_v60 = vmax.f32 %v2942_v62, 0.0  ;;  %v2945_v4 = vadd.f32 %v5389_v45, %v2877_v56  ;;  %v3007_v7 = vmax.f32 %v2943_v2, 0.0  ;;  %v2896_v62 = vld [vmem:[#allocation2 + $0x68] sm:$0xff]  ;;  %v2898_v2 = vld [vmem:[#allocation2 + $0x198] sm:$0xff] }
 0x4e9   : > { %4336 = vst [vmem:[%s4895_s28 + $0x68] sm:$0xff] %v4232_v50   ;;  %v4242_v6 = vpack.c.bf16 %v3005_v54, %v3004_v53  ;;  %v2946_v41 = vadd.f32 %v5389_v45, %v2878_v1  ;;  %v2947_v8 = vadd.f32 %v5389_v45, %v2879_v49  ;;  %v3008_v10 = vmax.f32 %v2944_v0, 0.0  ;;  %v2897_v1 = vld [vmem:[#allocation2 + $0x190] sm:$0xff]  ;;  %v2899_v0 = vld [vmem:[#allocation2 + $0x38] sm:$0xff] }
 0x4ea   : > { %4337 = vst [vmem:[%s4895_s28 + $0x70] sm:$0xff] %v4237_v3   ;;  %v3009_v11 = vmax.f32 %v2945_v4, 0.0  ;;  %v2948_v12 = vadd.f32 %v5389_v45, %v2880_v59  ;;  %v2949_v13 = vadd.f32 %v5389_v45, %v2881_v63  ;;  %v4247_v16 = vpack.c.bf16 %v3007_v7, %v3006_v60 }
 0x4eb   : > { %4338 = vst [vmem:[%s4895_s28 + $0x78] sm:$0xff] %v4242_v6   ;;  %v3010_v17 = vmax.f32 %v2946_v41, 0.0  ;;  %v3011_v18 = vmax.f32 %v2947_v8, 0.0  ;;  %v2950_v19 = vadd.f32 %v5389_v45, %v2882_v5  ;;  %v2951_v27 = vadd.f32 %v5389_v45, %v2883_v9  ;;  %v2900_v41 = vld [vmem:[#allocation2 + $0xc0] sm:$0xff] }
 0x4ec   : > { %v4252_v22 = vpack.c.bf16 %v3009_v11, %v3008_v10  ;;  %v3012_v23 = vmax.f32 %v2948_v12, 0.0  ;;  %v3013_v24 = vmax.f32 %v2949_v13, 0.0  ;;  %4339 = vst [vmem:[%s4895_s28 + $0x80] sm:$0xff] %v4247_v16   ;;  %v2952_v32 = vadd.f32 %v5389_v45, %v2884_v14  ;;  %v2901_v8 = vld [vmem:[#allocation2 + $0x1c0] sm:$0xff]  ;;  %v2902_v13 = vld [vmem:[#allocation2 + $0x158] sm:$0xff]  ;;  %v2903_v14 = vld [vmem:[#allocation2 + $0x10] sm:$0xff] }
 0x4ed   : > { %v4257_v30 = vpack.c.bf16 %v3011_v18, %v3010_v17  ;;  %v3014_v31 = vmax.f32 %v2950_v19, 0.0  ;;  %v2953_v35 = vadd.f32 %v5389_v45, %v2885_v15  ;;  %v3015_v38 = vmax.f32 %v2951_v27, 0.0  ;;  %v2904_v19 = vld [vmem:[#allocation2 + $0x58] sm:$0xff] }
 0x4ee   : > { %4340 = vst [vmem:[%s4895_s28 + $0x88] sm:$0xff] %v4252_v22   ;;  %v4262_v37 = vpack.c.bf16 %v3013_v24, %v3012_v23  ;;  %v2954_v39 = vadd.f32 %v5389_v45, %v2886_v20  ;;  %v2955_v40 = vadd.f32 %v5389_v45, %v2887_v21  ;;  %v3016_v34 = vmax.f32 %v2952_v32, 0.0  ;;  %v2905_v20 = vld [vmem:[#allocation2 + $0xa0] sm:$0xff] }
 0x4ef   : > { %4341 = vst [vmem:[%s4895_s28 + $0x90] sm:$0xff] %v4257_v30   ;;  %v3017_v25 = vmax.f32 %v2953_v35, 0.0  ;;  %v2956_v26 = vadd.f32 %v5389_v45, %v2888_v28  ;;  %v2957_v44 = vadd.f32 %v5389_v45, %v2889_v29  ;;  %v4267_v46 = vpack.c.bf16 %v3015_v38, %v3014_v31 }
 0x4f0   : > { %4342 = vst [vmem:[%s4895_s28 + $0x98] sm:$0xff] %v4262_v37   ;;  %v3018_v42 = vmax.f32 %v2954_v39, 0.0  ;;  %v3019_v48 = vmax.f32 %v2955_v40, 0.0  ;;  %v2958_v51 = vadd.f32 %v5389_v45, %v2890_v36  ;;  %v2959_v61 = vadd.f32 %v5389_v45, %v2891_v33 }
 0x4f1   : > { %v4272_v56 = vpack.c.bf16 %v3017_v25, %v3016_v34  ;;  %v3020_v57 = vmax.f32 %v2956_v26, 0.0  ;;  %v3021_v58 = vmax.f32 %v2957_v44, 0.0  ;;  %4343 = vst [vmem:[%s4895_s28 + $0xa0] sm:$0xff] %v4267_v46   ;;  %v2960_v53 = vadd.f32 %v5389_v45, %v2892_v43 }
 0x4f2   : > { %v4277_v49 = vpack.c.bf16 %v3019_v48, %v3018_v42  ;;  %v3022_v50 = vmax.f32 %v2958_v51, 0.0  ;;  %v2961_v54 = vadd.f32 %v5389_v45, %v2893_v47  ;;  %v3023_v63 = vmax.f32 %v2959_v61, 0.0 }
 0x4f3   : > { %4344 = vst [vmem:[%s4895_s28 + $0xa8] sm:$0xff] %v4272_v56   ;;  %v4282_v59 = vpack.c.bf16 %v3021_v58, %v3020_v57  ;;  %v2962_v3 = vadd.f32 %v5389_v45, %v2894_v52  ;;  %v2963_v60 = vadd.f32 %v5389_v45, %v2895_v55  ;;  %v3024_v4 = vmax.f32 %v2960_v53, 0.0 }
 0x4f4   : > { %4345 = vst [vmem:[%s4895_s28 + $0xb0] sm:$0xff] %v4277_v49   ;;  %v3025_v5 = vmax.f32 %v2961_v54, 0.0  ;;  %v2964_v6 = vadd.f32 %v5389_v45, %v2896_v62  ;;  %v2965_v7 = vadd.f32 %v5389_v45, %v2897_v1  ;;  %v4287_v9 = vpack.c.bf16 %v3023_v63, %v3022_v50 }
 0x4f5   : > { %4346 = vst [vmem:[%s4895_s28 + $0xb8] sm:$0xff] %v4282_v59   ;;  %v3026_v10 = vmax.f32 %v2962_v3, 0.0  ;;  %v3027_v11 = vmax.f32 %v2963_v60, 0.0  ;;  %v2966_v12 = vadd.f32 %v5389_v45, %v2898_v2  ;;  %v2967_v18 = vadd.f32 %v5389_v45, %v2899_v0 }
 0x4f6   : > { %v4292_v15 = vpack.c.bf16 %v3025_v5, %v3024_v4  ;;  %v3028_v16 = vmax.f32 %v2964_v6, 0.0  ;;  %v3029_v17 = vmax.f32 %v2965_v7, 0.0  ;;  %4347 = vst [vmem:[%s4895_s28 + $0xc0] sm:$0xff] %v4287_v9   ;;  %v2968_v23 = vadd.f32 %v5389_v45, %v2900_v41 }
 0x4f7   : > { %v4297_v21 = vpack.c.bf16 %v3027_v11, %v3026_v10  ;;  %v3030_v22 = vmax.f32 %v2966_v12, 0.0  ;;  %v2969_v24 = vadd.f32 %v5389_v45, %v2901_v8  ;;  %v3031_v28 = vmax.f32 %v2967_v18, 0.0 }
 0x4f8   : > { %4348 = vst [vmem:[%s4895_s28 + $0xc8] sm:$0xff] %v4292_v15   ;;  %v4302_v27 = vpack.c.bf16 %v3029_v17, %v3028_v16  ;;  %v2970_v29 = vadd.f32 %v5389_v45, %v2902_v13  ;;  %v2971_v30 = vadd.f32 %v5389_v45, %v2903_v14  ;;  %v3032_v31 = vmax.f32 %v2968_v23, 0.0 }
 0x4f9   : > { %4349 = vst [vmem:[%s4895_s28 + $0xd0] sm:$0xff] %v4297_v21   ;;  %v3033_v32 = vmax.f32 %v2969_v24, 0.0  ;;  %v2972_v35 = vadd.f32 %v5389_v45, %v2904_v19  ;;  %v2973_v36 = vadd.f32 %v5389_v45, %v2905_v20  ;;  %v4307_v37 = vpack.c.bf16 %v3031_v28, %v3030_v22 }
 0x4fa   : > { %4350 = vst [vmem:[%s4895_s28 + $0xd8] sm:$0xff] %v4302_v27   ;;  %v3034_v38 = vmax.f32 %v2970_v29, 0.0  ;;  %v3035_v39 = vmax.f32 %v2971_v30, 0.0 }
 0x4fb   : > { %v4312_v40 = vpack.c.bf16 %v3033_v32, %v3032_v31  ;;  %v3036_v33 = vmax.f32 %v2972_v35, 0.0  ;;  %v3037_v34 = vmax.f32 %v2973_v36, 0.0  ;;  %4351 = vst [vmem:[%s4895_s28 + $0xe0] sm:$0xff] %v4307_v37  }
 0x4fc   : > { %v4317_v25 = vpack.c.bf16 %v3035_v39, %v3034_v38 }
 0x4fd   : > { %4352 = vst [vmem:[%s4895_s28 + $0xe8] sm:$0xff] %v4312_v40   ;;  %v4322_v26 = vpack.c.bf16 %v3037_v34, %v3036_v33 }
 0x4fe   : > { %4353 = vst [vmem:[%s4895_s28 + $0xf0] sm:$0xff] %v4317_v25  }
 0x4ff   : > { %4354 = vst [vmem:[%s4895_s28 + $0xf8] sm:$0xff] %v4322_v26  }
 0x500 PF: > { %s29_s9 = sadd.s32 1, %s4519_s9   ;;  %s5535_s29 = smov %s4499_s30 }
 0x501   : > { %p26_p1 = scmp.ge.s32.totalorder %s29_s9, 6   ;;  %s5536_s30 = smov %s4618_s22 }
 0x502   : > { %s5537_s7 = smov %s4511_s8  ;;  %s5538_s0 = smov %s4515_s1 }
 0x503   : > { %s5539_s8 = smov %s5544_s10  ;;  %s5540_s1 = smov %s5546_s11 }
 0x504   :  { %28 = sbr.rel (!%p26_p1) target bundleno = 11 (0xb), region = 115 }

// kernel: deepae_forward_pallas.5
= control target key start
LH: loop header
LB: loop body
LE: loop exit
PB: predicated region body
PF: predicated region fallthrough
CT: control target
= control target key end

     0   :  { %s4457_s27 = smov [#allocation4]   ;;  %s4458_s28 = smov [#allocation5]   ;;  %s5444_s0 = inlined_call_operand.vmem [shape: s32[4], index: 0, kind: input, shape index: {}]   ;;  %s5445_s2 = inlined_call_operand.vmem [shape: bf16[1024,1024], index: 2, kind: input, shape index: {}]   ;;  %s5446_s3 = inlined_call_operand.vmem [shape: bf16[1024,128], index: 3, kind: input, shape index: {}]   ;;  %s5447_s4 = inlined_call_operand.vmem [shape: bf16[128,128], index: 4, kind: input, shape index: {}]   ;;  %s5448_s5 = inlined_call_operand.vmem [shape: f32[1,128], index: 5, kind: input, shape index: {}]   ;;  %s5449_s6 = inlined_call_operand.vmem [shape: bf16[1024,128], index: 6, kind: output, shape index: {}]   ;;  %s5450_s1 = inlined_call_operand.vmem [shape: s32[2], index: 1, kind: input, shape index: {}]  }
   0x1   :  { %s12_s23 = sshll.u32 %s5444_s0, 4  ;;  %s17_s26 = sshll.u32 %s5450_s1, 4  ;;  %s13_s23 = int_to_ptr.vmem [resolvable:$true] %s12_s23  ;;  %s18_s26 = int_to_ptr.vmem [resolvable:$true] %s17_s26 }
   0x2   :  { %15 = dma.vmem_to_smem %s13_s23, 16, %s4457_s27, [#allocation3] }
   0x3   :  { %20 = dma.vmem_to_smem %s18_s26, 16, %s4458_s28, [#allocation3] }
   0x4   :  { %4427 = dma.done.wait [#allocation3], 32 }
   0x5   :  { %4428 = vsyncadd [#allocation3], 4294967264 }
   0x6   :  { %23 = sfence }
   0x7   :  { %s4501_s29 = smov 0   ;;  %s4503_s30 = smov 0  }
   0x8   :  { %s4505_s7 = smov 0   ;;  %s4507_s0 = smov 0  }
   0x9   :  { %s4509_s8 = smov 0   ;;  %s4511_s1 = smov 0  }
   0xa   :  { %s4513_s9 = smov 0  }
   0xb LB: > { %s41_s10 = sadd.s32 1, %s4447_s8  ;;  %s48_s11 = sadd.s32 1, %s4451_s1  ;;  %s4455_s9 = sphi %s4513_s9, %s29_s9   ;;  %s4451_s1 = sphi %s4511_s1, %s5476_s1   ;;  %s4447_s8 = sphi %s4509_s8, %s5475_s8   ;;  %s4443_s0 = sphi %s4507_s0, %s5474_s0   ;;  %s4439_s7 = sphi %s4505_s7, %s5473_s7   ;;  %s4435_s30 = sphi %s4503_s30, %s5472_s30   ;;  %s4431_s29 = sphi %s4501_s29, %s5471_s29  }
   0xc   : > { %p42_p0 = scmp.ge.s32.totalorder %s41_s10, 2  ;;  %s3233_s12 = sshll.u32 %s4451_s1, 1 }
   0xd   : > { %s53_s13 = sadd.s32 %s4447_s8, %s3233_s12  ;;  %p70_p1 = scmp.ne.s32.totalorder %s4435_s30, %s4431_s29 }
   0xe   : > { %s5478_s11 = smov (!%p42_p0, %s48_s11), %s4451_s1  ;;  %p71_p3 = scmp.eq.s32.totalorder %s4455_s9, 0 }
   0xf   : > { %p50_p2 = scmp.ge.s32.totalorder %s5478_s11, 2  ;;  %s5480_s10 = smov (%p42_p0, %s41_s10), 0 }
  0x10   : > { %p72_p4 = por %p71_p3, %p70_p1  ;;  %s54_s14 = sld [smem:[#allocation4 + %s53_s13]] }
  0x11   : > { %s5482_s11 = smov (%p50_p2, %s5478_s11), 0  ;;  %s63_s21 = sadd.s32 1, %s4435_s30 }
  0x12   : > { %s3234_s15 = sshll.u32 %s5482_s11, 1  ;;  %s58_s18 = ssub.s32 %s4451_s1, %s5482_s11 }
  0x13   : > { %s56_s16 = sadd.s32 %s3234_s15, %s5480_s10  ;;  %p3240_p6 = scmp.ge.s32.totalorder %s4455_s9, 4 }
  0x14   : > { %s57_s17 = sld [smem:[#allocation4 + %s56_s16]] }
  0x1a   : > { %s59_s19 = ssub.s32 %s54_s14, %s57_s17  ;;  %221 = sbr.rel (%p3240_p6) target bundleno = 170 (0xaa), region = 24 }
  0x1b   : > { %s60_s20 = sor.u32 %s59_s19, %s58_s18 }
  0x1c   : > { %p61_p5 = scmp.eq.s32.totalorder %s60_s20, 0 }
  0x1e   : > { %s4554_s22 = scalar_select %p61_p5, %s4435_s30, %s63_s21  }
  0x1f   : > { %224 = sbr.rel (!%p72_p4) target bundleno = 170 (0xaa), region = 28  ;;  %s231_s23 = sld [smem:[#allocation4 + %s53_s13]] (%p72_p4) }
  0x20   : > { %s226_s24 = sand.u32 (%p72_p4), 1, %s4435_s30   ;;  %s3931_s25 = sshll.u32 (%p72_p4), %s4451_s1, 9 }
  0x21   : > { %s3241_s26 = sshll.u32 (%p72_p4), %s226_s24, 10 }
  0x22   : > { %s4567_s13 = scalar_lea.vmem (%p72_p4), [#allocation6], %s3241_s26 }
  0x25   : > { %s3244_s27 = sshll.u32 %s231_s23, 2 }
  0x26   : > { %s235_s28 = sadd.s32 %s3931_s25, %s3244_s27 }
  0x27   : > { %s3246_s12 = sshll.u32 %s235_s28, 2 }
  0x28   : > { %s4562_s16 = scalar_lea.vmem %s5445_s2, %s3246_s12 }
  0x29   : > { %v250_v0 = vld [vmem:[%s4562_s16] sm:$0xff]  ;;  %v252_v1 = vld [vmem:[%s4562_s16 + $0x8] sm:$0xff] }
  0x2a   : > { %v254_v2 = vld [vmem:[%s4562_s16 + $0x20] sm:$0xff]  ;;  %251 = vst [vmem:[%s4567_s13] sm:$0xff] %v250_v0  ;;  %v256_v3 = vld [vmem:[%s4562_s16 + $0x28] sm:$0xff] }
  0x2b   : > { %253 = vst [vmem:[%s4567_s13 + $0x8] sm:$0xff] %v252_v1  ;;  %v258_v4 = vld [vmem:[%s4562_s16 + $0x40] sm:$0xff]  ;;  %v260_v5 = vld [vmem:[%s4562_s16 + $0x48] sm:$0xff] }
  0x2c   : > { %255 = vst [vmem:[%s4567_s13 + $0x10] sm:$0xff] %v254_v2  ;;  %v262_v6 = vld [vmem:[%s4562_s16 + $0x60] sm:$0xff]  ;;  %v264_v7 = vld [vmem:[%s4562_s16 + $0x68] sm:$0xff] }
  0x2d   : > { %257 = vst [vmem:[%s4567_s13 + $0x18] sm:$0xff] %v256_v3  ;;  %v266_v8 = vld [vmem:[%s4562_s16 + $0x80] sm:$0xff]  ;;  %v268_v9 = vld [vmem:[%s4562_s16 + $0x88] sm:$0xff] }
  0x2e   : > { %259 = vst [vmem:[%s4567_s13 + $0x20] sm:$0xff] %v258_v4  ;;  %v270_v10 = vld [vmem:[%s4562_s16 + $0xa0] sm:$0xff]  ;;  %v272_v11 = vld [vmem:[%s4562_s16 + $0xa8] sm:$0xff] }
  0x2f   : > { %261 = vst [vmem:[%s4567_s13 + $0x28] sm:$0xff] %v260_v5  ;;  %v274_v12 = vld [vmem:[%s4562_s16 + $0xc0] sm:$0xff]  ;;  %v276_v13 = vld [vmem:[%s4562_s16 + $0xc8] sm:$0xff] }
  0x30   : > { %263 = vst [vmem:[%s4567_s13 + $0x30] sm:$0xff] %v262_v6  ;;  %v278_v14 = vld [vmem:[%s4562_s16 + $0xe0] sm:$0xff]  ;;  %v280_v15 = vld [vmem:[%s4562_s16 + $0xe8] sm:$0xff] }
  0x31   : > { %265 = vst [vmem:[%s4567_s13 + $0x38] sm:$0xff] %v264_v7  ;;  %v282_v16 = vld [vmem:[%s4562_s16 + $0x100] sm:$0xff]  ;;  %v284_v17 = vld [vmem:[%s4562_s16 + $0x108] sm:$0xff] }
  0x32   : > { %267 = vst [vmem:[%s4567_s13 + $0x40] sm:$0xff] %v266_v8  ;;  %v286_v18 = vld [vmem:[%s4562_s16 + $0x120] sm:$0xff]  ;;  %v288_v19 = vld [vmem:[%s4562_s16 + $0x128] sm:$0xff] }
  0x33   : > { %269 = vst [vmem:[%s4567_s13 + $0x48] sm:$0xff] %v268_v9  ;;  %v290_v20 = vld [vmem:[%s4562_s16 + $0x140] sm:$0xff]  ;;  %v292_v21 = vld [vmem:[%s4562_s16 + $0x148] sm:$0xff] }
  0x34   : > { %271 = vst [vmem:[%s4567_s13 + $0x50] sm:$0xff] %v270_v10  ;;  %v294_v22 = vld [vmem:[%s4562_s16 + $0x160] sm:$0xff]  ;;  %v296_v23 = vld [vmem:[%s4562_s16 + $0x168] sm:$0xff] }
  0x35   : > { %273 = vst [vmem:[%s4567_s13 + $0x58] sm:$0xff] %v272_v11  ;;  %v298_v24 = vld [vmem:[%s4562_s16 + $0x180] sm:$0xff]  ;;  %v300_v25 = vld [vmem:[%s4562_s16 + $0x188] sm:$0xff] }
  0x36   : > { %275 = vst [vmem:[%s4567_s13 + $0x60] sm:$0xff] %v274_v12  ;;  %v302_v26 = vld [vmem:[%s4562_s16 + $0x1a0] sm:$0xff]  ;;  %v304_v27 = vld [vmem:[%s4562_s16 + $0x1a8] sm:$0xff] }
  0x37   : > { %277 = vst [vmem:[%s4567_s13 + $0x68] sm:$0xff] %v276_v13  ;;  %v306_v28 = vld [vmem:[%s4562_s16 + $0x1c0] sm:$0xff]  ;;  %v308_v29 = vld [vmem:[%s4562_s16 + $0x1c8] sm:$0xff] }
  0x38   : > { %279 = vst [vmem:[%s4567_s13 + $0x70] sm:$0xff] %v278_v14  ;;  %v310_v30 = vld [vmem:[%s4562_s16 + $0x1e0] sm:$0xff]  ;;  %v312_v31 = vld [vmem:[%s4562_s16 + $0x1e8] sm:$0xff] }
  0x39   : > { %281 = vst [vmem:[%s4567_s13 + $0x78] sm:$0xff] %v280_v15  ;;  %v314_v32 = vld [vmem:[%s4562_s16 + $0x200] sm:$0xff]  ;;  %v316_v33 = vld [vmem:[%s4562_s16 + $0x208] sm:$0xff] }
  0x3a   : > { %283 = vst [vmem:[%s4567_s13 + $0x80] sm:$0xff] %v282_v16  ;;  %v318_v34 = vld [vmem:[%s4562_s16 + $0x220] sm:$0xff]  ;;  %v320_v35 = vld [vmem:[%s4562_s16 + $0x228] sm:$0xff] }
  0x3b   : > { %285 = vst [vmem:[%s4567_s13 + $0x88] sm:$0xff] %v284_v17  ;;  %v322_v36 = vld [vmem:[%s4562_s16 + $0x240] sm:$0xff]  ;;  %v324_v37 = vld [vmem:[%s4562_s16 + $0x248] sm:$0xff] }
  0x3c   : > { %287 = vst [vmem:[%s4567_s13 + $0x90] sm:$0xff] %v286_v18  ;;  %v326_v38 = vld [vmem:[%s4562_s16 + $0x260] sm:$0xff]  ;;  %v328_v39 = vld [vmem:[%s4562_s16 + $0x268] sm:$0xff] }
  0x3d   : > { %289 = vst [vmem:[%s4567_s13 + $0x98] sm:$0xff] %v288_v19  ;;  %v330_v40 = vld [vmem:[%s4562_s16 + $0x280] sm:$0xff]  ;;  %v332_v41 = vld [vmem:[%s4562_s16 + $0x288] sm:$0xff] }
  0x3e   : > { %291 = vst [vmem:[%s4567_s13 + $0xa0] sm:$0xff] %v290_v20  ;;  %v334_v42 = vld [vmem:[%s4562_s16 + $0x2a0] sm:$0xff]  ;;  %v336_v43 = vld [vmem:[%s4562_s16 + $0x2a8] sm:$0xff] }
  0x3f   : > { %293 = vst [vmem:[%s4567_s13 + $0xa8] sm:$0xff] %v292_v21  ;;  %v338_v44 = vld [vmem:[%s4562_s16 + $0x2c0] sm:$0xff]  ;;  %v340_v45 = vld [vmem:[%s4562_s16 + $0x2c8] sm:$0xff] }
  0x40   : > { %295 = vst [vmem:[%s4567_s13 + $0xb0] sm:$0xff] %v294_v22  ;;  %v342_v46 = vld [vmem:[%s4562_s16 + $0x2e0] sm:$0xff]  ;;  %v344_v47 = vld [vmem:[%s4562_s16 + $0x2e8] sm:$0xff] }
  0x41   : > { %297 = vst [vmem:[%s4567_s13 + $0xb8] sm:$0xff] %v296_v23  ;;  %v346_v48 = vld [vmem:[%s4562_s16 + $0x300] sm:$0xff]  ;;  %v348_v49 = vld [vmem:[%s4562_s16 + $0x308] sm:$0xff] }
  0x42   : > { %299 = vst [vmem:[%s4567_s13 + $0xc0] sm:$0xff] %v298_v24  ;;  %v350_v50 = vld [vmem:[%s4562_s16 + $0x320] sm:$0xff]  ;;  %v352_v51 = vld [vmem:[%s4562_s16 + $0x328] sm:$0xff] }
  0x43   : > { %301 = vst [vmem:[%s4567_s13 + $0xc8] sm:$0xff] %v300_v25  ;;  %v354_v52 = vld [vmem:[%s4562_s16 + $0x340] sm:$0xff]  ;;  %v356_v53 = vld [vmem:[%s4562_s16 + $0x348] sm:$0xff] }
  0x44   : > { %303 = vst [vmem:[%s4567_s13 + $0xd0] sm:$0xff] %v302_v26  ;;  %v358_v54 = vld [vmem:[%s4562_s16 + $0x360] sm:$0xff]  ;;  %v360_v55 = vld [vmem:[%s4562_s16 + $0x368] sm:$0xff] }
  0x45   : > { %305 = vst [vmem:[%s4567_s13 + $0xd8] sm:$0xff] %v304_v27  ;;  %v362_v56 = vld [vmem:[%s4562_s16 + $0x380] sm:$0xff]  ;;  %v364_v57 = vld [vmem:[%s4562_s16 + $0x388] sm:$0xff] }
  0x46   : > { %307 = vst [vmem:[%s4567_s13 + $0xe0] sm:$0xff] %v306_v28  ;;  %v366_v58 = vld [vmem:[%s4562_s16 + $0x3a0] sm:$0xff]  ;;  %v368_v59 = vld [vmem:[%s4562_s16 + $0x3a8] sm:$0xff] }
  0x47   : > { %309 = vst [vmem:[%s4567_s13 + $0xe8] sm:$0xff] %v308_v29  ;;  %v370_v60 = vld [vmem:[%s4562_s16 + $0x3c0] sm:$0xff]  ;;  %v372_v61 = vld [vmem:[%s4562_s16 + $0x3c8] sm:$0xff] }
  0x48   : > { %311 = vst [vmem:[%s4567_s13 + $0xf0] sm:$0xff] %v310_v30  ;;  %v374_v62 = vld [vmem:[%s4562_s16 + $0x3e0] sm:$0xff]  ;;  %v376_v63 = vld [vmem:[%s4562_s16 + $0x3e8] sm:$0xff] }
  0x49   : > { %313 = vst [vmem:[%s4567_s13 + $0xf8] sm:$0xff] %v312_v31  ;;  %v378_v0 = vld [vmem:[%s4562_s16 + $0x400] sm:$0xff]  ;;  %v380_v1 = vld [vmem:[%s4562_s16 + $0x408] sm:$0xff] }
  0x4a   : > { %315 = vst [vmem:[%s4567_s13 + $0x100] sm:$0xff] %v314_v32  ;;  %v382_v2 = vld [vmem:[%s4562_s16 + $0x420] sm:$0xff]  ;;  %v384_v3 = vld [vmem:[%s4562_s16 + $0x428] sm:$0xff] }
  0x4b   : > { %317 = vst [vmem:[%s4567_s13 + $0x108] sm:$0xff] %v316_v33  ;;  %v386_v4 = vld [vmem:[%s4562_s16 + $0x440] sm:$0xff]  ;;  %v388_v5 = vld [vmem:[%s4562_s16 + $0x448] sm:$0xff] }
  0x4c   : > { %319 = vst [vmem:[%s4567_s13 + $0x110] sm:$0xff] %v318_v34  ;;  %v390_v6 = vld [vmem:[%s4562_s16 + $0x460] sm:$0xff]  ;;  %v392_v7 = vld [vmem:[%s4562_s16 + $0x468] sm:$0xff] }
  0x4d   : > { %321 = vst [vmem:[%s4567_s13 + $0x118] sm:$0xff] %v320_v35  ;;  %v394_v8 = vld [vmem:[%s4562_s16 + $0x480] sm:$0xff]  ;;  %v396_v9 = vld [vmem:[%s4562_s16 + $0x488] sm:$0xff] }
  0x4e   : > { %323 = vst [vmem:[%s4567_s13 + $0x120] sm:$0xff] %v322_v36  ;;  %v398_v10 = vld [vmem:[%s4562_s16 + $0x4a0] sm:$0xff]  ;;  %v400_v11 = vld [vmem:[%s4562_s16 + $0x4a8] sm:$0xff] }
  0x4f   : > { %325 = vst [vmem:[%s4567_s13 + $0x128] sm:$0xff] %v324_v37  ;;  %v402_v12 = vld [vmem:[%s4562_s16 + $0x4c0] sm:$0xff]  ;;  %v404_v13 = vld [vmem:[%s4562_s16 + $0x4c8] sm:$0xff] }
  0x50   : > { %327 = vst [vmem:[%s4567_s13 + $0x130] sm:$0xff] %v326_v38  ;;  %v406_v14 = vld [vmem:[%s4562_s16 + $0x4e0] sm:$0xff]  ;;  %v408_v15 = vld [vmem:[%s4562_s16 + $0x4e8] sm:$0xff] }
  0x51   : > { %329 = vst [vmem:[%s4567_s13 + $0x138] sm:$0xff] %v328_v39  ;;  %v410_v16 = vld [vmem:[%s4562_s16 + $0x500] sm:$0xff]  ;;  %v412_v17 = vld [vmem:[%s4562_s16 + $0x508] sm:$0xff] }
  0x52   : > { %331 = vst [vmem:[%s4567_s13 + $0x140] sm:$0xff] %v330_v40  ;;  %v414_v18 = vld [vmem:[%s4562_s16 + $0x520] sm:$0xff]  ;;  %v416_v19 = vld [vmem:[%s4562_s16 + $0x528] sm:$0xff] }
  0x53   : > { %333 = vst [vmem:[%s4567_s13 + $0x148] sm:$0xff] %v332_v41  ;;  %v418_v20 = vld [vmem:[%s4562_s16 + $0x540] sm:$0xff]  ;;  %v420_v21 = vld [vmem:[%s4562_s16 + $0x548] sm:$0xff] }
  0x54   : > { %335 = vst [vmem:[%s4567_s13 + $0x150] sm:$0xff] %v334_v42  ;;  %v422_v22 = vld [vmem:[%s4562_s16 + $0x560] sm:$0xff]  ;;  %v424_v23 = vld [vmem:[%s4562_s16 + $0x568] sm:$0xff] }
  0x55   : > { %337 = vst [vmem:[%s4567_s13 + $0x158] sm:$0xff] %v336_v43  ;;  %v426_v24 = vld [vmem:[%s4562_s16 + $0x580] sm:$0xff]  ;;  %v428_v25 = vld [vmem:[%s4562_s16 + $0x588] sm:$0xff] }
  0x56   : > { %339 = vst [vmem:[%s4567_s13 + $0x160] sm:$0xff] %v338_v44  ;;  %v430_v26 = vld [vmem:[%s4562_s16 + $0x5a0] sm:$0xff]  ;;  %v432_v27 = vld [vmem:[%s4562_s16 + $0x5a8] sm:$0xff] }
  0x57   : > { %341 = vst [vmem:[%s4567_s13 + $0x168] sm:$0xff] %v340_v45  ;;  %v434_v28 = vld [vmem:[%s4562_s16 + $0x5c0] sm:$0xff]  ;;  %v436_v29 = vld [vmem:[%s4562_s16 + $0x5c8] sm:$0xff] }
  0x58   : > { %343 = vst [vmem:[%s4567_s13 + $0x170] sm:$0xff] %v342_v46  ;;  %v438_v30 = vld [vmem:[%s4562_s16 + $0x5e0] sm:$0xff]  ;;  %v440_v31 = vld [vmem:[%s4562_s16 + $0x5e8] sm:$0xff] }
  0x59   : > { %345 = vst [vmem:[%s4567_s13 + $0x178] sm:$0xff] %v344_v47  ;;  %v442_v32 = vld [vmem:[%s4562_s16 + $0x600] sm:$0xff]  ;;  %v444_v33 = vld [vmem:[%s4562_s16 + $0x608] sm:$0xff] }
  0x5a   : > { %347 = vst [vmem:[%s4567_s13 + $0x180] sm:$0xff] %v346_v48  ;;  %v446_v34 = vld [vmem:[%s4562_s16 + $0x620] sm:$0xff]  ;;  %v448_v35 = vld [vmem:[%s4562_s16 + $0x628] sm:$0xff] }
  0x5b   : > { %349 = vst [vmem:[%s4567_s13 + $0x188] sm:$0xff] %v348_v49  ;;  %v450_v36 = vld [vmem:[%s4562_s16 + $0x640] sm:$0xff]  ;;  %v452_v37 = vld [vmem:[%s4562_s16 + $0x648] sm:$0xff] }
  0x5c   : > { %351 = vst [vmem:[%s4567_s13 + $0x190] sm:$0xff] %v350_v50  ;;  %v454_v38 = vld [vmem:[%s4562_s16 + $0x660] sm:$0xff]  ;;  %v456_v39 = vld [vmem:[%s4562_s16 + $0x668] sm:$0xff] }
  0x5d   : > { %353 = vst [vmem:[%s4567_s13 + $0x198] sm:$0xff] %v352_v51  ;;  %v458_v40 = vld [vmem:[%s4562_s16 + $0x680] sm:$0xff]  ;;  %v460_v41 = vld [vmem:[%s4562_s16 + $0x688] sm:$0xff] }
  0x5e   : > { %355 = vst [vmem:[%s4567_s13 + $0x1a0] sm:$0xff] %v354_v52  ;;  %v462_v42 = vld [vmem:[%s4562_s16 + $0x6a0] sm:$0xff]  ;;  %v464_v43 = vld [vmem:[%s4562_s16 + $0x6a8] sm:$0xff] }
  0x5f   : > { %357 = vst [vmem:[%s4567_s13 + $0x1a8] sm:$0xff] %v356_v53  ;;  %v466_v44 = vld [vmem:[%s4562_s16 + $0x6c0] sm:$0xff]  ;;  %v468_v45 = vld [vmem:[%s4562_s16 + $0x6c8] sm:$0xff] }
  0x60   : > { %359 = vst [vmem:[%s4567_s13 + $0x1b0] sm:$0xff] %v358_v54  ;;  %v470_v46 = vld [vmem:[%s4562_s16 + $0x6e0] sm:$0xff]  ;;  %v472_v47 = vld [vmem:[%s4562_s16 + $0x6e8] sm:$0xff] }
  0x61   : > { %361 = vst [vmem:[%s4567_s13 + $0x1b8] sm:$0xff] %v360_v55  ;;  %v474_v48 = vld [vmem:[%s4562_s16 + $0x700] sm:$0xff]  ;;  %v476_v49 = vld [vmem:[%s4562_s16 + $0x708] sm:$0xff] }
  0x62   : > { %363 = vst [vmem:[%s4567_s13 + $0x1c0] sm:$0xff] %v362_v56  ;;  %v478_v50 = vld [vmem:[%s4562_s16 + $0x720] sm:$0xff]  ;;  %v480_v51 = vld [vmem:[%s4562_s16 + $0x728] sm:$0xff] }
  0x63   : > { %365 = vst [vmem:[%s4567_s13 + $0x1c8] sm:$0xff] %v364_v57  ;;  %v482_v52 = vld [vmem:[%s4562_s16 + $0x740] sm:$0xff]  ;;  %v484_v53 = vld [vmem:[%s4562_s16 + $0x748] sm:$0xff] }
  0x64   : > { %367 = vst [vmem:[%s4567_s13 + $0x1d0] sm:$0xff] %v366_v58  ;;  %v486_v54 = vld [vmem:[%s4562_s16 + $0x760] sm:$0xff]  ;;  %v488_v55 = vld [vmem:[%s4562_s16 + $0x768] sm:$0xff] }
  0x65   : > { %369 = vst [vmem:[%s4567_s13 + $0x1d8] sm:$0xff] %v368_v59  ;;  %v490_v56 = vld [vmem:[%s4562_s16 + $0x780] sm:$0xff]  ;;  %v492_v57 = vld [vmem:[%s4562_s16 + $0x788] sm:$0xff] }
  0x66   : > { %371 = vst [vmem:[%s4567_s13 + $0x1e0] sm:$0xff] %v370_v60  ;;  %v494_v58 = vld [vmem:[%s4562_s16 + $0x7a0] sm:$0xff]  ;;  %v496_v59 = vld [vmem:[%s4562_s16 + $0x7a8] sm:$0xff] }
  0x67   : > { %373 = vst [vmem:[%s4567_s13 + $0x1e8] sm:$0xff] %v372_v61  ;;  %v498_v60 = vld [vmem:[%s4562_s16 + $0x7c0] sm:$0xff]  ;;  %v500_v61 = vld [vmem:[%s4562_s16 + $0x7c8] sm:$0xff] }
  0x68   : > { %375 = vst [vmem:[%s4567_s13 + $0x1f0] sm:$0xff] %v374_v62  ;;  %v502_v62 = vld [vmem:[%s4562_s16 + $0x7e0] sm:$0xff] }
  0x69   : > { %377 = vst [vmem:[%s4567_s13 + $0x1f8] sm:$0xff] %v376_v63  ;;  %v504_v63 = vld [vmem:[%s4562_s16 + $0x7e8] sm:$0xff] }
  0x6a   : > { %379 = vst [vmem:[%s4567_s13 + $0x200] sm:$0xff] %v378_v0 }
  0x6b   : > { %381 = vst [vmem:[%s4567_s13 + $0x208] sm:$0xff] %v380_v1 }
  0x6c   : > { %383 = vst [vmem:[%s4567_s13 + $0x210] sm:$0xff] %v382_v2 }
  0x6d   : > { %385 = vst [vmem:[%s4567_s13 + $0x218] sm:$0xff] %v384_v3 }
  0x6e   : > { %387 = vst [vmem:[%s4567_s13 + $0x220] sm:$0xff] %v386_v4 }
  0x6f   : > { %389 = vst [vmem:[%s4567_s13 + $0x228] sm:$0xff] %v388_v5 }
  0x70   : > { %391 = vst [vmem:[%s4567_s13 + $0x230] sm:$0xff] %v390_v6 }
  0x71   : > { %393 = vst [vmem:[%s4567_s13 + $0x238] sm:$0xff] %v392_v7 }
  0x72   : > { %395 = vst [vmem:[%s4567_s13 + $0x240] sm:$0xff] %v394_v8 }
  0x73   : > { %397 = vst [vmem:[%s4567_s13 + $0x248] sm:$0xff] %v396_v9 }
  0x74   : > { %399 = vst [vmem:[%s4567_s13 + $0x250] sm:$0xff] %v398_v10 }
  0x75   : > { %401 = vst [vmem:[%s4567_s13 + $0x258] sm:$0xff] %v400_v11 }
  0x76   : > { %403 = vst [vmem:[%s4567_s13 + $0x260] sm:$0xff] %v402_v12 }
  0x77   : > { %405 = vst [vmem:[%s4567_s13 + $0x268] sm:$0xff] %v404_v13 }
  0x78   : > { %407 = vst [vmem:[%s4567_s13 + $0x270] sm:$0xff] %v406_v14 }
  0x79   : > { %409 = vst [vmem:[%s4567_s13 + $0x278] sm:$0xff] %v408_v15 }
  0x7a   : > { %411 = vst [vmem:[%s4567_s13 + $0x280] sm:$0xff] %v410_v16 }
  0x7b   : > { %413 = vst [vmem:[%s4567_s13 + $0x288] sm:$0xff] %v412_v17 }
  0x7c   : > { %415 = vst [vmem:[%s4567_s13 + $0x290] sm:$0xff] %v414_v18 }
  0x7d   : > { %417 = vst [vmem:[%s4567_s13 + $0x298] sm:$0xff] %v416_v19 }
  0x7e   : > { %419 = vst [vmem:[%s4567_s13 + $0x2a0] sm:$0xff] %v418_v20 }
  0x7f   : > { %421 = vst [vmem:[%s4567_s13 + $0x2a8] sm:$0xff] %v420_v21 }
  0x80   : > { %423 = vst [vmem:[%s4567_s13 + $0x2b0] sm:$0xff] %v422_v22 }
  0x81   : > { %425 = vst [vmem:[%s4567_s13 + $0x2b8] sm:$0xff] %v424_v23 }
  0x82   : > { %427 = vst [vmem:[%s4567_s13 + $0x2c0] sm:$0xff] %v426_v24 }
  0x83   : > { %429 = vst [vmem:[%s4567_s13 + $0x2c8] sm:$0xff] %v428_v25 }
  0x84   : > { %431 = vst [vmem:[%s4567_s13 + $0x2d0] sm:$0xff] %v430_v26 }
  0x85   : > { %433 = vst [vmem:[%s4567_s13 + $0x2d8] sm:$0xff] %v432_v27 }
  0x86   : > { %435 = vst [vmem:[%s4567_s13 + $0x2e0] sm:$0xff] %v434_v28 }
  0x87   : > { %437 = vst [vmem:[%s4567_s13 + $0x2e8] sm:$0xff] %v436_v29 }
  0x88   : > { %439 = vst [vmem:[%s4567_s13 + $0x2f0] sm:$0xff] %v438_v30 }
  0x89   : > { %441 = vst [vmem:[%s4567_s13 + $0x2f8] sm:$0xff] %v440_v31 }
  0x8a   : > { %443 = vst [vmem:[%s4567_s13 + $0x300] sm:$0xff] %v442_v32 }
  0x8b   : > { %445 = vst [vmem:[%s4567_s13 + $0x308] sm:$0xff] %v444_v33 }
  0x8c   : > { %447 = vst [vmem:[%s4567_s13 + $0x310] sm:$0xff] %v446_v34 }
  0x8d   : > { %449 = vst [vmem:[%s4567_s13 + $0x318] sm:$0xff] %v448_v35 }
  0x8e   : > { %451 = vst [vmem:[%s4567_s13 + $0x320] sm:$0xff] %v450_v36 }
  0x8f   : > { %453 = vst [vmem:[%s4567_s13 + $0x328] sm:$0xff] %v452_v37 }
  0x90   : > { %455 = vst [vmem:[%s4567_s13 + $0x330] sm:$0xff] %v454_v38 }
  0x91   : > { %457 = vst [vmem:[%s4567_s13 + $0x338] sm:$0xff] %v456_v39 }
  0x92   : > { %459 = vst [vmem:[%s4567_s13 + $0x340] sm:$0xff] %v458_v40 }
  0x93   : > { %461 = vst [vmem:[%s4567_s13 + $0x348] sm:$0xff] %v460_v41 }
  0x94   : > { %463 = vst [vmem:[%s4567_s13 + $0x350] sm:$0xff] %v462_v42 }
  0x95   : > { %465 = vst [vmem:[%s4567_s13 + $0x358] sm:$0xff] %v464_v43 }
  0x96   : > { %467 = vst [vmem:[%s4567_s13 + $0x360] sm:$0xff] %v466_v44 }
  0x97   : > { %469 = vst [vmem:[%s4567_s13 + $0x368] sm:$0xff] %v468_v45 }
  0x98   : > { %471 = vst [vmem:[%s4567_s13 + $0x370] sm:$0xff] %v470_v46 }
  0x99   : > { %473 = vst [vmem:[%s4567_s13 + $0x378] sm:$0xff] %v472_v47 }
  0x9a   : > { %475 = vst [vmem:[%s4567_s13 + $0x380] sm:$0xff] %v474_v48 }
  0x9b   : > { %477 = vst [vmem:[%s4567_s13 + $0x388] sm:$0xff] %v476_v49 }
  0x9c   : > { %479 = vst [vmem:[%s4567_s13 + $0x390] sm:$0xff] %v478_v50 }
  0x9d   : > { %481 = vst [vmem:[%s4567_s13 + $0x398] sm:$0xff] %v480_v51 }
  0x9e   : > { %483 = vst [vmem:[%s4567_s13 + $0x3a0] sm:$0xff] %v482_v52 }
  0x9f   : > { %485 = vst [vmem:[%s4567_s13 + $0x3a8] sm:$0xff] %v484_v53 }
  0xa0   : > { %487 = vst [vmem:[%s4567_s13 + $0x3b0] sm:$0xff] %v486_v54 }
  0xa1   : > { %489 = vst [vmem:[%s4567_s13 + $0x3b8] sm:$0xff] %v488_v55 }
  0xa2   : > { %491 = vst [vmem:[%s4567_s13 + $0x3c0] sm:$0xff] %v490_v56 }
  0xa3   : > { %493 = vst [vmem:[%s4567_s13 + $0x3c8] sm:$0xff] %v492_v57 }
  0xa4   : > { %495 = vst [vmem:[%s4567_s13 + $0x3d0] sm:$0xff] %v494_v58 }
  0xa5   : > { %497 = vst [vmem:[%s4567_s13 + $0x3d8] sm:$0xff] %v496_v59 }
  0xa6   : > { %499 = vst [vmem:[%s4567_s13 + $0x3e0] sm:$0xff] %v498_v60 }
  0xa7   : > { %501 = vst [vmem:[%s4567_s13 + $0x3e8] sm:$0xff] %v500_v61 }
  0xa8   : > { %503 = vst [vmem:[%s4567_s13 + $0x3f0] sm:$0xff] %v502_v62 }
  0xa9   : > { %505 = vst [vmem:[%s4567_s13 + $0x3f8] sm:$0xff] %v504_v63 }
  0xaa PF: > { %p3247_p7 = scmp.ge.s32.totalorder %s4455_s9, 1  ;;  %p525_p8 = scmp.lt.s32.totalorder %s4455_s9, 5 }
  0xac   : > { %p526_p9 = pnand %p3247_p7, %p525_p8 }
  0xad   : > { %s532_s17 = sand.u32 (!%p526_p9), 1, %s4431_s29   ;;  %s3249_s18 = sshll.u32 (!%p526_p9), %s4443_s0, 1 }
  0xae   : > { %529 = sbr.rel (%p526_p9) target bundleno = 1272 (0x4f8), region = 55  ;;  %s3248_s19 = sshll.u32 (!%p526_p9), %s532_s17, 10 }
  0xaf   : > { %s581_s20 = sadd.s32 (!%p526_p9), %s4439_s7, %s3249_s18  ;;  %s3252_s23 = sshll.u32 (!%p526_p9), %s4443_s0, 6 }
  0xb0   : > { %s582_s21 = sld [smem:[#allocation4 + %s581_s20]] (!%p526_p9)  ;;  %p600_p10 = scmp.lt.s32.totalorder (!%p526_p9), %s3252_s23, 127 }
  0xb1   : > { %s4838_s16 = scalar_lea.vmem (!%p526_p9), [#allocation6], %s3248_s19  ;;  %p3254_p12 = scmp.ne.s32.totalorder (!%p526_p9), %s4439_s7, 0 }
  0xb3   : > { %s5484_s23 = smov (!%p600_p10, %s3252_s23), 127 }
  0xb4   : > { %s3253_s25 = sshll.u32 %s5484_s23, 2 }
  0xb5   : > { %s4831_s28 = scalar_lea.vmem %s5449_s6, %s3253_s25 }
  0xb6   : > { %s3250_s24 = sshll.u32 %s582_s21, 6 }
  0xb7   : > { %p584_p11 = scmp.lt.s32.totalorder %s3250_s24, 127  ;;  %611 = sbr.rel (%p3254_p12) target bundleno = 253 (0xfd), region = 63 }
  0xb9   : > { %s5486_s24 = smov (!%p584_p11, %s3250_s24), 127 }
  0xba   : > { %s3251_s12 = sshll.u32 %s5486_s24, 2 }
  0xbb   : > { %s4836_s29 = scalar_lea.vmem %s5446_s3, %s3251_s12 }
  0xbc   : > { %v4459_v0 = vmov 0.0  }
  0xbd   : > { %612 = vst [vmem:[#allocation2 + $0xb0] sm:$0xff] %v4459_v0 }
  0xbe   : > { %613 = vst [vmem:[#allocation2 + $0x1b0] sm:$0xff] %v4459_v0 }
  0xbf   : > { %614 = vst [vmem:[#allocation2 + $0xd8] sm:$0xff] %v4459_v0 }
  0xc0   : > { %615 = vst [vmem:[#allocation2 + $0x18] sm:$0xff] %v4459_v0 }
  0xc1   : > { %616 = vst [vmem:[#allocation2 + $0x50] sm:$0xff] %v4459_v0 }
  0xc2   : > { %617 = vst [vmem:[#allocation2 + $0x168] sm:$0xff] %v4459_v0 }
  0xc3   : > { %618 = vst [vmem:[#allocation2 + $0x130] sm:$0xff] %v4459_v0 }
  0xc4   : > { %619 = vst [vmem:[#allocation2 + $0x48] sm:$0xff] %v4459_v0 }
  0xc5   : > { %620 = vst [vmem:[#allocation2 + $0x180] sm:$0xff] %v4459_v0 }
  0xc6   : > { %621 = vst [vmem:[#allocation2 + $0x110] sm:$0xff] %v4459_v0 }
  0xc7   : > { %622 = vst [vmem:[#allocation2 + $0x118] sm:$0xff] %v4459_v0 }
  0xc8   : > { %623 = vst [vmem:[#allocation2 + $0x98] sm:$0xff] %v4459_v0 }
  0xc9   : > { %624 = vst [vmem:[#allocation2 + $0x120] sm:$0xff] %v4459_v0 }
  0xca   : > { %625 = vst [vmem:[#allocation2 + $0x150] sm:$0xff] %v4459_v0 }
  0xcb   : > { %626 = vst [vmem:[#allocation2 + $0x108] sm:$0xff] %v4459_v0 }
  0xcc   : > { %627 = vst [vmem:[#allocation2 + $0x60] sm:$0xff] %v4459_v0 }
  0xcd   : > { %628 = vst [vmem:[#allocation2 + $0xe0] sm:$0xff] %v4459_v0 }
  0xce   : > { %629 = vst [vmem:[#allocation2 + $0x188] sm:$0xff] %v4459_v0 }
  0xcf   : > { %630 = vst [vmem:[#allocation2 + $0x138] sm:$0xff] %v4459_v0 }
  0xd0   : > { %631 = vst [vmem:[#allocation2 + $0x140] sm:$0xff] %v4459_v0 }
  0xd1   : > { %632 = vst [vmem:[#allocation2 + $0x80] sm:$0xff] %v4459_v0 }
  0xd2   : > { %633 = vst [vmem:[#allocation2 + $0x1a8] sm:$0xff] %v4459_v0 }
  0xd3   : > { %634 = vst [vmem:[#allocation2 + $0x1b8] sm:$0xff] %v4459_v0 }
  0xd4   : > { %635 = vst [vmem:[#allocation2 + $0x28] sm:$0xff] %v4459_v0 }
  0xd5   : > { %636 = vst [vmem:[#allocation2 + $0x1e8] sm:$0xff] %v4459_v0 }
  0xd6   : > { %637 = vst [vmem:[#allocation2 + $0xf8] sm:$0xff] %v4459_v0 }
  0xd7   : > { %638 = vst [vmem:[#allocation2 + $0x160] sm:$0xff] %v4459_v0 }
  0xd8   : > { %639 = vst [vmem:[#allocation2 + $0x30] sm:$0xff] %v4459_v0 }
  0xd9   : > { %640 = vst [vmem:[#allocation2 + $0x1e0] sm:$0xff] %v4459_v0 }
  0xda   : > { %641 = vst [vmem:[#allocation2] sm:$0xff] %v4459_v0 }
  0xdb   : > { %642 = vst [vmem:[#allocation2 + $0xf0] sm:$0xff] %v4459_v0 }
  0xdc   : > { %643 = vst [vmem:[#allocation2 + $0x8] sm:$0xff] %v4459_v0 }
  0xdd   : > { %644 = vst [vmem:[#allocation2 + $0x148] sm:$0xff] %v4459_v0 }
  0xde   : > { %645 = vst [vmem:[#allocation2 + $0x1d0] sm:$0xff] %v4459_v0 }
  0xdf   : > { %646 = vst [vmem:[#allocation2 + $0x100] sm:$0xff] %v4459_v0 }
  0xe0   : > { %647 = vst [vmem:[#allocation2 + $0xc8] sm:$0xff] %v4459_v0 }
  0xe1   : > { %648 = vst [vmem:[#allocation2 + $0x40] sm:$0xff] %v4459_v0 }
  0xe2   : > { %649 = vst [vmem:[#allocation2 + $0x1f8] sm:$0xff] %v4459_v0 }
  0xe3   : > { %650 = vst [vmem:[#allocation2 + $0x20] sm:$0xff] %v4459_v0 }
  0xe4   : > { %651 = vst [vmem:[#allocation2 + $0x128] sm:$0xff] %v4459_v0 }
  0xe5   : > { %652 = vst [vmem:[#allocation2 + $0x1a0] sm:$0xff] %v4459_v0 }
  0xe6   : > { %653 = vst [vmem:[#allocation2 + $0x1f0] sm:$0xff] %v4459_v0 }
  0xe7   : > { %654 = vst [vmem:[#allocation2 + $0xe8] sm:$0xff] %v4459_v0 }
  0xe8   : > { %655 = vst [vmem:[#allocation2 + $0x78] sm:$0xff] %v4459_v0 }
  0xe9   : > { %656 = vst [vmem:[#allocation2 + $0x70] sm:$0xff] %v4459_v0 }
  0xea   : > { %657 = vst [vmem:[#allocation2 + $0x90] sm:$0xff] %v4459_v0 }
  0xeb   : > { %658 = vst [vmem:[#allocation2 + $0x1d8] sm:$0xff] %v4459_v0 }
  0xec   : > { %659 = vst [vmem:[#allocation2 + $0xd0] sm:$0xff] %v4459_v0 }
  0xed   : > { %660 = vst [vmem:[#allocation2 + $0xb8] sm:$0xff] %v4459_v0 }
  0xee   : > { %661 = vst [vmem:[#allocation2 + $0x88] sm:$0xff] %v4459_v0 }
  0xef   : > { %662 = vst [vmem:[#allocation2 + $0xa8] sm:$0xff] %v4459_v0 }
  0xf0   : > { %663 = vst [vmem:[#allocation2 + $0x1c8] sm:$0xff] %v4459_v0 }
  0xf1   : > { %664 = vst [vmem:[#allocation2 + $0x170] sm:$0xff] %v4459_v0 }
  0xf2   : > { %665 = vst [vmem:[#allocation2 + $0x178] sm:$0xff] %v4459_v0 }
  0xf3   : > { %666 = vst [vmem:[#allocation2 + $0x68] sm:$0xff] %v4459_v0 }
  0xf4   : > { %667 = vst [vmem:[#allocation2 + $0x190] sm:$0xff] %v4459_v0 }
  0xf5   : > { %668 = vst [vmem:[#allocation2 + $0x198] sm:$0xff] %v4459_v0 }
  0xf6   : > { %669 = vst [vmem:[#allocation2 + $0x38] sm:$0xff] %v4459_v0 }
  0xf7   : > { %670 = vst [vmem:[#allocation2 + $0xc0] sm:$0xff] %v4459_v0 }
  0xf8   : > { %671 = vst [vmem:[#allocation2 + $0x1c0] sm:$0xff] %v4459_v0 }
  0xf9   : > { %672 = vst [vmem:[#allocation2 + $0x158] sm:$0xff] %v4459_v0 }
  0xfa   : > { %673 = vst [vmem:[#allocation2 + $0x10] sm:$0xff] %v4459_v0 }
  0xfb   : > { %674 = vst [vmem:[#allocation2 + $0x58] sm:$0xff] %v4459_v0 }
  0xfc   : > { %675 = vst [vmem:[#allocation2 + $0xa0] sm:$0xff] %v4459_v0 }
  0xfd PF: > { %s676_s13 = sld [smem:[#allocation5 + %s4443_s0]] }
 0x103   : > { %p3255_p13 = scmp.ge.s32.totalorder %s4439_s7, %s676_s13 }
 0x105   : > { %680 = sbr.rel (%p3255_p13) target bundleno = 1227 (0x4cb), region = 67 }
 0x10a   : > { %v3971_v1 = vld [vmem:[%s5447_s4 + $0x38] sm:$0xff]  ;;  %v3970_v2 = vld [vmem:[%s5447_s4 + $0x30] sm:$0xff]  ;;  %v3969_v3 = vld [vmem:[%s5447_s4 + $0x28] sm:$0xff] }
 0x10b   : > { %1001 = vmatpush.bf16.msra.mxu0 %v3971_v1  ;;  %4291 = vmatpush.bf16.msra.mxu1 %v3971_v1  ;;  %v3968_v4 = vld [vmem:[%s5447_s4 + $0x20] sm:$0xff]  ;;  %v3967_v5 = vld [vmem:[%s5447_s4 + $0x18] sm:$0xff]  ;;  %v3966_v6 = vld [vmem:[%s5447_s4 + $0x10] sm:$0xff] }
 0x10c   : > { %4292 = vmatpush.bf16.msra.mxu2 %v3971_v1  ;;  %4293 = vmatpush.bf16.msra.mxu3 %v3971_v1  ;;  %v3965_v7 = vld [vmem:[%s5447_s4 + $0x8] sm:$0xff]  ;;  %v3964_v8 = vld [vmem:[%s5447_s4] sm:$0xff]  ;;  %v3934_v17 = vld [vmem:[%s4836_s29 + $0x10] sm:$0xff] }
 0x10d   : > { %v3932_v9 = vld [vmem:[%s4836_s29] sm:$0xff]  ;;  %v3933_v13 = vld [vmem:[%s4836_s29 + $0x8] sm:$0xff]  ;;  %v3942_v18 = vld [vmem:[%s4836_s29 + $0x50] sm:$0xff] }
 0x10e   : > { %v3940_v10 = vld [vmem:[%s4836_s29 + $0x40] sm:$0xff]  ;;  %v3941_v14 = vld [vmem:[%s4836_s29 + $0x48] sm:$0xff]  ;;  %v3950_v19 = vld [vmem:[%s4836_s29 + $0x90] sm:$0xff] }
 0x10f   : > { %1002 = vmatpush.bf16.msra.mxu0 %v3970_v2  ;;  %4294 = vmatpush.bf16.msra.mxu1 %v3970_v2  ;;  %v3948_v11 = vld [vmem:[%s4836_s29 + $0x80] sm:$0xff]  ;;  %v3949_v15 = vld [vmem:[%s4836_s29 + $0x88] sm:$0xff]  ;;  %v3958_v20 = vld [vmem:[%s4836_s29 + $0xd0] sm:$0xff] }
 0x110   : > { %4295 = vmatpush.bf16.msra.mxu2 %v3970_v2  ;;  %4296 = vmatpush.bf16.msra.mxu3 %v3970_v2  ;;  %v3956_v12 = vld [vmem:[%s4836_s29 + $0xc0] sm:$0xff]  ;;  %v3957_v16 = vld [vmem:[%s4836_s29 + $0xc8] sm:$0xff]  ;;  %v3935_v21 = vld [vmem:[%s4836_s29 + $0x18] sm:$0xff] }
 0x111   : > { %v3943_v22 = vld [vmem:[%s4836_s29 + $0x58] sm:$0xff]  ;;  %v3936_v25 = vld [vmem:[%s4836_s29 + $0x20] sm:$0xff]  ;;  %v3937_v29 = vld [vmem:[%s4836_s29 + $0x28] sm:$0xff] }
 0x112   : > { %v3951_v23 = vld [vmem:[%s4836_s29 + $0x98] sm:$0xff]  ;;  %v3944_v26 = vld [vmem:[%s4836_s29 + $0x60] sm:$0xff]  ;;  %v3945_v30 = vld [vmem:[%s4836_s29 + $0x68] sm:$0xff] }
 0x113   : > { %1003 = vmatpush.bf16.msra.mxu0 %v3969_v3  ;;  %4297 = vmatpush.bf16.msra.mxu1 %v3969_v3  ;;  %v3959_v24 = vld [vmem:[%s4836_s29 + $0xd8] sm:$0xff]  ;;  %v3952_v27 = vld [vmem:[%s4836_s29 + $0xa0] sm:$0xff]  ;;  %v3953_v31 = vld [vmem:[%s4836_s29 + $0xa8] sm:$0xff] }
 0x114   : > { %4298 = vmatpush.bf16.msra.mxu2 %v3969_v3  ;;  %4299 = vmatpush.bf16.msra.mxu3 %v3969_v3  ;;  %v3960_v28 = vld [vmem:[%s4836_s29 + $0xe0] sm:$0xff]  ;;  %v3961_v32 = vld [vmem:[%s4836_s29 + $0xe8] sm:$0xff]  ;;  %v3938_v33 = vld [vmem:[%s4836_s29 + $0x30] sm:$0xff] }
 0x115   : > { %v3946_v34 = vld [vmem:[%s4836_s29 + $0x70] sm:$0xff]  ;;  %v3939_v37 = vld [vmem:[%s4836_s29 + $0x38] sm:$0xff] }
 0x116   : > { %v3954_v35 = vld [vmem:[%s4836_s29 + $0xb0] sm:$0xff]  ;;  %v3947_v38 = vld [vmem:[%s4836_s29 + $0x78] sm:$0xff] }
 0x117   : > { %1004 = vmatpush.bf16.msra.mxu0 %v3968_v4  ;;  %4300 = vmatpush.bf16.msra.mxu1 %v3968_v4  ;;  %v3962_v36 = vld [vmem:[%s4836_s29 + $0xf0] sm:$0xff]  ;;  %v3955_v39 = vld [vmem:[%s4836_s29 + $0xb8] sm:$0xff] }
 0x118   : > { %4301 = vmatpush.bf16.msra.mxu2 %v3968_v4  ;;  %4302 = vmatpush.bf16.msra.mxu3 %v3968_v4  ;;  %v3963_v40 = vld [vmem:[%s4836_s29 + $0xf8] sm:$0xff] }
 0x11b   : > { %1005 = vmatpush.bf16.msra.mxu0 %v3967_v5  ;;  %4303 = vmatpush.bf16.msra.mxu1 %v3967_v5 }
 0x11c   : > { %4304 = vmatpush.bf16.msra.mxu2 %v3967_v5  ;;  %4305 = vmatpush.bf16.msra.mxu3 %v3967_v5 }
 0x11f   : > { %1006 = vmatpush.bf16.msra.mxu0 %v3966_v6  ;;  %4306 = vmatpush.bf16.msra.mxu1 %v3966_v6 }
 0x120   : > { %4307 = vmatpush.bf16.msra.mxu2 %v3966_v6  ;;  %4308 = vmatpush.bf16.msra.mxu3 %v3966_v6 }
 0x123   : > { %1007 = vmatpush.bf16.msra.mxu0 %v3965_v7  ;;  %4309 = vmatpush.bf16.msra.mxu1 %v3965_v7 }
 0x124   : > { %4310 = vmatpush.bf16.msra.mxu2 %v3965_v7  ;;  %4311 = vmatpush.bf16.msra.mxu3 %v3965_v7 }
 0x127   : > { %1008 = vmatpush.bf16.msra.mxu0 %v3964_v8  ;;  %4312 = vmatpush.bf16.msra.mxu1 %v3964_v8 }
 0x128   : > { %4313 = vmatpush.bf16.msra.mxu2 %v3964_v8  ;;  %4314 = vmatpush.bf16.msra.mxu3 %v3964_v8 }
 0x12a   : > { %1009 = vmatmul.bf16.vlgmr.msra.gmra.mxu0 %v3932_v9  ;;  %1049 = vmatmul.bf16.vlgmr.msra.gmra.mxu1 %v3940_v10 }
 0x12b   : > { %1089 = vmatmul.bf16.vlgmr.msra.gmra.mxu2 %v3948_v11  ;;  %1129 = vmatmul.bf16.vlgmr.msra.gmra.mxu3 %v3956_v12 }
 0x13a   : > { %1014 = vmatmul.bf16.gmra.mxu0 %v3933_v13  ;;  %1054 = vmatmul.bf16.gmra.mxu1 %v3941_v14 }
 0x13b   : > { %1094 = vmatmul.bf16.gmra.mxu2 %v3949_v15  ;;  %1134 = vmatmul.bf16.gmra.mxu3 %v3957_v16 }
 0x14a   : > { %1019 = vmatmul.bf16.gmra.mxu0 %v3934_v17  ;;  %1059 = vmatmul.bf16.gmra.mxu1 %v3942_v18 }
 0x14b   : > { %1099 = vmatmul.bf16.gmra.mxu2 %v3950_v19  ;;  %1139 = vmatmul.bf16.gmra.mxu3 %v3958_v20 }
 0x15a   : > { %1024 = vmatmul.bf16.gmra.mxu0 %v3935_v21  ;;  %1064 = vmatmul.bf16.gmra.mxu1 %v3943_v22 }
 0x15b   : > { %1104 = vmatmul.bf16.gmra.mxu2 %v3951_v23  ;;  %1144 = vmatmul.bf16.gmra.mxu3 %v3959_v24 }
 0x16a   : > { %1029 = vmatmul.bf16.gmra.mxu0 %v3936_v25  ;;  %1069 = vmatmul.bf16.gmra.mxu1 %v3944_v26 }
 0x16b   : > { %1109 = vmatmul.bf16.gmra.mxu2 %v3952_v27  ;;  %1149 = vmatmul.bf16.gmra.mxu3 %v3960_v28 }
 0x17a   : > { %1034 = vmatmul.bf16.gmra.mxu0 %v3937_v29  ;;  %1074 = vmatmul.bf16.gmra.mxu1 %v3945_v30 }
 0x17b   : > { %1114 = vmatmul.bf16.gmra.mxu2 %v3953_v31  ;;  %1154 = vmatmul.bf16.gmra.mxu3 %v3961_v32 }
 0x18a   : > { %1039 = vmatmul.bf16.gmra.mxu0 %v3938_v33  ;;  %1079 = vmatmul.bf16.gmra.mxu1 %v3946_v34 }
 0x18b   : > { %1119 = vmatmul.bf16.gmra.mxu2 %v3954_v35  ;;  %1159 = vmatmul.bf16.gmra.mxu3 %v3962_v36 }
 0x19a   : > { %1044 = vmatmul.bf16.gmra.mxu0 %v3939_v37  ;;  %1084 = vmatmul.bf16.gmra.mxu1 %v3947_v38 }
 0x19b   : > { %1124 = vmatmul.bf16.gmra.mxu2 %v3955_v39  ;;  %1164 = vmatmul.bf16.gmra.mxu3 %v3963_v40 }
 0x1a7   : > { %v4963_v41 = vpop.f32.mrf.mxu0  ;;  %v4965_v42 = vpop.f32.mrf.mxu1 }
 0x1a8   : > { %5451 = vst [vmem:[#allocation8_spill] sm:$0xff] %v4965_v42 }
 0x1ae   : > { %v4967_v43 = vpop.f32.mrf.mxu2  ;;  %v4969_v44 = vpop.f32.mrf.mxu3 }
 0x1af   : > { %5452 = vst [vmem:[#allocation9_spill] sm:$0xff] %v4967_v43  ;;  %v4971_v45 = vpop.f32.mrf.mxu0  ;;  %v4973_v46 = vpop.f32.mrf.mxu1 }
 0x1b0   : > { %5453 = vst [vmem:[#allocation10_spill] sm:$0xff] %v4969_v44 }
 0x1b1   : > { %5454 = vst [vmem:[#allocation11_spill] sm:$0xff] %v4973_v46 }
 0x1b6   : > { %v4975_v47 = vpop.f32.mrf.mxu2  ;;  %v4977_v48 = vpop.f32.mrf.mxu3 }
 0x1b7   : > { %5455 = vst [vmem:[#allocation12_spill] sm:$0xff] %v4975_v47  ;;  %v4979_v49 = vpop.f32.mrf.mxu0  ;;  %v4981_v50 = vpop.f32.mrf.mxu1 }
 0x1b8   : > { %5456 = vst [vmem:[#allocation13_spill] sm:$0xff] %v4977_v48 }
 0x1be   : > { %v4983_v51 = vpop.f32.mrf.mxu2  ;;  %v4985_v52 = vpop.f32.mrf.mxu3 }
 0x1bf   : > { %5457 = vst [vmem:[#allocation14_spill] sm:$0xff] %v4983_v51  ;;  %v4987_v53 = vpop.f32.mrf.mxu0  ;;  %v4989_v54 = vpop.f32.mrf.mxu1 }
 0x1c0   : > { %5458 = vst [vmem:[#allocation15_spill] sm:$0xff] %v4985_v52 }
 0x1c6   : > { %v4991_v55 = vpop.f32.mrf.mxu2  ;;  %v4993_v56 = vpop.f32.mrf.mxu3 }
 0x1c7   : > { %5459 = vst [vmem:[#allocation16_spill] sm:$0xff] %v4991_v55  ;;  %v4995_v57 = vpop.f32.mrf.mxu0  ;;  %v4997_v58 = vpop.f32.mrf.mxu1 }
 0x1c8   : > { %5460 = vst [vmem:[#allocation17_spill] sm:$0xff] %v4993_v56 }
 0x1ce   : > { %v4999_v59 = vpop.f32.mrf.mxu2  ;;  %v5001_v60 = vpop.f32.mrf.mxu3 }
 0x1cf   : > { %v5003_v61 = vpop.f32.mrf.mxu0  ;;  %v5005_v62 = vpop.f32.mrf.mxu1 }
 0x1d6   : > { %v5007_v63 = vpop.f32.mrf.mxu2  ;;  %v5009_v0 = vpop.f32.mrf.mxu3 }
 0x1d7   : > { %v5011_v1 = vpop.f32.mrf.mxu0  ;;  %v5013_v2 = vpop.f32.mrf.mxu1 }
 0x1de   : > { %v5015_v3 = vpop.f32.mrf.mxu2  ;;  %v5017_v4 = vpop.f32.mrf.mxu3 }
 0x1df   : > { %v5019_v5 = vpop.f32.mrf.mxu0  ;;  %v5021_v6 = vpop.f32.mrf.mxu1 }
 0x1e6   : > { %v5023_v7 = vpop.f32.mrf.mxu2  ;;  %v5025_v8 = vpop.f32.mrf.mxu3 }
 0x1e7   : > { %v1030_v9 = vpop.f32.mrf.mxu0  ;;  %v1070_v10 = vpop.f32.mrf.mxu1 }
 0x1ee   : > { %v5027_v11 = vpop.f32.mrf.mxu2  ;;  %v5029_v12 = vpop.f32.mrf.mxu3 }
 0x1ef   : > { %v1032_v13 = vpop.f32.mrf.mxu0  ;;  %v1072_v14 = vpop.f32.mrf.mxu1 }
 0x1f6   : > { %v1112_v15 = vpop.f32.mrf.mxu2  ;;  %v1152_v16 = vpop.f32.mrf.mxu3 }
 0x1f7   : > { %v1035_v17 = vpop.f32.mrf.mxu0  ;;  %v1075_v18 = vpop.f32.mrf.mxu1 }
 0x1fe   : > { %v1115_v19 = vpop.f32.mrf.mxu2  ;;  %v1155_v20 = vpop.f32.mrf.mxu3 }
 0x1ff   : > { %v1037_v21 = vpop.f32.mrf.mxu0  ;;  %v1077_v22 = vpop.f32.mrf.mxu1 }
 0x200   : > { %v1367_v55 = vpack.c.bf16 %v1037_v21, %v1035_v17  ;;  %v1375_v51 = vpack.c.bf16 %v1077_v22, %v1075_v18  ;;  %v3976_v17 = vld [vmem:[%s4838_s16 + $0x24] sm:$0xf]  ;;  %v3436_v18 = vld [vmem:[%s4838_s16 + $0x30] sm:$0xf0] }
 0x201   : > { %v3439_v21 = vor.u32 %v3976_v17, %v3436_v18 }
 0x206   : > { %v1117_v23 = vpop.f32.mrf.mxu2  ;;  %v1157_v24 = vpop.f32.mrf.mxu3 }
 0x207   : > { %v1040_v25 = vpop.f32.mrf.mxu0  ;;  %v1080_v26 = vpop.f32.mrf.mxu1 }
 0x20e   : > { %v1120_v27 = vpop.f32.mrf.mxu2  ;;  %v1160_v28 = vpop.f32.mrf.mxu3 }
 0x20f   : > { %v1042_v29 = vpop.f32.mrf.mxu0  ;;  %v1082_v30 = vpop.f32.mrf.mxu1 }
 0x210   : > { %v1368_v48 = vpack.c.bf16 %v1042_v29, %v1040_v25  ;;  %v1376_v44 = vpack.c.bf16 %v1082_v30, %v1080_v26  ;;  %v1383_v25 = vpack.c.bf16 %v1117_v23, %v1115_v19  ;;  %v1391_v26 = vpack.c.bf16 %v1157_v24, %v1155_v20  ;;  %v3434_v19 = vld [vmem:[%s4838_s16 + $0x20] sm:$0xf]  ;;  %v3978_v20 = vld [vmem:[%s4838_s16 + $0x2c] sm:$0xf0]  ;;  %v3442_v23 = vld [vmem:[%s4838_s16 + $0x28] sm:$0xf] }
 0x211   : > { %v3435_v22 = vor.u32 %v3978_v20, %v3434_v19  ;;  %v3979_v24 = vld [vmem:[%s4838_s16 + $0x34] sm:$0xf0]  ;;  %v3522_v19 = vld [vmem:[%s4838_s16 + $0xc8] sm:$0xf] }
 0x212   : > { %v3443_v29 = vor.u32 %v3979_v24, %v3442_v23  ;;  %v3999_v20 = vld [vmem:[%s4838_s16 + $0xd4] sm:$0xf0] }
 0x213   : > { %v3523_v23 = vor.u32 %v3999_v20, %v3522_v19  ;;  %v4012_v20 = vld [vmem:[%s4838_s16 + $0x144] sm:$0xf] }
 0x216   : > { %v1122_v31 = vpop.f32.mrf.mxu2  ;;  %v1162_v32 = vpop.f32.mrf.mxu3 }
 0x217   : > { %v1045_v33 = vpop.f32.mrf.mxu0  ;;  %v1085_v34 = vpop.f32.mrf.mxu1  ;;  %v1384_v46 = vpack.c.bf16 %v1122_v31, %v1120_v27  ;;  %v1392_v42 = vpack.c.bf16 %v1162_v32, %v1160_v28  ;;  %v3977_v27 = vld [vmem:[%s4838_s16 + $0x2c] sm:$0xf]  ;;  %v3444_v28 = vld [vmem:[%s4838_s16 + $0x38] sm:$0xf0]  ;;  %v3980_v31 = vld [vmem:[%s4838_s16 + $0x44] sm:$0xf] }
 0x218   : > { %v3447_v30 = vor.u32 %v3977_v27, %v3444_v28  ;;  %v3452_v32 = vld [vmem:[%s4838_s16 + $0x50] sm:$0xf0]  ;;  %v4000_v27 = vld [vmem:[%s4838_s16 + $0xe4] sm:$0xf] }
 0x219   : > { %v3532_v28 = vld [vmem:[%s4838_s16 + $0xf0] sm:$0xf0] }
 0x21e   : > { %v1125_v35 = vpop.f32.mrf.mxu2  ;;  %v1165_v36 = vpop.f32.mrf.mxu3 }
 0x21f   : > { %v1047_v37 = vpop.f32.mrf.mxu0  ;;  %v1087_v38 = vpop.f32.mrf.mxu1 }
 0x220   : > { %v1369_v39 = vpack.c.bf16 %v1047_v37, %v1045_v33  ;;  %v1377_v40 = vpack.c.bf16 %v1087_v38, %v1085_v34  ;;  %v1366_v33 = vpack.c.bf16 %v1032_v13, %v1030_v9  ;;  %v1374_v34 = vpack.c.bf16 %v1072_v14, %v1070_v10  ;;  %v5467_v9 = vld [vmem:[#allocation9_spill] sm:$0xff]  ;;  %v5468_v10 = vld [vmem:[#allocation12_spill] sm:$0xff] }
 0x221   : > { %v5470_v13 = vld [vmem:[#allocation13_spill] sm:$0xff]  ;;  %v3455_v37 = vor.u32 %v3980_v31, %v3452_v32  ;;  %v3535_v31 = vor.u32 %v4000_v27, %v3532_v28  ;;  %v1172_v28 = vld [vmem:[#allocation2 + $0xd8] sm:$0xff] }
 0x222   : > { %2034 = vmatpush.bf16.msrb.mxu1 %v1369_v39  ;;  %2203 = vmatpush.bf16.msrb.mxu2 %v1377_v40  ;;  %v3458_v39 = vld [vmem:[%s4838_s16 + $0x48] sm:$0xf]  ;;  %v3983_v40 = vld [vmem:[%s4838_s16 + $0x54] sm:$0xf0] }
 0x226   : > { %v1127_v47 = vpop.f32.mrf.mxu2  ;;  %v1167_v43 = vpop.f32.mrf.mxu3  ;;  %2035 = vmatpush.bf16.msrb.mxu1 %v1368_v48  ;;  %2204 = vmatpush.bf16.msrb.mxu2 %v1376_v44  ;;  %v1365_v44 = vpack.c.bf16 %v5019_v5, %v5011_v1  ;;  %v1372_v48 = vpack.c.bf16 %v5005_v62, %v4997_v58  ;;  %v1380_v58 = vpack.c.bf16 %v5007_v63, %v4999_v59  ;;  %v3420_v62 = vld [vmem:[%s4838_s16 + $0x10] sm:$0xf0]  ;;  %v3418_v1 = vld [vmem:[%s4838_s16] sm:$0xf]  ;;  %v5466_v5 = vld [vmem:[#allocation17_spill] sm:$0xff] }
 0x227   : > { %v1385_v56 = vpack.c.bf16 %v1127_v47, %v1125_v35  ;;  %v1393_v52 = vpack.c.bf16 %v1167_v43, %v1165_v36  ;;  %v1373_v43 = vpack.c.bf16 %v5021_v6, %v5013_v2  ;;  %v1382_v47 = vpack.c.bf16 %v1112_v15, %v5027_v11  ;;  %v3450_v35 = vld [vmem:[%s4838_s16 + $0x40] sm:$0xf]  ;;  %v3982_v36 = vld [vmem:[%s4838_s16 + $0x4c] sm:$0xf0] }
 0x228   : > { %v1378_v11 = vpack.c.bf16 %v5468_v10, %v5467_v9  ;;  %v3451_v38 = vor.u32 %v3982_v36, %v3450_v35  ;;  %v3993_v9 = vld [vmem:[%s4838_s16 + $0xac] sm:$0xf]  ;;  %v3508_v10 = vld [vmem:[%s4838_s16 + $0xb8] sm:$0xf0]  ;;  %v3538_v35 = vld [vmem:[%s4838_s16 + $0xe8] sm:$0xf] }
 0x229   : > { %2372 = vmatpush.bf16.msrb.mxu3 %v1385_v56  ;;  %2541 = vmatpush.bf16.msrb.mxu0 %v1393_v52  ;;  %v1389_v52 = vpack.c.bf16 %v5025_v8, %v5017_v4  ;;  %v1371_v56 = vpack.c.bf16 %v4989_v54, %v4981_v50  ;;  %v1362_v50 = vpack.c.bf16 %v4971_v45, %v4963_v41  ;;  %v5462_v54 = vld [vmem:[#allocation11_spill] sm:$0xff]  ;;  %v3973_v45 = vld [vmem:[%s4838_s16 + $0xc] sm:$0xf] }
 0x22a   : > { %2036 = vmatpush.bf16.msrb.mxu1 %v1367_v55  ;;  %2205 = vmatpush.bf16.msrb.mxu2 %v1375_v51  ;;  %v1381_v51 = vpack.c.bf16 %v5023_v7, %v5015_v3  ;;  %v1363_v55 = vpack.c.bf16 %v4987_v53, %v4979_v49  ;;  %v3974_v49 = vld [vmem:[%s4838_s16 + $0xc] sm:$0xf0]  ;;  %v5461_v53 = vld [vmem:[#allocation8_spill] sm:$0xff]  ;;  %v5465_v4 = vld [vmem:[#allocation15_spill] sm:$0xff] }
 0x22b   : > { %v1370_v2 = vpack.c.bf16 %v5462_v54, %v5461_v53  ;;  %v3419_v63 = vor.u32 %v3974_v49, %v3418_v1  ;;  %v5463_v3 = vld [vmem:[#allocation14_spill] sm:$0xff]  ;;  %v1387_v6 = vpack.c.bf16 %v5466_v5, %v5465_v4  ;;  %v3426_v7 = vld [vmem:[%s4838_s16 + $0x8] sm:$0xf]  ;;  %v3975_v41 = vld [vmem:[%s4838_s16 + $0x14] sm:$0xf0] }
 0x22c   : > { %v3428_v8 = vld [vmem:[%s4838_s16 + $0x18] sm:$0xf0]  ;;  %v3427_v15 = vor.u32 %v3975_v41, %v3426_v7  ;;  %v3482_v1 = vld [vmem:[%s4838_s16 + $0x80] sm:$0xf]  ;;  %v3990_v49 = vld [vmem:[%s4838_s16 + $0x8c] sm:$0xf0] }
 0x22d   : > { %2373 = vmatpush.bf16.msrb.mxu3 %v1384_v46  ;;  %2542 = vmatpush.bf16.msrb.mxu0 %v1392_v42  ;;  %v1390_v46 = vpack.c.bf16 %v1152_v16, %v5029_v12  ;;  %v1364_v42 = vpack.c.bf16 %v5003_v61, %v4995_v57  ;;  %v3972_v57 = vld [vmem:[%s4838_s16 + $0x4] sm:$0xf]  ;;  %v1388_v61 = vpack.c.bf16 %v5009_v0, %v5001_v60  ;;  %v5469_v12 = vld [vmem:[#allocation10_spill] sm:$0xff]  ;;  %v3490_v54 = vld [vmem:[%s4838_s16 + $0x88] sm:$0xf] }
 0x22e   : > { %2037 = vmatpush.bf16.msrb.mxu1 %v1366_v33  ;;  %2206 = vmatpush.bf16.msrb.mxu2 %v1374_v34  ;;  %v3423_v59 = vor.u32 %v3972_v57, %v3420_v62  ;;  %v5464_v60 = vld [vmem:[#allocation16_spill] sm:$0xff]  ;;  %v1386_v14 = vpack.c.bf16 %v5470_v13, %v5469_v12  ;;  %v3431_v16 = vor.u32 %v3973_v45, %v3428_v8  ;;  %v3981_v33 = vld [vmem:[%s4838_s16 + $0x4c] sm:$0xf]  ;;  %v3460_v34 = vld [vmem:[%s4838_s16 + $0x58] sm:$0xf0] }
 0x22f   : > { %v1379_v0 = vpack.c.bf16 %v5464_v60, %v5463_v3  ;;  %v3484_v62 = vld [vmem:[%s4838_s16 + $0x90] sm:$0xf0]  ;;  %v3483_v53 = vor.u32 %v3990_v49, %v3482_v1  ;;  %v3498_v5 = vld [vmem:[%s4838_s16 + $0xa0] sm:$0xf]  ;;  %v3506_v45 = vld [vmem:[%s4838_s16 + $0xa8] sm:$0xf]  ;;  %v3511_v12 = vor.u32 %v3993_v9, %v3508_v10 }
 0x230   : > { %v3500_v4 = vld [vmem:[%s4838_s16 + $0xb0] sm:$0xf0]  ;;  %v3995_v8 = vld [vmem:[%s4838_s16 + $0xb4] sm:$0xf0]  ;;  %v3996_v13 = vld [vmem:[%s4838_s16 + $0xc4] sm:$0xf] }
 0x231   : > { %2374 = vmatpush.bf16.msrb.mxu3 %v1383_v25  ;;  %2543 = vmatpush.bf16.msrb.mxu0 %v1391_v26  ;;  %v3459_v25 = vor.u32 %v3983_v40, %v3458_v39  ;;  %v3463_v26 = vor.u32 %v3981_v33, %v3460_v34  ;;  %v4003_v36 = vld [vmem:[%s4838_s16 + $0xf4] sm:$0xf0]  ;;  %v4004_v33 = vld [vmem:[%s4838_s16 + $0x104] sm:$0xf]  ;;  %v3548_v34 = vld [vmem:[%s4838_s16 + $0x110] sm:$0xf0] }
 0x232   : > { %2038 = vmatpush.bf16.msrb.mxu1 %v1365_v44  ;;  %2207 = vmatpush.bf16.msrb.mxu2 %v1373_v43  ;;  %v3984_v44 = vld [vmem:[%s4838_s16 + $0x64] sm:$0xf]  ;;  %v3468_v43 = vld [vmem:[%s4838_s16 + $0x70] sm:$0xf0]  ;;  %v3539_v39 = vor.u32 %v4003_v36, %v3538_v35 }
 0x233   : > { %v3564_v49 = vld [vmem:[%s4838_s16 + $0x130] sm:$0xf0] }
 0x235   : > { %2375 = vmatpush.bf16.msrb.mxu3 %v1382_v47  ;;  %2544 = vmatpush.bf16.msrb.mxu0 %v1390_v46  ;;  %v3466_v47 = vld [vmem:[%s4838_s16 + $0x60] sm:$0xf]  ;;  %v3986_v46 = vld [vmem:[%s4838_s16 + $0x6c] sm:$0xf0] }
 0x236   : > { %2039 = vmatpush.bf16.msrb.mxu1 %v1364_v42  ;;  %2208 = vmatpush.bf16.msrb.mxu2 %v1372_v48  ;;  %v3471_v42 = vor.u32 %v3984_v44, %v3468_v43  ;;  %v3467_v48 = vor.u32 %v3986_v46, %v3466_v47  ;;  %v3551_v44 = vor.u32 %v4004_v33, %v3548_v34  ;;  %v3554_v46 = vld [vmem:[%s4838_s16 + $0x108] sm:$0xf]  ;;  %v3588_v33 = vld [vmem:[%s4838_s16 + $0x158] sm:$0xf0] }
 0x239   : > { %2376 = vmatpush.bf16.msrb.mxu3 %v1381_v51  ;;  %2545 = vmatpush.bf16.msrb.mxu0 %v1389_v52  ;;  %v3474_v51 = vld [vmem:[%s4838_s16 + $0x68] sm:$0xf]  ;;  %v3987_v52 = vld [vmem:[%s4838_s16 + $0x74] sm:$0xf0] }
 0x23a   : > { %2040 = vmatpush.bf16.msrb.mxu1 %v1363_v55  ;;  %2209 = vmatpush.bf16.msrb.mxu2 %v1371_v56  ;;  %v3985_v55 = vld [vmem:[%s4838_s16 + $0x6c] sm:$0xf]  ;;  %v3476_v56 = vld [vmem:[%s4838_s16 + $0x78] sm:$0xf0]  ;;  %v3475_v57 = vor.u32 %v3987_v52, %v3474_v51 }
 0x23b   : > { %v3556_v51 = vld [vmem:[%s4838_s16 + $0x118] sm:$0xf0] }
 0x23d   : > { %2377 = vmatpush.bf16.msrb.mxu3 %v1380_v58  ;;  %2546 = vmatpush.bf16.msrb.mxu0 %v1388_v61  ;;  %v3479_v58 = vor.u32 %v3985_v55, %v3476_v56  ;;  %v3988_v61 = vld [vmem:[%s4838_s16 + $0x84] sm:$0xf] }
 0x23e   : > { %2041 = vmatpush.bf16.msrb.mxu1 %v1362_v50  ;;  %2210 = vmatpush.bf16.msrb.mxu2 %v1370_v2  ;;  %v3487_v50 = vor.u32 %v3988_v61, %v3484_v62  ;;  %v3991_v2 = vld [vmem:[%s4838_s16 + $0x94] sm:$0xf0]  ;;  %v4008_v62 = vld [vmem:[%s4838_s16 + $0x124] sm:$0xf] }
 0x23f   : > { %v3491_v3 = vor.u32 %v3991_v2, %v3490_v54  ;;  %v1170_v2 = vld [vmem:[#allocation2 + $0xb0] sm:$0xff] }
 0x241   : > { %2378 = vmatpush.bf16.msrb.mxu3 %v1379_v0  ;;  %2547 = vmatpush.bf16.msrb.mxu0 %v1387_v6  ;;  %v3992_v0 = vld [vmem:[%s4838_s16 + $0xa4] sm:$0xf]  ;;  %v3994_v6 = vld [vmem:[%s4838_s16 + $0xac] sm:$0xf0] }
 0x242   : > { %2211 = vmatmul.bf16.vlgmr.msrb.gmra.mxu2 %v3423_v59  ;;  %2042 = vmatmul.bf16.vlgmr.msrb.gmra.mxu1 %v3419_v63  ;;  %v3989_v59 = vld [vmem:[%s4838_s16 + $0x8c] sm:$0xf]  ;;  %v3492_v63 = vld [vmem:[%s4838_s16 + $0x98] sm:$0xf0]  ;;  %v3503_v7 = vor.u32 %v3992_v0, %v3500_v4  ;;  %v3499_v41 = vor.u32 %v3994_v6, %v3498_v5  ;;  %v3570_v6 = vld [vmem:[%s4838_s16 + $0x128] sm:$0xf] }
 0x243   : > { %v3495_v60 = vor.u32 %v3989_v59, %v3492_v63 }
 0x245   : > { %2379 = vmatpush.bf16.msrb.mxu3 %v1378_v11  ;;  %2548 = vmatpush.bf16.msrb.mxu0 %v1386_v14  ;;  %v3507_v11 = vor.u32 %v3995_v8, %v3506_v45  ;;  %v3516_v14 = vld [vmem:[%s4838_s16 + $0xd0] sm:$0xf0]  ;;  %v3572_v45 = vld [vmem:[%s4838_s16 + $0x138] sm:$0xf0] }
 0x246   : > { %v3519_v17 = vor.u32 %v3996_v13, %v3516_v14  ;;  %v1171_v13 = vld [vmem:[#allocation2 + $0x1b0] sm:$0xff] }
 0x248   : > { %2380 = vmatmul.bf16.vlgmr.msrb.gmra.mxu3 %v3427_v15  ;;  %2549 = vmatmul.bf16.vlgmr.msrb.gmra.mxu0 %v3431_v16  ;;  %v3514_v15 = vld [vmem:[%s4838_s16 + $0xc0] sm:$0xf]  ;;  %v3998_v16 = vld [vmem:[%s4838_s16 + $0xcc] sm:$0xf0] }
 0x249   : > { %v3515_v18 = vor.u32 %v3998_v16, %v3514_v15 }
 0x252   : > { %2216 = vmatmul.bf16.gmra.mxu2 %v3439_v21  ;;  %2047 = vmatmul.bf16.gmra.mxu1 %v3435_v22  ;;  %v3997_v21 = vld [vmem:[%s4838_s16 + $0xcc] sm:$0xf]  ;;  %v3524_v22 = vld [vmem:[%s4838_s16 + $0xd8] sm:$0xf0] }
 0x253   : > { %v3527_v24 = vor.u32 %v3997_v21, %v3524_v22  ;;  %v3580_v22 = vld [vmem:[%s4838_s16 + $0x150] sm:$0xf0] }
 0x258   : > { %2385 = vmatmul.bf16.gmra.mxu3 %v3443_v29  ;;  %2554 = vmatmul.bf16.gmra.mxu0 %v3447_v30  ;;  %v3530_v29 = vld [vmem:[%s4838_s16 + $0xe0] sm:$0xf]  ;;  %v4002_v30 = vld [vmem:[%s4838_s16 + $0xec] sm:$0xf0] }
 0x259   : > { %v3531_v32 = vor.u32 %v4002_v30, %v3530_v29 }
 0x262   : > { %2221 = vmatmul.bf16.gmra.mxu2 %v3455_v37  ;;  %2052 = vmatmul.bf16.gmra.mxu1 %v3451_v38  ;;  %v4001_v37 = vld [vmem:[%s4838_s16 + $0xec] sm:$0xf]  ;;  %v3540_v38 = vld [vmem:[%s4838_s16 + $0xf8] sm:$0xf0] }
 0x263   : > { %v3543_v40 = vor.u32 %v4001_v37, %v3540_v38  ;;  %v3586_v38 = vld [vmem:[%s4838_s16 + $0x148] sm:$0xf] }
 0x268   : > { %2390 = vmatmul.bf16.gmra.mxu3 %v3459_v25  ;;  %2559 = vmatmul.bf16.gmra.mxu0 %v3463_v26  ;;  %v3546_v25 = vld [vmem:[%s4838_s16 + $0x100] sm:$0xf]  ;;  %v4006_v26 = vld [vmem:[%s4838_s16 + $0x10c] sm:$0xf0] }
 0x269   : > { %v3547_v43 = vor.u32 %v4006_v26, %v3546_v25 }
 0x272   : > { %2226 = vmatmul.bf16.gmra.mxu2 %v3471_v42  ;;  %2057 = vmatmul.bf16.gmra.mxu1 %v3467_v48  ;;  %v4007_v42 = vld [vmem:[%s4838_s16 + $0x114] sm:$0xf0]  ;;  %v4005_v48 = vld [vmem:[%s4838_s16 + $0x10c] sm:$0xf] }
 0x273   : > { %v3555_v52 = vor.u32 %v4007_v42, %v3554_v46  ;;  %v3559_v55 = vor.u32 %v4005_v48, %v3556_v51 }
 0x278   : > { %2395 = vmatmul.bf16.gmra.mxu3 %v3475_v57  ;;  %2564 = vmatmul.bf16.gmra.mxu0 %v3479_v58 }
 0x282   : > { %2231 = vmatmul.bf16.gmra.mxu2 %v3487_v50  ;;  %2062 = vmatmul.bf16.gmra.mxu1 %v3483_v53  ;;  %v3562_v50 = vld [vmem:[%s4838_s16 + $0x120] sm:$0xf]  ;;  %v4010_v53 = vld [vmem:[%s4838_s16 + $0x12c] sm:$0xf0] }
 0x283   : > { %v3563_v0 = vor.u32 %v4010_v53, %v3562_v50 }
 0x288   : > { %2400 = vmatmul.bf16.gmra.mxu3 %v3491_v3  ;;  %2569 = vmatmul.bf16.gmra.mxu0 %v3495_v60  ;;  %v3567_v60 = vor.u32 %v4008_v62, %v3564_v49  ;;  %v4018_v62 = vld [vmem:[%s4838_s16 + $0x16c] sm:$0xf0] }
 0x289   : > { %v1174_v49 = vld [vmem:[#allocation2 + $0x50] sm:$0xff] }
 0x292   : > { %2236 = vmatmul.bf16.gmra.mxu2 %v3503_v7  ;;  %2067 = vmatmul.bf16.gmra.mxu1 %v3499_v41  ;;  %v4011_v7 = vld [vmem:[%s4838_s16 + $0x134] sm:$0xf0]  ;;  %v4009_v41 = vld [vmem:[%s4838_s16 + $0x12c] sm:$0xf] }
 0x298   : > { %2405 = vmatmul.bf16.gmra.mxu3 %v3507_v11  ;;  %2574 = vmatmul.bf16.gmra.mxu0 %v3511_v12  ;;  %v3571_v11 = vor.u32 %v4011_v7, %v3570_v6  ;;  %v3575_v12 = vor.u32 %v4009_v41, %v3572_v45 }
 0x2a2   : > { %2241 = vmatmul.bf16.gmra.mxu2 %v3519_v17  ;;  %2072 = vmatmul.bf16.gmra.mxu1 %v3515_v18 }
 0x2a8   : > { %2410 = vmatmul.bf16.gmra.mxu3 %v3523_v23  ;;  %2579 = vmatmul.bf16.gmra.mxu0 %v3527_v24  ;;  %v3578_v23 = vld [vmem:[%s4838_s16 + $0x140] sm:$0xf]  ;;  %v4014_v24 = vld [vmem:[%s4838_s16 + $0x14c] sm:$0xf0] }
 0x2a9   : > { %v3579_v35 = vor.u32 %v4014_v24, %v3578_v23 }
 0x2b2   : > { %2246 = vmatmul.bf16.gmra.mxu2 %v3535_v31  ;;  %2077 = vmatmul.bf16.gmra.mxu1 %v3531_v32  ;;  %v3583_v32 = vor.u32 %v4012_v20, %v3580_v22  ;;  %v4022_v20 = vld [vmem:[%s4838_s16 + $0x18c] sm:$0xf0] }
 0x2b3   : > { %v1176_v22 = vld [vmem:[#allocation2 + $0x130] sm:$0xff] }
 0x2b8   : > { %2415 = vmatmul.bf16.gmra.mxu3 %v3539_v39  ;;  %2584 = vmatmul.bf16.gmra.mxu0 %v3543_v40  ;;  %v4015_v39 = vld [vmem:[%s4838_s16 + $0x154] sm:$0xf0]  ;;  %v4013_v40 = vld [vmem:[%s4838_s16 + $0x14c] sm:$0xf] }
 0x2bf   : > { %v2043_v47 = vpop.f32.mrf.mxu1 }
 0x2c2   : > { %2251 = vmatmul.bf16.gmra.mxu2 %v3551_v44  ;;  %2082 = vmatmul.bf16.gmra.mxu1 %v3547_v43  ;;  %v3587_v44 = vor.u32 %v4015_v39, %v3586_v38  ;;  %v3591_v43 = vor.u32 %v4013_v40, %v3588_v33 }
 0x2c5   : > { %v2212_v56 = vpop.f32.mrf.mxu2  ;;  %v2550_v57 = vpop.f32.mrf.mxu0 }
 0x2c6   : > { %v2213_v61 = vadd.f32 %v2212_v56, %v2043_v47  ;;  %v1173_v47 = vld [vmem:[#allocation2 + $0x18] sm:$0xff]  ;;  %v4016_v56 = vld [vmem:[%s4838_s16 + $0x164] sm:$0xf] }
 0x2c7   : > { %v2045_v58 = vpop.f32.mrf.mxu1 }
 0x2c8   : > { %2420 = vmatmul.bf16.gmra.mxu3 %v3555_v52  ;;  %2589 = vmatmul.bf16.gmra.mxu0 %v3559_v55 }
 0x2cb   : > { %v2381_v1 = vpop.f32.mrf.mxu3 }
 0x2cc   : > { %v2382_v54 = vadd.f32 %v2381_v1, %v2213_v61  ;;  %v3594_v61 = vld [vmem:[%s4838_s16 + $0x160] sm:$0xf] }
 0x2cd   : > { %v2214_v59 = vpop.f32.mrf.mxu2  ;;  %v2552_v63 = vpop.f32.mrf.mxu0 }
 0x2ce   : > { %v2551_v3 = vadd.f32 %v2550_v57, %v2382_v54  ;;  %v2215_v8 = vadd.f32 %v2214_v59, %v2045_v58  ;;  %v3596_v58 = vld [vmem:[%s4838_s16 + $0x170] sm:$0xf0]  ;;  %v3595_v59 = vor.u32 %v4018_v62, %v3594_v61 }
 0x2cf   : > { %v2048_v4 = vpop.f32.mrf.mxu1 }
 0x2d0   : > { %v2710_v5 = vadd.f32 %v2551_v3, %v1170_v2  ;;  %v3599_v2 = vor.u32 %v4016_v56, %v3596_v58  ;;  %v4026_v56 = vld [vmem:[%s4838_s16 + $0x1ac] sm:$0xf0]  ;;  %v1178_v58 = vld [vmem:[#allocation2 + $0x180] sm:$0xff] }
 0x2d2   : > { %2774 = vst [vmem:[#allocation2 + $0xb0] sm:$0xff] %v2710_v5  ;;  %2256 = vmatmul.bf16.gmra.mxu2 %v3567_v60  ;;  %2087 = vmatmul.bf16.gmra.mxu1 %v3563_v0  ;;  %v3602_v60 = vld [vmem:[%s4838_s16 + $0x168] sm:$0xf]  ;;  %v4019_v0 = vld [vmem:[%s4838_s16 + $0x174] sm:$0xf0] }
 0x2d3   : > { %v2383_v9 = vpop.f32.mrf.mxu3  ;;  %v3604_v5 = vld [vmem:[%s4838_s16 + $0x178] sm:$0xf0]  ;;  %v3603_v45 = vor.u32 %v4019_v0, %v3602_v60 }
 0x2d4   : > { %v2384_v10 = vadd.f32 %v2383_v9, %v2215_v8  ;;  %v1175_v9 = vld [vmem:[#allocation2 + $0x168] sm:$0xff] }
 0x2d5   : > { %v2217_v14 = vpop.f32.mrf.mxu2  ;;  %v2555_v15 = vpop.f32.mrf.mxu0 }
 0x2d6   : > { %v2553_v16 = vadd.f32 %v2552_v63, %v2384_v10  ;;  %v2218_v19 = vadd.f32 %v2217_v14, %v2048_v4  ;;  %v4017_v4 = vld [vmem:[%s4838_s16 + $0x16c] sm:$0xf] }
 0x2d7   : > { %v2050_v17 = vpop.f32.mrf.mxu1  ;;  %v3607_v8 = vor.u32 %v4017_v4, %v3604_v5 }
 0x2d8   : > { %v2711_v18 = vadd.f32 %v2553_v16, %v1171_v13  ;;  %2425 = vmatmul.bf16.gmra.mxu3 %v3571_v11  ;;  %2594 = vmatmul.bf16.gmra.mxu0 %v3575_v12  ;;  %v4020_v16 = vld [vmem:[%s4838_s16 + $0x184] sm:$0xf] }
 0x2da   : > { %2775 = vst [vmem:[#allocation2 + $0x1b0] sm:$0xff] %v2711_v18  ;;  %v3612_v18 = vld [vmem:[%s4838_s16 + $0x190] sm:$0xf0] }
 0x2db   : > { %v2386_v21 = vpop.f32.mrf.mxu3 }
 0x2dc   : > { %v2387_v27 = vadd.f32 %v2386_v21, %v2218_v19  ;;  %v3610_v19 = vld [vmem:[%s4838_s16 + $0x180] sm:$0xf] }
 0x2dd   : > { %v2219_v29 = vpop.f32.mrf.mxu2  ;;  %v2557_v30 = vpop.f32.mrf.mxu0 }
 0x2de   : > { %v2556_v31 = vadd.f32 %v2555_v15, %v2387_v27  ;;  %v2220_v34 = vadd.f32 %v2219_v29, %v2050_v17  ;;  %v3611_v29 = vor.u32 %v4022_v20, %v3610_v19 }
 0x2df   : > { %v2053_v36 = vpop.f32.mrf.mxu1 }
 0x2e0   : > { %v2712_v37 = vadd.f32 %v2556_v31, %v1172_v28  ;;  %v3615_v28 = vor.u32 %v4020_v16, %v3612_v18  ;;  %v4030_v16 = vld [vmem:[%s4838_s16 + $0x1cc] sm:$0xf0]  ;;  %v1180_v18 = vld [vmem:[#allocation2 + $0x118] sm:$0xff] }
 0x2e2   : > { %2776 = vst [vmem:[#allocation2 + $0xd8] sm:$0xff] %v2712_v37  ;;  %2261 = vmatmul.bf16.gmra.mxu2 %v3583_v32  ;;  %2092 = vmatmul.bf16.gmra.mxu1 %v3579_v35  ;;  %v3618_v32 = vld [vmem:[%s4838_s16 + $0x188] sm:$0xf]  ;;  %v4023_v35 = vld [vmem:[%s4838_s16 + $0x194] sm:$0xf0] }
 0x2e3   : > { %v2388_v25 = vpop.f32.mrf.mxu3  ;;  %v3620_v37 = vld [vmem:[%s4838_s16 + $0x198] sm:$0xf0]  ;;  %v3619_v33 = vor.u32 %v4023_v35, %v3618_v32 }
 0x2e4   : > { %v2389_v26 = vadd.f32 %v2388_v25, %v2220_v34  ;;  %v1177_v25 = vld [vmem:[#allocation2 + $0x48] sm:$0xff] }
 0x2e5   : > { %v2222_v46 = vpop.f32.mrf.mxu2  ;;  %v2560_v42 = vpop.f32.mrf.mxu0 }
 0x2e6   : > { %v2558_v48 = vadd.f32 %v2557_v30, %v2389_v26  ;;  %v2223_v55 = vadd.f32 %v2222_v46, %v2053_v36  ;;  %v4021_v36 = vld [vmem:[%s4838_s16 + $0x18c] sm:$0xf] }
 0x2e7   : > { %v2055_v51 = vpop.f32.mrf.mxu1  ;;  %v3623_v34 = vor.u32 %v4021_v36, %v3620_v37 }
 0x2e8   : > { %v2713_v52 = vadd.f32 %v2558_v48, %v1173_v47  ;;  %2430 = vmatmul.bf16.gmra.mxu3 %v3587_v44  ;;  %2599 = vmatmul.bf16.gmra.mxu0 %v3591_v43  ;;  %v4024_v48 = vld [vmem:[%s4838_s16 + $0x1a4] sm:$0xf] }
 0x2ea   : > { %2777 = vst [vmem:[#allocation2 + $0x18] sm:$0xff] %v2713_v52  ;;  %v3628_v52 = vld [vmem:[%s4838_s16 + $0x1b0] sm:$0xf0] }
 0x2eb   : > { %v2391_v57 = vpop.f32.mrf.mxu3 }
 0x2ec   : > { %v2392_v1 = vadd.f32 %v2391_v57, %v2223_v55  ;;  %v3626_v55 = vld [vmem:[%s4838_s16 + $0x1a0] sm:$0xf] }
 0x2ed   : > { %v2224_v50 = vpop.f32.mrf.mxu2  ;;  %v2562_v53 = vpop.f32.mrf.mxu0 }
 0x2ee   : > { %v2561_v54 = vadd.f32 %v2560_v42, %v2392_v1  ;;  %v2225_v6 = vadd.f32 %v2224_v50, %v2055_v51  ;;  %v3627_v50 = vor.u32 %v4026_v56, %v3626_v55 }
 0x2ef   : > { %v2058_v63 = vpop.f32.mrf.mxu1 }
 0x2f0   : > { %v2714_v3 = vadd.f32 %v2561_v54, %v1174_v49  ;;  %v3631_v49 = vor.u32 %v4024_v48, %v3628_v52  ;;  %v4034_v48 = vld [vmem:[%s4838_s16 + $0x1ec] sm:$0xf0]  ;;  %v1182_v52 = vld [vmem:[#allocation2 + $0x120] sm:$0xff] }
 0x2f2   : > { %2778 = vst [vmem:[#allocation2 + $0x50] sm:$0xff] %v2714_v3  ;;  %2266 = vmatmul.bf16.gmra.mxu2 %v3599_v2  ;;  %2097 = vmatmul.bf16.gmra.mxu1 %v3595_v59  ;;  %v3634_v2 = vld [vmem:[%s4838_s16 + $0x1a8] sm:$0xf]  ;;  %v4027_v59 = vld [vmem:[%s4838_s16 + $0x1b4] sm:$0xf0] }
 0x2f3   : > { %v2393_v7 = vpop.f32.mrf.mxu3  ;;  %v3636_v3 = vld [vmem:[%s4838_s16 + $0x1b8] sm:$0xf0]  ;;  %v3635_v5 = vor.u32 %v4027_v59, %v3634_v2 }
 0x2f4   : > { %v2394_v41 = vadd.f32 %v2393_v7, %v2225_v6  ;;  %v1179_v7 = vld [vmem:[#allocation2 + $0x110] sm:$0xff] }
 0x2f5   : > { %v2227_v10 = vpop.f32.mrf.mxu2  ;;  %v2565_v11 = vpop.f32.mrf.mxu0 }
 0x2f6   : > { %v2563_v12 = vadd.f32 %v2562_v53, %v2394_v41  ;;  %v2228_v15 = vadd.f32 %v2227_v10, %v2058_v63  ;;  %v4025_v63 = vld [vmem:[%s4838_s16 + $0x1ac] sm:$0xf] }
 0x2f7   : > { %v2060_v13 = vpop.f32.mrf.mxu1  ;;  %v3639_v6 = vor.u32 %v4025_v63, %v3636_v3 }
 0x2f8   : > { %v2715_v14 = vadd.f32 %v2563_v12, %v1175_v9  ;;  %2435 = vmatmul.bf16.gmra.mxu3 %v3603_v45  ;;  %2604 = vmatmul.bf16.gmra.mxu0 %v3607_v8  ;;  %v4028_v12 = vld [vmem:[%s4838_s16 + $0x1c4] sm:$0xf] }
 0x2fa   : > { %2779 = vst [vmem:[#allocation2 + $0x168] sm:$0xff] %v2715_v14  ;;  %v3644_v14 = vld [vmem:[%s4838_s16 + $0x1d0] sm:$0xf0] }
 0x2fb   : > { %v2396_v17 = vpop.f32.mrf.mxu3 }
 0x2fc   : > { %v2397_v21 = vadd.f32 %v2396_v17, %v2228_v15  ;;  %v3642_v15 = vld [vmem:[%s4838_s16 + $0x1c0] sm:$0xf] }
 0x2fd   : > { %v2229_v23 = vpop.f32.mrf.mxu2  ;;  %v2567_v24 = vpop.f32.mrf.mxu0 }
 0x2fe   : > { %v2566_v27 = vadd.f32 %v2565_v11, %v2397_v21  ;;  %v2230_v38 = vadd.f32 %v2229_v23, %v2060_v13  ;;  %v3643_v23 = vor.u32 %v4030_v16, %v3642_v15 }
 0x2ff   : > { %v2063_v30 = vpop.f32.mrf.mxu1 }
 0x300   : > { %v2716_v31 = vadd.f32 %v2566_v27, %v1176_v22  ;;  %v3647_v22 = vor.u32 %v4028_v12, %v3644_v14  ;;  %v4038_v12 = vld [vmem:[%s4838_s16 + $0x20c] sm:$0xf0]  ;;  %v1184_v14 = vld [vmem:[#allocation2 + $0x108] sm:$0xff] }
 0x302   : > { %2780 = vst [vmem:[#allocation2 + $0x130] sm:$0xff] %v2716_v31  ;;  %2271 = vmatmul.bf16.gmra.mxu2 %v3615_v28  ;;  %2102 = vmatmul.bf16.gmra.mxu1 %v3611_v29  ;;  %v3650_v28 = vld [vmem:[%s4838_s16 + $0x1c8] sm:$0xf]  ;;  %v4031_v29 = vld [vmem:[%s4838_s16 + $0x1d4] sm:$0xf0] }
 0x303   : > { %v2398_v39 = vpop.f32.mrf.mxu3  ;;  %v3652_v31 = vld [vmem:[%s4838_s16 + $0x1d8] sm:$0xf0]  ;;  %v3651_v37 = vor.u32 %v4031_v29, %v3650_v28 }
 0x304   : > { %v2399_v40 = vadd.f32 %v2398_v39, %v2230_v38  ;;  %v1181_v39 = vld [vmem:[#allocation2 + $0x98] sm:$0xff] }
 0x305   : > { %v2232_v26 = vpop.f32.mrf.mxu2  ;;  %v2570_v44 = vpop.f32.mrf.mxu0 }
 0x306   : > { %v2568_v43 = vadd.f32 %v2567_v24, %v2399_v40  ;;  %v2233_v42 = vadd.f32 %v2232_v26, %v2063_v30  ;;  %v4029_v30 = vld [vmem:[%s4838_s16 + $0x1cc] sm:$0xf] }
 0x307   : > { %v2065_v47 = vpop.f32.mrf.mxu1  ;;  %v3655_v38 = vor.u32 %v4029_v30, %v3652_v31 }
 0x308   : > { %v2717_v46 = vadd.f32 %v2568_v43, %v1177_v25  ;;  %2440 = vmatmul.bf16.gmra.mxu3 %v3619_v33  ;;  %2609 = vmatmul.bf16.gmra.mxu0 %v3623_v34  ;;  %v4032_v43 = vld [vmem:[%s4838_s16 + $0x1e4] sm:$0xf] }
 0x30a   : > { %2781 = vst [vmem:[#allocation2 + $0x48] sm:$0xff] %v2717_v46  ;;  %v3660_v46 = vld [vmem:[%s4838_s16 + $0x1f0] sm:$0xf0] }
 0x30b   : > { %v2401_v51 = vpop.f32.mrf.mxu3 }
 0x30c   : > { %v2402_v57 = vadd.f32 %v2401_v51, %v2233_v42  ;;  %v3658_v42 = vld [vmem:[%s4838_s16 + $0x1e0] sm:$0xf] }
 0x30d   : > { %v2234_v61 = vpop.f32.mrf.mxu2  ;;  %v2572_v62 = vpop.f32.mrf.mxu0 }
 0x30e   : > { %v2571_v1 = vadd.f32 %v2570_v44, %v2402_v57  ;;  %v2235_v60 = vadd.f32 %v2234_v61, %v2065_v47  ;;  %v3659_v61 = vor.u32 %v4034_v48, %v3658_v42 }
 0x30f   : > { %v2068_v53 = vpop.f32.mrf.mxu1 }
 0x310   : > { %v2718_v54 = vadd.f32 %v2571_v1, %v1178_v58  ;;  %v3663_v58 = vor.u32 %v4032_v43, %v3660_v46  ;;  %v4042_v43 = vld [vmem:[%s4838_s16 + $0x22c] sm:$0xf0]  ;;  %v1186_v46 = vld [vmem:[#allocation2 + $0xe0] sm:$0xff] }
 0x312   : > { %2782 = vst [vmem:[#allocation2 + $0x180] sm:$0xff] %v2718_v54  ;;  %2276 = vmatmul.bf16.gmra.mxu2 %v3631_v49  ;;  %2107 = vmatmul.bf16.gmra.mxu1 %v3627_v50  ;;  %v3666_v49 = vld [vmem:[%s4838_s16 + $0x1e8] sm:$0xf]  ;;  %v4035_v50 = vld [vmem:[%s4838_s16 + $0x1f4] sm:$0xf0] }
 0x313   : > { %v2403_v0 = vpop.f32.mrf.mxu3  ;;  %v3668_v54 = vld [vmem:[%s4838_s16 + $0x1f8] sm:$0xf0]  ;;  %v3667_v3 = vor.u32 %v4035_v50, %v3666_v49 }
 0x314   : > { %v2404_v4 = vadd.f32 %v2403_v0, %v2235_v60  ;;  %v1183_v0 = vld [vmem:[#allocation2 + $0x150] sm:$0xff] }
 0x315   : > { %v2237_v41 = vpop.f32.mrf.mxu2  ;;  %v2575_v45 = vpop.f32.mrf.mxu0 }
 0x316   : > { %v2573_v8 = vadd.f32 %v2572_v62, %v2404_v4  ;;  %v2238_v11 = vadd.f32 %v2237_v41, %v2068_v53  ;;  %v4033_v53 = vld [vmem:[%s4838_s16 + $0x1ec] sm:$0xf] }
 0x317   : > { %v2070_v9 = vpop.f32.mrf.mxu1  ;;  %v3671_v60 = vor.u32 %v4033_v53, %v3668_v54 }
 0x318   : > { %v2719_v10 = vadd.f32 %v2573_v8, %v1179_v7  ;;  %2445 = vmatmul.bf16.gmra.mxu3 %v3635_v5  ;;  %2614 = vmatmul.bf16.gmra.mxu0 %v3639_v6  ;;  %v4036_v8 = vld [vmem:[%s4838_s16 + $0x204] sm:$0xf] }
 0x31a   : > { %2783 = vst [vmem:[#allocation2 + $0x110] sm:$0xff] %v2719_v10  ;;  %v3676_v10 = vld [vmem:[%s4838_s16 + $0x210] sm:$0xf0] }
 0x31b   : > { %v2406_v13 = vpop.f32.mrf.mxu3 }
 0x31c   : > { %v2407_v17 = vadd.f32 %v2406_v13, %v2238_v11  ;;  %v3674_v11 = vld [vmem:[%s4838_s16 + $0x200] sm:$0xf] }
 0x31d   : > { %v2239_v19 = vpop.f32.mrf.mxu2  ;;  %v2577_v20 = vpop.f32.mrf.mxu0 }
 0x31e   : > { %v2576_v21 = vadd.f32 %v2575_v45, %v2407_v17  ;;  %v2240_v32 = vadd.f32 %v2239_v19, %v2070_v9  ;;  %v3675_v19 = vor.u32 %v4038_v12, %v3674_v11 }
 0x31f   : > { %v2073_v24 = vpop.f32.mrf.mxu1 }
 0x320   : > { %v2720_v27 = vadd.f32 %v2576_v21, %v1180_v18  ;;  %v3679_v18 = vor.u32 %v4036_v8, %v3676_v10  ;;  %v4046_v8 = vld [vmem:[%s4838_s16 + $0x24c] sm:$0xf0]  ;;  %v1188_v10 = vld [vmem:[#allocation2 + $0x138] sm:$0xff] }
 0x322   : > { %2784 = vst [vmem:[#allocation2 + $0x118] sm:$0xff] %v2720_v27  ;;  %2281 = vmatmul.bf16.gmra.mxu2 %v3647_v22  ;;  %2112 = vmatmul.bf16.gmra.mxu1 %v3643_v23  ;;  %v3682_v22 = vld [vmem:[%s4838_s16 + $0x208] sm:$0xf]  ;;  %v4039_v23 = vld [vmem:[%s4838_s16 + $0x214] sm:$0xf0] }
 0x323   : > { %v2408_v35 = vpop.f32.mrf.mxu3  ;;  %v3684_v27 = vld [vmem:[%s4838_s16 + $0x218] sm:$0xf0]  ;;  %v3683_v31 = vor.u32 %v4039_v23, %v3682_v22 }
 0x324   : > { %v2409_v36 = vadd.f32 %v2408_v35, %v2240_v32  ;;  %v1185_v35 = vld [vmem:[#allocation2 + $0x60] sm:$0xff] }
 0x325   : > { %v2242_v40 = vpop.f32.mrf.mxu2  ;;  %v2580_v33 = vpop.f32.mrf.mxu0 }
 0x326   : > { %v2578_v34 = vadd.f32 %v2577_v20, %v2409_v36  ;;  %v2243_v44 = vadd.f32 %v2242_v40, %v2073_v24  ;;  %v4037_v24 = vld [vmem:[%s4838_s16 + $0x20c] sm:$0xf] }
 0x327   : > { %v2075_v25 = vpop.f32.mrf.mxu1  ;;  %v3687_v32 = vor.u32 %v4037_v24, %v3684_v27 }
 0x328   : > { %v2721_v26 = vadd.f32 %v2578_v34, %v1181_v39  ;;  %2450 = vmatmul.bf16.gmra.mxu3 %v3651_v37  ;;  %2619 = vmatmul.bf16.gmra.mxu0 %v3655_v38  ;;  %v4040_v34 = vld [vmem:[%s4838_s16 + $0x224] sm:$0xf] }
 0x32a   : > { %2785 = vst [vmem:[#allocation2 + $0x98] sm:$0xff] %v2721_v26  ;;  %v3692_v26 = vld [vmem:[%s4838_s16 + $0x230] sm:$0xf0] }
 0x32b   : > { %v2411_v47 = vpop.f32.mrf.mxu3 }
 0x32c   : > { %v2412_v51 = vadd.f32 %v2411_v47, %v2243_v44  ;;  %v3690_v44 = vld [vmem:[%s4838_s16 + $0x220] sm:$0xf] }
 0x32d   : > { %v2244_v55 = vpop.f32.mrf.mxu2  ;;  %v2582_v56 = vpop.f32.mrf.mxu0 }
 0x32e   : > { %v2581_v57 = vadd.f32 %v2580_v33, %v2412_v51  ;;  %v2245_v2 = vadd.f32 %v2244_v55, %v2075_v25  ;;  %v3691_v55 = vor.u32 %v4042_v43, %v3690_v44 }
 0x32f   : > { %v2078_v62 = vpop.f32.mrf.mxu1 }
 0x330   : > { %v2722_v1 = vadd.f32 %v2581_v57, %v1182_v52  ;;  %v3695_v52 = vor.u32 %v4040_v34, %v3692_v26  ;;  %v4050_v34 = vld [vmem:[%s4838_s16 + $0x26c] sm:$0xf0]  ;;  %v1190_v26 = vld [vmem:[#allocation2 + $0x80] sm:$0xff] }
 0x332   : > { %2786 = vst [vmem:[#allocation2 + $0x120] sm:$0xff] %v2722_v1  ;;  %2286 = vmatmul.bf16.gmra.mxu2 %v3663_v58  ;;  %2117 = vmatmul.bf16.gmra.mxu1 %v3659_v61  ;;  %v3698_v58 = vld [vmem:[%s4838_s16 + $0x228] sm:$0xf]  ;;  %v4043_v61 = vld [vmem:[%s4838_s16 + $0x234] sm:$0xf0] }
 0x333   : > { %v2413_v59 = vpop.f32.mrf.mxu3  ;;  %v3700_v1 = vld [vmem:[%s4838_s16 + $0x238] sm:$0xf0]  ;;  %v3699_v54 = vor.u32 %v4043_v61, %v3698_v58 }
 0x334   : > { %v2414_v63 = vadd.f32 %v2413_v59, %v2245_v2  ;;  %v1187_v59 = vld [vmem:[#allocation2 + $0x188] sm:$0xff] }
 0x335   : > { %v2247_v4 = vpop.f32.mrf.mxu2  ;;  %v2585_v5 = vpop.f32.mrf.mxu0 }
 0x336   : > { %v2583_v6 = vadd.f32 %v2582_v56, %v2414_v63  ;;  %v2248_v45 = vadd.f32 %v2247_v4, %v2078_v62  ;;  %v4041_v62 = vld [vmem:[%s4838_s16 + $0x22c] sm:$0xf] }
 0x337   : > { %v2080_v7 = vpop.f32.mrf.mxu1  ;;  %v3703_v2 = vor.u32 %v4041_v62, %v3700_v1 }
 0x338   : > { %v2723_v41 = vadd.f32 %v2583_v6, %v1183_v0  ;;  %2455 = vmatmul.bf16.gmra.mxu3 %v3667_v3  ;;  %2624 = vmatmul.bf16.gmra.mxu0 %v3671_v60  ;;  %v4044_v6 = vld [vmem:[%s4838_s16 + $0x244] sm:$0xf] }
 0x33a   : > { %2787 = vst [vmem:[#allocation2 + $0x150] sm:$0xff] %v2723_v41  ;;  %v3708_v41 = vld [vmem:[%s4838_s16 + $0x250] sm:$0xf0] }
 0x33b   : > { %v2416_v9 = vpop.f32.mrf.mxu3 }
 0x33c   : > { %v2417_v13 = vadd.f32 %v2416_v9, %v2248_v45  ;;  %v3706_v45 = vld [vmem:[%s4838_s16 + $0x240] sm:$0xf] }
 0x33d   : > { %v2249_v15 = vpop.f32.mrf.mxu2  ;;  %v2587_v16 = vpop.f32.mrf.mxu0 }
 0x33e   : > { %v2586_v17 = vadd.f32 %v2585_v5, %v2417_v13  ;;  %v2250_v28 = vadd.f32 %v2249_v15, %v2080_v7  ;;  %v3707_v15 = vor.u32 %v4046_v8, %v3706_v45 }
 0x33f   : > { %v2083_v20 = vpop.f32.mrf.mxu1 }
 0x340   : > { %v2724_v21 = vadd.f32 %v2586_v17, %v1184_v14  ;;  %v3711_v14 = vor.u32 %v4044_v6, %v3708_v41  ;;  %v4054_v6 = vld [vmem:[%s4838_s16 + $0x28c] sm:$0xf0]  ;;  %v1192_v41 = vld [vmem:[#allocation2 + $0x1b8] sm:$0xff] }
 0x342   : > { %2788 = vst [vmem:[#allocation2 + $0x108] sm:$0xff] %v2724_v21  ;;  %2291 = vmatmul.bf16.gmra.mxu2 %v3679_v18  ;;  %2122 = vmatmul.bf16.gmra.mxu1 %v3675_v19  ;;  %v3714_v18 = vld [vmem:[%s4838_s16 + $0x248] sm:$0xf]  ;;  %v4047_v19 = vld [vmem:[%s4838_s16 + $0x254] sm:$0xf0] }
 0x343   : > { %v2418_v29 = vpop.f32.mrf.mxu3  ;;  %v3716_v21 = vld [vmem:[%s4838_s16 + $0x258] sm:$0xf0]  ;;  %v3715_v27 = vor.u32 %v4047_v19, %v3714_v18 }
 0x344   : > { %v2419_v30 = vadd.f32 %v2418_v29, %v2250_v28  ;;  %v1189_v29 = vld [vmem:[#allocation2 + $0x140] sm:$0xff] }
 0x345   : > { %v2252_v36 = vpop.f32.mrf.mxu2  ;;  %v2590_v37 = vpop.f32.mrf.mxu0 }
 0x346   : > { %v2588_v38 = vadd.f32 %v2587_v16, %v2419_v30  ;;  %v2253_v33 = vadd.f32 %v2252_v36, %v2083_v20  ;;  %v4045_v20 = vld [vmem:[%s4838_s16 + $0x24c] sm:$0xf] }
 0x347   : > { %v2085_v39 = vpop.f32.mrf.mxu1  ;;  %v3719_v28 = vor.u32 %v4045_v20, %v3716_v21 }
 0x348   : > { %v2725_v40 = vadd.f32 %v2588_v38, %v1185_v35  ;;  %2460 = vmatmul.bf16.gmra.mxu3 %v3683_v31  ;;  %2629 = vmatmul.bf16.gmra.mxu0 %v3687_v32  ;;  %v4048_v38 = vld [vmem:[%s4838_s16 + $0x264] sm:$0xf] }
 0x34a   : > { %2789 = vst [vmem:[#allocation2 + $0x60] sm:$0xff] %v2725_v40  ;;  %v3724_v40 = vld [vmem:[%s4838_s16 + $0x270] sm:$0xf0] }
 0x34b   : > { %v2421_v25 = vpop.f32.mrf.mxu3 }
 0x34c   : > { %v2422_v47 = vadd.f32 %v2421_v25, %v2253_v33  ;;  %v3722_v33 = vld [vmem:[%s4838_s16 + $0x260] sm:$0xf] }
 0x34d   : > { %v2254_v42 = vpop.f32.mrf.mxu2  ;;  %v2592_v48 = vpop.f32.mrf.mxu0 }
 0x34e   : > { %v2591_v51 = vadd.f32 %v2590_v37, %v2422_v47  ;;  %v2255_v49 = vadd.f32 %v2254_v42, %v2085_v39  ;;  %v3723_v42 = vor.u32 %v4050_v34, %v3722_v33 }
 0x34f   : > { %v2088_v56 = vpop.f32.mrf.mxu1 }
 0x350   : > { %v2726_v57 = vadd.f32 %v2591_v51, %v1186_v46  ;;  %v3727_v46 = vor.u32 %v4048_v38, %v3724_v40  ;;  %v4058_v38 = vld [vmem:[%s4838_s16 + $0x2ac] sm:$0xf0]  ;;  %v1194_v40 = vld [vmem:[#allocation2 + $0x1e8] sm:$0xff] }
 0x352   : > { %2790 = vst [vmem:[#allocation2 + $0xe0] sm:$0xff] %v2726_v57  ;;  %2296 = vmatmul.bf16.gmra.mxu2 %v3695_v52  ;;  %2127 = vmatmul.bf16.gmra.mxu1 %v3691_v55  ;;  %v3730_v52 = vld [vmem:[%s4838_s16 + $0x268] sm:$0xf]  ;;  %v4051_v55 = vld [vmem:[%s4838_s16 + $0x274] sm:$0xf0] }
 0x353   : > { %v2423_v50 = vpop.f32.mrf.mxu3  ;;  %v3732_v57 = vld [vmem:[%s4838_s16 + $0x278] sm:$0xf0]  ;;  %v3731_v1 = vor.u32 %v4051_v55, %v3730_v52 }
 0x354   : > { %v2424_v53 = vadd.f32 %v2423_v50, %v2255_v49  ;;  %v1191_v50 = vld [vmem:[#allocation2 + $0x1a8] sm:$0xff] }
 0x355   : > { %v2257_v63 = vpop.f32.mrf.mxu2  ;;  %v2595_v3 = vpop.f32.mrf.mxu0 }
 0x356   : > { %v2593_v60 = vadd.f32 %v2592_v48, %v2424_v53  ;;  %v2258_v5 = vadd.f32 %v2257_v63, %v2088_v56  ;;  %v4049_v56 = vld [vmem:[%s4838_s16 + $0x26c] sm:$0xf] }
 0x357   : > { %v2090_v0 = vpop.f32.mrf.mxu1  ;;  %v3735_v49 = vor.u32 %v4049_v56, %v3732_v57 }
 0x358   : > { %v2727_v4 = vadd.f32 %v2593_v60, %v1187_v59  ;;  %2465 = vmatmul.bf16.gmra.mxu3 %v3699_v54  ;;  %2634 = vmatmul.bf16.gmra.mxu0 %v3703_v2  ;;  %v4052_v60 = vld [vmem:[%s4838_s16 + $0x284] sm:$0xf] }
 0x35a   : > { %2791 = vst [vmem:[#allocation2 + $0x188] sm:$0xff] %v2727_v4  ;;  %v3740_v4 = vld [vmem:[%s4838_s16 + $0x290] sm:$0xf0] }
 0x35b   : > { %v2426_v7 = vpop.f32.mrf.mxu3 }
 0x35c   : > { %v2427_v9 = vadd.f32 %v2426_v7, %v2258_v5  ;;  %v3738_v5 = vld [vmem:[%s4838_s16 + $0x280] sm:$0xf] }
 0x35d   : > { %v2259_v11 = vpop.f32.mrf.mxu2  ;;  %v2597_v12 = vpop.f32.mrf.mxu0 }
 0x35e   : > { %v2596_v13 = vadd.f32 %v2595_v3, %v2427_v9  ;;  %v2260_v22 = vadd.f32 %v2259_v11, %v2090_v0  ;;  %v3739_v11 = vor.u32 %v4054_v6, %v3738_v5 }
 0x35f   : > { %v2093_v16 = vpop.f32.mrf.mxu1 }
 0x360   : > { %v2728_v17 = vadd.f32 %v2596_v13, %v1188_v10  ;;  %v3743_v10 = vor.u32 %v4052_v60, %v3740_v4  ;;  %v4062_v60 = vld [vmem:[%s4838_s16 + $0x2cc] sm:$0xf0]  ;;  %v1196_v4 = vld [vmem:[#allocation2 + $0x160] sm:$0xff] }
 0x362   : > { %2792 = vst [vmem:[#allocation2 + $0x138] sm:$0xff] %v2728_v17  ;;  %2301 = vmatmul.bf16.gmra.mxu2 %v3711_v14  ;;  %2132 = vmatmul.bf16.gmra.mxu1 %v3707_v15  ;;  %v3746_v14 = vld [vmem:[%s4838_s16 + $0x288] sm:$0xf]  ;;  %v4055_v15 = vld [vmem:[%s4838_s16 + $0x294] sm:$0xf0] }
 0x363   : > { %v2428_v23 = vpop.f32.mrf.mxu3  ;;  %v3748_v17 = vld [vmem:[%s4838_s16 + $0x298] sm:$0xf0]  ;;  %v3747_v21 = vor.u32 %v4055_v15, %v3746_v14 }
 0x364   : > { %v2429_v24 = vadd.f32 %v2428_v23, %v2260_v22  ;;  %v1193_v23 = vld [vmem:[#allocation2 + $0x28] sm:$0xff] }
 0x365   : > { %v2262_v30 = vpop.f32.mrf.mxu2  ;;  %v2600_v31 = vpop.f32.mrf.mxu0 }
 0x366   : > { %v2598_v32 = vadd.f32 %v2597_v12, %v2429_v24  ;;  %v2263_v37 = vadd.f32 %v2262_v30, %v2093_v16  ;;  %v4053_v16 = vld [vmem:[%s4838_s16 + $0x28c] sm:$0xf] }
 0x367   : > { %v2095_v35 = vpop.f32.mrf.mxu1  ;;  %v3751_v22 = vor.u32 %v4053_v16, %v3748_v17 }
 0x368   : > { %v2729_v36 = vadd.f32 %v2598_v32, %v1189_v29  ;;  %2470 = vmatmul.bf16.gmra.mxu3 %v3715_v27  ;;  %2639 = vmatmul.bf16.gmra.mxu0 %v3719_v28  ;;  %v4056_v32 = vld [vmem:[%s4838_s16 + $0x2a4] sm:$0xf] }
 0x36a   : > { %2793 = vst [vmem:[#allocation2 + $0x140] sm:$0xff] %v2729_v36  ;;  %v3756_v36 = vld [vmem:[%s4838_s16 + $0x2b0] sm:$0xf0] }
 0x36b   : > { %v2431_v39 = vpop.f32.mrf.mxu3 }
 0x36c   : > { %v2432_v25 = vadd.f32 %v2431_v39, %v2263_v37  ;;  %v3754_v37 = vld [vmem:[%s4838_s16 + $0x2a0] sm:$0xf] }
 0x36d   : > { %v2264_v44 = vpop.f32.mrf.mxu2  ;;  %v2602_v43 = vpop.f32.mrf.mxu0 }
 0x36e   : > { %v2601_v47 = vadd.f32 %v2600_v31, %v2432_v25  ;;  %v2265_v58 = vadd.f32 %v2264_v44, %v2095_v35  ;;  %v3755_v44 = vor.u32 %v4058_v38, %v3754_v37 }
 0x36f   : > { %v2098_v48 = vpop.f32.mrf.mxu1 }
 0x370   : > { %v2730_v51 = vadd.f32 %v2601_v47, %v1190_v26  ;;  %v3759_v26 = vor.u32 %v4056_v32, %v3756_v36  ;;  %v4066_v32 = vld [vmem:[%s4838_s16 + $0x2ec] sm:$0xf0]  ;;  %v1198_v36 = vld [vmem:[#allocation2 + $0x1e0] sm:$0xff] }
 0x372   : > { %2794 = vst [vmem:[#allocation2 + $0x80] sm:$0xff] %v2730_v51  ;;  %2306 = vmatmul.bf16.gmra.mxu2 %v3727_v46  ;;  %2137 = vmatmul.bf16.gmra.mxu1 %v3723_v42  ;;  %v3762_v46 = vld [vmem:[%s4838_s16 + $0x2a8] sm:$0xf]  ;;  %v4059_v42 = vld [vmem:[%s4838_s16 + $0x2b4] sm:$0xf0] }
 0x373   : > { %v2433_v61 = vpop.f32.mrf.mxu3  ;;  %v3764_v51 = vld [vmem:[%s4838_s16 + $0x2b8] sm:$0xf0]  ;;  %v3763_v57 = vor.u32 %v4059_v42, %v3762_v46 }
 0x374   : > { %v2434_v62 = vadd.f32 %v2433_v61, %v2265_v58  ;;  %v1195_v61 = vld [vmem:[#allocation2 + $0xf8] sm:$0xff] }
 0x375   : > { %v2267_v53 = vpop.f32.mrf.mxu2  ;;  %v2605_v54 = vpop.f32.mrf.mxu0 }
 0x376   : > { %v2603_v2 = vadd.f32 %v2602_v43, %v2434_v62  ;;  %v2268_v3 = vadd.f32 %v2267_v53, %v2098_v48  ;;  %v4057_v48 = vld [vmem:[%s4838_s16 + $0x2ac] sm:$0xf] }
 0x377   : > { %v2100_v59 = vpop.f32.mrf.mxu1  ;;  %v3767_v58 = vor.u32 %v4057_v48, %v3764_v51 }
 0x378   : > { %v2731_v63 = vadd.f32 %v2603_v2, %v1191_v50  ;;  %2475 = vmatmul.bf16.gmra.mxu3 %v3731_v1  ;;  %2644 = vmatmul.bf16.gmra.mxu0 %v3735_v49  ;;  %v4060_v2 = vld [vmem:[%s4838_s16 + $0x2c4] sm:$0xf] }
 0x37a   : > { %2795 = vst [vmem:[#allocation2 + $0x1a8] sm:$0xff] %v2731_v63  ;;  %v3772_v63 = vld [vmem:[%s4838_s16 + $0x2d0] sm:$0xf0] }
 0x37b   : > { %v2436_v0 = vpop.f32.mrf.mxu3 }
 0x37c   : > { %v2437_v7 = vadd.f32 %v2436_v0, %v2268_v3  ;;  %v3770_v3 = vld [vmem:[%s4838_s16 + $0x2c0] sm:$0xf] }
 0x37d   : > { %v2269_v45 = vpop.f32.mrf.mxu2  ;;  %v2607_v8 = vpop.f32.mrf.mxu0 }
 0x37e   : > { %v2606_v9 = vadd.f32 %v2605_v54, %v2437_v7  ;;  %v2270_v18 = vadd.f32 %v2269_v45, %v2100_v59  ;;  %v3771_v45 = vor.u32 %v4062_v60, %v3770_v3 }
 0x37f   : > { %v2103_v12 = vpop.f32.mrf.mxu1 }
 0x380   : > { %v2732_v13 = vadd.f32 %v2606_v9, %v1192_v41  ;;  %v3775_v41 = vor.u32 %v4060_v2, %v3772_v63  ;;  %v4070_v2 = vld [vmem:[%s4838_s16 + $0x30c] sm:$0xf0] }
 0x381   : > { %v1200_v63 = vld [vmem:[#allocation2 + $0xf0] sm:$0xff] }
 0x382   : > { %2796 = vst [vmem:[#allocation2 + $0x1b8] sm:$0xff] %v2732_v13  ;;  %2311 = vmatmul.bf16.gmra.mxu2 %v3743_v10  ;;  %2142 = vmatmul.bf16.gmra.mxu1 %v3739_v11  ;;  %v3778_v10 = vld [vmem:[%s4838_s16 + $0x2c8] sm:$0xf]  ;;  %v4063_v11 = vld [vmem:[%s4838_s16 + $0x2d4] sm:$0xf0] }
 0x383   : > { %v2438_v19 = vpop.f32.mrf.mxu3  ;;  %v3780_v13 = vld [vmem:[%s4838_s16 + $0x2d8] sm:$0xf0]  ;;  %v3779_v17 = vor.u32 %v4063_v11, %v3778_v10 }
 0x384   : > { %v2439_v20 = vadd.f32 %v2438_v19, %v2270_v18  ;;  %v1197_v19 = vld [vmem:[#allocation2 + $0x30] sm:$0xff] }
 0x385   : > { %v2272_v24 = vpop.f32.mrf.mxu2  ;;  %v2610_v27 = vpop.f32.mrf.mxu0 }
 0x386   : > { %v2608_v28 = vadd.f32 %v2607_v8, %v2439_v20  ;;  %v2273_v31 = vadd.f32 %v2272_v24, %v2103_v12  ;;  %v4061_v12 = vld [vmem:[%s4838_s16 + $0x2cc] sm:$0xf] }
 0x387   : > { %v2105_v29 = vpop.f32.mrf.mxu1  ;;  %v3783_v18 = vor.u32 %v4061_v12, %v3780_v13 }
 0x388   : > { %v2733_v30 = vadd.f32 %v2608_v28, %v1193_v23  ;;  %2480 = vmatmul.bf16.gmra.mxu3 %v3747_v21  ;;  %2649 = vmatmul.bf16.gmra.mxu0 %v3751_v22  ;;  %v4064_v28 = vld [vmem:[%s4838_s16 + $0x2e4] sm:$0xf] }
 0x38a   : > { %2797 = vst [vmem:[#allocation2 + $0x28] sm:$0xff] %v2733_v30  ;;  %v3788_v30 = vld [vmem:[%s4838_s16 + $0x2f0] sm:$0xf0] }
 0x38b   : > { %v2441_v35 = vpop.f32.mrf.mxu3 }
 0x38c   : > { %v2442_v39 = vadd.f32 %v2441_v35, %v2273_v31  ;;  %v3786_v31 = vld [vmem:[%s4838_s16 + $0x2e0] sm:$0xf] }
 0x38d   : > { %v2274_v33 = vpop.f32.mrf.mxu2  ;;  %v2612_v34 = vpop.f32.mrf.mxu0 }
 0x38e   : > { %v2611_v25 = vadd.f32 %v2610_v27, %v2442_v39  ;;  %v2275_v52 = vadd.f32 %v2274_v33, %v2105_v29  ;;  %v3787_v33 = vor.u32 %v4066_v32, %v3786_v31 }
 0x38f   : > { %v2108_v43 = vpop.f32.mrf.mxu1 }
 0x390   : > { %v2734_v47 = vadd.f32 %v2611_v25, %v1194_v40  ;;  %v3791_v40 = vor.u32 %v4064_v28, %v3788_v30  ;;  %v4074_v28 = vld [vmem:[%s4838_s16 + $0x32c] sm:$0xf0]  ;;  %v1202_v30 = vld [vmem:[#allocation2 + $0x148] sm:$0xff] }
 0x392   : > { %2798 = vst [vmem:[#allocation2 + $0x1e8] sm:$0xff] %v2734_v47  ;;  %2316 = vmatmul.bf16.gmra.mxu2 %v3759_v26  ;;  %2147 = vmatmul.bf16.gmra.mxu1 %v3755_v44  ;;  %v3794_v26 = vld [vmem:[%s4838_s16 + $0x2e8] sm:$0xf]  ;;  %v4067_v44 = vld [vmem:[%s4838_s16 + $0x2f4] sm:$0xf0] }
 0x393   : > { %v2443_v55 = vpop.f32.mrf.mxu3  ;;  %v3796_v47 = vld [vmem:[%s4838_s16 + $0x2f8] sm:$0xf0]  ;;  %v3795_v51 = vor.u32 %v4067_v44, %v3794_v26 }
 0x394   : > { %v2444_v56 = vadd.f32 %v2443_v55, %v2275_v52  ;;  %v1199_v55 = vld [vmem:[#allocation2] sm:$0xff] }
 0x395   : > { %v2277_v62 = vpop.f32.mrf.mxu2  ;;  %v2615_v1 = vpop.f32.mrf.mxu0 }
 0x396   : > { %v2613_v49 = vadd.f32 %v2612_v34, %v2444_v56  ;;  %v2278_v54 = vadd.f32 %v2277_v62, %v2108_v43  ;;  %v4065_v43 = vld [vmem:[%s4838_s16 + $0x2ec] sm:$0xf] }
 0x397   : > { %v2110_v50 = vpop.f32.mrf.mxu1  ;;  %v3799_v52 = vor.u32 %v4065_v43, %v3796_v47 }
 0x398   : > { %v2735_v53 = vadd.f32 %v2613_v49, %v1195_v61  ;;  %2485 = vmatmul.bf16.gmra.mxu3 %v3763_v57  ;;  %2654 = vmatmul.bf16.gmra.mxu0 %v3767_v58  ;;  %v4068_v49 = vld [vmem:[%s4838_s16 + $0x304] sm:$0xf] }
 0x39a   : > { %2799 = vst [vmem:[#allocation2 + $0xf8] sm:$0xff] %v2735_v53  ;;  %v3804_v53 = vld [vmem:[%s4838_s16 + $0x310] sm:$0xf0] }
 0x39b   : > { %v2446_v59 = vpop.f32.mrf.mxu3 }
 0x39c   : > { %v2447_v0 = vadd.f32 %v2446_v59, %v2278_v54  ;;  %v3802_v54 = vld [vmem:[%s4838_s16 + $0x300] sm:$0xf] }
 0x39d   : > { %v2279_v5 = vpop.f32.mrf.mxu2  ;;  %v2617_v6 = vpop.f32.mrf.mxu0 }
 0x39e   : > { %v2616_v7 = vadd.f32 %v2615_v1, %v2447_v0  ;;  %v2280_v14 = vadd.f32 %v2279_v5, %v2110_v50  ;;  %v3803_v5 = vor.u32 %v4070_v2, %v3802_v54 }
 0x39f   : > { %v2113_v8 = vpop.f32.mrf.mxu1 }
 0x3a0   : > { %v2736_v9 = vadd.f32 %v2616_v7, %v1196_v4  ;;  %v3807_v4 = vor.u32 %v4068_v49, %v3804_v53  ;;  %v4078_v49 = vld [vmem:[%s4838_s16 + $0x34c] sm:$0xf0]  ;;  %v1204_v53 = vld [vmem:[#allocation2 + $0x100] sm:$0xff] }
 0x3a2   : > { %2800 = vst [vmem:[#allocation2 + $0x160] sm:$0xff] %v2736_v9  ;;  %2321 = vmatmul.bf16.gmra.mxu2 %v3775_v41  ;;  %2152 = vmatmul.bf16.gmra.mxu1 %v3771_v45  ;;  %v3810_v41 = vld [vmem:[%s4838_s16 + $0x308] sm:$0xf]  ;;  %v4071_v45 = vld [vmem:[%s4838_s16 + $0x314] sm:$0xf0] }
 0x3a3   : > { %v2448_v15 = vpop.f32.mrf.mxu3  ;;  %v3812_v9 = vld [vmem:[%s4838_s16 + $0x318] sm:$0xf0]  ;;  %v3811_v13 = vor.u32 %v4071_v45, %v3810_v41 }
 0x3a4   : > { %v2449_v16 = vadd.f32 %v2448_v15, %v2280_v14  ;;  %v1201_v15 = vld [vmem:[#allocation2 + $0x8] sm:$0xff] }
 0x3a5   : > { %v2282_v20 = vpop.f32.mrf.mxu2  ;;  %v2620_v21 = vpop.f32.mrf.mxu0 }
 0x3a6   : > { %v2618_v22 = vadd.f32 %v2617_v6, %v2449_v16  ;;  %v2283_v27 = vadd.f32 %v2282_v20, %v2113_v8  ;;  %v4069_v8 = vld [vmem:[%s4838_s16 + $0x30c] sm:$0xf] }
 0x3a7   : > { %v2115_v23 = vpop.f32.mrf.mxu1  ;;  %v3815_v14 = vor.u32 %v4069_v8, %v3812_v9 }
 0x3a8   : > { %v2737_v24 = vadd.f32 %v2618_v22, %v1197_v19  ;;  %2490 = vmatmul.bf16.gmra.mxu3 %v3779_v17  ;;  %2659 = vmatmul.bf16.gmra.mxu0 %v3783_v18  ;;  %v4072_v22 = vld [vmem:[%s4838_s16 + $0x324] sm:$0xf] }
 0x3aa   : > { %2801 = vst [vmem:[#allocation2 + $0x30] sm:$0xff] %v2737_v24  ;;  %v3820_v24 = vld [vmem:[%s4838_s16 + $0x330] sm:$0xf0] }
 0x3ab   : > { %v2451_v29 = vpop.f32.mrf.mxu3 }
 0x3ac   : > { %v2452_v35 = vadd.f32 %v2451_v29, %v2283_v27  ;;  %v3818_v27 = vld [vmem:[%s4838_s16 + $0x320] sm:$0xf] }
 0x3ad   : > { %v2284_v37 = vpop.f32.mrf.mxu2  ;;  %v2622_v38 = vpop.f32.mrf.mxu0 }
 0x3ae   : > { %v2621_v39 = vadd.f32 %v2620_v21, %v2452_v35  ;;  %v2285_v46 = vadd.f32 %v2284_v37, %v2115_v23  ;;  %v3819_v37 = vor.u32 %v4074_v28, %v3818_v27 }
 0x3af   : > { %v2118_v34 = vpop.f32.mrf.mxu1 }
 0x3b0   : > { %v2738_v25 = vadd.f32 %v2621_v39, %v1198_v36  ;;  %v3823_v36 = vor.u32 %v4072_v22, %v3820_v24  ;;  %v4082_v22 = vld [vmem:[%s4838_s16 + $0x36c] sm:$0xf0]  ;;  %v1206_v24 = vld [vmem:[#allocation2 + $0x40] sm:$0xff] }
 0x3b2   : > { %2802 = vst [vmem:[#allocation2 + $0x1e0] sm:$0xff] %v2738_v25  ;;  %2326 = vmatmul.bf16.gmra.mxu2 %v3791_v40  ;;  %2157 = vmatmul.bf16.gmra.mxu1 %v3787_v33  ;;  %v3826_v40 = vld [vmem:[%s4838_s16 + $0x328] sm:$0xf]  ;;  %v4075_v33 = vld [vmem:[%s4838_s16 + $0x334] sm:$0xf0] }
 0x3b3   : > { %v2453_v42 = vpop.f32.mrf.mxu3  ;;  %v3828_v25 = vld [vmem:[%s4838_s16 + $0x338] sm:$0xf0]  ;;  %v3827_v47 = vor.u32 %v4075_v33, %v3826_v40 }
 0x3b4   : > { %v2454_v48 = vadd.f32 %v2453_v42, %v2285_v46  ;;  %v1203_v42 = vld [vmem:[#allocation2 + $0x1d0] sm:$0xff] }
 0x3b5   : > { %v2287_v56 = vpop.f32.mrf.mxu2  ;;  %v2625_v57 = vpop.f32.mrf.mxu0 }
 0x3b6   : > { %v2623_v58 = vadd.f32 %v2622_v38, %v2454_v48  ;;  %v2288_v1 = vadd.f32 %v2287_v56, %v2118_v34  ;;  %v4073_v34 = vld [vmem:[%s4838_s16 + $0x32c] sm:$0xf] }
 0x3b7   : > { %v2120_v61 = vpop.f32.mrf.mxu1  ;;  %v3831_v46 = vor.u32 %v4073_v34, %v3828_v25 }
 0x3b8   : > { %v2739_v62 = vadd.f32 %v2623_v58, %v1199_v55  ;;  %2495 = vmatmul.bf16.gmra.mxu3 %v3795_v51  ;;  %2664 = vmatmul.bf16.gmra.mxu0 %v3799_v52  ;;  %v4076_v58 = vld [vmem:[%s4838_s16 + $0x344] sm:$0xf] }
 0x3ba   : > { %2803 = vst [vmem:[#allocation2] sm:$0xff] %v2739_v62  ;;  %v3836_v62 = vld [vmem:[%s4838_s16 + $0x350] sm:$0xf0] }
 0x3bb   : > { %v2456_v50 = vpop.f32.mrf.mxu3 }
 0x3bc   : > { %v2457_v59 = vadd.f32 %v2456_v50, %v2288_v1  ;;  %v3834_v1 = vld [vmem:[%s4838_s16 + $0x340] sm:$0xf] }
 0x3bd   : > { %v2289_v3 = vpop.f32.mrf.mxu2  ;;  %v2627_v60 = vpop.f32.mrf.mxu0 }
 0x3be   : > { %v2626_v0 = vadd.f32 %v2625_v57, %v2457_v59  ;;  %v2290_v10 = vadd.f32 %v2289_v3, %v2120_v61  ;;  %v3835_v3 = vor.u32 %v4078_v49, %v3834_v1 }
 0x3bf   : > { %v2123_v6 = vpop.f32.mrf.mxu1 }
 0x3c0   : > { %v2740_v7 = vadd.f32 %v2626_v0, %v1200_v63  ;;  %v3839_v63 = vor.u32 %v4076_v58, %v3836_v62  ;;  %v4086_v58 = vld [vmem:[%s4838_s16 + $0x38c] sm:$0xf0]  ;;  %v1208_v62 = vld [vmem:[#allocation2 + $0x20] sm:$0xff] }
 0x3c2   : > { %2804 = vst [vmem:[#allocation2 + $0xf0] sm:$0xff] %v2740_v7  ;;  %2331 = vmatmul.bf16.gmra.mxu2 %v3807_v4  ;;  %2162 = vmatmul.bf16.gmra.mxu1 %v3803_v5  ;;  %v3842_v4 = vld [vmem:[%s4838_s16 + $0x348] sm:$0xf]  ;;  %v4079_v5 = vld [vmem:[%s4838_s16 + $0x354] sm:$0xf0] }
 0x3c3   : > { %v2458_v11 = vpop.f32.mrf.mxu3  ;;  %v3844_v7 = vld [vmem:[%s4838_s16 + $0x358] sm:$0xf0]  ;;  %v3843_v9 = vor.u32 %v4079_v5, %v3842_v4 }
 0x3c4   : > { %v2459_v12 = vadd.f32 %v2458_v11, %v2290_v10  ;;  %v1205_v11 = vld [vmem:[#allocation2 + $0xc8] sm:$0xff] }
 0x3c5   : > { %v2292_v16 = vpop.f32.mrf.mxu2  ;;  %v2630_v17 = vpop.f32.mrf.mxu0 }
 0x3c6   : > { %v2628_v18 = vadd.f32 %v2627_v60, %v2459_v12  ;;  %v2293_v21 = vadd.f32 %v2292_v16, %v2123_v6  ;;  %v4077_v6 = vld [vmem:[%s4838_s16 + $0x34c] sm:$0xf] }
 0x3c7   : > { %v2125_v19 = vpop.f32.mrf.mxu1  ;;  %v3847_v10 = vor.u32 %v4077_v6, %v3844_v7 }
 0x3c8   : > { %v2741_v20 = vadd.f32 %v2628_v18, %v1201_v15  ;;  %2500 = vmatmul.bf16.gmra.mxu3 %v3811_v13  ;;  %2669 = vmatmul.bf16.gmra.mxu0 %v3815_v14  ;;  %v4080_v18 = vld [vmem:[%s4838_s16 + $0x364] sm:$0xf] }
 0x3ca   : > { %2805 = vst [vmem:[#allocation2 + $0x8] sm:$0xff] %v2741_v20  ;;  %v3852_v20 = vld [vmem:[%s4838_s16 + $0x370] sm:$0xf0] }
 0x3cb   : > { %v2461_v23 = vpop.f32.mrf.mxu3 }
 0x3cc   : > { %v2462_v29 = vadd.f32 %v2461_v23, %v2293_v21  ;;  %v3850_v21 = vld [vmem:[%s4838_s16 + $0x360] sm:$0xf] }
 0x3cd   : > { %v2294_v31 = vpop.f32.mrf.mxu2  ;;  %v2632_v32 = vpop.f32.mrf.mxu0 }
 0x3ce   : > { %v2631_v35 = vadd.f32 %v2630_v17, %v2462_v29  ;;  %v2295_v26 = vadd.f32 %v2294_v31, %v2125_v19  ;;  %v3851_v31 = vor.u32 %v4082_v22, %v3850_v21 }
 0x3cf   : > { %v2128_v38 = vpop.f32.mrf.mxu1 }
 0x3d0   : > { %v2742_v39 = vadd.f32 %v2631_v35, %v1202_v30  ;;  %v3855_v30 = vor.u32 %v4080_v18, %v3852_v20  ;;  %v4090_v18 = vld [vmem:[%s4838_s16 + $0x3ac] sm:$0xf0]  ;;  %v1210_v20 = vld [vmem:[#allocation2 + $0x1a0] sm:$0xff] }
 0x3d2   : > { %2806 = vst [vmem:[#allocation2 + $0x148] sm:$0xff] %v2742_v39  ;;  %2336 = vmatmul.bf16.gmra.mxu2 %v3823_v36  ;;  %2167 = vmatmul.bf16.gmra.mxu1 %v3819_v37  ;;  %v3858_v36 = vld [vmem:[%s4838_s16 + $0x368] sm:$0xf]  ;;  %v4083_v37 = vld [vmem:[%s4838_s16 + $0x374] sm:$0xf0] }
 0x3d3   : > { %v2463_v44 = vpop.f32.mrf.mxu3  ;;  %v3860_v39 = vld [vmem:[%s4838_s16 + $0x378] sm:$0xf0]  ;;  %v3859_v25 = vor.u32 %v4083_v37, %v3858_v36 }
 0x3d4   : > { %v2464_v43 = vadd.f32 %v2463_v44, %v2295_v26  ;;  %v1207_v44 = vld [vmem:[#allocation2 + $0x1f8] sm:$0xff] }
 0x3d5   : > { %v2297_v48 = vpop.f32.mrf.mxu2  ;;  %v2635_v51 = vpop.f32.mrf.mxu0 }
 0x3d6   : > { %v2633_v52 = vadd.f32 %v2632_v32, %v2464_v43  ;;  %v2298_v57 = vadd.f32 %v2297_v48, %v2128_v38  ;;  %v4081_v38 = vld [vmem:[%s4838_s16 + $0x36c] sm:$0xf] }
 0x3d7   : > { %v2130_v55 = vpop.f32.mrf.mxu1  ;;  %v3863_v26 = vor.u32 %v4081_v38, %v3860_v39 }
 0x3d8   : > { %v2743_v56 = vadd.f32 %v2633_v52, %v1203_v42  ;;  %2505 = vmatmul.bf16.gmra.mxu3 %v3827_v47  ;;  %2674 = vmatmul.bf16.gmra.mxu0 %v3831_v46  ;;  %v4084_v52 = vld [vmem:[%s4838_s16 + $0x384] sm:$0xf] }
 0x3da   : > { %2807 = vst [vmem:[#allocation2 + $0x1d0] sm:$0xff] %v2743_v56  ;;  %v3868_v56 = vld [vmem:[%s4838_s16 + $0x390] sm:$0xf0] }
 0x3db   : > { %v2466_v61 = vpop.f32.mrf.mxu3 }
 0x3dc   : > { %v2467_v50 = vadd.f32 %v2466_v61, %v2298_v57  ;;  %v3866_v57 = vld [vmem:[%s4838_s16 + $0x380] sm:$0xf] }
 0x3dd   : > { %v2299_v54 = vpop.f32.mrf.mxu2  ;;  %v2637_v2 = vpop.f32.mrf.mxu0 }
 0x3de   : > { %v2636_v59 = vadd.f32 %v2635_v51, %v2467_v50  ;;  %v2300_v41 = vadd.f32 %v2299_v54, %v2130_v55  ;;  %v3867_v54 = vor.u32 %v4086_v58, %v3866_v57 }
 0x3df   : > { %v2133_v60 = vpop.f32.mrf.mxu1 }
 0x3e0   : > { %v2744_v0 = vadd.f32 %v2636_v59, %v1204_v53  ;;  %v3871_v53 = vor.u32 %v4084_v52, %v3868_v56  ;;  %v4094_v52 = vld [vmem:[%s4838_s16 + $0x3cc] sm:$0xf0]  ;;  %v1212_v56 = vld [vmem:[#allocation2 + $0xe8] sm:$0xff] }
 0x3e2   : > { %2808 = vst [vmem:[#allocation2 + $0x100] sm:$0xff] %v2744_v0  ;;  %2341 = vmatmul.bf16.gmra.mxu2 %v3839_v63  ;;  %2172 = vmatmul.bf16.gmra.mxu1 %v3835_v3  ;;  %v3874_v63 = vld [vmem:[%s4838_s16 + $0x388] sm:$0xf]  ;;  %v4087_v3 = vld [vmem:[%s4838_s16 + $0x394] sm:$0xf0] }
 0x3e3   : > { %v2468_v45 = vpop.f32.mrf.mxu3  ;;  %v3876_v0 = vld [vmem:[%s4838_s16 + $0x398] sm:$0xf0]  ;;  %v3875_v7 = vor.u32 %v4087_v3, %v3874_v63 }
 0x3e4   : > { %v2469_v8 = vadd.f32 %v2468_v45, %v2300_v41  ;;  %v1209_v45 = vld [vmem:[#allocation2 + $0x128] sm:$0xff] }
 0x3e5   : > { %v2302_v12 = vpop.f32.mrf.mxu2  ;;  %v2640_v13 = vpop.f32.mrf.mxu0 }
 0x3e6   : > { %v2638_v14 = vadd.f32 %v2637_v2, %v2469_v8  ;;  %v2303_v17 = vadd.f32 %v2302_v12, %v2133_v60  ;;  %v4085_v60 = vld [vmem:[%s4838_s16 + $0x38c] sm:$0xf] }
 0x3e7   : > { %v2135_v15 = vpop.f32.mrf.mxu1  ;;  %v3879_v41 = vor.u32 %v4085_v60, %v3876_v0 }
 0x3e8   : > { %v2745_v16 = vadd.f32 %v2638_v14, %v1205_v11  ;;  %2510 = vmatmul.bf16.gmra.mxu3 %v3843_v9  ;;  %2679 = vmatmul.bf16.gmra.mxu0 %v3847_v10  ;;  %v4088_v14 = vld [vmem:[%s4838_s16 + $0x3a4] sm:$0xf] }
 0x3ea   : > { %2809 = vst [vmem:[#allocation2 + $0xc8] sm:$0xff] %v2745_v16  ;;  %v3884_v16 = vld [vmem:[%s4838_s16 + $0x3b0] sm:$0xf0] }
 0x3eb   : > { %v2471_v19 = vpop.f32.mrf.mxu3 }
 0x3ec   : > { %v2472_v23 = vadd.f32 %v2471_v19, %v2303_v17  ;;  %v3882_v17 = vld [vmem:[%s4838_s16 + $0x3a0] sm:$0xf] }
 0x3ed   : > { %v2304_v27 = vpop.f32.mrf.mxu2  ;;  %v2642_v28 = vpop.f32.mrf.mxu0 }
 0x3ee   : > { %v2641_v29 = vadd.f32 %v2640_v13, %v2472_v23  ;;  %v2305_v40 = vadd.f32 %v2304_v27, %v2135_v15  ;;  %v3883_v27 = vor.u32 %v4090_v18, %v3882_v17 }
 0x3ef   : > { %v2138_v32 = vpop.f32.mrf.mxu1 }
 0x3f0   : > { %v2746_v35 = vadd.f32 %v2641_v29, %v1206_v24  ;;  %v3887_v24 = vor.u32 %v4088_v14, %v3884_v16  ;;  %v4098_v14 = vld [vmem:[%s4838_s16 + $0x3ec] sm:$0xf0] }
 0x3f1   : > { %v1214_v16 = vld [vmem:[#allocation2 + $0x70] sm:$0xff] }
 0x3f2   : > { %2810 = vst [vmem:[#allocation2 + $0x40] sm:$0xff] %v2746_v35  ;;  %2346 = vmatmul.bf16.gmra.mxu2 %v3855_v30  ;;  %2177 = vmatmul.bf16.gmra.mxu1 %v3851_v31  ;;  %v3890_v30 = vld [vmem:[%s4838_s16 + $0x3a8] sm:$0xf]  ;;  %v4091_v31 = vld [vmem:[%s4838_s16 + $0x3b4] sm:$0xf0] }
 0x3f3   : > { %v2473_v33 = vpop.f32.mrf.mxu3  ;;  %v3892_v35 = vld [vmem:[%s4838_s16 + $0x3b8] sm:$0xf0]  ;;  %v3891_v39 = vor.u32 %v4091_v31, %v3890_v30 }
 0x3f4   : > { %v2474_v34 = vadd.f32 %v2473_v33, %v2305_v40  ;;  %v1211_v33 = vld [vmem:[#allocation2 + $0x1f0] sm:$0xff] }
 0x3f5   : > { %v2307_v43 = vpop.f32.mrf.mxu2  ;;  %v2645_v47 = vpop.f32.mrf.mxu0 }
 0x3f6   : > { %v2643_v46 = vadd.f32 %v2642_v28, %v2474_v34  ;;  %v2308_v51 = vadd.f32 %v2307_v43, %v2138_v32  ;;  %v4089_v32 = vld [vmem:[%s4838_s16 + $0x3ac] sm:$0xf] }
 0x3f7   : > { %v2140_v42 = vpop.f32.mrf.mxu1  ;;  %v3895_v40 = vor.u32 %v4089_v32, %v3892_v35 }
 0x3f8   : > { %v2747_v48 = vadd.f32 %v2643_v46, %v1207_v44  ;;  %2515 = vmatmul.bf16.gmra.mxu3 %v3859_v25  ;;  %2684 = vmatmul.bf16.gmra.mxu0 %v3863_v26  ;;  %v4092_v46 = vld [vmem:[%s4838_s16 + $0x3c4] sm:$0xf] }
 0x3fa   : > { %2811 = vst [vmem:[#allocation2 + $0x1f8] sm:$0xff] %v2747_v48  ;;  %v3900_v48 = vld [vmem:[%s4838_s16 + $0x3d0] sm:$0xf0] }
 0x3fb   : > { %v2476_v55 = vpop.f32.mrf.mxu3 }
 0x3fc   : > { %v2477_v61 = vadd.f32 %v2476_v55, %v2308_v51  ;;  %v3898_v51 = vld [vmem:[%s4838_s16 + $0x3c0] sm:$0xf] }
 0x3fd   : > { %v2309_v1 = vpop.f32.mrf.mxu2  ;;  %v2647_v49 = vpop.f32.mrf.mxu0 }
 0x3fe   : > { %v2646_v50 = vadd.f32 %v2645_v47, %v2477_v61  ;;  %v2310_v4 = vadd.f32 %v2309_v1, %v2140_v42  ;;  %v3899_v1 = vor.u32 %v4094_v52, %v3898_v51 }
 0x3ff   : > { %v2143_v2 = vpop.f32.mrf.mxu1 }
 0x400   : > { %v2748_v59 = vadd.f32 %v2646_v50, %v1208_v62  ;;  %v3903_v62 = vor.u32 %v4092_v46, %v3900_v48 }
 0x402   : > { %2812 = vst [vmem:[#allocation2 + $0x20] sm:$0xff] %v2748_v59  ;;  %2351 = vmatmul.bf16.gmra.mxu2 %v3871_v53  ;;  %2182 = vmatmul.bf16.gmra.mxu1 %v3867_v54  ;;  %v3906_v53 = vld [vmem:[%s4838_s16 + $0x3c8] sm:$0xf]  ;;  %v4095_v54 = vld [vmem:[%s4838_s16 + $0x3d4] sm:$0xf0] }
 0x403   : > { %v2478_v5 = vpop.f32.mrf.mxu3  ;;  %v3908_v59 = vld [vmem:[%s4838_s16 + $0x3d8] sm:$0xf0]  ;;  %v3907_v0 = vor.u32 %v4095_v54, %v3906_v53 }
 0x404   : > { %v2479_v6 = vadd.f32 %v2478_v5, %v2310_v4  ;;  %v1213_v5 = vld [vmem:[#allocation2 + $0x78] sm:$0xff] }
 0x405   : > { %v2312_v8 = vpop.f32.mrf.mxu2  ;;  %v2650_v9 = vpop.f32.mrf.mxu0 }
 0x406   : > { %v2648_v10 = vadd.f32 %v2647_v49, %v2479_v6  ;;  %v2313_v13 = vadd.f32 %v2312_v8, %v2143_v2  ;;  %v4093_v2 = vld [vmem:[%s4838_s16 + $0x3cc] sm:$0xf] }
 0x407   : > { %v2145_v11 = vpop.f32.mrf.mxu1  ;;  %v3911_v4 = vor.u32 %v4093_v2, %v3908_v59  ;;  %v1218_v2 = vld [vmem:[#allocation2 + $0xb8] sm:$0xff] }
 0x408   : > { %v2749_v12 = vadd.f32 %v2648_v10, %v1209_v45  ;;  %2520 = vmatmul.bf16.gmra.mxu3 %v3875_v7  ;;  %2689 = vmatmul.bf16.gmra.mxu0 %v3879_v41  ;;  %v4096_v10 = vld [vmem:[%s4838_s16 + $0x3e4] sm:$0xf] }
 0x40a   : > { %2813 = vst [vmem:[#allocation2 + $0x128] sm:$0xff] %v2749_v12  ;;  %v3916_v12 = vld [vmem:[%s4838_s16 + $0x3f0] sm:$0xf0] }
 0x40b   : > { %v2481_v15 = vpop.f32.mrf.mxu3 }
 0x40c   : > { %v2482_v19 = vadd.f32 %v2481_v15, %v2313_v13  ;;  %v3914_v13 = vld [vmem:[%s4838_s16 + $0x3e0] sm:$0xf] }
 0x40d   : > { %v2314_v21 = vpop.f32.mrf.mxu2  ;;  %v2652_v22 = vpop.f32.mrf.mxu0 }
 0x40e   : > { %v2651_v23 = vadd.f32 %v2650_v9, %v2482_v19  ;;  %v2315_v36 = vadd.f32 %v2314_v21, %v2145_v11  ;;  %v3915_v21 = vor.u32 %v4098_v14, %v3914_v13  ;;  %v1220_v14 = vld [vmem:[#allocation2 + $0xa8] sm:$0xff] }
 0x40f   : > { %v2148_v28 = vpop.f32.mrf.mxu1 }
 0x410   : > { %v2750_v29 = vadd.f32 %v2651_v23, %v1210_v20  ;;  %v3919_v20 = vor.u32 %v4096_v10, %v3916_v12 }
 0x412   : > { %2814 = vst [vmem:[#allocation2 + $0x1a0] sm:$0xff] %v2750_v29  ;;  %2356 = vmatmul.bf16.gmra.mxu2 %v3887_v24  ;;  %2187 = vmatmul.bf16.gmra.mxu1 %v3883_v27  ;;  %v3922_v24 = vld [vmem:[%s4838_s16 + $0x3e8] sm:$0xf]  ;;  %v4099_v27 = vld [vmem:[%s4838_s16 + $0x3f4] sm:$0xf0] }
 0x413   : > { %v2483_v37 = vpop.f32.mrf.mxu3  ;;  %v3924_v29 = vld [vmem:[%s4838_s16 + $0x3f8] sm:$0xf0]  ;;  %v3923_v35 = vor.u32 %v4099_v27, %v3922_v24 }
 0x414   : > { %v2484_v38 = vadd.f32 %v2483_v37, %v2315_v36  ;;  %v1215_v37 = vld [vmem:[#allocation2 + $0x90] sm:$0xff] }
 0x415   : > { %v2317_v34 = vpop.f32.mrf.mxu2  ;;  %v2655_v25 = vpop.f32.mrf.mxu0 }
 0x416   : > { %v2653_v26 = vadd.f32 %v2652_v22, %v2484_v38  ;;  %v2318_v47 = vadd.f32 %v2317_v34, %v2148_v28  ;;  %v4097_v28 = vld [vmem:[%s4838_s16 + $0x3ec] sm:$0xf] }
 0x417   : > { %v2150_v44 = vpop.f32.mrf.mxu1  ;;  %v3927_v36 = vor.u32 %v4097_v28, %v3924_v29 }
 0x418   : > { %v2751_v43 = vadd.f32 %v2653_v26, %v1211_v33  ;;  %2525 = vmatmul.bf16.gmra.mxu3 %v3891_v39  ;;  %2694 = vmatmul.bf16.gmra.mxu0 %v3895_v40 }
 0x41a   : > { %2815 = vst [vmem:[#allocation2 + $0x1f0] sm:$0xff] %v2751_v43  ;;  %v1216_v43 = vld [vmem:[#allocation2 + $0x1d8] sm:$0xff] }
 0x41b   : > { %v2486_v42 = vpop.f32.mrf.mxu3 }
 0x41c   : > { %v2487_v55 = vadd.f32 %v2486_v42, %v2318_v47 }
 0x41d   : > { %v2319_v57 = vpop.f32.mrf.mxu2  ;;  %v2657_v58 = vpop.f32.mrf.mxu0 }
 0x41e   : > { %v2656_v61 = vadd.f32 %v2655_v25, %v2487_v55  ;;  %v2320_v63 = vadd.f32 %v2319_v57, %v2150_v44  ;;  %v1217_v57 = vld [vmem:[#allocation2 + $0xd0] sm:$0xff] }
 0x41f   : > { %v2153_v49 = vpop.f32.mrf.mxu1 }
 0x420   : > { %v2752_v50 = vadd.f32 %v2656_v61, %v1212_v56 }
 0x422   : > { %2816 = vst [vmem:[#allocation2 + $0xe8] sm:$0xff] %v2752_v50  ;;  %2361 = vmatmul.bf16.gmra.mxu2 %v3903_v62  ;;  %2192 = vmatmul.bf16.gmra.mxu1 %v3899_v1 }
 0x423   : > { %v2488_v3 = vpop.f32.mrf.mxu3 }
 0x424   : > { %v2489_v60 = vadd.f32 %v2488_v3, %v2320_v63 }
 0x425   : > { %v2322_v6 = vpop.f32.mrf.mxu2  ;;  %v2660_v7 = vpop.f32.mrf.mxu0 }
 0x426   : > { %v2658_v41 = vadd.f32 %v2657_v58, %v2489_v60  ;;  %v2323_v9 = vadd.f32 %v2322_v6, %v2153_v49 }
 0x427   : > { %v2155_v45 = vpop.f32.mrf.mxu1 }
 0x428   : > { %v2753_v8 = vadd.f32 %v2658_v41, %v1213_v5  ;;  %2530 = vmatmul.bf16.gmra.mxu3 %v3907_v0  ;;  %2699 = vmatmul.bf16.gmra.mxu0 %v3911_v4 }
 0x42a   : > { %2817 = vst [vmem:[#allocation2 + $0x78] sm:$0xff] %v2753_v8 }
 0x42b   : > { %v2491_v11 = vpop.f32.mrf.mxu3 }
 0x42c   : > { %v2492_v15 = vadd.f32 %v2491_v11, %v2323_v9 }
 0x42d   : > { %v2324_v17 = vpop.f32.mrf.mxu2  ;;  %v2662_v18 = vpop.f32.mrf.mxu0 }
 0x42e   : > { %v2661_v19 = vadd.f32 %v2660_v7, %v2492_v15  ;;  %v2325_v30 = vadd.f32 %v2324_v17, %v2155_v45  ;;  %v1219_v7 = vld [vmem:[#allocation2 + $0x88] sm:$0xff] }
 0x42f   : > { %v2158_v22 = vpop.f32.mrf.mxu1 }
 0x430   : > { %v2754_v23 = vadd.f32 %v2661_v19, %v1214_v16 }
 0x432   : > { %2818 = vst [vmem:[#allocation2 + $0x70] sm:$0xff] %v2754_v23  ;;  %2366 = vmatmul.bf16.gmra.mxu2 %v3919_v20  ;;  %2197 = vmatmul.bf16.gmra.mxu1 %v3915_v21  ;;  %v1221_v23 = vld [vmem:[#allocation2 + $0x1c8] sm:$0xff] }
 0x433   : > { %v2493_v31 = vpop.f32.mrf.mxu3 }
 0x434   : > { %v2494_v32 = vadd.f32 %v2493_v31, %v2325_v30 }
 0x435   : > { %v2327_v38 = vpop.f32.mrf.mxu2  ;;  %v2665_v39 = vpop.f32.mrf.mxu0 }
 0x436   : > { %v2663_v40 = vadd.f32 %v2662_v18, %v2494_v32  ;;  %v2328_v25 = vadd.f32 %v2327_v38, %v2158_v22 }
 0x437   : > { %v2160_v33 = vpop.f32.mrf.mxu1 }
 0x438   : > { %v2755_v34 = vadd.f32 %v2663_v40, %v1215_v37  ;;  %2535 = vmatmul.bf16.gmra.mxu3 %v3923_v35  ;;  %2704 = vmatmul.bf16.gmra.mxu0 %v3927_v36  ;;  %v1222_v36 = vld [vmem:[#allocation2 + $0x170] sm:$0xff] }
 0x43a   : > { %2819 = vst [vmem:[#allocation2 + $0x90] sm:$0xff] %v2755_v34 }
 0x43b   : > { %v2496_v26 = vpop.f32.mrf.mxu3 }
 0x43c   : > { %v2497_v44 = vadd.f32 %v2496_v26, %v2328_v25 }
 0x43d   : > { %v2329_v47 = vpop.f32.mrf.mxu2  ;;  %v2667_v46 = vpop.f32.mrf.mxu0 }
 0x43e   : > { %v2666_v42 = vadd.f32 %v2665_v39, %v2497_v44  ;;  %v2330_v52 = vadd.f32 %v2329_v47, %v2160_v33  ;;  %v1223_v44 = vld [vmem:[#allocation2 + $0x178] sm:$0xff] }
 0x43f   : > { %v2163_v48 = vpop.f32.mrf.mxu1 }
 0x440   : > { %v2756_v51 = vadd.f32 %v2666_v42, %v1216_v43 }
 0x442   : > { %2820 = vst [vmem:[#allocation2 + $0x1d8] sm:$0xff] %v2756_v51 }
 0x443   : > { %v2498_v55 = vpop.f32.mrf.mxu3 }
 0x444   : > { %v2499_v56 = vadd.f32 %v2498_v55, %v2330_v52 }
 0x445   : > { %v2332_v58 = vpop.f32.mrf.mxu2  ;;  %v2670_v61 = vpop.f32.mrf.mxu0 }
 0x446   : > { %v2668_v62 = vadd.f32 %v2667_v46, %v2499_v56  ;;  %v2333_v50 = vadd.f32 %v2332_v58, %v2163_v48  ;;  %v1224_v56 = vld [vmem:[#allocation2 + $0x68] sm:$0xff] }
 0x447   : > { %v2165_v1 = vpop.f32.mrf.mxu1 }
 0x448   : > { %v2757_v49 = vadd.f32 %v2668_v62, %v1217_v57 }
 0x44a   : > { %2821 = vst [vmem:[#allocation2 + $0xd0] sm:$0xff] %v2757_v49 }
 0x44b   : > { %v2501_v53 = vpop.f32.mrf.mxu3 }
 0x44c   : > { %v2502_v54 = vadd.f32 %v2501_v53, %v2333_v50 }
 0x44d   : > { %v2334_v59 = vpop.f32.mrf.mxu2  ;;  %v2672_v63 = vpop.f32.mrf.mxu0 }
 0x44e   : > { %v2671_v3 = vadd.f32 %v2670_v61, %v2502_v54  ;;  %v2335_v4 = vadd.f32 %v2334_v59, %v2165_v1  ;;  %v1225_v54 = vld [vmem:[#allocation2 + $0x190] sm:$0xff] }
 0x44f   : > { %v2168_v60 = vpop.f32.mrf.mxu1 }
 0x450   : > { %v2758_v0 = vadd.f32 %v2671_v3, %v1218_v2 }
 0x452   : > { %2822 = vst [vmem:[#allocation2 + $0xb8] sm:$0xff] %v2758_v0 }
 0x453   : > { %v2503_v5 = vpop.f32.mrf.mxu3 }
 0x454   : > { %v2504_v6 = vadd.f32 %v2503_v5, %v2335_v4 }
 0x455   : > { %v2337_v41 = vpop.f32.mrf.mxu2  ;;  %v2675_v45 = vpop.f32.mrf.mxu0 }
 0x456   : > { %v2673_v8 = vadd.f32 %v2672_v63, %v2504_v6  ;;  %v2338_v11 = vadd.f32 %v2337_v41, %v2168_v60  ;;  %v1226_v6 = vld [vmem:[#allocation2 + $0x198] sm:$0xff] }
 0x457   : > { %v2170_v9 = vpop.f32.mrf.mxu1 }
 0x458   : > { %v2759_v10 = vadd.f32 %v2673_v8, %v1219_v7 }
 0x45a   : > { %2823 = vst [vmem:[#allocation2 + $0x88] sm:$0xff] %v2759_v10 }
 0x45b   : > { %v2506_v12 = vpop.f32.mrf.mxu3 }
 0x45c   : > { %v2507_v13 = vadd.f32 %v2506_v12, %v2338_v11 }
 0x45d   : > { %v2339_v15 = vpop.f32.mrf.mxu2  ;;  %v2677_v16 = vpop.f32.mrf.mxu0 }
 0x45e   : > { %v2676_v17 = vadd.f32 %v2675_v45, %v2507_v13  ;;  %v2340_v20 = vadd.f32 %v2339_v15, %v2170_v9  ;;  %v1227_v13 = vld [vmem:[#allocation2 + $0x38] sm:$0xff] }
 0x45f   : > { %v2173_v18 = vpop.f32.mrf.mxu1 }
 0x460   : > { %v2760_v19 = vadd.f32 %v2676_v17, %v1220_v14 }
 0x462   : > { %2824 = vst [vmem:[#allocation2 + $0xa8] sm:$0xff] %v2760_v19 }
 0x463   : > { %v2508_v21 = vpop.f32.mrf.mxu3 }
 0x464   : > { %v2509_v22 = vadd.f32 %v2508_v21, %v2340_v20 }
 0x465   : > { %v2342_v24 = vpop.f32.mrf.mxu2  ;;  %v2680_v27 = vpop.f32.mrf.mxu0 }
 0x466   : > { %v2678_v28 = vadd.f32 %v2677_v16, %v2509_v22  ;;  %v2343_v31 = vadd.f32 %v2342_v24, %v2173_v18  ;;  %v1228_v22 = vld [vmem:[#allocation2 + $0xc0] sm:$0xff] }
 0x467   : > { %v2175_v29 = vpop.f32.mrf.mxu1 }
 0x468   : > { %v2761_v30 = vadd.f32 %v2678_v28, %v1221_v23 }
 0x46a   : > { %2825 = vst [vmem:[#allocation2 + $0x1c8] sm:$0xff] %v2761_v30 }
 0x46b   : > { %v2511_v32 = vpop.f32.mrf.mxu3 }
 0x46c   : > { %v2512_v35 = vadd.f32 %v2511_v32, %v2343_v31 }
 0x46d   : > { %v2344_v37 = vpop.f32.mrf.mxu2  ;;  %v2682_v38 = vpop.f32.mrf.mxu0 }
 0x46e   : > { %v2681_v39 = vadd.f32 %v2680_v27, %v2512_v35  ;;  %v2345_v34 = vadd.f32 %v2344_v37, %v2175_v29  ;;  %v1229_v35 = vld [vmem:[#allocation2 + $0x1c0] sm:$0xff] }
 0x46f   : > { %v2178_v40 = vpop.f32.mrf.mxu1 }
 0x470   : > { %v2762_v33 = vadd.f32 %v2681_v39, %v1222_v36 }
 0x472   : > { %2826 = vst [vmem:[#allocation2 + $0x170] sm:$0xff] %v2762_v33 }
 0x473   : > { %v2513_v25 = vpop.f32.mrf.mxu3 }
 0x474   : > { %v2514_v26 = vadd.f32 %v2513_v25, %v2345_v34  ;;  %v1230_v25 = vld [vmem:[#allocation2 + $0x158] sm:$0xff] }
 0x475   : > { %v2347_v43 = vpop.f32.mrf.mxu2  ;;  %v2685_v47 = vpop.f32.mrf.mxu0 }
 0x476   : > { %v2683_v46 = vadd.f32 %v2682_v38, %v2514_v26  ;;  %v2348_v51 = vadd.f32 %v2347_v43, %v2178_v40 }
 0x477   : > { %v2180_v42 = vpop.f32.mrf.mxu1 }
 0x478   : > { %v2763_v48 = vadd.f32 %v2683_v46, %v1223_v44 }
 0x47a   : > { %2827 = vst [vmem:[#allocation2 + $0x178] sm:$0xff] %v2763_v48 }
 0x47b   : > { %v2516_v52 = vpop.f32.mrf.mxu3 }
 0x47c   : > { %v2517_v55 = vadd.f32 %v2516_v52, %v2348_v51  ;;  %v1231_v52 = vld [vmem:[#allocation2 + $0x10] sm:$0xff] }
 0x47d   : > { %v2349_v57 = vpop.f32.mrf.mxu2  ;;  %v2687_v58 = vpop.f32.mrf.mxu0 }
 0x47e   : > { %v2686_v61 = vadd.f32 %v2685_v47, %v2517_v55  ;;  %v2350_v49 = vadd.f32 %v2349_v57, %v2180_v42 }
 0x47f   : > { %v2183_v62 = vpop.f32.mrf.mxu1 }
 0x480   : > { %v2764_v1 = vadd.f32 %v2686_v61, %v1224_v56 }
 0x482   : > { %2828 = vst [vmem:[#allocation2 + $0x68] sm:$0xff] %v2764_v1 }
 0x483   : > { %v2518_v50 = vpop.f32.mrf.mxu3 }
 0x484   : > { %v2519_v53 = vadd.f32 %v2518_v50, %v2350_v49  ;;  %v1232_v50 = vld [vmem:[#allocation2 + $0x58] sm:$0xff] }
 0x485   : > { %v2352_v2 = vpop.f32.mrf.mxu2  ;;  %v2690_v59 = vpop.f32.mrf.mxu0 }
 0x486   : > { %v2688_v63 = vadd.f32 %v2687_v58, %v2519_v53  ;;  %v2353_v0 = vadd.f32 %v2352_v2, %v2183_v62 }
 0x487   : > { %v2185_v3 = vpop.f32.mrf.mxu1 }
 0x488   : > { %v2765_v60 = vadd.f32 %v2688_v63, %v1225_v54 }
 0x48a   : > { %2829 = vst [vmem:[#allocation2 + $0x190] sm:$0xff] %v2765_v60 }
 0x48b   : > { %v2521_v4 = vpop.f32.mrf.mxu3 }
 0x48c   : > { %v2522_v5 = vadd.f32 %v2521_v4, %v2353_v0  ;;  %v1233_v0 = vld [vmem:[#allocation2 + $0xa0] sm:$0xff] }
 0x48d   : > { %v2354_v7 = vpop.f32.mrf.mxu2  ;;  %v2692_v41 = vpop.f32.mrf.mxu0 }
 0x48e   : > { %v2691_v45 = vadd.f32 %v2690_v59, %v2522_v5  ;;  %v2355_v10 = vadd.f32 %v2354_v7, %v2185_v3 }
 0x48f   : > { %v2188_v8 = vpop.f32.mrf.mxu1 }
 0x490   : > { %v2766_v9 = vadd.f32 %v2691_v45, %v1226_v6 }
 0x492   : > { %2830 = vst [vmem:[#allocation2 + $0x198] sm:$0xff] %v2766_v9 }
 0x493   : > { %v2523_v11 = vpop.f32.mrf.mxu3 }
 0x494   : > { %v2524_v12 = vadd.f32 %v2523_v11, %v2355_v10 }
 0x495   : > { %v2357_v14 = vpop.f32.mrf.mxu2  ;;  %v2695_v15 = vpop.f32.mrf.mxu0 }
 0x496   : > { %v2693_v16 = vadd.f32 %v2692_v41, %v2524_v12  ;;  %v2358_v18 = vadd.f32 %v2357_v14, %v2188_v8 }
 0x497   : > { %v2190_v19 = vpop.f32.mrf.mxu1 }
 0x498   : > { %v2767_v17 = vadd.f32 %v2693_v16, %v1227_v13 }
 0x49a   : > { %2831 = vst [vmem:[#allocation2 + $0x38] sm:$0xff] %v2767_v17 }
 0x49b   : > { %v2526_v20 = vpop.f32.mrf.mxu3 }
 0x49c   : > { %v2527_v21 = vadd.f32 %v2526_v20, %v2358_v18 }
 0x49d   : > { %v2359_v23 = vpop.f32.mrf.mxu2  ;;  %v2697_v24 = vpop.f32.mrf.mxu0 }
 0x49e   : > { %v2696_v27 = vadd.f32 %v2695_v15, %v2527_v21  ;;  %v2360_v29 = vadd.f32 %v2359_v23, %v2190_v19 }
 0x49f   : > { %v2193_v31 = vpop.f32.mrf.mxu1 }
 0x4a0   : > { %v2768_v28 = vadd.f32 %v2696_v27, %v1228_v22 }
 0x4a2   : > { %2832 = vst [vmem:[#allocation2 + $0xc0] sm:$0xff] %v2768_v28 }
 0x4a3   : > { %v2528_v30 = vpop.f32.mrf.mxu3 }
 0x4a4   : > { %v2529_v32 = vadd.f32 %v2528_v30, %v2360_v29 }
 0x4a5   : > { %v2362_v36 = vpop.f32.mrf.mxu2  ;;  %v2700_v38 = vpop.f32.mrf.mxu0 }
 0x4a6   : > { %v2698_v37 = vadd.f32 %v2697_v24, %v2529_v32  ;;  %v2363_v40 = vadd.f32 %v2362_v36, %v2193_v31 }
 0x4a7   : > { %v2195_v26 = vpop.f32.mrf.mxu1 }
 0x4a8   : > { %v2769_v39 = vadd.f32 %v2698_v37, %v1229_v35 }
 0x4aa   : > { %2833 = vst [vmem:[#allocation2 + $0x1c0] sm:$0xff] %v2769_v39 }
 0x4ab   : > { %v2531_v33 = vpop.f32.mrf.mxu3 }
 0x4ac   : > { %v2532_v34 = vadd.f32 %v2531_v33, %v2363_v40 }
 0x4ad   : > { %v2364_v44 = vpop.f32.mrf.mxu2  ;;  %v2702_v46 = vpop.f32.mrf.mxu0 }
 0x4ae   : > { %v2701_v43 = vadd.f32 %v2700_v38, %v2532_v34  ;;  %v2365_v42 = vadd.f32 %v2364_v44, %v2195_v26 }
 0x4af   : > { %v2198_v57 = vpop.f32.mrf.mxu1 }
 0x4b0   : > { %v2770_v47 = vadd.f32 %v2701_v43, %v1230_v25 }
 0x4b2   : > { %2834 = vst [vmem:[#allocation2 + $0x158] sm:$0xff] %v2770_v47 }
 0x4b3   : > { %v2533_v48 = vpop.f32.mrf.mxu3 }
 0x4b4   : > { %v2534_v51 = vadd.f32 %v2533_v48, %v2365_v42 }
 0x4b5   : > { %v2367_v55 = vpop.f32.mrf.mxu2  ;;  %v2705_v1 = vpop.f32.mrf.mxu0 }
 0x4b6   : > { %v2703_v56 = vadd.f32 %v2702_v46, %v2534_v51  ;;  %v2368_v61 = vadd.f32 %v2367_v55, %v2198_v57 }
 0x4b7   : > { %v2200_v59 = vpop.f32.mrf.mxu1 }
 0x4b8   : > { %v2771_v58 = vadd.f32 %v2703_v56, %v1231_v52 }
 0x4ba   : > { %2835 = vst [vmem:[#allocation2 + $0x10] sm:$0xff] %v2771_v58 }
 0x4bb   : > { %v2536_v62 = vpop.f32.mrf.mxu3 }
 0x4bc   : > { %v2537_v49 = vadd.f32 %v2536_v62, %v2368_v61 }
 0x4bd   : > { %v2369_v54 = vpop.f32.mrf.mxu2  ;;  %v2707_v4 = vpop.f32.mrf.mxu0 }
 0x4be   : > { %v2706_v53 = vadd.f32 %v2705_v1, %v2537_v49  ;;  %v2370_v63 = vadd.f32 %v2369_v54, %v2200_v59 }
 0x4c0   : > { %v2772_v2 = vadd.f32 %v2706_v53, %v1232_v50 }
 0x4c2   : > { %2836 = vst [vmem:[#allocation2 + $0x58] sm:$0xff] %v2772_v2 }
 0x4c3   : > { %v2538_v3 = vpop.f32.mrf.mxu3 }
 0x4c4   : > { %v2539_v60 = vadd.f32 %v2538_v3, %v2370_v63 }
 0x4c6   : > { %v2708_v5 = vadd.f32 %v2707_v4, %v2539_v60 }
 0x4c8   : > { %v2773_v6 = vadd.f32 %v2708_v5, %v1233_v0 }
 0x4ca   : > { %2837 = vst [vmem:[#allocation2 + $0xa0] sm:$0xff] %v2773_v6 }
 0x4cb PF: > { %p3928_p0 = scmp.ne.s32.totalorder %s4439_s7, 1 }
 0x4cd   : > { %2841 = sbr.rel (%p3928_p0) target bundleno = 1272 (0x4f8), region = 71 }
 0x4d2   : > { %v2842_v7 = vld [vmem:[#allocation2 + $0xb0] sm:$0xff]  ;;  %v5325_v45 = vld [vmem:[%s5448_s5] ss:$0 sm:$0xff]  ;;  %v2844_v8 = vld [vmem:[#allocation2 + $0xd8] sm:$0xff] }
 0x4d3   : > { %v2843_v41 = vld [vmem:[#allocation2 + $0x1b0] sm:$0xff]  ;;  %v2845_v9 = vld [vmem:[#allocation2 + $0x18] sm:$0xff]  ;;  %v2847_v11 = vld [vmem:[#allocation2 + $0x168] sm:$0xff]  ;;  %v2910_v13 = vadd.f32 %v5325_v45, %v2842_v7  ;;  %v2912_v15 = vadd.f32 %v5325_v45, %v2844_v8 }
 0x4d4   : > { %v2846_v10 = vld [vmem:[#allocation2 + $0x50] sm:$0xff]  ;;  %v2911_v14 = vadd.f32 %v5325_v45, %v2843_v41  ;;  %v2913_v16 = vadd.f32 %v5325_v45, %v2845_v9  ;;  %v2849_v17 = vld [vmem:[#allocation2 + $0x48] sm:$0xff]  ;;  %v2850_v18 = vld [vmem:[#allocation2 + $0x180] sm:$0xff]  ;;  %v2915_v21 = vadd.f32 %v5325_v45, %v2847_v11 }
 0x4d5   : > { %v2848_v12 = vld [vmem:[#allocation2 + $0x130] sm:$0xff]  ;;  %v2914_v20 = vadd.f32 %v5325_v45, %v2846_v10  ;;  %v2917_v23 = vadd.f32 %v5325_v45, %v2849_v17  ;;  %v2852_v24 = vld [vmem:[#allocation2 + $0x118] sm:$0xff]  ;;  %v2854_v28 = vld [vmem:[#allocation2 + $0x120] sm:$0xff]  ;;  %v2918_v31 = vadd.f32 %v5325_v45, %v2850_v18 }
 0x4d6   : > { %v2851_v19 = vld [vmem:[#allocation2 + $0x110] sm:$0xff]  ;;  %v2916_v22 = vadd.f32 %v5325_v45, %v2848_v12  ;;  %v2853_v27 = vld [vmem:[#allocation2 + $0x98] sm:$0xff]  ;;  %v4103_v29 = vpack.c.bf16 %v2911_v14, %v2910_v13  ;;  %v4108_v30 = vpack.c.bf16 %v2913_v16, %v2912_v15  ;;  %v2856_v36 = vld [vmem:[#allocation2 + $0x108] sm:$0xff]  ;;  %v2920_v40 = vadd.f32 %v5325_v45, %v2852_v24 }
 0x4d7   : > { %v2919_v32 = vadd.f32 %v5325_v45, %v2851_v19  ;;  %v2855_v35 = vld [vmem:[#allocation2 + $0x150] sm:$0xff]  ;;  %v2857_v37 = vld [vmem:[#allocation2 + $0x60] sm:$0xff]  ;;  %v4113_v38 = vpack.c.bf16 %v2915_v21, %v2914_v20  ;;  %v2921_v33 = vadd.f32 %v5325_v45, %v2853_v27  ;;  %v2859_v25 = vld [vmem:[#allocation2 + $0x188] sm:$0xff]  ;;  %v2922_v43 = vadd.f32 %v5325_v45, %v2854_v28 }
 0x4d8   : > { %v4118_v39 = vpack.c.bf16 %v2917_v23, %v2916_v22  ;;  %v2858_v34 = vld [vmem:[#allocation2 + $0xe0] sm:$0xff]  ;;  %v2860_v26 = vld [vmem:[#allocation2 + $0x138] sm:$0xff]  ;;  %4104 = vst [vmem:[%s4831_s28] sm:$0xff] %v4103_v29   ;;  %v2923_v47 = vadd.f32 %v5325_v45, %v2855_v35  ;;  %v2924_v46 = vadd.f32 %v5325_v45, %v2856_v36  ;;  %v2863_v51 = vld [vmem:[#allocation2 + $0x1a8] sm:$0xff]  ;;  %v2925_v55 = vadd.f32 %v5325_v45, %v2857_v37 }
 0x4d9   : > { %v4123_v44 = vpack.c.bf16 %v2919_v32, %v2918_v31  ;;  %v2861_v42 = vld [vmem:[#allocation2 + $0x140] sm:$0xff]  ;;  %4260 = vst [vmem:[%s4831_s28 + $0x8] sm:$0xff] %v4108_v30   ;;  %v4128_v52 = vpack.c.bf16 %v2921_v33, %v2920_v40  ;;  %v2926_v56 = vadd.f32 %v5325_v45, %v2858_v34  ;;  %v2927_v57 = vadd.f32 %v5325_v45, %v2859_v25  ;;  %v2864_v58 = vld [vmem:[#allocation2 + $0x1b8] sm:$0xff]  ;;  %v2865_v61 = vld [vmem:[#allocation2 + $0x28] sm:$0xff] }
 0x4da   : > { %v2862_v48 = vld [vmem:[#allocation2 + $0x80] sm:$0xff]  ;;  %v2866_v62 = vld [vmem:[#allocation2 + $0x1e8] sm:$0xff]  ;;  %4261 = vst [vmem:[%s4831_s28 + $0x10] sm:$0xff] %v4113_v38   ;;  %v4133_v1 = vpack.c.bf16 %v2923_v47, %v2922_v43  ;;  %v2928_v49 = vadd.f32 %v5325_v45, %v2860_v26  ;;  %v2929_v50 = vadd.f32 %v5325_v45, %v2861_v42  ;;  %v2867_v54 = vld [vmem:[#allocation2 + $0xf8] sm:$0xff]  ;;  %v4138_v63 = vpack.c.bf16 %v2925_v55, %v2924_v46 }
 0x4db   : > { %v2930_v53 = vadd.f32 %v5325_v45, %v2862_v48  ;;  %v2868_v2 = vld [vmem:[#allocation2 + $0x160] sm:$0xff]  ;;  %v2869_v59 = vld [vmem:[#allocation2 + $0x30] sm:$0xff]  ;;  %4262 = vst [vmem:[%s4831_s28 + $0x18] sm:$0xff] %v4118_v39   ;;  %v2931_v3 = vadd.f32 %v5325_v45, %v2863_v51  ;;  %v2932_v60 = vadd.f32 %v5325_v45, %v2864_v58  ;;  %v4143_v5 = vpack.c.bf16 %v2927_v57, %v2926_v56  ;;  %v2873_v9 = vld [vmem:[#allocation2 + $0x8] sm:$0xff] }
 0x4dc   : > { %v2870_v0 = vld [vmem:[#allocation2 + $0x1e0] sm:$0xff]  ;;  %4263 = vst [vmem:[%s4831_s28 + $0x20] sm:$0xff] %v4123_v44   ;;  %v2933_v6 = vadd.f32 %v5325_v45, %v2865_v61  ;;  %v2934_v7 = vadd.f32 %v5325_v45, %v2866_v62  ;;  %v2935_v41 = vadd.f32 %v5325_v45, %v2867_v54  ;;  %v2872_v8 = vld [vmem:[#allocation2 + $0xf0] sm:$0xff]  ;;  %v4148_v10 = vpack.c.bf16 %v2929_v50, %v2928_v49  ;;  %v2874_v13 = vld [vmem:[#allocation2 + $0x148] sm:$0xff] }
 0x4dd   : > { %v2871_v4 = vld [vmem:[#allocation2] sm:$0xff]  ;;  %4264 = vst [vmem:[%s4831_s28 + $0x28] sm:$0xff] %v4128_v52   ;;  %v2936_v11 = vadd.f32 %v5325_v45, %v2868_v2  ;;  %v2937_v12 = vadd.f32 %v5325_v45, %v2869_v59  ;;  %v2875_v14 = vld [vmem:[#allocation2 + $0x1d0] sm:$0xff]  ;;  %v4153_v15 = vpack.c.bf16 %v2931_v3, %v2930_v53  ;;  %v2938_v16 = vadd.f32 %v5325_v45, %v2870_v0  ;;  %v2877_v19 = vld [vmem:[#allocation2 + $0xc8] sm:$0xff] }
 0x4de   : > { %4265 = vst [vmem:[%s4831_s28 + $0x30] sm:$0xff] %v4133_v1   ;;  %v2939_v17 = vadd.f32 %v5325_v45, %v2871_v4  ;;  %v2876_v18 = vld [vmem:[#allocation2 + $0x100] sm:$0xff]  ;;  %v4158_v20 = vpack.c.bf16 %v2933_v6, %v2932_v60  ;;  %v2940_v21 = vadd.f32 %v5325_v45, %v2872_v8  ;;  %v2941_v22 = vadd.f32 %v5325_v45, %v2873_v9  ;;  %v2879_v24 = vld [vmem:[#allocation2 + $0x1f8] sm:$0xff]  ;;  %v2881_v31 = vld [vmem:[#allocation2 + $0x128] sm:$0xff] }
 0x4df   : > { %4266 = vst [vmem:[%s4831_s28 + $0x38] sm:$0xff] %v4138_v63   ;;  %v2878_v23 = vld [vmem:[#allocation2 + $0x40] sm:$0xff]  ;;  %v4163_v27 = vpack.c.bf16 %v2935_v41, %v2934_v7  ;;  %v2942_v28 = vadd.f32 %v5325_v45, %v2874_v13  ;;  %v2943_v29 = vadd.f32 %v5325_v45, %v2875_v14  ;;  %v4168_v32 = vpack.c.bf16 %v2937_v12, %v2936_v11  ;;  %v2883_v38 = vld [vmem:[#allocation2 + $0x1f0] sm:$0xff]  ;;  %v2884_v34 = vld [vmem:[#allocation2 + $0xe8] sm:$0xff] }
 0x4e0   : > { %4267 = vst [vmem:[%s4831_s28 + $0x40] sm:$0xff] %v4143_v5   ;;  %v2880_v30 = vld [vmem:[#allocation2 + $0x20] sm:$0xff]  ;;  %v2944_v35 = vadd.f32 %v5325_v45, %v2876_v18  ;;  %v2945_v36 = vadd.f32 %v5325_v45, %v2877_v19  ;;  %v4173_v39 = vpack.c.bf16 %v2939_v17, %v2938_v16  ;;  %v2946_v40 = vadd.f32 %v5325_v45, %v2878_v23  ;;  %v2885_v25 = vld [vmem:[#allocation2 + $0x78] sm:$0xff]  ;;  %v2886_v47 = vld [vmem:[#allocation2 + $0x70] sm:$0xff] }
 0x4e1   : > { %4268 = vst [vmem:[%s4831_s28 + $0x48] sm:$0xff] %v4148_v10   ;;  %v2882_v37 = vld [vmem:[#allocation2 + $0x1a0] sm:$0xff]  ;;  %v2947_v33 = vadd.f32 %v5325_v45, %v2879_v24  ;;  %v4178_v26 = vpack.c.bf16 %v2941_v22, %v2940_v21  ;;  %v2948_v44 = vadd.f32 %v5325_v45, %v2880_v30  ;;  %v2949_v43 = vadd.f32 %v5325_v45, %v2881_v31  ;;  %v2887_v46 = vld [vmem:[#allocation2 + $0x90] sm:$0xff]  ;;  %v2888_v52 = vld [vmem:[#allocation2 + $0x1d8] sm:$0xff] }
 0x4e2   : > { %4269 = vst [vmem:[%s4831_s28 + $0x50] sm:$0xff] %v4153_v15   ;;  %v4183_v42 = vpack.c.bf16 %v2943_v29, %v2942_v28  ;;  %v2950_v48 = vadd.f32 %v5325_v45, %v2882_v37  ;;  %v2951_v51 = vadd.f32 %v5325_v45, %v2883_v38  ;;  %v2889_v55 = vld [vmem:[#allocation2 + $0xd0] sm:$0xff]  ;;  %v4188_v56 = vpack.c.bf16 %v2945_v36, %v2944_v35  ;;  %v2890_v61 = vld [vmem:[#allocation2 + $0xb8] sm:$0xff]  ;;  %v2891_v62 = vld [vmem:[#allocation2 + $0x88] sm:$0xff] }
 0x4e3   : > { %4270 = vst [vmem:[%s4831_s28 + $0x58] sm:$0xff] %v4158_v20   ;;  %v2952_v57 = vadd.f32 %v5325_v45, %v2884_v34  ;;  %v2953_v58 = vadd.f32 %v5325_v45, %v2885_v25  ;;  %v4193_v1 = vpack.c.bf16 %v2947_v33, %v2946_v40  ;;  %v2954_v49 = vadd.f32 %v5325_v45, %v2886_v47  ;;  %v2892_v53 = vld [vmem:[#allocation2 + $0xa8] sm:$0xff]  ;;  %v2894_v3 = vld [vmem:[#allocation2 + $0x170] sm:$0xff]  ;;  %v2895_v60 = vld [vmem:[#allocation2 + $0x178] sm:$0xff] }
 0x4e4   : > { %4271 = vst [vmem:[%s4831_s28 + $0x60] sm:$0xff] %v4163_v27   ;;  %v2955_v50 = vadd.f32 %v5325_v45, %v2887_v46  ;;  %v2893_v54 = vld [vmem:[#allocation2 + $0x1c8] sm:$0xff]  ;;  %v4198_v2 = vpack.c.bf16 %v2949_v43, %v2948_v44  ;;  %v2956_v59 = vadd.f32 %v5325_v45, %v2888_v52  ;;  %v2957_v63 = vadd.f32 %v5325_v45, %v2889_v55  ;;  %v2897_v7 = vld [vmem:[#allocation2 + $0x190] sm:$0xff]  ;;  %v2898_v10 = vld [vmem:[#allocation2 + $0x198] sm:$0xff] }
 0x4e5   : > { %4272 = vst [vmem:[%s4831_s28 + $0x68] sm:$0xff] %v4168_v32   ;;  %v4203_v0 = vpack.c.bf16 %v2951_v51, %v2950_v48  ;;  %v2958_v4 = vadd.f32 %v5325_v45, %v2890_v61  ;;  %v2959_v5 = vadd.f32 %v5325_v45, %v2891_v62  ;;  %v2896_v6 = vld [vmem:[#allocation2 + $0x68] sm:$0xff]  ;;  %v4208_v41 = vpack.c.bf16 %v2953_v58, %v2952_v57  ;;  %v2899_v11 = vld [vmem:[#allocation2 + $0x38] sm:$0xff]  ;;  %v2900_v15 = vld [vmem:[#allocation2 + $0xc0] sm:$0xff] }
 0x4e6   : > { %4273 = vst [vmem:[%s4831_s28 + $0x70] sm:$0xff] %v4173_v39   ;;  %v2960_v8 = vadd.f32 %v5325_v45, %v2892_v53  ;;  %v2961_v9 = vadd.f32 %v5325_v45, %v2893_v54  ;;  %v4213_v12 = vpack.c.bf16 %v2955_v50, %v2954_v49  ;;  %v2962_v13 = vadd.f32 %v5325_v45, %v2894_v3  ;;  %v2901_v16 = vld [vmem:[#allocation2 + $0x1c0] sm:$0xff]  ;;  %v2902_v20 = vld [vmem:[#allocation2 + $0x158] sm:$0xff]  ;;  %v2903_v21 = vld [vmem:[#allocation2 + $0x10] sm:$0xff] }
 0x4e7   : > { %4274 = vst [vmem:[%s4831_s28 + $0x78] sm:$0xff] %v4178_v26   ;;  %v2963_v14 = vadd.f32 %v5325_v45, %v2895_v60  ;;  %v4218_v17 = vpack.c.bf16 %v2957_v63, %v2956_v59  ;;  %v2964_v18 = vadd.f32 %v5325_v45, %v2896_v6  ;;  %v2965_v19 = vadd.f32 %v5325_v45, %v2897_v7  ;;  %v2904_v27 = vld [vmem:[#allocation2 + $0x58] sm:$0xff]  ;;  %v2905_v28 = vld [vmem:[#allocation2 + $0xa0] sm:$0xff] }
 0x4e8   : > { %4275 = vst [vmem:[%s4831_s28 + $0x80] sm:$0xff] %v4183_v42   ;;  %v4223_v22 = vpack.c.bf16 %v2959_v5, %v2958_v4  ;;  %v2966_v23 = vadd.f32 %v5325_v45, %v2898_v10  ;;  %v2967_v24 = vadd.f32 %v5325_v45, %v2899_v11  ;;  %v4228_v29 = vpack.c.bf16 %v2961_v9, %v2960_v8 }
 0x4e9   : > { %4276 = vst [vmem:[%s4831_s28 + $0x88] sm:$0xff] %v4188_v56   ;;  %v2968_v30 = vadd.f32 %v5325_v45, %v2900_v15  ;;  %v2969_v31 = vadd.f32 %v5325_v45, %v2901_v16  ;;  %v4233_v32 = vpack.c.bf16 %v2963_v14, %v2962_v13  ;;  %v2970_v35 = vadd.f32 %v5325_v45, %v2902_v20 }
 0x4ea   : > { %4277 = vst [vmem:[%s4831_s28 + $0x90] sm:$0xff] %v4193_v1   ;;  %v2971_v36 = vadd.f32 %v5325_v45, %v2903_v21  ;;  %v4238_v37 = vpack.c.bf16 %v2965_v19, %v2964_v18  ;;  %v2972_v38 = vadd.f32 %v5325_v45, %v2904_v27  ;;  %v2973_v39 = vadd.f32 %v5325_v45, %v2905_v28 }
 0x4eb   : > { %4278 = vst [vmem:[%s4831_s28 + $0x98] sm:$0xff] %v4198_v2   ;;  %v4243_v40 = vpack.c.bf16 %v2967_v24, %v2966_v23  ;;  %v4248_v33 = vpack.c.bf16 %v2969_v31, %v2968_v30 }
 0x4ec   : > { %4279 = vst [vmem:[%s4831_s28 + $0xa0] sm:$0xff] %v4203_v0   ;;  %v4253_v34 = vpack.c.bf16 %v2971_v36, %v2970_v35  ;;  %v4258_v25 = vpack.c.bf16 %v2973_v39, %v2972_v38 }
 0x4ed   : > { %4280 = vst [vmem:[%s4831_s28 + $0xa8] sm:$0xff] %v4208_v41  }
 0x4ee   : > { %4281 = vst [vmem:[%s4831_s28 + $0xb0] sm:$0xff] %v4213_v12  }
 0x4ef   : > { %4282 = vst [vmem:[%s4831_s28 + $0xb8] sm:$0xff] %v4218_v17  }
 0x4f0   : > { %4283 = vst [vmem:[%s4831_s28 + $0xc0] sm:$0xff] %v4223_v22  }
 0x4f1   : > { %4284 = vst [vmem:[%s4831_s28 + $0xc8] sm:$0xff] %v4228_v29  }
 0x4f2   : > { %4285 = vst [vmem:[%s4831_s28 + $0xd0] sm:$0xff] %v4233_v32  }
 0x4f3   : > { %4286 = vst [vmem:[%s4831_s28 + $0xd8] sm:$0xff] %v4238_v37  }
 0x4f4   : > { %4287 = vst [vmem:[%s4831_s28 + $0xe0] sm:$0xff] %v4243_v40  }
 0x4f5   : > { %4288 = vst [vmem:[%s4831_s28 + $0xe8] sm:$0xff] %v4248_v33  }
 0x4f6   : > { %4289 = vst [vmem:[%s4831_s28 + $0xf0] sm:$0xff] %v4253_v34  }
 0x4f7   : > { %4290 = vst [vmem:[%s4831_s28 + $0xf8] sm:$0xff] %v4258_v25  }
 0x4f8 PF: > { %s29_s9 = sadd.s32 1, %s4455_s9   ;;  %s5471_s29 = smov %s4435_s30 }
 0x4f9   : > { %p26_p1 = scmp.ge.s32.totalorder %s29_s9, 6   ;;  %s5472_s30 = smov %s4554_s22 }
 0x4fa   : > { %s5473_s7 = smov %s4447_s8  ;;  %s5474_s0 = smov %s4451_s1 }
 0x4fb   : > { %s5475_s8 = smov %s5480_s10  ;;  %s5476_s1 = smov %s5482_s11 }
 0x4fc   :  { %28 = sbr.rel (!%p26_p1) target bundleno = 11 (0xb), region = 115 }

</bundles_post_ra>
